<compile_context>
chip_gen: v5e
topology: v5e:2x2
jax: 0.10.0
libtpu: 0.0.40
codegen_flags: <defaults>
</compile_context>

<pallas_src>
import functools
import math

import jax
import jax.numpy as jnp
from jax.experimental import pallas as pl
from jax.experimental.pallas import tpu as pltpu


def _round_up(x, m):
    return ((x + m - 1) // m) * m


def _vmem_limit_bytes():
    """Per-core VMEM limit for pallas_call: 88 MiB on 128-MiB parts
    (v5e/v6e), 48 MiB otherwise (safe on v7x's 64 MiB per core)."""
    try:
        kind = jax.devices()[0].device_kind.lower()
    except Exception:
        kind = ""
    if ("v5" in kind) or ("v6" in kind):
        return 88 * 1024 * 1024
    return 48 * 1024 * 1024


def _pick_tile_m(m, per_row_bytes, resident_bytes, budget_bytes):
    """Pick an M tile: small M -> one (8-aligned) block; otherwise the largest
    128-multiple tile that fits the VMEM budget, preferring >=2 grid steps so
    both v7x TensorCores get work."""
    if m <= 128:
        return _round_up(max(m, 8), 8)
    fitting = [t for t in (1024, 512, 256, 128)
               if resident_bytes + t * per_row_bytes <= budget_bytes]
    if not fitting:
        fitting = [128]
    two_step = [t for t in fitting if (m + t - 1) // t >= 2]
    return max(two_step) if two_step else max(fitting)


# ----------------------------------------------------------------------------
# Fused Conv3x3 (stride 1, pad 1) + bias + ReLU [+ MaxPool 2x2]
# ----------------------------------------------------------------------------
def _conv_relu_pool_kernel(p_ref, w_ref, b_ref, o_ref, *, nwin):
    # p_ref: (nwin, TM, K)  bf16 im2col taps, one slab per 2x2-pool position
    # w_ref: (K, Npad)      bf16 (9 taps folded into K; Cout padded to 128)
    # b_ref: (1, Npad)      f32
    # o_ref: (TM, Npad)     bf16
    w = w_ref[...]
    acc = jnp.dot(p_ref[0], w, preferred_element_type=jnp.float32)
    for a in range(1, nwin):                       # unrolled (nwin is 1 or 4)
        acc = jnp.maximum(
            acc, jnp.dot(p_ref[a], w, preferred_element_type=jnp.float32))
    # bias once after the max (max(h_a)+b == max(h_a+b)), then ReLU.
    o_ref[...] = jnp.maximum(acc + b_ref[...], 0.0).astype(o_ref.dtype)


def conv3x3_relu(x, w_mat, b, *, pool, vmem_limit):
    """x: (B, H, W, Cx) NHWC (Cx may carry zero-padded channels >= Cin),
    w_mat: (9*Cin, Npad) bf16 pre-padded weights, b: (Cout,) f32 bias.

    Returns (B, Ho, Wo, Npad) bf16 with Npad = Cout rounded up to 128;
    channels >= Cout are exactly zero so the padded map feeds the next layer
    directly."""
    B, H, W, Cx = x.shape
    K, Npad = w_mat.shape
    Cin = K // 9
    Cout = b.shape[0]
    assert Cx >= Cin

    b_p = jnp.zeros((1, Npad), jnp.float32).at[:, :Cout].set(
        b.astype(jnp.float32).reshape(1, -1))

    # Contract over REAL channels only (don't carry 128-padding into K).
    xb = x[..., :Cin].astype(jnp.bfloat16)
    xp = jnp.pad(xb, ((0, 0), (1, 1), (1, 1), (0, 0)))   # spatial halo

    if pool:
        assert H % 2 == 0 and W % 2 == 0, "maxpool2x2 needs even H, W"
        Ho, Wo = H // 2, W // 2
        # Build the 4 pool-position slabs directly with stride-2 slices:
        # conv output pixel (2*ho+py, 2*wo+px), tap (dy,dx) reads padded input
        # row 2*ho+py+dy / col 2*wo+px+dx.
        slabs = []
        for py in range(2):
            for px in range(2):
                taps = [xp[:, py + dy: py + dy + 2 * Ho: 2,
                            px + dx: px + dx + 2 * Wo: 2, :]
                        for dy in range(3) for dx in range(3)]
                slabs.append(jnp.concatenate(taps, axis=-1)
                             .reshape(B * Ho * Wo, K))
        pat = jnp.stack(slabs, axis=0)                    # (4, M, K)
        nwin = 4
    else:
        Ho, Wo = H, W
        taps = [xp[:, dy:dy + H, dx:dx + W, :]
                for dy in range(3) for dx in range(3)]
        pat = jnp.concatenate(taps, axis=-1).reshape(1, B * H * W, K)
        nwin = 1

    M = B * Ho * Wo                     # batch folded into the matmul M axis
    # Double-buffered VMEM estimate: bf16 pat rows + bf16 out rows per M row,
    # plus resident bf16 weights / f32 bias.  Keep 20% headroom vs the limit.
    per_row = 4 * nwin * K + 4 * Npad
    resident = 4 * K * Npad + 8 * Npad
    tm = _pick_tile_m(M, per_row, resident, int(vmem_limit * 0.8))
    Mpad = _round_up(M, tm)
    if Mpad != M:
        pat = jnp.pad(pat, ((0, 0), (0, Mpad - M), (0, 0)))

    out = pl.pallas_call(
        functools.partial(_conv_relu_pool_kernel, nwin=nwin),
        out_shape=jax.ShapeDtypeStruct((Mpad, Npad), jnp.bfloat16),
        grid=(Mpad // tm,),
        in_specs=[
            pl.BlockSpec((nwin, tm, K), lambda i: (0, i, 0)),
            pl.BlockSpec((K, Npad), lambda i: (0, 0)),    # resident weights
            pl.BlockSpec((1, Npad), lambda i: (0, 0)),    # resident bias
        ],
        out_specs=pl.BlockSpec((tm, Npad), lambda i: (i, 0)),
        compiler_params=pltpu.CompilerParams(
            dimension_semantics=("parallel",),
            vmem_limit_bytes=vmem_limit),
    )(pat, w_mat, b_p)
    if Mpad != M:
        out = out[:M]
    return out.reshape(B, Ho, Wo, Npad)


# ----------------------------------------------------------------------------
# Classifier: Dropout -> Linear(512,512) -> ReLU -> Dropout -> Linear(512,512)
#             -> ReLU -> Linear(512,num_classes)       (Dropout == identity)
# ----------------------------------------------------------------------------
def _classifier_kernel(x_ref, w1_ref, b1_ref, w2_ref, b2_ref, w3_ref, b3_ref,
                       o_ref):
    h = jnp.dot(x_ref[...], w1_ref[...],
                preferred_element_type=jnp.float32) + b1_ref[...]
    h = jnp.maximum(h, 0.0).astype(jnp.bfloat16)
    h = jnp.dot(h, w2_ref[...],
                preferred_element_type=jnp.float32) + b2_ref[...]
    h = jnp.maximum(h, 0.0).astype(jnp.bfloat16)
    o = jnp.dot(h, w3_ref[...],
                preferred_element_type=jnp.float32) + b3_ref[...]
    o_ref[...] = o.astype(o_ref.dtype)


def classifier(x, prep_cls, *, vmem_limit):
    # x: (B, 512); weights stored as (in, out) so the kernel computes x @ W.
    (w1, b1), (w2, b2), (w3p, b3) = prep_cls
    B, D = x.shape
    nc = b3.shape[0]
    ncp = w3p.shape[1]                                  # lane-dense logits tile
    b1p = b1.astype(jnp.float32).reshape(1, -1)
    b2p = b2.astype(jnp.float32).reshape(1, -1)
    b3p = jnp.zeros((1, ncp), jnp.float32).at[:, :nc].set(
        b3.astype(jnp.float32).reshape(1, -1))

    xb = x.astype(jnp.bfloat16)
    Bp = _round_up(max(B, 8), 8)        # at least one sublane tile of rows
    tb = 256 if Bp > 512 else Bp        # tile batch when it gets large
    Bp = _round_up(Bp, tb)
    if Bp != B:
        xb = jnp.pad(xb, ((0, Bp - B), (0, 0)))

    out = pl.pallas_call(
        _classifier_kernel,
        out_shape=jax.ShapeDtypeStruct((Bp, ncp), jnp.float32),
        grid=(Bp // tb,),
        in_specs=[
            pl.BlockSpec((tb, D), lambda i: (i, 0)),
            pl.BlockSpec(w1.shape, lambda i: (0, 0)),       # resident weights
            pl.BlockSpec((1, b1p.shape[1]), lambda i: (0, 0)),
            pl.BlockSpec(w2.shape, lambda i: (0, 0)),
            pl.BlockSpec((1, b2p.shape[1]), lambda i: (0, 0)),
            pl.BlockSpec(w3p.shape, lambda i: (0, 0)),
            pl.BlockSpec((1, ncp), lambda i: (0, 0)),
        ],
        out_specs=pl.BlockSpec((tb, ncp), lambda i: (i, 0)),
        compiler_params=pltpu.CompilerParams(
            dimension_semantics=("parallel",),
            vmem_limit_bytes=vmem_limit),
    )(xb, w1, b1p, w2, b2p, w3p, b3p)
    return out[:B, :nc]


# ----------------------------------------------------------------------------
# VGG model: features (dict of per-stage maps) + classifier
# ----------------------------------------------------------------------------
VGG_CFG = [16, 'M', 32, 'M', 64, 'M', 512, 'M']   # small VGG-style features


def init_params(key, cfg=VGG_CFG, in_channels=3, num_classes=10):
    feat_params = []
    c_in = in_channels
    for v in cfg:
        if v == 'M':
            continue
        key, kw = jax.random.split(key)
        n = 3 * 3 * v                                     # kh*kw*out_channels
        w = (jax.random.normal(kw, (3, 3, c_in, v), dtype=jnp.float32)
             * math.sqrt(2.0 / n))
        b = jnp.zeros((v,), jnp.float32)
        feat_params.append((w, b))
        c_in = v

    cls_params = []
    for fan_in, fan_out in [(512, 512), (512, 512), (512, num_classes)]:
        key, kw, kb = jax.random.split(key, 3)
        bound = 1.0 / math.sqrt(fan_in)
        w = jax.random.uniform(kw, (fan_in, fan_out), jnp.float32,
                               minval=-bound, maxval=bound)
        b = jax.random.uniform(kb, (fan_out,), jnp.float32,
                               minval=-bound, maxval=bound)
        cls_params.append((w, b))
    return feat_params, cls_params


def prepare_params(feat_params, cls_params):
    """One-time parameter prep (outside the jitted forward): reshape conv
    weights to (9*Cin, Npad) bf16 matrices padded only on Cout; cast linear
    weights to bf16 and pad the last one to a lane-dense logits width."""
    prep_feat = []
    for w, b in feat_params:
        kh, kw_, cin, cout = w.shape
        npad = _round_up(cout, 128)
        w_mat = jnp.zeros((kh * kw_ * cin, npad), jnp.bfloat16)
        w_mat = w_mat.at[:, :cout].set(
            w.astype(jnp.bfloat16).reshape(kh * kw_ * cin, cout))
        prep_feat.append((w_mat, b.astype(jnp.float32)))

    (w1, b1), (w2, b2), (w3, b3) = cls_params
    nc = w3.shape[1]
    ncp = _round_up(nc, 128)
    w3p = jnp.zeros((w3.shape[0], ncp), jnp.bfloat16).at[:, :nc].set(
        w3.astype(jnp.bfloat16))
    prep_cls = ((w1.astype(jnp.bfloat16), b1.astype(jnp.float32)),
                (w2.astype(jnp.bfloat16), b2.astype(jnp.float32)),
                (w3p, b3.astype(jnp.float32)))
    return prep_feat, prep_cls


def vgg_forward(x_nchw, prep_feat, prep_cls, cfg=VGG_CFG,
                features_nchw=False):
    """Returns (logits, x_dict).  x_dict holds the per-stage feature maps
    (pooled outputs of each fused conv+ReLU+pool stage) in bf16, NHWC by
    default; set features_nchw=True for PyTorch-style NCHW entries."""
    vmem_limit = _vmem_limit_bytes()
    x = jnp.transpose(x_nchw, (0, 2, 3, 1)).astype(jnp.bfloat16)  # NCHW->NHWC
    x_dict = {}
    conv_idx = 0
    layer_idx = 0
    i = 0
    while i < len(cfg):
        v = cfg[i]
        assert v != 'M', "standalone pool ('M' with no preceding conv) unsupported"
        w_mat, b = prep_feat[conv_idx]
        fuse_pool = (i + 1 < len(cfg)) and (cfg[i + 1] == 'M')
        x = conv3x3_relu(x, w_mat, b, pool=fuse_pool,
                         vmem_limit=vmem_limit)   # (B,Ho,Wo,Npad), padded ch
        cout = b.shape[0]
        feat = x[..., :cout]                      # strip channel padding
        if features_nchw:
            feat = jnp.transpose(feat, (0, 3, 1, 2))
        if fuse_pool:
            x_dict[f"layer{layer_idx + 1}_pool"] = feat
            layer_idx += 2
            i += 2
        else:
            x_dict[f"layer{layer_idx}_conv{conv_idx}"] = feat
            layer_idx += 1
            i += 1
        conv_idx += 1

    last_key = None
    for k in x_dict:
        last_key = k
    feat = x_dict[last_key]
    if not features_nchw:
        feat = jnp.transpose(feat, (0, 3, 1, 2))   # match PyTorch flatten order
    feat = feat.reshape(feat.shape[0], -1)
    expect = prep_cls[0][0].shape[0]
    assert feat.shape[1] == expect, (
        f"classifier expects {expect} features, got {feat.shape[1]}")
    logits = classifier(feat, prep_cls, vmem_limit=vmem_limit)
    return logits, x_dict


if __name__ == "__main__":
    key = jax.random.PRNGKey(0)
    key, kx = jax.random.split(key)
    x = jax.random.normal(kx, (2, 3, 16, 16), dtype=jnp.float32)  # NCHW input

    feat_params, cls_params = init_params(key, VGG_CFG, in_channels=3,
                                          num_classes=10)
    prep_feat, prep_cls = prepare_params(feat_params, cls_params)  # one-time

    fwd = jax.jit(vgg_forward)
    logits, x_dict = fwd(x, prep_feat, prep_cls)
    jax.block_until_ready(logits)
    jax.block_until_ready(list(x_dict.values()))

    assert logits.shape == (2, 10)
    assert x_dict["layer7_pool"].shape == (2, 1, 1, 512)
    print("KERNEL_OK")
</pallas_src>

<mosaic_0001>
module attributes {stable_mosaic.version = 11 : i64} {
  func.func @_conv_relu_pool_kernel(%arg0: i32, %arg1: memref<4x128x27xbf16, #tpu.memory_space<vmem>>, %arg2: memref<27x128xbf16, #tpu.memory_space<vmem>>, %arg3: memref<1x128xf32, #tpu.memory_space<vmem>>, %arg4: memref<128x128xbf16, #tpu.memory_space<vmem>>) attributes {dimension_semantics = [#tpu.dimension_semantics<parallel>], iteration_bounds = array<i64: 1>, scalar_prefetch = 0 : i64, scratch_operands = 0 : i64, tpu.core_type = #tpu.core_type<tc>, window_params = [{transform_indices = @transform_0, window_bounds = array<i64: 4, 128, 27>}, {pipeline_mode = #tpu.pipeline_mode<synchronous>, transform_indices = @transform_1, window_bounds = array<i64: 27, 128>}, {pipeline_mode = #tpu.pipeline_mode<synchronous>, transform_indices = @transform_2, window_bounds = array<i64: 1, 128>}, {transform_indices = @transform_3, window_bounds = array<i64: 128, 128>}]} {
    %c0 = arith.constant 0 : index
    %c0_0 = arith.constant 0 : index
    %0 = vector.load %arg2[%c0, %c0_0] : memref<27x128xbf16, #tpu.memory_space<vmem>>, vector<27x128xbf16>
    %c0_1 = arith.constant 0 : index
    %c0_2 = arith.constant 0 : index
    %c0_3 = arith.constant 0 : index
    %1 = vector.load %arg1[%c0_1, %c0_2, %c0_3] : memref<4x128x27xbf16, #tpu.memory_space<vmem>>, vector<1x128x27xbf16>
    %2 = vector.shape_cast %1 : vector<1x128x27xbf16> to vector<128x27xbf16>
    %cst = arith.constant dense<0.000000e+00> : vector<128x128xf32>
    %3 = tpu.matmul %2, %0, %cst {dimension_numbers = #tpu.dot_dimension_numbers<[1], [0], [0], [1], [0, 0, 1, 1], [], []>} : vector<128x27xbf16>, vector<27x128xbf16>, vector<128x128xf32> -> vector<128x128xf32>
    %c1 = arith.constant 1 : index
    %c0_4 = arith.constant 0 : index
    %c0_5 = arith.constant 0 : index
    %4 = vector.load %arg1[%c1, %c0_4, %c0_5] : memref<4x128x27xbf16, #tpu.memory_space<vmem>>, vector<1x128x27xbf16>
    %5 = vector.shape_cast %4 : vector<1x128x27xbf16> to vector<128x27xbf16>
    %cst_6 = arith.constant dense<0.000000e+00> : vector<128x128xf32>
    %6 = tpu.matmul %5, %0, %cst_6 {dimension_numbers = #tpu.dot_dimension_numbers<[1], [0], [0], [1], [0, 0, 1, 1], [], []>} : vector<128x27xbf16>, vector<27x128xbf16>, vector<128x128xf32> -> vector<128x128xf32>
    %7 = arith.maximumf %3, %6 : vector<128x128xf32>
    %c2 = arith.constant 2 : index
    %c0_7 = arith.constant 0 : index
    %c0_8 = arith.constant 0 : index
    %8 = vector.load %arg1[%c2, %c0_7, %c0_8] : memref<4x128x27xbf16, #tpu.memory_space<vmem>>, vector<1x128x27xbf16>
    %9 = vector.shape_cast %8 : vector<1x128x27xbf16> to vector<128x27xbf16>
    %cst_9 = arith.constant dense<0.000000e+00> : vector<128x128xf32>
    %10 = tpu.matmul %9, %0, %cst_9 {dimension_numbers = #tpu.dot_dimension_numbers<[1], [0], [0], [1], [0, 0, 1, 1], [], []>} : vector<128x27xbf16>, vector<27x128xbf16>, vector<128x128xf32> -> vector<128x128xf32>
    %11 = arith.maximumf %7, %10 : vector<128x128xf32>
    %c3 = arith.constant 3 : index
    %c0_10 = arith.constant 0 : index
    %c0_11 = arith.constant 0 : index
    %12 = vector.load %arg1[%c3, %c0_10, %c0_11] : memref<4x128x27xbf16, #tpu.memory_space<vmem>>, vector<1x128x27xbf16>
    %13 = vector.shape_cast %12 : vector<1x128x27xbf16> to vector<128x27xbf16>
    %cst_12 = arith.constant dense<0.000000e+00> : vector<128x128xf32>
    %14 = tpu.matmul %13, %0, %cst_12 {dimension_numbers = #tpu.dot_dimension_numbers<[1], [0], [0], [1], [0, 0, 1, 1], [], []>} : vector<128x27xbf16>, vector<27x128xbf16>, vector<128x128xf32> -> vector<128x128xf32>
    %15 = arith.maximumf %11, %14 : vector<128x128xf32>
    %c0_13 = arith.constant 0 : index
    %c0_14 = arith.constant 0 : index
    %16 = vector.load %arg3[%c0_13, %c0_14] : memref<1x128xf32, #tpu.memory_space<vmem>>, vector<1x128xf32>
    %17 = vector.broadcast %16 : vector<1x128xf32> to vector<128x128xf32>
    %18 = arith.addf %15, %17 : vector<128x128xf32>
    %cst_15 = arith.constant 0.000000e+00 : f32
    %19 = vector.broadcast %cst_15 : f32 to vector<128x128xf32>
    %20 = arith.maximumf %18, %19 : vector<128x128xf32>
    %21 = arith.truncf %20 : vector<128x128xf32> to vector<128x128xbf16>
    %c0_16 = arith.constant 0 : index
    %c0_17 = arith.constant 0 : index
    %22 = vector.load %arg4[%c0_16, %c0_17] : memref<128x128xbf16, #tpu.memory_space<vmem>>, vector<128x128xbf16>
    tpu.vector_store %arg4[%c0_16, %c0_17], %21 {strides = array<i32>} : memref<128x128xbf16, #tpu.memory_space<vmem>>, vector<128x128xbf16>,
    return
  }
  func.func @transform_0(%arg0: i32) -> (i32, i32, i32) {
    %c0_i32 = arith.constant 0 : i32
    %c0_i32_0 = arith.constant 0 : i32
    %c0_i32_1 = arith.constant 0 : i32
    return %c0_i32, %arg0, %c0_i32_0 : i32, i32, i32
  }
  func.func @transform_1(%arg0: i32) -> (i32, i32) {
    %c0_i32 = arith.constant 0 : i32
    %c0_i32_0 = arith.constant 0 : i32
    %c0_i32_1 = arith.constant 0 : i32
    return %c0_i32, %c0_i32_0 : i32, i32
  }
  func.func @transform_2(%arg0: i32) -> (i32, i32) {
    %c0_i32 = arith.constant 0 : i32
    %c0_i32_0 = arith.constant 0 : i32
    %c0_i32_1 = arith.constant 0 : i32
    return %c0_i32, %c0_i32_0 : i32, i32
  }
  func.func @transform_3(%arg0: i32) -> (i32, i32) {
    %c0_i32 = arith.constant 0 : i32
    %c0_i32_0 = arith.constant 0 : i32
    return %arg0, %c0_i32 : i32, i32
  }
}

module attributes {stable_mosaic.version = 11 : i64} {
  func.func @_conv_relu_pool_kernel(%arg0: i32, %arg1: memref<4x32x144xbf16, #tpu.memory_space<vmem>>, %arg2: memref<144x128xbf16, #tpu.memory_space<vmem>>, %arg3: memref<1x128xf32, #tpu.memory_space<vmem>>, %arg4: memref<32x128xbf16, #tpu.memory_space<vmem>>) attributes {dimension_semantics = [#tpu.dimension_semantics<parallel>], iteration_bounds = array<i64: 1>, scalar_prefetch = 0 : i64, scratch_operands = 0 : i64, tpu.core_type = #tpu.core_type<tc>, window_params = [{transform_indices = @transform_0, window_bounds = array<i64: 4, 32, 144>}, {pipeline_mode = #tpu.pipeline_mode<synchronous>, transform_indices = @transform_1, window_bounds = array<i64: 144, 128>}, {pipeline_mode = #tpu.pipeline_mode<synchronous>, transform_indices = @transform_2, window_bounds = array<i64: 1, 128>}, {transform_indices = @transform_3, window_bounds = array<i64: 32, 128>}]} {
    %c0 = arith.constant 0 : index
    %c0_0 = arith.constant 0 : index
    %0 = vector.load %arg2[%c0, %c0_0] : memref<144x128xbf16, #tpu.memory_space<vmem>>, vector<144x128xbf16>
    %c0_1 = arith.constant 0 : index
    %c0_2 = arith.constant 0 : index
    %c0_3 = arith.constant 0 : index
    %1 = vector.load %arg1[%c0_1, %c0_2, %c0_3] : memref<4x32x144xbf16, #tpu.memory_space<vmem>>, vector<1x32x144xbf16>
    %2 = vector.shape_cast %1 : vector<1x32x144xbf16> to vector<32x144xbf16>
    %cst = arith.constant dense<0.000000e+00> : vector<32x128xf32>
    %3 = tpu.matmul %2, %0, %cst {dimension_numbers = #tpu.dot_dimension_numbers<[1], [0], [0], [1], [0, 0, 1, 1], [], []>} : vector<32x144xbf16>, vector<144x128xbf16>, vector<32x128xf32> -> vector<32x128xf32>
    %c1 = arith.constant 1 : index
    %c0_4 = arith.constant 0 : index
    %c0_5 = arith.constant 0 : index
    %4 = vector.load %arg1[%c1, %c0_4, %c0_5] : memref<4x32x144xbf16, #tpu.memory_space<vmem>>, vector<1x32x144xbf16>
    %5 = vector.shape_cast %4 : vector<1x32x144xbf16> to vector<32x144xbf16>
    %cst_6 = arith.constant dense<0.000000e+00> : vector<32x128xf32>
    %6 = tpu.matmul %5, %0, %cst_6 {dimension_numbers = #tpu.dot_dimension_numbers<[1], [0], [0], [1], [0, 0, 1, 1], [], []>} : vector<32x144xbf16>, vector<144x128xbf16>, vector<32x128xf32> -> vector<32x128xf32>
    %7 = arith.maximumf %3, %6 : vector<32x128xf32>
    %c2 = arith.constant 2 : index
    %c0_7 = arith.constant 0 : index
    %c0_8 = arith.constant 0 : index
    %8 = vector.load %arg1[%c2, %c0_7, %c0_8] : memref<4x32x144xbf16, #tpu.memory_space<vmem>>, vector<1x32x144xbf16>
    %9 = vector.shape_cast %8 : vector<1x32x144xbf16> to vector<32x144xbf16>
    %cst_9 = arith.constant dense<0.000000e+00> : vector<32x128xf32>
    %10 = tpu.matmul %9, %0, %cst_9 {dimension_numbers = #tpu.dot_dimension_numbers<[1], [0], [0], [1], [0, 0, 1, 1], [], []>} : vector<32x144xbf16>, vector<144x128xbf16>, vector<32x128xf32> -> vector<32x128xf32>
    %11 = arith.maximumf %7, %10 : vector<32x128xf32>
    %c3 = arith.constant 3 : index
    %c0_10 = arith.constant 0 : index
    %c0_11 = arith.constant 0 : index
    %12 = vector.load %arg1[%c3, %c0_10, %c0_11] : memref<4x32x144xbf16, #tpu.memory_space<vmem>>, vector<1x32x144xbf16>
    %13 = vector.shape_cast %12 : vector<1x32x144xbf16> to vector<32x144xbf16>
    %cst_12 = arith.constant dense<0.000000e+00> : vector<32x128xf32>
    %14 = tpu.matmul %13, %0, %cst_12 {dimension_numbers = #tpu.dot_dimension_numbers<[1], [0], [0], [1], [0, 0, 1, 1], [], []>} : vector<32x144xbf16>, vector<144x128xbf16>, vector<32x128xf32> -> vector<32x128xf32>
    %15 = arith.maximumf %11, %14 : vector<32x128xf32>
    %c0_13 = arith.constant 0 : index
    %c0_14 = arith.constant 0 : index
    %16 = vector.load %arg3[%c0_13, %c0_14] : memref<1x128xf32, #tpu.memory_space<vmem>>, vector<1x128xf32>
    %17 = vector.broadcast %16 : vector<1x128xf32> to vector<32x128xf32>
    %18 = arith.addf %15, %17 : vector<32x128xf32>
    %cst_15 = arith.constant 0.000000e+00 : f32
    %19 = vector.broadcast %cst_15 : f32 to vector<32x128xf32>
    %20 = arith.maximumf %18, %19 : vector<32x128xf32>
    %21 = arith.truncf %20 : vector<32x128xf32> to vector<32x128xbf16>
    %c0_16 = arith.constant 0 : index
    %c0_17 = arith.constant 0 : index
    %22 = vector.load %arg4[%c0_16, %c0_17] : memref<32x128xbf16, #tpu.memory_space<vmem>>, vector<32x128xbf16>
    tpu.vector_store %arg4[%c0_16, %c0_17], %21 {strides = array<i32>} : memref<32x128xbf16, #tpu.memory_space<vmem>>, vector<32x128xbf16>,
    return
  }
  func.func @transform_0(%arg0: i32) -> (i32, i32, i32) {
    %c0_i32 = arith.constant 0 : i32
    %c0_i32_0 = arith.constant 0 : i32
    %c0_i32_1 = arith.constant 0 : i32
    return %c0_i32, %arg0, %c0_i32_0 : i32, i32, i32
  }
  func.func @transform_1(%arg0: i32) -> (i32, i32) {
    %c0_i32 = arith.constant 0 : i32
    %c0_i32_0 = arith.constant 0 : i32
    %c0_i32_1 = arith.constant 0 : i32
    return %c0_i32, %c0_i32_0 : i32, i32
  }
  func.func @transform_2(%arg0: i32) -> (i32, i32) {
    %c0_i32 = arith.constant 0 : i32
    %c0_i32_0 = arith.constant 0 : i32
    %c0_i32_1 = arith.constant 0 : i32
    return %c0_i32, %c0_i32_0 : i32, i32
  }
  func.func @transform_3(%arg0: i32) -> (i32, i32) {
    %c0_i32 = arith.constant 0 : i32
    %c0_i32_0 = arith.constant 0 : i32
    return %arg0, %c0_i32 : i32, i32
  }
}

module attributes {stable_mosaic.version = 11 : i64} {
  func.func @_conv_relu_pool_kernel(%arg0: i32, %arg1: memref<4x8x288xbf16, #tpu.memory_space<vmem>>, %arg2: memref<288x128xbf16, #tpu.memory_space<vmem>>, %arg3: memref<1x128xf32, #tpu.memory_space<vmem>>, %arg4: memref<8x128xbf16, #tpu.memory_space<vmem>>) attributes {dimension_semantics = [#tpu.dimension_semantics<parallel>], iteration_bounds = array<i64: 1>, scalar_prefetch = 0 : i64, scratch_operands = 0 : i64, tpu.core_type = #tpu.core_type<tc>, window_params = [{transform_indices = @transform_0, window_bounds = array<i64: 4, 8, 288>}, {pipeline_mode = #tpu.pipeline_mode<synchronous>, transform_indices = @transform_1, window_bounds = array<i64: 288, 128>}, {pipeline_mode = #tpu.pipeline_mode<synchronous>, transform_indices = @transform_2, window_bounds = array<i64: 1, 128>}, {transform_indices = @transform_3, window_bounds = array<i64: 8, 128>}]} {
    %c0 = arith.constant 0 : index
    %c0_0 = arith.constant 0 : index
    %0 = vector.load %arg2[%c0, %c0_0] : memref<288x128xbf16, #tpu.memory_space<vmem>>, vector<288x128xbf16>
    %c0_1 = arith.constant 0 : index
    %c0_2 = arith.constant 0 : index
    %c0_3 = arith.constant 0 : index
    %1 = vector.load %arg1[%c0_1, %c0_2, %c0_3] : memref<4x8x288xbf16, #tpu.memory_space<vmem>>, vector<1x8x288xbf16>
    %2 = vector.shape_cast %1 : vector<1x8x288xbf16> to vector<8x288xbf16>
    %cst = arith.constant dense<0.000000e+00> : vector<8x128xf32>
    %3 = tpu.matmul %2, %0, %cst {dimension_numbers = #tpu.dot_dimension_numbers<[1], [0], [0], [1], [0, 0, 1, 1], [], []>} : vector<8x288xbf16>, vector<288x128xbf16>, vector<8x128xf32> -> vector<8x128xf32>
    %c1 = arith.constant 1 : index
    %c0_4 = arith.constant 0 : index
    %c0_5 = arith.constant 0 : index
    %4 = vector.load %arg1[%c1, %c0_4, %c0_5] : memref<4x8x288xbf16, #tpu.memory_space<vmem>>, vector<1x8x288xbf16>
    %5 = vector.shape_cast %4 : vector<1x8x288xbf16> to vector<8x288xbf16>
    %cst_6 = arith.constant dense<0.000000e+00> : vector<8x128xf32>
    %6 = tpu.matmul %5, %0, %cst_6 {dimension_numbers = #tpu.dot_dimension_numbers<[1], [0], [0], [1], [0, 0, 1, 1], [], []>} : vector<8x288xbf16>, vector<288x128xbf16>, vector<8x128xf32> -> vector<8x128xf32>
    %7 = arith.maximumf %3, %6 : vector<8x128xf32>
    %c2 = arith.constant 2 : index
    %c0_7 = arith.constant 0 : index
    %c0_8 = arith.constant 0 : index
    %8 = vector.load %arg1[%c2, %c0_7, %c0_8] : memref<4x8x288xbf16, #tpu.memory_space<vmem>>, vector<1x8x288xbf16>
    %9 = vector.shape_cast %8 : vector<1x8x288xbf16> to vector<8x288xbf16>
    %cst_9 = arith.constant dense<0.000000e+00> : vector<8x128xf32>
    %10 = tpu.matmul %9, %0, %cst_9 {dimension_numbers = #tpu.dot_dimension_numbers<[1], [0], [0], [1], [0, 0, 1, 1], [], []>} : vector<8x288xbf16>, vector<288x128xbf16>, vector<8x128xf32> -> vector<8x128xf32>
    %11 = arith.maximumf %7, %10 : vector<8x128xf32>
    %c3 = arith.constant 3 : index
    %c0_10 = arith.constant 0 : index
    %c0_11 = arith.constant 0 : index
    %12 = vector.load %arg1[%c3, %c0_10, %c0_11] : memref<4x8x288xbf16, #tpu.memory_space<vmem>>, vector<1x8x288xbf16>
    %13 = vector.shape_cast %12 : vector<1x8x288xbf16> to vector<8x288xbf16>
    %cst_12 = arith.constant dense<0.000000e+00> : vector<8x128xf32>
    %14 = tpu.matmul %13, %0, %cst_12 {dimension_numbers = #tpu.dot_dimension_numbers<[1], [0], [0], [1], [0, 0, 1, 1], [], []>} : vector<8x288xbf16>, vector<288x128xbf16>, vector<8x128xf32> -> vector<8x128xf32>
    %15 = arith.maximumf %11, %14 : vector<8x128xf32>
    %c0_13 = arith.constant 0 : index
    %c0_14 = arith.constant 0 : index
    %16 = vector.load %arg3[%c0_13, %c0_14] : memref<1x128xf32, #tpu.memory_space<vmem>>, vector<1x128xf32>
    %17 = vector.broadcast %16 : vector<1x128xf32> to vector<8x128xf32>
    %18 = arith.addf %15, %17 : vector<8x128xf32>
    %cst_15 = arith.constant 0.000000e+00 : f32
    %19 = vector.broadcast %cst_15 : f32 to vector<8x128xf32>
    %20 = arith.maximumf %18, %19 : vector<8x128xf32>
    %21 = arith.truncf %20 : vector<8x128xf32> to vector<8x128xbf16>
    %c0_16 = arith.constant 0 : index
    %c0_17 = arith.constant 0 : index
    %22 = vector.load %arg4[%c0_16, %c0_17] : memref<8x128xbf16, #tpu.memory_space<vmem>>, vector<8x128xbf16>
    tpu.vector_store %arg4[%c0_16, %c0_17], %21 {strides = array<i32>} : memref<8x128xbf16, #tpu.memory_space<vmem>>, vector<8x128xbf16>,
    return
  }
  func.func @transform_0(%arg0: i32) -> (i32, i32, i32) {
    %c0_i32 = arith.constant 0 : i32
    %c0_i32_0 = arith.constant 0 : i32
    %c0_i32_1 = arith.constant 0 : i32
    return %c0_i32, %arg0, %c0_i32_0 : i32, i32, i32
  }
  func.func @transform_1(%arg0: i32) -> (i32, i32) {
    %c0_i32 = arith.constant 0 : i32
    %c0_i32_0 = arith.constant 0 : i32
    %c0_i32_1 = arith.constant 0 : i32
    return %c0_i32, %c0_i32_0 : i32, i32
  }
  func.func @transform_2(%arg0: i32) -> (i32, i32) {
    %c0_i32 = arith.constant 0 : i32
    %c0_i32_0 = arith.constant 0 : i32
    %c0_i32_1 = arith.constant 0 : i32
    return %c0_i32, %c0_i32_0 : i32, i32
  }
  func.func @transform_3(%arg0: i32) -> (i32, i32) {
    %c0_i32 = arith.constant 0 : i32
    %c0_i32_0 = arith.constant 0 : i32
    return %arg0, %c0_i32 : i32, i32
  }
}

module attributes {stable_mosaic.version = 11 : i64} {
  func.func @_conv_relu_pool_kernel(%arg0: i32, %arg1: memref<4x8x576xbf16, #tpu.memory_space<vmem>>, %arg2: memref<576x512xbf16, #tpu.memory_space<vmem>>, %arg3: memref<1x512xf32, #tpu.memory_space<vmem>>, %arg4: memref<8x512xbf16, #tpu.memory_space<vmem>>) attributes {dimension_semantics = [#tpu.dimension_semantics<parallel>], iteration_bounds = array<i64: 1>, scalar_prefetch = 0 : i64, scratch_operands = 0 : i64, tpu.core_type = #tpu.core_type<tc>, window_params = [{transform_indices = @transform_0, window_bounds = array<i64: 4, 8, 576>}, {pipeline_mode = #tpu.pipeline_mode<synchronous>, transform_indices = @transform_1, window_bounds = array<i64: 576, 512>}, {pipeline_mode = #tpu.pipeline_mode<synchronous>, transform_indices = @transform_2, window_bounds = array<i64: 1, 512>}, {transform_indices = @transform_3, window_bounds = array<i64: 8, 512>}]} {
    %c0 = arith.constant 0 : index
    %c0_0 = arith.constant 0 : index
    %0 = vector.load %arg2[%c0, %c0_0] : memref<576x512xbf16, #tpu.memory_space<vmem>>, vector<576x512xbf16>
    %c0_1 = arith.constant 0 : index
    %c0_2 = arith.constant 0 : index
    %c0_3 = arith.constant 0 : index
    %1 = vector.load %arg1[%c0_1, %c0_2, %c0_3] : memref<4x8x576xbf16, #tpu.memory_space<vmem>>, vector<1x8x576xbf16>
    %2 = vector.shape_cast %1 : vector<1x8x576xbf16> to vector<8x576xbf16>
    %cst = arith.constant dense<0.000000e+00> : vector<8x512xf32>
    %3 = tpu.matmul %2, %0, %cst {dimension_numbers = #tpu.dot_dimension_numbers<[1], [0], [0], [1], [0, 0, 1, 1], [], []>} : vector<8x576xbf16>, vector<576x512xbf16>, vector<8x512xf32> -> vector<8x512xf32>
    %c1 = arith.constant 1 : index
    %c0_4 = arith.constant 0 : index
    %c0_5 = arith.constant 0 : index
    %4 = vector.load %arg1[%c1, %c0_4, %c0_5] : memref<4x8x576xbf16, #tpu.memory_space<vmem>>, vector<1x8x576xbf16>
    %5 = vector.shape_cast %4 : vector<1x8x576xbf16> to vector<8x576xbf16>
    %cst_6 = arith.constant dense<0.000000e+00> : vector<8x512xf32>
    %6 = tpu.matmul %5, %0, %cst_6 {dimension_numbers = #tpu.dot_dimension_numbers<[1], [0], [0], [1], [0, 0, 1, 1], [], []>} : vector<8x576xbf16>, vector<576x512xbf16>, vector<8x512xf32> -> vector<8x512xf32>
    %7 = arith.maximumf %3, %6 : vector<8x512xf32>
    %c2 = arith.constant 2 : index
    %c0_7 = arith.constant 0 : index
    %c0_8 = arith.constant 0 : index
    %8 = vector.load %arg1[%c2, %c0_7, %c0_8] : memref<4x8x576xbf16, #tpu.memory_space<vmem>>, vector<1x8x576xbf16>
    %9 = vector.shape_cast %8 : vector<1x8x576xbf16> to vector<8x576xbf16>
    %cst_9 = arith.constant dense<0.000000e+00> : vector<8x512xf32>
    %10 = tpu.matmul %9, %0, %cst_9 {dimension_numbers = #tpu.dot_dimension_numbers<[1], [0], [0], [1], [0, 0, 1, 1], [], []>} : vector<8x576xbf16>, vector<576x512xbf16>, vector<8x512xf32> -> vector<8x512xf32>
    %11 = arith.maximumf %7, %10 : vector<8x512xf32>
    %c3 = arith.constant 3 : index
    %c0_10 = arith.constant 0 : index
    %c0_11 = arith.constant 0 : index
    %12 = vector.load %arg1[%c3, %c0_10, %c0_11] : memref<4x8x576xbf16, #tpu.memory_space<vmem>>, vector<1x8x576xbf16>
    %13 = vector.shape_cast %12 : vector<1x8x576xbf16> to vector<8x576xbf16>
    %cst_12 = arith.constant dense<0.000000e+00> : vector<8x512xf32>
    %14 = tpu.matmul %13, %0, %cst_12 {dimension_numbers = #tpu.dot_dimension_numbers<[1], [0], [0], [1], [0, 0, 1, 1], [], []>} : vector<8x576xbf16>, vector<576x512xbf16>, vector<8x512xf32> -> vector<8x512xf32>
    %15 = arith.maximumf %11, %14 : vector<8x512xf32>
    %c0_13 = arith.constant 0 : index
    %c0_14 = arith.constant 0 : index
    %16 = vector.load %arg3[%c0_13, %c0_14] : memref<1x512xf32, #tpu.memory_space<vmem>>, vector<1x512xf32>
    %17 = vector.broadcast %16 : vector<1x512xf32> to vector<8x512xf32>
    %18 = arith.addf %15, %17 : vector<8x512xf32>
    %cst_15 = arith.constant 0.000000e+00 : f32
    %19 = vector.broadcast %cst_15 : f32 to vector<8x512xf32>
    %20 = arith.maximumf %18, %19 : vector<8x512xf32>
    %21 = arith.truncf %20 : vector<8x512xf32> to vector<8x512xbf16>
    %c0_16 = arith.constant 0 : index
    %c0_17 = arith.constant 0 : index
    %22 = vector.load %arg4[%c0_16, %c0_17] : memref<8x512xbf16, #tpu.memory_space<vmem>>, vector<8x512xbf16>
    tpu.vector_store %arg4[%c0_16, %c0_17], %21 {strides = array<i32>} : memref<8x512xbf16, #tpu.memory_space<vmem>>, vector<8x512xbf16>,
    return
  }
  func.func @transform_0(%arg0: i32) -> (i32, i32, i32) {
    %c0_i32 = arith.constant 0 : i32
    %c0_i32_0 = arith.constant 0 : i32
    %c0_i32_1 = arith.constant 0 : i32
    return %c0_i32, %arg0, %c0_i32_0 : i32, i32, i32
  }
  func.func @transform_1(%arg0: i32) -> (i32, i32) {
    %c0_i32 = arith.constant 0 : i32
    %c0_i32_0 = arith.constant 0 : i32
    %c0_i32_1 = arith.constant 0 : i32
    return %c0_i32, %c0_i32_0 : i32, i32
  }
  func.func @transform_2(%arg0: i32) -> (i32, i32) {
    %c0_i32 = arith.constant 0 : i32
    %c0_i32_0 = arith.constant 0 : i32
    %c0_i32_1 = arith.constant 0 : i32
    return %c0_i32, %c0_i32_0 : i32, i32
  }
  func.func @transform_3(%arg0: i32) -> (i32, i32) {
    %c0_i32 = arith.constant 0 : i32
    %c0_i32_0 = arith.constant 0 : i32
    return %arg0, %c0_i32 : i32, i32
  }
}

module attributes {stable_mosaic.version = 11 : i64} {
  func.func @_classifier_kernel(%arg0: i32, %arg1: memref<8x512xbf16, #tpu.memory_space<vmem>>, %arg2: memref<512x512xbf16, #tpu.memory_space<vmem>>, %arg3: memref<1x512xf32, #tpu.memory_space<vmem>>, %arg4: memref<512x512xbf16, #tpu.memory_space<vmem>>, %arg5: memref<1x512xf32, #tpu.memory_space<vmem>>, %arg6: memref<512x128xbf16, #tpu.memory_space<vmem>>, %arg7: memref<1x128xf32, #tpu.memory_space<vmem>>, %arg8: memref<8x128xf32, #tpu.memory_space<vmem>>) attributes {dimension_semantics = [#tpu.dimension_semantics<parallel>], iteration_bounds = array<i64: 1>, scalar_prefetch = 0 : i64, scratch_operands = 0 : i64, tpu.core_type = #tpu.core_type<tc>, window_params = [{transform_indices = @transform_0, window_bounds = array<i64: 8, 512>}, {pipeline_mode = #tpu.pipeline_mode<synchronous>, transform_indices = @transform_1, window_bounds = array<i64: 512, 512>}, {pipeline_mode = #tpu.pipeline_mode<synchronous>, transform_indices = @transform_2, window_bounds = array<i64: 1, 512>}, {pipeline_mode = #tpu.pipeline_mode<synchronous>, transform_indices = @transform_3, window_bounds = array<i64: 512, 512>}, {pipeline_mode = #tpu.pipeline_mode<synchronous>, transform_indices = @transform_4, window_bounds = array<i64: 1, 512>}, {pipeline_mode = #tpu.pipeline_mode<synchronous>, transform_indices = @transform_5, window_bounds = array<i64: 512, 128>}, {pipeline_mode = #tpu.pipeline_mode<synchronous>, transform_indices = @transform_6, window_bounds = array<i64: 1, 128>}, {transform_indices = @transform_7, window_bounds = array<i64: 8, 128>}]} {
    %c0 = arith.constant 0 : index
    %c0_0 = arith.constant 0 : index
    %0 = vector.load %arg1[%c0, %c0_0] : memref<8x512xbf16, #tpu.memory_space<vmem>>, vector<8x512xbf16>
    %c0_1 = arith.constant 0 : index
    %c0_2 = arith.constant 0 : index
    %1 = vector.load %arg2[%c0_1, %c0_2] : memref<512x512xbf16, #tpu.memory_space<vmem>>, vector<512x512xbf16>
    %cst = arith.constant dense<0.000000e+00> : vector<8x512xf32>
    %2 = tpu.matmul %0, %1, %cst {dimension_numbers = #tpu.dot_dimension_numbers<[1], [0], [0], [1], [0, 0, 1, 1], [], []>} : vector<8x512xbf16>, vector<512x512xbf16>, vector<8x512xf32> -> vector<8x512xf32>
    %c0_3 = arith.constant 0 : index
    %c0_4 = arith.constant 0 : index
    %3 = vector.load %arg3[%c0_3, %c0_4] : memref<1x512xf32, #tpu.memory_space<vmem>>, vector<1x512xf32>
    %4 = vector.broadcast %3 : vector<1x512xf32> to vector<8x512xf32>
    %5 = arith.addf %2, %4 : vector<8x512xf32>
    %cst_5 = arith.constant 0.000000e+00 : f32
    %6 = vector.broadcast %cst_5 : f32 to vector<8x512xf32>
    %7 = arith.maximumf %5, %6 : vector<8x512xf32>
    %8 = arith.truncf %7 : vector<8x512xf32> to vector<8x512xbf16>
    %c0_6 = arith.constant 0 : index
    %c0_7 = arith.constant 0 : index
    %9 = vector.load %arg4[%c0_6, %c0_7] : memref<512x512xbf16, #tpu.memory_space<vmem>>, vector<512x512xbf16>
    %cst_8 = arith.constant dense<0.000000e+00> : vector<8x512xf32>
    %10 = tpu.matmul %8, %9, %cst_8 {dimension_numbers = #tpu.dot_dimension_numbers<[1], [0], [0], [1], [0, 0, 1, 1], [], []>} : vector<8x512xbf16>, vector<512x512xbf16>, vector<8x512xf32> -> vector<8x512xf32>
    %c0_9 = arith.constant 0 : index
    %c0_10 = arith.constant 0 : index
    %11 = vector.load %arg5[%c0_9, %c0_10] : memref<1x512xf32, #tpu.memory_space<vmem>>, vector<1x512xf32>
    %12 = vector.broadcast %11 : vector<1x512xf32> to vector<8x512xf32>
    %13 = arith.addf %10, %12 : vector<8x512xf32>
    %cst_11 = arith.constant 0.000000e+00 : f32
    %14 = vector.broadcast %cst_11 : f32 to vector<8x512xf32>
    %15 = arith.maximumf %13, %14 : vector<8x512xf32>
    %16 = arith.truncf %15 : vector<8x512xf32> to vector<8x512xbf16>
    %c0_12 = arith.constant 0 : index
    %c0_13 = arith.constant 0 : index
    %17 = vector.load %arg6[%c0_12, %c0_13] : memref<512x128xbf16, #tpu.memory_space<vmem>>, vector<512x128xbf16>
    %cst_14 = arith.constant dense<0.000000e+00> : vector<8x128xf32>
    %18 = tpu.matmul %16, %17, %cst_14 {dimension_numbers = #tpu.dot_dimension_numbers<[1], [0], [0], [1], [0, 0, 1, 1], [], []>} : vector<8x512xbf16>, vector<512x128xbf16>, vector<8x128xf32> -> vector<8x128xf32>
    %c0_15 = arith.constant 0 : index
    %c0_16 = arith.constant 0 : index
    %19 = vector.load %arg7[%c0_15, %c0_16] : memref<1x128xf32, #tpu.memory_space<vmem>>, vector<1x128xf32>
    %20 = vector.broadcast %19 : vector<1x128xf32> to vector<8x128xf32>
    %21 = arith.addf %18, %20 : vector<8x128xf32>
    %c0_17 = arith.constant 0 : index
    %c0_18 = arith.constant 0 : index
    %22 = vector.load %arg8[%c0_17, %c0_18] : memref<8x128xf32, #tpu.memory_space<vmem>>, vector<8x128xf32>
    tpu.vector_store %arg8[%c0_17, %c0_18], %21 {strides = array<i32>} : memref<8x128xf32, #tpu.memory_space<vmem>>, vector<8x128xf32>,
    return
  }
  func.func @transform_0(%arg0: i32) -> (i32, i32) {
    %c0_i32 = arith.constant 0 : i32
    %c0_i32_0 = arith.constant 0 : i32
    return %arg0, %c0_i32 : i32, i32
  }
  func.func @transform_1(%arg0: i32) -> (i32, i32) {
    %c0_i32 = arith.constant 0 : i32
    %c0_i32_0 = arith.constant 0 : i32
    %c0_i32_1 = arith.constant 0 : i32
    return %c0_i32, %c0_i32_0 : i32, i32
  }
  func.func @transform_2(%arg0: i32) -> (i32, i32) {
    %c0_i32 = arith.constant 0 : i32
    %c0_i32_0 = arith.constant 0 : i32
    %c0_i32_1 = arith.constant 0 : i32
    return %c0_i32, %c0_i32_0 : i32, i32
  }
  func.func @transform_3(%arg0: i32) -> (i32, i32) {
    %c0_i32 = arith.constant 0 : i32
    %c0_i32_0 = arith.constant 0 : i32
    %c0_i32_1 = arith.constant 0 : i32
    return %c0_i32, %c0_i32_0 : i32, i32
  }
  func.func @transform_4(%arg0: i32) -> (i32, i32) {
    %c0_i32 = arith.constant 0 : i32
    %c0_i32_0 = arith.constant 0 : i32
    %c0_i32_1 = arith.constant 0 : i32
    return %c0_i32, %c0_i32_0 : i32, i32
  }
  func.func @transform_5(%arg0: i32) -> (i32, i32) {
    %c0_i32 = arith.constant 0 : i32
    %c0_i32_0 = arith.constant 0 : i32
    %c0_i32_1 = arith.constant 0 : i32
    return %c0_i32, %c0_i32_0 : i32, i32
  }
  func.func @transform_6(%arg0: i32) -> (i32, i32) {
    %c0_i32 = arith.constant 0 : i32
    %c0_i32_0 = arith.constant 0 : i32
    %c0_i32_1 = arith.constant 0 : i32
    return %c0_i32, %c0_i32_0 : i32, i32
  }
  func.func @transform_7(%arg0: i32) -> (i32, i32) {
    %c0_i32 = arith.constant 0 : i32
    %c0_i32_0 = arith.constant 0 : i32
    return %arg0, %c0_i32 : i32, i32
  }
}

</mosaic_0001>

<bundles_post_ra>
// kernel: vgg_forward.5
= control target key start
LH: loop header
LB: loop body
LE: loop exit
PB: predicated region body
PF: predicated region fallthrough
CT: control target
= control target key end

     0   :  { %vm111_vm0 = vcmask 1044480   ;;  %vm112_vm1 = vcmask 1045504   ;;  %v976_v2 = vmov 65535   ;;  %vm86_vm2 = vcmask 220160   ;;  %s1179_s1 = inlined_call_operand.vmem [shape: bf16[27,128], index: 1, kind: input, shape index: {}]   ;;  %s1180_s0 = inlined_call_operand.vmem [shape: bf16[4,128,27], index: 0, kind: input, shape index: {}]   ;;  %s1181_s2 = inlined_call_operand.vmem [shape: f32[1,128], index: 2, kind: input, shape index: {}]   ;;  %s1182_s3 = inlined_call_operand.vmem [shape: bf16[128,128], index: 3, kind: output, shape index: {}]  }
   0x1   :  { %v715_v0 = vld [vmem:[%s1179_s1 + $0x8] sm:$0xf]  ;;  %v894_v1 = vld [vmem:[%s1179_s1 + $0x8] sm:$0x30]  ;;  %v113_v3 = vsel %vm111_vm0, 4294967295, %v976_v2  ;;  %v893_v7 = vld [vmem:[%s1179_s1] sm:$0xff] }
   0x2   :  { %v716_v4 = vor.u32 %v894_v1, %v715_v0  ;;  %v114_v5 = vsel %vm112_vm1, %v113_v3, 0  ;;  %v895_v8 = vld [vmem:[%s1180_s0] sm:$0xff]  ;;  %v896_v12 = vld [vmem:[%s1180_s0 + $0x8] sm:$0xff]  ;;  %v897_v16 = vld [vmem:[%s1180_s0 + $0x10] sm:$0xff] }
   0x3   :  { %v903_v9 = vld [vmem:[%s1180_s0 + $0x40] sm:$0xff]  ;;  %v904_v13 = vld [vmem:[%s1180_s0 + $0x48] sm:$0xff]  ;;  %v905_v17 = vld [vmem:[%s1180_s0 + $0x50] sm:$0xff] }
   0x4   :  { %v116_v6 = vand.u32 %v716_v4, %v114_v5  ;;  %v911_v10 = vld [vmem:[%s1180_s0 + $0x80] sm:$0xff]  ;;  %v912_v14 = vld [vmem:[%s1180_s0 + $0x88] sm:$0xff]  ;;  %v913_v18 = vld [vmem:[%s1180_s0 + $0x90] sm:$0xff] }
   0x5   :  { %v919_v11 = vld [vmem:[%s1180_s0 + $0xc0] sm:$0xff]  ;;  %v920_v15 = vld [vmem:[%s1180_s0 + $0xc8] sm:$0xff]  ;;  %v921_v19 = vld [vmem:[%s1180_s0 + $0xd0] sm:$0xff] }
   0x6   :  { %124 = vmatpush.bf16.msra.mxu0 %v116_v6  ;;  %254 = vmatpush.bf16.msra.mxu1 %v116_v6  ;;  %v898_v20 = vld [vmem:[%s1180_s0 + $0x18] sm:$0xff]  ;;  %v899_v24 = vld [vmem:[%s1180_s0 + $0x20] sm:$0xff]  ;;  %v900_v28 = vld [vmem:[%s1180_s0 + $0x28] sm:$0xff] }
   0x7   :  { %400 = vmatpush.bf16.msra.mxu2 %v116_v6  ;;  %546 = vmatpush.bf16.msra.mxu3 %v116_v6  ;;  %v906_v21 = vld [vmem:[%s1180_s0 + $0x58] sm:$0xff]  ;;  %v907_v25 = vld [vmem:[%s1180_s0 + $0x60] sm:$0xff]  ;;  %v908_v29 = vld [vmem:[%s1180_s0 + $0x68] sm:$0xff] }
   0x8   :  { %v914_v22 = vld [vmem:[%s1180_s0 + $0x98] sm:$0xff]  ;;  %v915_v26 = vld [vmem:[%s1180_s0 + $0xa0] sm:$0xff]  ;;  %v916_v30 = vld [vmem:[%s1180_s0 + $0xa8] sm:$0xff] }
   0x9   :  { %v922_v23 = vld [vmem:[%s1180_s0 + $0xd8] sm:$0xff]  ;;  %v923_v27 = vld [vmem:[%s1180_s0 + $0xe0] sm:$0xff]  ;;  %v924_v31 = vld [vmem:[%s1180_s0 + $0xe8] sm:$0xff] }
   0xa   :  { %125 = vmatpush.bf16.msra.mxu0 %v893_v7  ;;  %255 = vmatpush.bf16.msra.mxu1 %v893_v7  ;;  %v901_v32 = vld [vmem:[%s1180_s0 + $0x30] sm:$0xff]  ;;  %v902_v36 = vld [vmem:[%s1180_s0 + $0x38] sm:$0xff]  ;;  %v1137_v49 = vld [vmem:[%s1181_s2] ss:$0 sm:$0xff] }
   0xb   :  { %401 = vmatpush.bf16.msra.mxu2 %v893_v7  ;;  %547 = vmatpush.bf16.msra.mxu3 %v893_v7  ;;  %v909_v33 = vld [vmem:[%s1180_s0 + $0x70] sm:$0xff]  ;;  %v910_v37 = vld [vmem:[%s1180_s0 + $0x78] sm:$0xff] }
   0xc   :  { %v917_v34 = vld [vmem:[%s1180_s0 + $0xb0] sm:$0xff]  ;;  %v918_v38 = vld [vmem:[%s1180_s0 + $0xb8] sm:$0xff] }
   0xd   :  { %717 = vmatmul.msk.bf16.vlgmr.msra.gmra.mxu0 %vm86_vm2, %v895_v8  ;;  %773 = vmatmul.msk.bf16.vlgmr.msra.gmra.mxu1 %vm86_vm2, %v903_v9  ;;  %v925_v35 = vld [vmem:[%s1180_s0 + $0xf0] sm:$0xff]  ;;  %v926_v39 = vld [vmem:[%s1180_s0 + $0xf8] sm:$0xff] }
   0xe   :  { %829 = vmatmul.msk.bf16.vlgmr.msra.gmra.mxu2 %vm86_vm2, %v911_v10  ;;  %885 = vmatmul.msk.bf16.vlgmr.msra.gmra.mxu3 %vm86_vm2, %v919_v11 }
  0x1d   :  { %718 = vmatmul.msk.bf16.gmra.mxu0 %vm86_vm2, %v896_v12  ;;  %774 = vmatmul.msk.bf16.gmra.mxu1 %vm86_vm2, %v904_v13 }
  0x1e   :  { %830 = vmatmul.msk.bf16.gmra.mxu2 %vm86_vm2, %v912_v14  ;;  %886 = vmatmul.msk.bf16.gmra.mxu3 %vm86_vm2, %v920_v15 }
  0x2d   :  { %719 = vmatmul.msk.bf16.gmra.mxu0 %vm86_vm2, %v897_v16  ;;  %775 = vmatmul.msk.bf16.gmra.mxu1 %vm86_vm2, %v905_v17 }
  0x2e   :  { %831 = vmatmul.msk.bf16.gmra.mxu2 %vm86_vm2, %v913_v18  ;;  %887 = vmatmul.msk.bf16.gmra.mxu3 %vm86_vm2, %v921_v19 }
  0x3d   :  { %720 = vmatmul.msk.bf16.gmra.mxu0 %vm86_vm2, %v898_v20  ;;  %776 = vmatmul.msk.bf16.gmra.mxu1 %vm86_vm2, %v906_v21 }
  0x3e   :  { %832 = vmatmul.msk.bf16.gmra.mxu2 %vm86_vm2, %v914_v22  ;;  %888 = vmatmul.msk.bf16.gmra.mxu3 %vm86_vm2, %v922_v23 }
  0x4d   :  { %721 = vmatmul.msk.bf16.gmra.mxu0 %vm86_vm2, %v899_v24  ;;  %777 = vmatmul.msk.bf16.gmra.mxu1 %vm86_vm2, %v907_v25 }
  0x4e   :  { %833 = vmatmul.msk.bf16.gmra.mxu2 %vm86_vm2, %v915_v26  ;;  %889 = vmatmul.msk.bf16.gmra.mxu3 %vm86_vm2, %v923_v27 }
  0x5d   :  { %722 = vmatmul.msk.bf16.gmra.mxu0 %vm86_vm2, %v900_v28  ;;  %778 = vmatmul.msk.bf16.gmra.mxu1 %vm86_vm2, %v908_v29 }
  0x5e   :  { %834 = vmatmul.msk.bf16.gmra.mxu2 %vm86_vm2, %v916_v30  ;;  %890 = vmatmul.msk.bf16.gmra.mxu3 %vm86_vm2, %v924_v31 }
  0x6d   :  { %723 = vmatmul.msk.bf16.gmra.mxu0 %vm86_vm2, %v901_v32  ;;  %779 = vmatmul.msk.bf16.gmra.mxu1 %vm86_vm2, %v909_v33 }
  0x6e   :  { %835 = vmatmul.msk.bf16.gmra.mxu2 %vm86_vm2, %v917_v34  ;;  %891 = vmatmul.msk.bf16.gmra.mxu3 %vm86_vm2, %v925_v35 }
  0x7d   :  { %724 = vmatmul.msk.bf16.gmra.mxu0 %vm86_vm2, %v902_v36  ;;  %780 = vmatmul.msk.bf16.gmra.mxu1 %vm86_vm2, %v910_v37 }
  0x7e   :  { %836 = vmatmul.msk.bf16.gmra.mxu2 %vm86_vm2, %v918_v38  ;;  %892 = vmatmul.msk.bf16.gmra.mxu3 %vm86_vm2, %v926_v39 }
  0x8a   :  { %v127_v40 = vpop.f32.mrf.mxu0  ;;  %v257_v41 = vpop.f32.mrf.mxu1 }
  0x8b   :  { %v297_v42 = vmax.f32 %v127_v40, %v257_v41 }
  0x91   :  { %v403_v43 = vpop.f32.mrf.mxu2  ;;  %v549_v44 = vpop.f32.mrf.mxu3 }
  0x92   :  { %v129_v45 = vpop.f32.mrf.mxu0  ;;  %v259_v46 = vpop.f32.mrf.mxu1  ;;  %v443_v47 = vmax.f32 %v297_v42, %v403_v43 }
  0x93   :  { %v298_v50 = vmax.f32 %v129_v45, %v259_v46 }
  0x94   :  { %v589_v48 = vmax.f32 %v443_v47, %v549_v44 }
  0x96   :  { %v609_v56 = vadd.f32 %v1137_v49, %v589_v48 }
  0x98   :  { %v625_v59 = vmax.f32 %v609_v56, 0.0 }
  0x99   :  { %v405_v51 = vpop.f32.mrf.mxu2  ;;  %v551_v52 = vpop.f32.mrf.mxu3 }
  0x9a   :  { %v444_v53 = vmax.f32 %v298_v50, %v405_v51  ;;  %v132_v54 = vpop.f32.mrf.mxu0  ;;  %v262_v55 = vpop.f32.mrf.mxu1 }
  0x9b   :  { %v299_v61 = vmax.f32 %v132_v54, %v262_v55 }
  0x9c   :  { %v590_v57 = vmax.f32 %v444_v53, %v551_v52 }
  0x9e   :  { %v610_v58 = vadd.f32 %v1137_v49, %v590_v57 }
  0xa0   :  { %v626_v60 = vmax.f32 %v610_v58, 0.0 }
  0xa1   :  { %v408_v62 = vpop.f32.mrf.mxu2  ;;  %v554_v63 = vpop.f32.mrf.mxu3 }
  0xa2   :  { %v930_v0 = vpack.c.bf16 %v626_v60, %v625_v59  ;;  %v134_v1 = vpop.f32.mrf.mxu0  ;;  %v264_v2 = vpop.f32.mrf.mxu1  ;;  %v445_v3 = vmax.f32 %v299_v61, %v408_v62 }
  0xa3   :  { %v300_v5 = vmax.f32 %v134_v1, %v264_v2 }
  0xa4   :  { %931 = vst [vmem:[%s1182_s3] sm:$0xff] %v930_v0   ;;  %v591_v4 = vmax.f32 %v445_v3, %v554_v63 }
  0xa6   :  { %v611_v11 = vadd.f32 %v1137_v49, %v591_v4 }
  0xa8   :  { %v627_v14 = vmax.f32 %v611_v11, 0.0 }
  0xa9   :  { %v410_v6 = vpop.f32.mrf.mxu2  ;;  %v556_v7 = vpop.f32.mrf.mxu3 }
  0xaa   :  { %v446_v8 = vmax.f32 %v300_v5, %v410_v6  ;;  %v137_v9 = vpop.f32.mrf.mxu0  ;;  %v267_v10 = vpop.f32.mrf.mxu1 }
  0xab   :  { %v301_v16 = vmax.f32 %v137_v9, %v267_v10 }
  0xac   :  { %v592_v12 = vmax.f32 %v446_v8, %v556_v7 }
  0xae   :  { %v612_v13 = vadd.f32 %v1137_v49, %v592_v12 }
  0xb0   :  { %v628_v15 = vmax.f32 %v612_v13, 0.0 }
  0xb1   :  { %v413_v17 = vpop.f32.mrf.mxu2  ;;  %v559_v18 = vpop.f32.mrf.mxu3 }
  0xb2   :  { %v935_v19 = vpack.c.bf16 %v628_v15, %v627_v14  ;;  %v139_v20 = vpop.f32.mrf.mxu0  ;;  %v269_v21 = vpop.f32.mrf.mxu1  ;;  %v447_v22 = vmax.f32 %v301_v16, %v413_v17 }
  0xb3   :  { %v302_v24 = vmax.f32 %v139_v20, %v269_v21 }
  0xb4   :  { %967 = vst [vmem:[%s1182_s3 + $0x8] sm:$0xff] %v935_v19   ;;  %v593_v23 = vmax.f32 %v447_v22, %v559_v18 }
  0xb6   :  { %v613_v30 = vadd.f32 %v1137_v49, %v593_v23 }
  0xb8   :  { %v629_v33 = vmax.f32 %v613_v30, 0.0 }
  0xb9   :  { %v415_v25 = vpop.f32.mrf.mxu2  ;;  %v561_v26 = vpop.f32.mrf.mxu3 }
  0xba   :  { %v448_v27 = vmax.f32 %v302_v24, %v415_v25  ;;  %v142_v28 = vpop.f32.mrf.mxu0  ;;  %v272_v29 = vpop.f32.mrf.mxu1 }
  0xbb   :  { %v303_v35 = vmax.f32 %v142_v28, %v272_v29 }
  0xbc   :  { %v594_v31 = vmax.f32 %v448_v27, %v561_v26 }
  0xbe   :  { %v614_v32 = vadd.f32 %v1137_v49, %v594_v31 }
  0xc0   :  { %v630_v34 = vmax.f32 %v614_v32, 0.0 }
  0xc1   :  { %v418_v36 = vpop.f32.mrf.mxu2  ;;  %v564_v37 = vpop.f32.mrf.mxu3 }
  0xc2   :  { %v940_v38 = vpack.c.bf16 %v630_v34, %v629_v33  ;;  %v144_v39 = vpop.f32.mrf.mxu0  ;;  %v274_v40 = vpop.f32.mrf.mxu1  ;;  %v449_v41 = vmax.f32 %v303_v35, %v418_v36 }
  0xc3   :  { %v304_v43 = vmax.f32 %v144_v39, %v274_v40 }
  0xc4   :  { %968 = vst [vmem:[%s1182_s3 + $0x10] sm:$0xff] %v940_v38   ;;  %v595_v42 = vmax.f32 %v449_v41, %v564_v37 }
  0xc6   :  { %v615_v50 = vadd.f32 %v1137_v49, %v595_v42 }
  0xc8   :  { %v631_v53 = vmax.f32 %v615_v50, 0.0 }
  0xc9   :  { %v420_v44 = vpop.f32.mrf.mxu2  ;;  %v566_v45 = vpop.f32.mrf.mxu3 }
  0xca   :  { %v450_v46 = vmax.f32 %v304_v43, %v420_v44  ;;  %v147_v47 = vpop.f32.mrf.mxu0  ;;  %v277_v48 = vpop.f32.mrf.mxu1 }
  0xcb   :  { %v305_v55 = vmax.f32 %v147_v47, %v277_v48 }
  0xcc   :  { %v596_v51 = vmax.f32 %v450_v46, %v566_v45 }
  0xce   :  { %v616_v52 = vadd.f32 %v1137_v49, %v596_v51 }
  0xd0   :  { %v632_v54 = vmax.f32 %v616_v52, 0.0 }
  0xd1   :  { %v423_v56 = vpop.f32.mrf.mxu2  ;;  %v569_v57 = vpop.f32.mrf.mxu3 }
  0xd2   :  { %v945_v58 = vpack.c.bf16 %v632_v54, %v631_v53  ;;  %v149_v59 = vpop.f32.mrf.mxu0  ;;  %v279_v60 = vpop.f32.mrf.mxu1  ;;  %v451_v61 = vmax.f32 %v305_v55, %v423_v56 }
  0xd3   :  { %v306_v63 = vmax.f32 %v149_v59, %v279_v60 }
  0xd4   :  { %969 = vst [vmem:[%s1182_s3 + $0x18] sm:$0xff] %v945_v58   ;;  %v597_v62 = vmax.f32 %v451_v61, %v569_v57 }
  0xd6   :  { %v617_v5 = vadd.f32 %v1137_v49, %v597_v62 }
  0xd8   :  { %v633_v8 = vmax.f32 %v617_v5, 0.0 }
  0xd9   :  { %v425_v0 = vpop.f32.mrf.mxu2  ;;  %v571_v1 = vpop.f32.mrf.mxu3 }
  0xda   :  { %v452_v2 = vmax.f32 %v306_v63, %v425_v0  ;;  %v152_v3 = vpop.f32.mrf.mxu0  ;;  %v282_v4 = vpop.f32.mrf.mxu1 }
  0xdb   :  { %v307_v10 = vmax.f32 %v152_v3, %v282_v4 }
  0xdc   :  { %v598_v6 = vmax.f32 %v452_v2, %v571_v1 }
  0xde   :  { %v618_v7 = vadd.f32 %v1137_v49, %v598_v6 }
  0xe0   :  { %v634_v9 = vmax.f32 %v618_v7, 0.0 }
  0xe1   :  { %v428_v11 = vpop.f32.mrf.mxu2  ;;  %v574_v12 = vpop.f32.mrf.mxu3 }
  0xe2   :  { %v950_v13 = vpack.c.bf16 %v634_v9, %v633_v8  ;;  %v154_v14 = vpop.f32.mrf.mxu0  ;;  %v284_v15 = vpop.f32.mrf.mxu1  ;;  %v453_v16 = vmax.f32 %v307_v10, %v428_v11 }
  0xe3   :  { %v308_v18 = vmax.f32 %v154_v14, %v284_v15 }
  0xe4   :  { %970 = vst [vmem:[%s1182_s3 + $0x20] sm:$0xff] %v950_v13   ;;  %v599_v17 = vmax.f32 %v453_v16, %v574_v12 }
  0xe6   :  { %v619_v24 = vadd.f32 %v1137_v49, %v599_v17 }
  0xe8   :  { %v635_v27 = vmax.f32 %v619_v24, 0.0 }
  0xe9   :  { %v430_v19 = vpop.f32.mrf.mxu2  ;;  %v576_v20 = vpop.f32.mrf.mxu3 }
  0xea   :  { %v454_v21 = vmax.f32 %v308_v18, %v430_v19  ;;  %v157_v22 = vpop.f32.mrf.mxu0  ;;  %v287_v23 = vpop.f32.mrf.mxu1 }
  0xeb   :  { %v309_v29 = vmax.f32 %v157_v22, %v287_v23 }
  0xec   :  { %v600_v25 = vmax.f32 %v454_v21, %v576_v20 }
  0xee   :  { %v620_v26 = vadd.f32 %v1137_v49, %v600_v25 }
  0xf0   :  { %v636_v28 = vmax.f32 %v620_v26, 0.0 }
  0xf1   :  { %v433_v30 = vpop.f32.mrf.mxu2  ;;  %v579_v31 = vpop.f32.mrf.mxu3 }
  0xf2   :  { %v955_v32 = vpack.c.bf16 %v636_v28, %v635_v27  ;;  %v159_v33 = vpop.f32.mrf.mxu0  ;;  %v289_v34 = vpop.f32.mrf.mxu1  ;;  %v455_v35 = vmax.f32 %v309_v29, %v433_v30 }
  0xf3   :  { %v310_v37 = vmax.f32 %v159_v33, %v289_v34 }
  0xf4   :  { %971 = vst [vmem:[%s1182_s3 + $0x28] sm:$0xff] %v955_v32   ;;  %v601_v36 = vmax.f32 %v455_v35, %v579_v31 }
  0xf6   :  { %v621_v43 = vadd.f32 %v1137_v49, %v601_v36 }
  0xf8   :  { %v637_v46 = vmax.f32 %v621_v43, 0.0 }
  0xf9   :  { %v435_v38 = vpop.f32.mrf.mxu2  ;;  %v581_v39 = vpop.f32.mrf.mxu3 }
  0xfa   :  { %v456_v40 = vmax.f32 %v310_v37, %v435_v38  ;;  %v162_v41 = vpop.f32.mrf.mxu0  ;;  %v292_v42 = vpop.f32.mrf.mxu1 }
  0xfb   :  { %v311_v48 = vmax.f32 %v162_v41, %v292_v42 }
  0xfc   :  { %v602_v44 = vmax.f32 %v456_v40, %v581_v39 }
  0xfe   :  { %v622_v45 = vadd.f32 %v1137_v49, %v602_v44 }
 0x100   :  { %v638_v47 = vmax.f32 %v622_v45, 0.0 }
 0x101   :  { %v438_v50 = vpop.f32.mrf.mxu2  ;;  %v584_v51 = vpop.f32.mrf.mxu3 }
 0x102   :  { %v960_v52 = vpack.c.bf16 %v638_v47, %v637_v46  ;;  %v457_v53 = vmax.f32 %v311_v48, %v438_v50  ;;  %v164_v54 = vpop.f32.mrf.mxu0  ;;  %v294_v55 = vpop.f32.mrf.mxu1 }
 0x103   :  { %v312_v57 = vmax.f32 %v164_v54, %v294_v55 }
 0x104   :  { %972 = vst [vmem:[%s1182_s3 + $0x30] sm:$0xff] %v960_v52   ;;  %v603_v56 = vmax.f32 %v457_v53, %v584_v51 }
 0x106   :  { %v623_v61 = vadd.f32 %v1137_v49, %v603_v56 }
 0x108   :  { %v639_v0 = vmax.f32 %v623_v61, 0.0 }
 0x109   :  { %v440_v58 = vpop.f32.mrf.mxu2  ;;  %v586_v60 = vpop.f32.mrf.mxu3 }
 0x10a   :  { %v458_v59 = vmax.f32 %v312_v57, %v440_v58 }
 0x10c   :  { %v604_v62 = vmax.f32 %v458_v59, %v586_v60 }
 0x10e   :  { %v624_v63 = vadd.f32 %v1137_v49, %v604_v62 }
 0x110   :  { %v640_v1 = vmax.f32 %v624_v63, 0.0 }
 0x112   :  { %v965_v2 = vpack.c.bf16 %v640_v1, %v639_v0 }
 0x114   :  { %973 = vst [vmem:[%s1182_s3 + $0x38] sm:$0xff] %v965_v2  }

// kernel: vgg_forward.6
= control target key start
LH: loop header
LB: loop body
LE: loop exit
PB: predicated region body
PF: predicated region fallthrough
CT: control target
= control target key end

     0   :  { %vm109_vm0 = vcmask 130048   ;;  %s745_s1 = inlined_call_operand.vmem [shape: bf16[144,128], index: 1, kind: input, shape index: {}]   ;;  %s746_s0 = inlined_call_operand.vmem [shape: bf16[4,32,144], index: 0, kind: input, shape index: {}]   ;;  %s747_s2 = inlined_call_operand.vmem [shape: f32[1,128], index: 2, kind: input, shape index: {}]   ;;  %s748_s3 = inlined_call_operand.vmem [shape: bf16[32,128], index: 3, kind: output, shape index: {}]  }
   0x1   :  { %v580_v0 = vld [vmem:[%s745_s1 + $0x38] sm:$0xff]  ;;  %v585_v1 = vld [vmem:[%s745_s1 + $0x40] sm:$0xff]  ;;  %v395_v3 = vld [vmem:[%s746_s0 + $0x8] sm:$0xf0] }
   0x2   :  { %v520_v2 = vld [vmem:[%s746_s0 + $0x4] sm:$0xf]  ;;  %v453_v5 = vld [vmem:[%s746_s0 + $0x28] sm:$0xf0]  ;;  %116 = vmatpush.bf16.msra.mxu0 %v580_v0  ;;  %142 = vmatpush.bf16.msra.mxu1 %v585_v1  ;;  %v604_v8 = vld [vmem:[%s745_s1 + $0x30] sm:$0xff] }
   0x3   :  { %v524_v4 = vld [vmem:[%s746_s0 + $0x24] sm:$0xf]  ;;  %v398_v6 = vor.u32 %v520_v2, %v395_v3  ;;  %183 = vmatpush.bf16.msra.mxu2 %v580_v0  ;;  %209 = vmatpush.bf16.msra.mxu3 %v585_v1  ;;  %v516_v9 = vld [vmem:[%s745_s1 + $0x28] sm:$0xff]  ;;  %v625_v11 = vld [vmem:[%s745_s1 + $0x18] sm:$0xff] }
   0x4   :  { %v456_v7 = vor.u32 %v524_v4, %v453_v5  ;;  %v515_v10 = vld [vmem:[%s745_s1 + $0x20] sm:$0xff]  ;;  %v522_v12 = vld [vmem:[%s746_s0 + $0x14] sm:$0xf]  ;;  %v403_v13 = vld [vmem:[%s746_s0 + $0x18] sm:$0xf0] }
   0x5   :  { %443 = vmatmul.msk.bf16.vlgmr.msra.gmra.mxu1 %vm109_vm0, %v398_v6  ;;  %v526_v14 = vld [vmem:[%s746_s0 + $0x34] sm:$0xf]  ;;  %v461_v15 = vld [vmem:[%s746_s0 + $0x38] sm:$0xf0]  ;;  %v406_v16 = vor.u32 %v522_v12, %v403_v13  ;;  %v512_v19 = vld [vmem:[%s745_s1 + $0x8] sm:$0xff] }
   0x6   :  { %254 = vmatpush.bf16.msrb.mxu1 %v580_v0  ;;  %465 = vmatmul.msk.bf16.vlgmr.msra.gmra.mxu3 %vm109_vm0, %v456_v7  ;;  %v464_v17 = vor.u32 %v526_v14, %v461_v15  ;;  %v513_v18 = vld [vmem:[%s745_s1 + $0x10] sm:$0xff]  ;;  %v511_v20 = vld [vmem:[%s745_s1] sm:$0xff]  ;;  %v521_v22 = vld [vmem:[%s746_s0 + $0x4] sm:$0xf0] }
   0x7   :  { %280 = vmatpush.bf16.msrb.mxu3 %v585_v1  ;;  %117 = vmatpush.bf16.msra.mxu0 %v604_v8  ;;  %v393_v21 = vld [vmem:[%s746_s0] sm:$0xf]  ;;  %v525_v24 = vld [vmem:[%s746_s0 + $0x24] sm:$0xf0]  ;;  %v528_v29 = vld [vmem:[%s746_s0 + $0x44] sm:$0xf] }
   0x8   :  { %184 = vmatpush.bf16.msra.mxu2 %v604_v8  ;;  %v451_v23 = vld [vmem:[%s746_s0 + $0x20] sm:$0xf]  ;;  %v394_v25 = vor.u32 %v521_v22, %v393_v21  ;;  %v529_v28 = vld [vmem:[%s746_s0 + $0x44] sm:$0xf0]  ;;  %v475_v30 = vld [vmem:[%s746_s0 + $0x48] sm:$0xf0] }
   0x9   :  { %v452_v26 = vor.u32 %v525_v24, %v451_v23  ;;  %v473_v27 = vld [vmem:[%s746_s0 + $0x40] sm:$0xf]  ;;  %v478_v32 = vor.u32 %v528_v29, %v475_v30  ;;  %v401_v33 = vld [vmem:[%s746_s0 + $0x10] sm:$0xf]  ;;  %v523_v34 = vld [vmem:[%s746_s0 + $0x14] sm:$0xf0] }
   0xa   :  { %255 = vmatpush.bf16.msrb.mxu1 %v604_v8  ;;  %v474_v31 = vor.u32 %v529_v28, %v473_v27  ;;  %v459_v35 = vld [vmem:[%s746_s0 + $0x30] sm:$0xf]  ;;  %v527_v36 = vld [vmem:[%s746_s0 + $0x34] sm:$0xf0]  ;;  %v402_v37 = vor.u32 %v523_v34, %v401_v33  ;;  %v530_v41 = vld [vmem:[%s746_s0 + $0x54] sm:$0xf] }
   0xb   :  { %555 = vmatpush.bf16.msra.mxu3 %v585_v1  ;;  %118 = vmatpush.bf16.msra.mxu0 %v516_v9  ;;  %v460_v38 = vor.u32 %v527_v36, %v459_v35  ;;  %v481_v39 = vld [vmem:[%s746_s0 + $0x50] sm:$0xf]  ;;  %v531_v40 = vld [vmem:[%s746_s0 + $0x54] sm:$0xf0]  ;;  %v483_v42 = vld [vmem:[%s746_s0 + $0x58] sm:$0xf0] }
   0xc   :  { %185 = vmatpush.bf16.msra.mxu2 %v516_v9  ;;  %v482_v43 = vor.u32 %v531_v40, %v481_v39  ;;  %v486_v44 = vor.u32 %v530_v41, %v483_v42  ;;  %v495_v45 = vld [vmem:[%s746_s0 + $0x60] sm:$0xf]  ;;  %v533_v46 = vld [vmem:[%s746_s0 + $0x64] sm:$0xf0]  ;;  %v532_v47 = vld [vmem:[%s746_s0 + $0x64] sm:$0xf] }
   0xd   :  { %v497_v48 = vld [vmem:[%s746_s0 + $0x68] sm:$0xf0]  ;;  %v496_v49 = vor.u32 %v533_v46, %v495_v45  ;;  %v503_v51 = vld [vmem:[%s746_s0 + $0x70] sm:$0xf]  ;;  %v535_v52 = vld [vmem:[%s746_s0 + $0x74] sm:$0xf0] }
   0xe   :  { %256 = vmatpush.bf16.msrb.mxu1 %v516_v9  ;;  %v500_v50 = vor.u32 %v532_v47, %v497_v48  ;;  %v534_v53 = vld [vmem:[%s746_s0 + $0x74] sm:$0xf]  ;;  %v505_v54 = vld [vmem:[%s746_s0 + $0x78] sm:$0xf0]  ;;  %v504_v55 = vor.u32 %v535_v52, %v503_v51 }
   0xf   :  { %119 = vmatpush.bf16.msra.mxu0 %v515_v10  ;;  %v508_v56 = vor.u32 %v534_v53, %v505_v54 }
  0x10   :  { %186 = vmatpush.bf16.msra.mxu2 %v515_v10 }
  0x12   :  { %257 = vmatpush.bf16.msrb.mxu1 %v515_v10 }
  0x13   :  { %120 = vmatpush.bf16.msra.mxu0 %v625_v11 }
  0x14   :  { %187 = vmatpush.bf16.msra.mxu2 %v625_v11 }
  0x15   :  { %444 = vmatmul.msk.bf16.gmra.mxu1 %vm109_vm0, %v406_v16 }
  0x16   :  { %258 = vmatpush.bf16.msrb.mxu1 %v625_v11  ;;  %466 = vmatmul.msk.bf16.gmra.mxu3 %vm109_vm0, %v464_v17 }
  0x17   :  { %121 = vmatpush.bf16.msra.mxu0 %v513_v18 }
  0x18   :  { %188 = vmatpush.bf16.msra.mxu2 %v513_v18 }
  0x1a   :  { %259 = vmatpush.bf16.msrb.mxu1 %v513_v18 }
  0x1b   :  { %122 = vmatpush.bf16.msra.mxu0 %v512_v19 }
  0x1c   :  { %189 = vmatpush.bf16.msra.mxu2 %v512_v19 }
  0x1e   :  { %260 = vmatpush.bf16.msrb.mxu1 %v512_v19 }
  0x1f   :  { %123 = vmatpush.bf16.msra.mxu0 %v511_v20 }
  0x20   :  { %190 = vmatpush.bf16.msra.mxu2 %v511_v20 }
  0x22   :  { %261 = vmatpush.bf16.msrb.mxu1 %v511_v20  ;;  %124 = vmatmul.bf16.vlgmr.msra.gmra.mxu0 %v394_v25 }
  0x23   :  { %325 = vmatpush.bf16.msrb.mxu0 %v580_v0  ;;  %191 = vmatmul.bf16.vlgmr.msra.gmra.mxu2 %v452_v26 }
  0x24   :  { %351 = vmatpush.bf16.msrb.mxu2 %v585_v1 }
  0x25   :  { %262 = vmatmul.bf16.vlgmr.msrb.gmra.mxu1 %v474_v31 }
  0x26   :  { %547 = vmatpush.bf16.msra.mxu1 %v580_v0  ;;  %487 = vmatmul.msk.bf16.vlgmr.msrb.gmra.mxu3 %vm109_vm0, %v478_v32 }
  0x27   :  { %326 = vmatpush.bf16.msrb.mxu0 %v604_v8 }
  0x2a   :  { %548 = vmatpush.bf16.msra.mxu1 %v604_v8 }
  0x2b   :  { %327 = vmatpush.bf16.msrb.mxu0 %v516_v9 }
  0x2e   :  { %549 = vmatpush.bf16.msra.mxu1 %v516_v9 }
  0x2f   :  { %328 = vmatpush.bf16.msrb.mxu0 %v515_v10 }
  0x32   :  { %550 = vmatpush.bf16.msra.mxu1 %v515_v10  ;;  %129 = vmatmul.bf16.gmra.mxu0 %v402_v37  ;;  %v556_v37 = vld [vmem:[%s747_s2] ss:$0 sm:$0xff] }
  0x33   :  { %329 = vmatpush.bf16.msrb.mxu0 %v625_v11  ;;  %196 = vmatmul.bf16.gmra.mxu2 %v460_v38 }
  0x35   :  { %267 = vmatmul.bf16.gmra.mxu1 %v482_v43 }
  0x36   :  { %551 = vmatpush.bf16.msra.mxu1 %v625_v11  ;;  %488 = vmatmul.msk.bf16.gmra.mxu3 %vm109_vm0, %v486_v44 }
  0x37   :  { %330 = vmatpush.bf16.msrb.mxu0 %v513_v18 }
  0x3a   :  { %552 = vmatpush.bf16.msra.mxu1 %v513_v18 }
  0x3b   :  { %331 = vmatpush.bf16.msrb.mxu0 %v512_v19 }
  0x3e   :  { %553 = vmatpush.bf16.msra.mxu1 %v512_v19 }
  0x3f   :  { %332 = vmatpush.bf16.msrb.mxu0 %v511_v20 }
  0x42   :  { %554 = vmatpush.bf16.msra.mxu1 %v511_v20  ;;  %333 = vmatmul.bf16.vlgmr.msrb.gmra.mxu0 %v496_v49 }
  0x43   :  { %509 = vmatmul.msk.bf16.vlgmr.msrb.gmra.mxu2 %vm109_vm0, %v500_v50 }
  0x45   :  { %338 = vmatmul.bf16.vlgmr.msra.gmra.mxu1 %v504_v55 }
  0x46   :  { %510 = vmatmul.msk.bf16.vlgmr.msra.gmra.mxu3 %vm109_vm0, %v508_v56 }
  0x82   :  { %v144_v57 = vpop.f32.mrf.mxu1 }
  0x89   :  { %v211_v58 = vpop.f32.mrf.mxu3 }
  0x8a   :  { %v146_v59 = vpop.f32.mrf.mxu1 }
  0x91   :  { %v213_v60 = vpop.f32.mrf.mxu3 }
  0x92   :  { %v149_v61 = vpop.f32.mrf.mxu1 }
  0x99   :  { %v216_v62 = vpop.f32.mrf.mxu3 }
  0x9a   :  { %v151_v63 = vpop.f32.mrf.mxu1 }
  0x9f   :  { %v125_v0 = vpop.f32.mrf.mxu0 }
  0xa0   :  { %v145_v4 = vadd.f32 %v144_v57, %v125_v0 }
  0xa1   :  { %v218_v1 = vpop.f32.mrf.mxu3 }
  0xa2   :  { %v263_v2 = vpop.f32.mrf.mxu1 }
  0xa6   :  { %v192_v3 = vpop.f32.mrf.mxu2 }
  0xa7   :  { %v212_v5 = vadd.f32 %v211_v58, %v192_v3  ;;  %v127_v6 = vpop.f32.mrf.mxu0 }
  0xa8   :  { %v147_v27 = vadd.f32 %v146_v59, %v127_v6 }
  0xa9   :  { %v221_v7 = vmax.f32 %v145_v4, %v212_v5  ;;  %v282_v8 = vpop.f32.mrf.mxu3 }
  0xaa   :  { %v265_v9 = vpop.f32.mrf.mxu1  ;;  %v283_v22 = vadd.f32 %v282_v8, %v263_v2 }
  0xac   :  { %v292_v30 = vmax.f32 %v221_v7, %v283_v22 }
  0xae   :  { %v194_v10 = vpop.f32.mrf.mxu2 }
  0xaf   :  { %v130_v11 = vpop.f32.mrf.mxu0  ;;  %v214_v23 = vadd.f32 %v213_v60, %v194_v10 }
  0xb0   :  { %v150_v31 = vadd.f32 %v149_v61, %v130_v11 }
  0xb1   :  { %v284_v12 = vpop.f32.mrf.mxu3  ;;  %v222_v33 = vmax.f32 %v147_v27, %v214_v23 }
  0xb2   :  { %v268_v13 = vpop.f32.mrf.mxu1  ;;  %v285_v28 = vadd.f32 %v284_v12, %v265_v9 }
  0xb4   :  { %v293_v39 = vmax.f32 %v222_v33, %v285_v28 }
  0xb6   :  { %v197_v14 = vpop.f32.mrf.mxu2 }
  0xb7   :  { %v132_v16 = vpop.f32.mrf.mxu0  ;;  %v217_v25 = vadd.f32 %v216_v62, %v197_v14 }
  0xb8   :  { %v152_v42 = vadd.f32 %v151_v63, %v132_v16 }
  0xb9   :  { %v287_v15 = vpop.f32.mrf.mxu3  ;;  %v223_v34 = vmax.f32 %v150_v31, %v217_v25 }
  0xba   :  { %v270_v17 = vpop.f32.mrf.mxu1  ;;  %v288_v32 = vadd.f32 %v287_v15, %v268_v13 }
  0xbc   :  { %v294_v43 = vmax.f32 %v223_v34, %v288_v32 }
  0xbe   :  { %v199_v18 = vpop.f32.mrf.mxu2 }
  0xbf   :  { %v334_v20 = vpop.f32.mrf.mxu0  ;;  %v219_v35 = vadd.f32 %v218_v1, %v199_v18 }
  0xc1   :  { %v289_v19 = vpop.f32.mrf.mxu3  ;;  %v224_v46 = vmax.f32 %v152_v42, %v219_v35 }
  0xc2   :  { %v339_v24 = vpop.f32.mrf.mxu1  ;;  %v290_v44 = vadd.f32 %v289_v19, %v270_v17 }
  0xc4   :  { %v295_v52 = vmax.f32 %v224_v46, %v290_v44 }
  0xc6   :  { %v353_v21 = vpop.f32.mrf.mxu2 }
  0xc7   :  { %v354_v26 = vadd.f32 %v353_v21, %v334_v20  ;;  %v336_v40 = vpop.f32.mrf.mxu0 }
  0xc9   :  { %v358_v29 = vpop.f32.mrf.mxu3  ;;  %v363_v36 = vmax.f32 %v292_v30, %v354_v26 }
  0xca   :  { %v359_v38 = vadd.f32 %v358_v29, %v339_v24  ;;  %v341_v50 = vpop.f32.mrf.mxu1 }
  0xcb   :  { %v371_v47 = vadd.f32 %v556_v37, %v363_v36 }
  0xcc   :  { %v365_v48 = vmax.f32 %v294_v43, %v359_v38 }
  0xcd   :  { %v375_v55 = vmax.f32 %v371_v47, 0.0 }
  0xce   :  { %v355_v41 = vpop.f32.mrf.mxu2  ;;  %v373_v56 = vadd.f32 %v556_v37, %v365_v48 }
  0xcf   :  { %v356_v45 = vadd.f32 %v355_v41, %v336_v40 }
  0xd0   :  { %v377_v61 = vmax.f32 %v373_v56, 0.0 }
  0xd1   :  { %v364_v49 = vmax.f32 %v293_v39, %v356_v45  ;;  %v360_v51 = vpop.f32.mrf.mxu3 }
  0xd2   :  { %v361_v54 = vadd.f32 %v360_v51, %v341_v50 }
  0xd3   :  { %v372_v53 = vadd.f32 %v556_v37, %v364_v49 }
  0xd4   :  { %v366_v58 = vmax.f32 %v295_v52, %v361_v54 }
  0xd5   :  { %v376_v57 = vmax.f32 %v372_v53, 0.0 }
  0xd6   :  { %v374_v60 = vadd.f32 %v556_v37, %v366_v58 }
  0xd7   :  { %v539_v59 = vpack.c.bf16 %v376_v57, %v375_v55 }
  0xd8   :  { %v378_v62 = vmax.f32 %v374_v60, 0.0 }
  0xd9   :  { %540 = vst [vmem:[%s748_s3] sm:$0xff] %v539_v59  }
  0xda   :  { %v544_v63 = vpack.c.bf16 %v378_v62, %v377_v61 }
  0xdc   :  { %546 = vst [vmem:[%s748_s3 + $0x8] sm:$0xff] %v544_v63  }

// kernel: vgg_forward.7
= control target key start
LH: loop header
LB: loop body
LE: loop exit
PB: predicated region body
PF: predicated region fallthrough
CT: control target
= control target key end

     0   :  { %vm171_vm0 = vcmask 261120   ;;  %s711_s1 = inlined_call_operand.vmem [shape: bf16[288,128], index: 1, kind: input, shape index: {}]   ;;  %s712_s0 = inlined_call_operand.vmem [shape: bf16[4,8,288], index: 0, kind: input, shape index: {}]   ;;  %s713_s2 = inlined_call_operand.vmem [shape: f32[1,128], index: 2, kind: input, shape index: {}]   ;;  %s714_s3 = inlined_call_operand.vmem [shape: bf16[8,128], index: 3, kind: output, shape index: {}]  }
   0x1   :  { %v518_v0 = vld [vmem:[%s711_s1 + $0x38] sm:$0xff]  ;;  %v528_v2 = vld [vmem:[%s711_s1 + $0x88] sm:$0xff]  ;;  %v535_v3 = vld [vmem:[%s711_s1 + $0x30] sm:$0xff] }
   0x2   :  { %v523_v1 = vld [vmem:[%s711_s1 + $0x78] sm:$0xff]  ;;  %175 = vmatpush.bf16.msra.mxu0 %v518_v0  ;;  %v540_v4 = vld [vmem:[%s711_s1 + $0x70] sm:$0xff]  ;;  %207 = vmatpush.bf16.msra.mxu3 %v528_v2  ;;  %v547_v5 = vld [vmem:[%s711_s1 + $0x80] sm:$0xff] }
   0x3   :  { %188 = vmatpush.bf16.msra.mxu1 %v523_v1  ;;  %243 = vmatpush.bf16.msra.mxu2 %v523_v1  ;;  %v52_v6 = vld [vmem:[%s712_s0 + $0x8] sm:$0xf]  ;;  %v572_v11 = vld [vmem:[%s711_s1 + $0x20] sm:$0xff]  ;;  %v587_v13 = vld [vmem:[%s711_s1 + $0x18] sm:$0xff] }
   0x4   :  { %v57_v7 = vunpack.c.l.b16 %v52_v6  ;;  %v557_v8 = vld [vmem:[%s711_s1 + $0x28] sm:$0xff]  ;;  %v577_v12 = vld [vmem:[%s711_s1 + $0x60] sm:$0xff]  ;;  %v592_v14 = vld [vmem:[%s711_s1 + $0x58] sm:$0xff] }
   0x5   :  { %v562_v9 = vld [vmem:[%s711_s1 + $0x68] sm:$0xff]  ;;  %v601_v15 = vld [vmem:[%s711_s1 + $0x10] sm:$0xff]  ;;  %v51_v19 = vld [vmem:[%s712_s0] sm:$0xff] }
   0x6   :  { %176 = vmatpush.bf16.msra.mxu0 %v535_v3  ;;  %208 = vmatpush.bf16.msra.mxu3 %v547_v5  ;;  %v60_v10 = vpack.c.b16 %v57_v7, %v57_v7  ;;  %v606_v16 = vld [vmem:[%s711_s1 + $0x50] sm:$0xff]  ;;  %v615_v17 = vld [vmem:[%s711_s1 + $0x8] sm:$0xff]  ;;  %v56_v21 = vunpack.c.h.b16 %v51_v19  ;;  %v635_v22 = vld [vmem:[%s711_s1] sm:$0xff]  ;;  %v55_v24 = vunpack.c.l.b16 %v51_v19 }
   0x7   :  { %189 = vmatpush.bf16.msra.mxu1 %v540_v4  ;;  %244 = vmatpush.bf16.msra.mxu2 %v540_v4  ;;  %v620_v18 = vld [vmem:[%s711_s1 + $0x48] sm:$0xff]  ;;  %v640_v23 = vld [vmem:[%s711_s1 + $0x40] sm:$0xff]  ;;  %v468_v31 = vld [vmem:[%s712_s0 + $0x14] sm:$0xf] }
   0x8   :  { %v467_v20 = vld [vmem:[%s712_s0 + $0xc] sm:$0xff]  ;;  %v59_v26 = vpack.c.b16 %v56_v21, %v56_v21  ;;  %v58_v27 = vpack.c.b16 %v55_v24, %v55_v24  ;;  %v471_v32 = vld [vmem:[%s712_s0 + $0x20] sm:$0xf]  ;;  %v221_v33 = vunpack.c.l.b16 %v468_v31  ;;  %v470_v37 = vld [vmem:[%s712_s0 + $0x18] sm:$0xff] }
   0x9   :  { %466 = vmatmul.msk.bf16.vlgmr.msra.gmra.mxu3 %vm171_vm0, %v60_v10  ;;  %v220_v25 = vunpack.c.h.b16 %v467_v20  ;;  %v219_v29 = vunpack.c.l.b16 %v467_v20  ;;  %v277_v34 = vunpack.c.l.b16 %v471_v32  ;;  %v275_v38 = vunpack.c.l.b16 %v470_v37  ;;  %v473_v39 = vld [vmem:[%s712_s0 + $0x24] sm:$0xff]  ;;  %v474_v47 = vld [vmem:[%s712_s0 + $0x2c] sm:$0xf] }
   0xa   :  { %230 = vmatpush.bf16.msrb.mxu3 %v518_v0  ;;  %177 = vmatpush.bf16.msra.mxu0 %v557_v8  ;;  %v224_v35 = vpack.c.b16 %v221_v33, %v221_v33  ;;  %v276_v41 = vunpack.c.h.b16 %v470_v37  ;;  %v332_v42 = vunpack.c.h.b16 %v473_v39  ;;  %v331_v43 = vunpack.c.l.b16 %v473_v39 }
   0xb   :  { %190 = vmatpush.bf16.msra.mxu1 %v562_v9  ;;  %245 = vmatpush.bf16.msra.mxu2 %v562_v9  ;;  %v223_v28 = vpack.c.b16 %v220_v25, %v220_v25  ;;  %v222_v30 = vpack.c.b16 %v219_v29, %v219_v29  ;;  %v280_v36 = vpack.c.b16 %v277_v34, %v277_v34  ;;  %v333_v48 = vunpack.c.l.b16 %v474_v47 }
   0xc   :  { %v278_v40 = vpack.c.b16 %v275_v38, %v275_v38  ;;  %v279_v44 = vpack.c.b16 %v276_v41, %v276_v41  ;;  %v335_v45 = vpack.c.b16 %v332_v42, %v332_v42  ;;  %v334_v46 = vpack.c.b16 %v331_v43, %v331_v43 }
   0xd   :  { %v336_v49 = vpack.c.b16 %v333_v48, %v333_v48 }
   0xe   :  { %231 = vmatpush.bf16.msrb.mxu3 %v535_v3  ;;  %178 = vmatpush.bf16.msra.mxu0 %v572_v11 }
   0xf   :  { %191 = vmatpush.bf16.msra.mxu1 %v577_v12  ;;  %246 = vmatpush.bf16.msra.mxu2 %v577_v12 }
  0x12   :  { %232 = vmatpush.bf16.msrb.mxu3 %v557_v8  ;;  %179 = vmatpush.bf16.msra.mxu0 %v587_v13 }
  0x13   :  { %192 = vmatpush.bf16.msra.mxu1 %v592_v14  ;;  %247 = vmatpush.bf16.msra.mxu2 %v592_v14 }
  0x16   :  { %233 = vmatpush.bf16.msrb.mxu3 %v572_v11  ;;  %180 = vmatpush.bf16.msra.mxu0 %v601_v15 }
  0x17   :  { %193 = vmatpush.bf16.msra.mxu1 %v606_v16  ;;  %248 = vmatpush.bf16.msra.mxu2 %v606_v16 }
  0x1a   :  { %234 = vmatpush.bf16.msrb.mxu3 %v587_v13  ;;  %181 = vmatpush.bf16.msra.mxu0 %v615_v17 }
  0x1b   :  { %194 = vmatpush.bf16.msra.mxu1 %v620_v18  ;;  %249 = vmatpush.bf16.msra.mxu2 %v620_v18 }
  0x1e   :  { %235 = vmatpush.bf16.msrb.mxu3 %v601_v15  ;;  %182 = vmatpush.bf16.msra.mxu0 %v635_v22 }
  0x1f   :  { %195 = vmatpush.bf16.msra.mxu1 %v640_v23  ;;  %250 = vmatpush.bf16.msra.mxu2 %v640_v23 }
  0x21   :  { %183 = vmatmul.bf16.vlgmr.msra.gmra.mxu0 %v58_v27 }
  0x22   :  { %236 = vmatpush.bf16.msrb.mxu3 %v615_v17  ;;  %262 = vmatpush.bf16.msrb.mxu0 %v528_v2 }
  0x23   :  { %286 = vmatpush.bf16.msrb.mxu1 %v518_v0  ;;  %318 = vmatpush.bf16.msrb.mxu2 %v528_v2 }
  0x24   :  { %196 = vmatmul.bf16.vlgmr.msra.gmra.mxu1 %v59_v26  ;;  %251 = vmatmul.bf16.vlgmr.msra.gmra.mxu2 %v223_v28 }
  0x26   :  { %237 = vmatpush.bf16.msrb.mxu3 %v635_v22  ;;  %263 = vmatpush.bf16.msrb.mxu0 %v547_v5 }
  0x27   :  { %287 = vmatpush.bf16.msrb.mxu1 %v535_v3  ;;  %319 = vmatpush.bf16.msrb.mxu2 %v547_v5 }
  0x29   :  { %238 = vmatmul.bf16.vlgmr.msrb.gmra.mxu3 %v222_v30 }
  0x2a   :  { %299 = vmatpush.bf16.msra.mxu3 %v523_v1  ;;  %342 = vmatpush.bf16.msra.mxu0 %v518_v0 }
  0x2b   :  { %355 = vmatpush.bf16.msra.mxu2 %v523_v1  ;;  %288 = vmatpush.bf16.msrb.mxu1 %v557_v8 }
  0x2e   :  { %300 = vmatpush.bf16.msra.mxu3 %v540_v4  ;;  %343 = vmatpush.bf16.msra.mxu0 %v535_v3 }
  0x2f   :  { %356 = vmatpush.bf16.msra.mxu2 %v540_v4  ;;  %289 = vmatpush.bf16.msrb.mxu1 %v572_v11 }
  0x31   :  { %469 = vmatmul.msk.bf16.vlgmr.msrb.gmra.mxu0 %vm171_vm0, %v224_v35 }
  0x32   :  { %301 = vmatpush.bf16.msra.mxu3 %v562_v9  ;;  %344 = vmatpush.bf16.msra.mxu0 %v557_v8 }
  0x33   :  { %357 = vmatpush.bf16.msra.mxu2 %v562_v9  ;;  %290 = vmatpush.bf16.msrb.mxu1 %v587_v13 }
  0x34   :  { %472 = vmatmul.msk.bf16.vlgmr.msrb.gmra.mxu2 %vm171_vm0, %v280_v36 }
  0x36   :  { %302 = vmatpush.bf16.msra.mxu3 %v577_v12  ;;  %345 = vmatpush.bf16.msra.mxu0 %v572_v11 }
  0x37   :  { %358 = vmatpush.bf16.msra.mxu2 %v577_v12  ;;  %291 = vmatpush.bf16.msrb.mxu1 %v601_v15 }
  0x3a   :  { %303 = vmatpush.bf16.msra.mxu3 %v592_v14  ;;  %346 = vmatpush.bf16.msra.mxu0 %v587_v13 }
  0x3b   :  { %359 = vmatpush.bf16.msra.mxu2 %v592_v14  ;;  %292 = vmatpush.bf16.msrb.mxu1 %v615_v17 }
  0x3e   :  { %304 = vmatpush.bf16.msra.mxu3 %v606_v16  ;;  %347 = vmatpush.bf16.msra.mxu0 %v601_v15 }
  0x3f   :  { %360 = vmatpush.bf16.msra.mxu2 %v606_v16  ;;  %293 = vmatpush.bf16.msrb.mxu1 %v635_v22 }
  0x42   :  { %305 = vmatpush.bf16.msra.mxu3 %v620_v18  ;;  %348 = vmatpush.bf16.msra.mxu0 %v615_v17  ;;  %v494_v17 = vld [vmem:[%s713_s2] ss:$0 sm:$0xff] }
  0x43   :  { %374 = vmatpush.bf16.msra.mxu1 %v528_v2  ;;  %361 = vmatpush.bf16.msra.mxu2 %v620_v18 }
  0x44   :  { %294 = vmatmul.bf16.vlgmr.msrb.gmra.mxu1 %v278_v40 }
  0x46   :  { %306 = vmatpush.bf16.msra.mxu3 %v640_v23  ;;  %349 = vmatpush.bf16.msra.mxu0 %v635_v22 }
  0x47   :  { %375 = vmatpush.bf16.msra.mxu1 %v547_v5  ;;  %362 = vmatpush.bf16.msra.mxu2 %v640_v23 }
  0x49   :  { %307 = vmatmul.bf16.vlgmr.msra.gmra.mxu3 %v279_v44  ;;  %350 = vmatmul.bf16.vlgmr.msra.gmra.mxu0 %v334_v46 }
  0x4a   :  { %363 = vmatmul.bf16.vlgmr.msra.gmra.mxu2 %v335_v45 }
  0x54   :  { %475 = vmatmul.msk.bf16.vlgmr.msra.gmra.mxu1 %vm171_vm0, %v336_v49 }
  0x8c   :  { %v210_v50 = vpop.f32.mrf.mxu3 }
  0x94   :  { %v212_v51 = vpop.f32.mrf.mxu3 }
  0x9e   :  { %v184_v53 = vpop.f32.mrf.mxu0 }
  0xa1   :  { %v197_v52 = vpop.f32.mrf.mxu1 }
  0xa2   :  { %v198_v2 = vadd.f32 %v197_v52, %v184_v53 }
  0xa4   :  { %v211_v7 = vadd.f32 %v210_v50, %v198_v2 }
  0xa6   :  { %v186_v56 = vpop.f32.mrf.mxu0 }
  0xa7   :  { %v252_v54 = vpop.f32.mrf.mxu2 }
  0xa9   :  { %v199_v55 = vpop.f32.mrf.mxu1 }
  0xac   :  { %v239_v57 = vpop.f32.mrf.mxu3 }
  0xad   :  { %v253_v3 = vadd.f32 %v252_v54, %v239_v57 }
  0xae   :  { %v265_v59 = vpop.f32.mrf.mxu0 }
  0xaf   :  { %v254_v58 = vpop.f32.mrf.mxu2  ;;  %v266_v5 = vadd.f32 %v265_v59, %v253_v3 }
  0xb1   :  { %v269_v11 = vmax.f32 %v211_v7, %v266_v5 }
  0xb4   :  { %v241_v60 = vpop.f32.mrf.mxu3 }
  0xb6   :  { %v267_v62 = vpop.f32.mrf.mxu0 }
  0xb7   :  { %v321_v61 = vpop.f32.mrf.mxu2 }
  0xbf   :  { %v323_v0 = vpop.f32.mrf.mxu2 }
  0xc1   :  { %v295_v63 = vpop.f32.mrf.mxu1 }
  0xc6   :  { %v351_v1 = vpop.f32.mrf.mxu0 }
  0xc9   :  { %v297_v4 = vpop.f32.mrf.mxu1 }
  0xcc   :  { %v308_v6 = vpop.f32.mrf.mxu3 }
  0xcd   :  { %v309_v8 = vadd.f32 %v308_v6, %v295_v63  ;;  %v364_v9 = vpop.f32.mrf.mxu2 }
  0xce   :  { %v365_v10 = vadd.f32 %v364_v9, %v351_v1  ;;  %v353_v13 = vpop.f32.mrf.mxu0 }
  0xcf   :  { %v322_v12 = vadd.f32 %v321_v61, %v309_v8 }
  0xd1   :  { %v325_v14 = vmax.f32 %v269_v11, %v322_v12  ;;  %v377_v15 = vpop.f32.mrf.mxu1 }
  0xd2   :  { %v378_v16 = vadd.f32 %v377_v15, %v365_v10 }
  0xd4   :  { %v381_v18 = vmax.f32 %v325_v14, %v378_v16  ;;  %v310_v19 = vpop.f32.mrf.mxu3 }
  0xd5   :  { %v366_v20 = vpop.f32.mrf.mxu2 }
  0xd6   :  { %v386_v21 = vadd.f32 %v494_v17, %v381_v18 }
  0xd8   :  { %v387_v22 = vmax.f32 %v386_v21, 0.0 }
  0xd9   :  { %v379_v23 = vpop.f32.mrf.mxu1 }
  0xda   :  { %v388_v24 = vpack.c.bf16 %v387_v22, %v387_v22 }
  0xdc   :  { %389 = vst [vmem:[%s714_s3] sm:$0xf] %v388_v24 }

// kernel: vgg_forward.8
= control target key start
LH: loop header
LB: loop body
LE: loop exit
PB: predicated region body
PF: predicated region fallthrough
CT: control target
= control target key end

     0   :  { %vm899_vm0 = vcmask 523264   ;;  %s4775_s1 = inlined_call_operand.vmem [shape: bf16[576,512], index: 1, kind: input, shape index: {}]   ;;  %s4776_s0 = inlined_call_operand.vmem [shape: bf16[4,8,576], index: 0, kind: input, shape index: {}]   ;;  %s4777_s2 = inlined_call_operand.vmem [shape: f32[1,512], index: 2, kind: input, shape index: {}]   ;;  %s4778_s3 = inlined_call_operand.vmem [shape: bf16[8,512], index: 3, kind: output, shape index: {}]  }
   0x1   :  { %v2167_v0 = vld [vmem:[%s4775_s1 + $0xe0] sm:$0xf]  ;;  %v2684_v1 = vld [vmem:[%s4775_s1 + $0xec] sm:$0xf0] }
   0x2   :  { %v2295_v2 = vld [vmem:[%s4775_s1 + $0x1e0] sm:$0xf]  ;;  %v2827_v3 = vor.u32 %v2684_v1, %v2167_v0  ;;  %v2716_v4 = vld [vmem:[%s4775_s1 + $0x1ec] sm:$0xf0] }
   0x3   :  { %v2423_v5 = vld [vmem:[%s4775_s1 + $0x2e0] sm:$0xf]  ;;  %v2748_v6 = vld [vmem:[%s4775_s1 + $0x2ec] sm:$0xf0]  ;;  %v2838_v7 = vor.u32 %v2716_v4, %v2295_v2 }
   0x4   :  { %v2840_v8 = vor.u32 %v2748_v6, %v2423_v5  ;;  %v2551_v9 = vld [vmem:[%s4775_s1 + $0x3e0] sm:$0xf]  ;;  %v2780_v10 = vld [vmem:[%s4775_s1 + $0x3ec] sm:$0xf0]  ;;  %903 = vmatpush.bf16.msra.mxu0 %v2827_v3 }
   0x5   :  { %v2151_v11 = vld [vmem:[%s4775_s1 + $0xc0] sm:$0xf]  ;;  %v2852_v12 = vor.u32 %v2780_v10, %v2551_v9  ;;  %v2680_v13 = vld [vmem:[%s4775_s1 + $0xcc] sm:$0xf0]  ;;  %916 = vmatpush.bf16.msra.mxu1 %v2838_v7 }
   0x6   :  { %v2279_v14 = vld [vmem:[%s4775_s1 + $0x1c0] sm:$0xf]  ;;  %v2712_v15 = vld [vmem:[%s4775_s1 + $0x1cc] sm:$0xf0]  ;;  %929 = vmatpush.bf16.msra.mxu2 %v2840_v8  ;;  %v2865_v16 = vor.u32 %v2680_v13, %v2151_v11 }
   0x7   :  { %v2867_v17 = vor.u32 %v2712_v15, %v2279_v14  ;;  %v2407_v18 = vld [vmem:[%s4775_s1 + $0x2c0] sm:$0xf]  ;;  %v2744_v19 = vld [vmem:[%s4775_s1 + $0x2cc] sm:$0xf0]  ;;  %942 = vmatpush.bf16.msra.mxu3 %v2852_v12 }
   0x8   :  { %v2535_v20 = vld [vmem:[%s4775_s1 + $0x3c0] sm:$0xf]  ;;  %v2879_v21 = vor.u32 %v2744_v19, %v2407_v18  ;;  %v2776_v22 = vld [vmem:[%s4775_s1 + $0x3cc] sm:$0xf0]  ;;  %904 = vmatpush.bf16.msra.mxu0 %v2865_v16 }
   0x9   :  { %v2135_v23 = vld [vmem:[%s4775_s1 + $0xa0] sm:$0xf]  ;;  %v2676_v24 = vld [vmem:[%s4775_s1 + $0xac] sm:$0xf0]  ;;  %v2890_v25 = vor.u32 %v2776_v22, %v2535_v20  ;;  %917 = vmatpush.bf16.msra.mxu1 %v2867_v17 }
   0xa   :  { %v2263_v26 = vld [vmem:[%s4775_s1 + $0x1a0] sm:$0xf]  ;;  %v2708_v27 = vld [vmem:[%s4775_s1 + $0x1ac] sm:$0xf0]  ;;  %v2902_v29 = vor.u32 %v2676_v24, %v2135_v23  ;;  %930 = vmatpush.bf16.msra.mxu2 %v2879_v21 }
   0xb   :  { %v2391_v28 = vld [vmem:[%s4775_s1 + $0x2a0] sm:$0xf]  ;;  %v2740_v30 = vld [vmem:[%s4775_s1 + $0x2ac] sm:$0xf0]  ;;  %v2915_v33 = vor.u32 %v2708_v27, %v2263_v26  ;;  %943 = vmatpush.bf16.msra.mxu3 %v2890_v25 }
   0xc   :  { %v2519_v31 = vld [vmem:[%s4775_s1 + $0x3a0] sm:$0xf]  ;;  %v2772_v32 = vld [vmem:[%s4775_s1 + $0x3ac] sm:$0xf0]  ;;  %v2917_v34 = vor.u32 %v2740_v30, %v2391_v28  ;;  %905 = vmatpush.bf16.msra.mxu0 %v2902_v29 }
   0xd   :  { %v2119_v35 = vld [vmem:[%s4775_s1 + $0x80] sm:$0xf]  ;;  %v2672_v36 = vld [vmem:[%s4775_s1 + $0x8c] sm:$0xf0]  ;;  %v2929_v38 = vor.u32 %v2772_v32, %v2519_v31  ;;  %918 = vmatpush.bf16.msra.mxu1 %v2915_v33 }
   0xe   :  { %v2247_v37 = vld [vmem:[%s4775_s1 + $0x180] sm:$0xf]  ;;  %v2704_v39 = vld [vmem:[%s4775_s1 + $0x18c] sm:$0xf0]  ;;  %v2947_v44 = vor.u32 %v2672_v36, %v2119_v35  ;;  %931 = vmatpush.bf16.msra.mxu2 %v2917_v34 }
   0xf   :  { %v2375_v40 = vld [vmem:[%s4775_s1 + $0x280] sm:$0xf]  ;;  %v2736_v41 = vld [vmem:[%s4775_s1 + $0x28c] sm:$0xf0]  ;;  %v2951_v45 = vor.u32 %v2704_v39, %v2247_v37  ;;  %944 = vmatpush.bf16.msra.mxu3 %v2929_v38 }
  0x10   :  { %v2503_v42 = vld [vmem:[%s4775_s1 + $0x380] sm:$0xf]  ;;  %v2768_v43 = vld [vmem:[%s4775_s1 + $0x38c] sm:$0xf0]  ;;  %v2953_v46 = vor.u32 %v2736_v41, %v2375_v40  ;;  %906 = vmatpush.bf16.msra.mxu0 %v2947_v44 }
  0x11   :  { %v2103_v47 = vld [vmem:[%s4775_s1 + $0x60] sm:$0xf]  ;;  %v2668_v48 = vld [vmem:[%s4775_s1 + $0x6c] sm:$0xf0]  ;;  %v2965_v50 = vor.u32 %v2768_v43, %v2503_v42  ;;  %919 = vmatpush.bf16.msra.mxu1 %v2951_v45  ;;  %v2682_v42 = vld [vmem:[%s4775_s1 + $0xe4] sm:$0xf] }
  0x12   :  { %v2231_v49 = vld [vmem:[%s4775_s1 + $0x160] sm:$0xf]  ;;  %v2700_v51 = vld [vmem:[%s4775_s1 + $0x16c] sm:$0xf0]  ;;  %v2983_v56 = vor.u32 %v2668_v48, %v2103_v47  ;;  %932 = vmatpush.bf16.msra.mxu2 %v2953_v46  ;;  %v2169_v48 = vld [vmem:[%s4775_s1 + $0xf0] sm:$0xf0] }
  0x13   :  { %v2359_v52 = vld [vmem:[%s4775_s1 + $0x260] sm:$0xf]  ;;  %v2732_v53 = vld [vmem:[%s4775_s1 + $0x26c] sm:$0xf0]  ;;  %v2987_v57 = vor.u32 %v2700_v51, %v2231_v49  ;;  %945 = vmatpush.bf16.msra.mxu3 %v2965_v50  ;;  %v2714_v49 = vld [vmem:[%s4775_s1 + $0x1e4] sm:$0xf] }
  0x14   :  { %v2487_v54 = vld [vmem:[%s4775_s1 + $0x360] sm:$0xf]  ;;  %v2764_v55 = vld [vmem:[%s4775_s1 + $0x36c] sm:$0xf0]  ;;  %v2989_v58 = vor.u32 %v2732_v53, %v2359_v52  ;;  %907 = vmatpush.bf16.msra.mxu0 %v2983_v56  ;;  %v2297_v51 = vld [vmem:[%s4775_s1 + $0x1f0] sm:$0xf0] }
  0x15   :  { %v2087_v59 = vld [vmem:[%s4775_s1 + $0x40] sm:$0xf]  ;;  %v2664_v60 = vld [vmem:[%s4775_s1 + $0x4c] sm:$0xf0]  ;;  %v3001_v62 = vor.u32 %v2764_v55, %v2487_v54  ;;  %920 = vmatpush.bf16.msra.mxu1 %v2987_v57  ;;  %v2746_v55 = vld [vmem:[%s4775_s1 + $0x2e4] sm:$0xf] }
  0x16   :  { %v2215_v61 = vld [vmem:[%s4775_s1 + $0x140] sm:$0xf]  ;;  %v2696_v63 = vld [vmem:[%s4775_s1 + $0x14c] sm:$0xf0]  ;;  %v3019_v5 = vor.u32 %v2664_v60, %v2087_v59  ;;  %933 = vmatpush.bf16.msra.mxu2 %v2989_v58  ;;  %v2425_v59 = vld [vmem:[%s4775_s1 + $0x2f0] sm:$0xf0] }
  0x17   :  { %v2343_v0 = vld [vmem:[%s4775_s1 + $0x240] sm:$0xf]  ;;  %v2728_v1 = vld [vmem:[%s4775_s1 + $0x24c] sm:$0xf0]  ;;  %v3023_v6 = vor.u32 %v2696_v63, %v2215_v61  ;;  %946 = vmatpush.bf16.msra.mxu3 %v3001_v62  ;;  %v160_v63 = vld [vmem:[%s4776_s0 + $0x8] sm:$0xff] }
  0x18   :  { %v2471_v2 = vld [vmem:[%s4775_s1 + $0x340] sm:$0xf]  ;;  %v2760_v4 = vld [vmem:[%s4775_s1 + $0x34c] sm:$0xf0]  ;;  %5001 = vst [vmem:[#allocation2_spill] sm:$0xff] %v3019_v5  ;;  %v3025_v9 = vor.u32 %v2728_v1, %v2343_v0  ;;  %908 = vmatpush.bf16.msra.mxu0 %v3019_v5  ;;  %v3134_v1 = vor.u32 %v2682_v42, %v2169_v48 }
  0x19   :  { %5002 = vst [vmem:[#allocation3_spill] sm:$0xff] %v3023_v6  ;;  %v2071_v10 = vld [vmem:[%s4775_s1 + $0x20] sm:$0xf]  ;;  %v2660_v11 = vld [vmem:[%s4775_s1 + $0x2c] sm:$0xf0]  ;;  %v3037_v14 = vor.u32 %v2760_v4, %v2471_v2  ;;  %921 = vmatpush.bf16.msra.mxu1 %v3023_v6  ;;  %v3136_v2 = vor.u32 %v2714_v49, %v2297_v51 }
  0x1a   :  { %5003 = vst [vmem:[#allocation4_spill] sm:$0xff] %v3025_v9  ;;  %v2199_v13 = vld [vmem:[%s4775_s1 + $0x120] sm:$0xf]  ;;  %v2692_v15 = vld [vmem:[%s4775_s1 + $0x12c] sm:$0xf0]  ;;  %v3055_v23 = vor.u32 %v2660_v11, %v2071_v10  ;;  %934 = vmatpush.bf16.msra.mxu2 %v3025_v9 }
  0x1b   :  { %5004 = vst [vmem:[#allocation5_spill] sm:$0xff] %v3037_v14  ;;  %v2327_v18 = vld [vmem:[%s4775_s1 + $0x220] sm:$0xf]  ;;  %v2724_v19 = vld [vmem:[%s4775_s1 + $0x22c] sm:$0xf0]  ;;  %v3068_v28 = vor.u32 %v2692_v15, %v2199_v13  ;;  %947 = vmatpush.bf16.msra.mxu3 %v3037_v14  ;;  %v167_v13 = vunpack.c.l.b16 %v160_v63  ;;  %v168_v15 = vunpack.c.h.b16 %v160_v63 }
  0x1c   :  { %v2455_v20 = vld [vmem:[%s4775_s1 + $0x320] sm:$0xf]  ;;  %v2756_v22 = vld [vmem:[%s4775_s1 + $0x32c] sm:$0xf0]  ;;  %5005 = vst [vmem:[#allocation6_spill] sm:$0xff] %v3055_v23  ;;  %v3070_v30 = vor.u32 %v2724_v19, %v2327_v18  ;;  %909 = vmatpush.bf16.msra.mxu0 %v3055_v23  ;;  %v3148_v18 = vor.u32 %v2746_v55, %v2425_v59 }
  0x1d   :  { %v2055_v24 = vld [vmem:[%s4775_s1] sm:$0xf]  ;;  %v2656_v26 = vld [vmem:[%s4775_s1 + $0xc] sm:$0xf0]  ;;  %5006 = vst [vmem:[#allocation7_spill] sm:$0xff] %v3068_v28  ;;  %v3082_v36 = vor.u32 %v2756_v22, %v2455_v20  ;;  %922 = vmatpush.bf16.msra.mxu1 %v3068_v28 }
  0x1e   :  { %v2183_v27 = vld [vmem:[%s4775_s1 + $0x100] sm:$0xf]  ;;  %5007 = vst [vmem:[#allocation8_spill] sm:$0xff] %v3070_v30  ;;  %v2688_v31 = vld [vmem:[%s4775_s1 + $0x10c] sm:$0xf0]  ;;  %v3103_v47 = vor.u32 %v2656_v26, %v2055_v24  ;;  %935 = vmatpush.bf16.msra.mxu2 %v3070_v30 }
  0x1f   :  { %v2311_v32 = vld [vmem:[%s4775_s1 + $0x200] sm:$0xf]  ;;  %v2720_v35 = vld [vmem:[%s4775_s1 + $0x20c] sm:$0xf0]  ;;  %5008 = vst [vmem:[#allocation9_spill] sm:$0xff] %v3082_v36  ;;  %v3116_v53 = vor.u32 %v2688_v31, %v2183_v27  ;;  %948 = vmatpush.bf16.msra.mxu3 %v3082_v36  ;;  %v3169_v31 = vpack.c.b16 %v167_v13, %v167_v13 }
  0x20   :  { %v2439_v37 = vld [vmem:[%s4775_s1 + $0x300] sm:$0xf]  ;;  %v2752_v39 = vld [vmem:[%s4775_s1 + $0x30c] sm:$0xf0]  ;;  %5009 = vst [vmem:[#allocation10_spill] sm:$0xff] %v3103_v47  ;;  %v3118_v54 = vor.u32 %v2720_v35, %v2311_v32  ;;  %910 = vmatpush.bf16.msra.mxu0 %v3103_v47  ;;  %v3175_v35 = vpack.c.b16 %v168_v15, %v168_v15 }
  0x21   :  { %v2615_v40 = vld [vmem:[%s4775_s1 + $0x460] sm:$0xf]  ;;  %v2796_v41 = vld [vmem:[%s4775_s1 + $0x46c] sm:$0xf0]  ;;  %5010 = vst [vmem:[#allocation11_spill] sm:$0xff] %v3116_v53  ;;  %v3127_v60 = vor.u32 %v2752_v39, %v2439_v37  ;;  %923 = vmatpush.bf16.msra.mxu1 %v3116_v53 }
  0x22   :  { %v159_v43 = vld [vmem:[%s4776_s0] sm:$0xff]  ;;  %5011 = vst [vmem:[#allocation12_spill] sm:$0xff] %v3118_v54  ;;  %v3129_v61 = vor.u32 %v2796_v41, %v2615_v40  ;;  %v2792_v10 = vld [vmem:[%s4775_s1 + $0x44c] sm:$0xf0]  ;;  %v2153_v19 = vld [vmem:[%s4775_s1 + $0xd0] sm:$0xf0]  ;;  %936 = vmatpush.bf16.msra.mxu2 %v3118_v54 }
  0x23   :  { %v165_v52 = vunpack.c.l.b16 %v159_v43  ;;  %5012 = vst [vmem:[#allocation13_spill] sm:$0xff] %v3127_v60  ;;  %v166_v0 = vunpack.c.h.b16 %v159_v43  ;;  %v2599_v4 = vld [vmem:[%s4775_s1 + $0x440] sm:$0xf]  ;;  %v2678_v11 = vld [vmem:[%s4775_s1 + $0xc4] sm:$0xf]  ;;  %949 = vmatpush.bf16.msra.mxu3 %v3127_v60 }
  0x24   :  { %5013 = vst [vmem:[#allocation14_spill] sm:$0xff] %v3129_v61  ;;  %v2710_v20 = vld [vmem:[%s4775_s1 + $0x1c4] sm:$0xf]  ;;  %v2281_v22 = vld [vmem:[%s4775_s1 + $0x1d0] sm:$0xf0]  ;;  %959 = vmatpush.bf16.msrb.mxu0 %v3129_v61  ;;  %v3173_v32 = vor.u32 %v2792_v10, %v2599_v4  ;;  %v3181_v39 = vor.u32 %v2678_v11, %v2153_v19 }
  0x25   :  { %5014 = vst [vmem:[#allocation15_spill] sm:$0xff] %v3134_v1  ;;  %v3159_v24 = vpack.c.b16 %v165_v52, %v165_v52  ;;  %v2742_v26 = vld [vmem:[%s4775_s1 + $0x2c4] sm:$0xf]  ;;  %v2409_v27 = vld [vmem:[%s4775_s1 + $0x2d0] sm:$0xf0]  ;;  %v3177_v37 = vpack.c.b16 %v166_v0, %v166_v0  ;;  %968 = vmatpush.bf16.msrb.mxu1 %v3134_v1  ;;  %v3183_v40 = vor.u32 %v2710_v20, %v2281_v22 }
  0x26   :  { %5015 = vst [vmem:[#allocation16_spill] sm:$0xff] %v3136_v2  ;;  %981 = vmatpush.bf16.msrb.mxu2 %v3136_v2  ;;  %v2583_v41 = vld [vmem:[%s4775_s1 + $0x420] sm:$0xf]  ;;  %v2788_v42 = vld [vmem:[%s4775_s1 + $0x42c] sm:$0xf0]  ;;  %v3195_v48 = vor.u32 %v2742_v26, %v2409_v27  ;;  %950 = vmatmul.bf16.vlgmr.msra.gmra.mxu3 %v3175_v35 }
  0x27   :  { %5016 = vst [vmem:[#allocation17_spill] sm:$0xff] %v3148_v18  ;;  %v2674_v43 = vld [vmem:[%s4775_s1 + $0xa4] sm:$0xf]  ;;  %994 = vmatpush.bf16.msrb.mxu3 %v3148_v18  ;;  %911 = vmatmul.bf16.vlgmr.msra.gmra.mxu0 %v3159_v24  ;;  %v2137_v49 = vld [vmem:[%s4775_s1 + $0xb0] sm:$0xf0]  ;;  %v3216_v63 = vor.u32 %v2788_v42, %v2583_v41 }
  0x28   :  { %5017 = vst [vmem:[#allocation18_spill] sm:$0xff] %v3173_v32  ;;  %v2706_v51 = vld [vmem:[%s4775_s1 + $0x1a4] sm:$0xf]  ;;  %v2265_v52 = vld [vmem:[%s4775_s1 + $0x1b0] sm:$0xf0]  ;;  %937 = vmatmul.bf16.vlgmr.msra.gmra.mxu2 %v3169_v31  ;;  %960 = vmatpush.bf16.msrb.mxu0 %v3173_v32  ;;  %v3224_v4 = vor.u32 %v2674_v43, %v2137_v49 }
  0x29   :  { %5018 = vst [vmem:[#allocation19_spill] sm:$0xff] %v3181_v39  ;;  %v2738_v55 = vld [vmem:[%s4775_s1 + $0x2a4] sm:$0xf]  ;;  %v2393_v59 = vld [vmem:[%s4775_s1 + $0x2b0] sm:$0xf0]  ;;  %924 = vmatmul.bf16.vlgmr.msra.gmra.mxu1 %v3177_v37  ;;  %v3226_v10 = vor.u32 %v2706_v51, %v2265_v52 }
  0x2a   :  { %5019 = vst [vmem:[#allocation20_spill] sm:$0xff] %v3183_v40  ;;  %v2567_v0 = vld [vmem:[%s4775_s1 + $0x400] sm:$0xf]  ;;  %969 = vmatpush.bf16.msrb.mxu1 %v3181_v39  ;;  %982 = vmatpush.bf16.msrb.mxu2 %v3183_v40  ;;  %v2784_v11 = vld [vmem:[%s4775_s1 + $0x40c] sm:$0xf0]  ;;  %v3238_v19 = vor.u32 %v2738_v55, %v2393_v59 }
  0x2b   :  { %5020 = vst [vmem:[#allocation21_spill] sm:$0xff] %v3195_v48  ;;  %v2670_v13 = vld [vmem:[%s4775_s1 + $0x84] sm:$0xf]  ;;  %v2121_v15 = vld [vmem:[%s4775_s1 + $0x90] sm:$0xf0]  ;;  %995 = vmatpush.bf16.msrb.mxu3 %v3195_v48  ;;  %v3259_v43 = vor.u32 %v2784_v11, %v2567_v0 }
  0x2c   :  { %5021 = vst [vmem:[#allocation22_spill] sm:$0xff] %v3216_v63  ;;  %v2702_v20 = vld [vmem:[%s4775_s1 + $0x184] sm:$0xf]  ;;  %v2249_v22 = vld [vmem:[%s4775_s1 + $0x190] sm:$0xf0]  ;;  %961 = vmatpush.bf16.msrb.mxu0 %v3216_v63  ;;  %v3266_v51 = vor.u32 %v2670_v13, %v2121_v15 }
  0x2d   :  { %5022 = vst [vmem:[#allocation23_spill] sm:$0xff] %v3224_v4  ;;  %v2734_v26 = vld [vmem:[%s4775_s1 + $0x284] sm:$0xf]  ;;  %v2377_v27 = vld [vmem:[%s4775_s1 + $0x290] sm:$0xf0]  ;;  %v3268_v52 = vor.u32 %v2702_v20, %v2249_v22 }
  0x2e   :  { %5023 = vst [vmem:[#allocation24_spill] sm:$0xff] %v3226_v10  ;;  %v2778_v41 = vld [vmem:[%s4775_s1 + $0x3e4] sm:$0xf]  ;;  %v2553_v42 = vld [vmem:[%s4775_s1 + $0x3f0] sm:$0xf0]  ;;  %970 = vmatpush.bf16.msrb.mxu1 %v3224_v4  ;;  %983 = vmatpush.bf16.msrb.mxu2 %v3226_v10  ;;  %v3277_v0 = vor.u32 %v2734_v26, %v2377_v27 }
  0x2f   :  { %5024 = vst [vmem:[#allocation25_spill] sm:$0xff] %v3238_v19  ;;  %v161_v49 = vld [vmem:[%s4776_s0 + $0x10] sm:$0xf]  ;;  %v2666_v55 = vld [vmem:[%s4775_s1 + $0x64] sm:$0xf]  ;;  %996 = vmatpush.bf16.msrb.mxu3 %v3238_v19  ;;  %v3279_v11 = vor.u32 %v2778_v41, %v2553_v42 }
  0x30   :  { %5025 = vst [vmem:[#allocation26_spill] sm:$0xff] %v3259_v43  ;;  %v2105_v59 = vld [vmem:[%s4775_s1 + $0x70] sm:$0xf0]  ;;  %v2698_v13 = vld [vmem:[%s4775_s1 + $0x164] sm:$0xf]  ;;  %v169_v41 = vunpack.c.l.b16 %v161_v49  ;;  %962 = vmatpush.bf16.msrb.mxu0 %v3259_v43 }
  0x31   :  { %5026 = vst [vmem:[#allocation27_spill] sm:$0xff] %v3266_v51  ;;  %v2233_v15 = vld [vmem:[%s4775_s1 + $0x170] sm:$0xf0]  ;;  %v2730_v20 = vld [vmem:[%s4775_s1 + $0x264] sm:$0xf]  ;;  %v3302_v42 = vor.u32 %v2666_v55, %v2105_v59 }
  0x32   :  { %5027 = vst [vmem:[#allocation28_spill] sm:$0xff] %v3268_v52  ;;  %v2361_v22 = vld [vmem:[%s4775_s1 + $0x270] sm:$0xf0]  ;;  %v2774_v26 = vld [vmem:[%s4775_s1 + $0x3c4] sm:$0xf]  ;;  %971 = vmatpush.bf16.msrb.mxu1 %v3266_v51  ;;  %984 = vmatpush.bf16.msrb.mxu2 %v3268_v52  ;;  %v3304_v19 = vor.u32 %v2698_v13, %v2233_v15 }
  0x33   :  { %5028 = vst [vmem:[#allocation29_spill] sm:$0xff] %v3277_v0  ;;  %v2537_v27 = vld [vmem:[%s4775_s1 + $0x3d0] sm:$0xf0]  ;;  %v2662_v10 = vld [vmem:[%s4775_s1 + $0x44] sm:$0xf]  ;;  %997 = vmatpush.bf16.msrb.mxu3 %v3277_v0  ;;  %v3314_v49 = vor.u32 %v2730_v20, %v2361_v22 }
  0x34   :  { %5029 = vst [vmem:[#allocation30_spill] sm:$0xff] %v3279_v11  ;;  %v2089_v4 = vld [vmem:[%s4775_s1 + $0x50] sm:$0xf0]  ;;  %1007 = vmatpush.bf16.msra.mxu0 %v3279_v11  ;;  %v3316_v51 = vor.u32 %v2774_v26, %v2537_v27  ;;  %v2694_v55 = vld [vmem:[%s4775_s1 + $0x144] sm:$0xf]  ;;  %v3336_v26 = vpack.c.b16 %v169_v41, %v169_v41 }
  0x35   :  { %5030 = vst [vmem:[#allocation31_spill] sm:$0xff] %v3302_v42  ;;  %v2217_v59 = vld [vmem:[%s4775_s1 + $0x150] sm:$0xf0]  ;;  %v2726_v13 = vld [vmem:[%s4775_s1 + $0x244] sm:$0xf]  ;;  %v3340_v27 = vor.u32 %v2662_v10, %v2089_v4 }
  0x36   :  { %5031 = vst [vmem:[#allocation32_spill] sm:$0xff] %v3304_v19  ;;  %v2345_v15 = vld [vmem:[%s4775_s1 + $0x250] sm:$0xf0]  ;;  %v2770_v20 = vld [vmem:[%s4775_s1 + $0x3a4] sm:$0xf]  ;;  %972 = vmatpush.bf16.msrb.mxu1 %v3302_v42  ;;  %985 = vmatpush.bf16.msrb.mxu2 %v3304_v19  ;;  %v3342_v11 = vor.u32 %v2694_v55, %v2217_v59 }
  0x37   :  { %5032 = vst [vmem:[#allocation33_spill] sm:$0xff] %v3314_v49  ;;  %v2521_v22 = vld [vmem:[%s4775_s1 + $0x3b0] sm:$0xf0]  ;;  %v2658_v0 = vld [vmem:[%s4775_s1 + $0x24] sm:$0xf]  ;;  %998 = vmatpush.bf16.msrb.mxu3 %v3314_v49  ;;  %v3352_v41 = vor.u32 %v2726_v13, %v2345_v15  ;;  %2629 = vmatmul.msk.bf16.vlgmr.msrb.gmra.mxu0 %vm899_vm0, %v3336_v26 }
  0x38   :  { %5033 = vst [vmem:[#allocation34_spill] sm:$0xff] %v3316_v51  ;;  %v2073_v52 = vld [vmem:[%s4775_s1 + $0x30] sm:$0xf0]  ;;  %1008 = vmatpush.bf16.msra.mxu0 %v3316_v51  ;;  %v3354_v42 = vor.u32 %v2770_v20, %v2521_v22  ;;  %v2690_v4 = vld [vmem:[%s4775_s1 + $0x124] sm:$0xf] }
  0x39   :  { %5034 = vst [vmem:[#allocation35_spill] sm:$0xff] %v3340_v27  ;;  %v2201_v10 = vld [vmem:[%s4775_s1 + $0x130] sm:$0xf0]  ;;  %v2722_v55 = vld [vmem:[%s4775_s1 + $0x224] sm:$0xf]  ;;  %v3378_v20 = vor.u32 %v2658_v0, %v2073_v52 }
  0x3a   :  { %5035 = vst [vmem:[#allocation36_spill] sm:$0xff] %v3342_v11  ;;  %v2329_v59 = vld [vmem:[%s4775_s1 + $0x230] sm:$0xf0]  ;;  %v2766_v13 = vld [vmem:[%s4775_s1 + $0x384] sm:$0xf]  ;;  %973 = vmatpush.bf16.msrb.mxu1 %v3340_v27  ;;  %986 = vmatpush.bf16.msrb.mxu2 %v3342_v11  ;;  %v3380_v22 = vor.u32 %v2690_v4, %v2201_v10 }
  0x3b   :  { %5036 = vst [vmem:[#allocation37_spill] sm:$0xff] %v3352_v41  ;;  %v2505_v15 = vld [vmem:[%s4775_s1 + $0x390] sm:$0xf0]  ;;  %v2654_v51 = vld [vmem:[%s4775_s1 + $0x4] sm:$0xf]  ;;  %999 = vmatpush.bf16.msrb.mxu3 %v3352_v41  ;;  %v3393_v52 = vor.u32 %v2722_v55, %v2329_v59 }
  0x3c   :  { %5037 = vst [vmem:[#allocation38_spill] sm:$0xff] %v3354_v42  ;;  %v2057_v49 = vld [vmem:[%s4775_s1 + $0x10] sm:$0xf0]  ;;  %v2686_v19 = vld [vmem:[%s4775_s1 + $0x104] sm:$0xf]  ;;  %1009 = vmatpush.bf16.msra.mxu0 %v3354_v42  ;;  %v3395_v0 = vor.u32 %v2766_v13, %v2505_v15 }
  0x3d   :  { %5038 = vst [vmem:[#allocation39_spill] sm:$0xff] %v3378_v20  ;;  %v2185_v4 = vld [vmem:[%s4775_s1 + $0x110] sm:$0xf0]  ;;  %v2718_v10 = vld [vmem:[%s4775_s1 + $0x204] sm:$0xf]  ;;  %v3426_v27 = vor.u32 %v2654_v51, %v2057_v49 }
  0x3e   :  { %5039 = vst [vmem:[#allocation40_spill] sm:$0xff] %v3380_v22  ;;  %v2313_v11 = vld [vmem:[%s4775_s1 + $0x210] sm:$0xf0]  ;;  %v2762_v42 = vld [vmem:[%s4775_s1 + $0x364] sm:$0xf]  ;;  %974 = vmatpush.bf16.msrb.mxu1 %v3378_v20  ;;  %987 = vmatpush.bf16.msrb.mxu2 %v3380_v22  ;;  %v3428_v43 = vor.u32 %v2686_v19, %v2185_v4 }
  0x3f   :  { %5040 = vst [vmem:[#allocation41_spill] sm:$0xff] %v3393_v52  ;;  %v2489_v55 = vld [vmem:[%s4775_s1 + $0x370] sm:$0xf0]  ;;  %v2794_v59 = vld [vmem:[%s4775_s1 + $0x464] sm:$0xf]  ;;  %1000 = vmatpush.bf16.msrb.mxu3 %v3393_v52  ;;  %v3438_v40 = vor.u32 %v2718_v10, %v2313_v11 }
  0x40   :  { %5041 = vst [vmem:[#allocation42_spill] sm:$0xff] %v3395_v0  ;;  %v2617_v13 = vld [vmem:[%s4775_s1 + $0x470] sm:$0xf0]  ;;  %v2175_v15 = vld [vmem:[%s4775_s1 + $0xe8] sm:$0xf]  ;;  %1010 = vmatpush.bf16.msra.mxu0 %v3395_v0  ;;  %v3440_v20 = vor.u32 %v2762_v42, %v2489_v55 }
  0x41   :  { %v2685_v41 = vld [vmem:[%s4775_s1 + $0xf4] sm:$0xf0]  ;;  %5042 = vst [vmem:[#allocation43_spill] sm:$0xff] %v3426_v27  ;;  %v2303_v63 = vld [vmem:[%s4775_s1 + $0x1e8] sm:$0xf]  ;;  %v3442_v51 = vor.u32 %v2794_v59, %v2617_v13 }
  0x42   :  { %5043 = vst [vmem:[#allocation44_spill] sm:$0xff] %v3428_v43  ;;  %v2717_v48 = vld [vmem:[%s4775_s1 + $0x1f4] sm:$0xf0]  ;;  %v3444_v19 = vor.u32 %v2685_v41, %v2175_v15  ;;  %v2758_v49 = vld [vmem:[%s4775_s1 + $0x344] sm:$0xf]  ;;  %975 = vmatpush.bf16.msrb.mxu1 %v3426_v27  ;;  %988 = vmatpush.bf16.msrb.mxu2 %v3428_v43 }
  0x43   :  { %5044 = vst [vmem:[#allocation45_spill] sm:$0xff] %v3438_v40  ;;  %v2473_v4 = vld [vmem:[%s4775_s1 + $0x350] sm:$0xf0]  ;;  %v2790_v0 = vld [vmem:[%s4775_s1 + $0x444] sm:$0xf]  ;;  %v3455_v11 = vor.u32 %v2717_v48, %v2303_v63  ;;  %1001 = vmatpush.bf16.msrb.mxu3 %v3438_v40 }
  0x44   :  { %5045 = vst [vmem:[#allocation46_spill] sm:$0xff] %v3440_v20  ;;  %v2601_v42 = vld [vmem:[%s4775_s1 + $0x450] sm:$0xf0]  ;;  %v2159_v41 = vld [vmem:[%s4775_s1 + $0xc8] sm:$0xf]  ;;  %1011 = vmatpush.bf16.msra.mxu0 %v3440_v20  ;;  %v3476_v55 = vor.u32 %v2758_v49, %v2473_v4 }
  0x45   :  { %5046 = vst [vmem:[#allocation47_spill] sm:$0xff] %v3442_v51  ;;  %v2681_v10 = vld [vmem:[%s4775_s1 + $0xd4] sm:$0xf0]  ;;  %v2287_v48 = vld [vmem:[%s4775_s1 + $0x1c8] sm:$0xf]  ;;  %v3480_v59 = vor.u32 %v2790_v0, %v2601_v42  ;;  %976 = vmatmul.bf16.vlgmr.msrb.gmra.mxu1 %v3159_v24  ;;  %989 = vmatmul.bf16.vlgmr.msrb.gmra.mxu2 %v3177_v37 }
  0x46   :  { %5047 = vst [vmem:[#allocation48_spill] sm:$0xff] %v3444_v19  ;;  %v2713_v63 = vld [vmem:[%s4775_s1 + $0x1d4] sm:$0xf0]  ;;  %1024 = vmatpush.bf16.msra.mxu1 %v3442_v51  ;;  %1033 = vmatpush.bf16.msra.mxu2 %v3444_v19  ;;  %v3482_v13 = vor.u32 %v2681_v10, %v2159_v41  ;;  %v2754_v15 = vld [vmem:[%s4775_s1 + $0x324] sm:$0xf] }
  0x47   :  { %5048 = vst [vmem:[#allocation49_spill] sm:$0xff] %v3455_v11  ;;  %v2457_v40 = vld [vmem:[%s4775_s1 + $0x330] sm:$0xf0]  ;;  %v2786_v49 = vld [vmem:[%s4775_s1 + $0x424] sm:$0xf]  ;;  %1046 = vmatpush.bf16.msra.mxu3 %v3455_v11  ;;  %v3494_v4 = vor.u32 %v2713_v63, %v2287_v48 }
  0x48   :  { %5049 = vst [vmem:[#allocation50_spill] sm:$0xff] %v3476_v55  ;;  %v2585_v0 = vld [vmem:[%s4775_s1 + $0x430] sm:$0xf0]  ;;  %v2143_v42 = vld [vmem:[%s4775_s1 + $0xa8] sm:$0xf]  ;;  %1002 = vmatmul.bf16.vlgmr.msrb.gmra.mxu3 %v3169_v31  ;;  %1012 = vmatpush.bf16.msra.mxu0 %v3476_v55  ;;  %v3515_v63 = vor.u32 %v2754_v15, %v2457_v40 }
  0x49   :  { %5050 = vst [vmem:[#allocation51_spill] sm:$0xff] %v3480_v59  ;;  %v2677_v41 = vld [vmem:[%s4775_s1 + $0xb4] sm:$0xf0]  ;;  %v2271_v10 = vld [vmem:[%s4775_s1 + $0x1a8] sm:$0xf]  ;;  %v3522_v19 = vor.u32 %v2786_v49, %v2585_v0 }
  0x4a   :  { %5051 = vst [vmem:[#allocation52_spill] sm:$0xff] %v3482_v13  ;;  %v2709_v48 = vld [vmem:[%s4775_s1 + $0x1b4] sm:$0xf0]  ;;  %v2750_v11 = vld [vmem:[%s4775_s1 + $0x304] sm:$0xf]  ;;  %1025 = vmatpush.bf16.msra.mxu1 %v3480_v59  ;;  %1034 = vmatpush.bf16.msra.mxu2 %v3482_v13  ;;  %v3524_v51 = vor.u32 %v2677_v41, %v2143_v42 }
  0x4b   :  { %5052 = vst [vmem:[#allocation53_spill] sm:$0xff] %v3494_v4  ;;  %v2441_v20 = vld [vmem:[%s4775_s1 + $0x310] sm:$0xf0]  ;;  %v2782_v40 = vld [vmem:[%s4775_s1 + $0x404] sm:$0xf]  ;;  %1047 = vmatpush.bf16.msra.mxu3 %v3494_v4  ;;  %v3536_v59 = vor.u32 %v2709_v48, %v2271_v10 }
  0x4c   :  { %5053 = vst [vmem:[#allocation54_spill] sm:$0xff] %v3515_v63  ;;  %v2569_v15 = vld [vmem:[%s4775_s1 + $0x410] sm:$0xf0]  ;;  %v2127_v49 = vld [vmem:[%s4775_s1 + $0x88] sm:$0xf]  ;;  %1013 = vmatpush.bf16.msra.mxu0 %v3515_v63  ;;  %v3557_v4 = vor.u32 %v2750_v11, %v2441_v20 }
  0x4d   :  { %5054 = vst [vmem:[#allocation55_spill] sm:$0xff] %v3522_v19  ;;  %v2673_v0 = vld [vmem:[%s4775_s1 + $0x94] sm:$0xf0]  ;;  %v2255_v42 = vld [vmem:[%s4775_s1 + $0x188] sm:$0xf]  ;;  %v3567_v43 = vor.u32 %v2782_v40, %v2569_v15 }
  0x4e   :  { %5055 = vst [vmem:[#allocation56_spill] sm:$0xff] %v3524_v51  ;;  %v2705_v41 = vld [vmem:[%s4775_s1 + $0x194] sm:$0xf0]  ;;  %v2431_v10 = vld [vmem:[%s4775_s1 + $0x2e8] sm:$0xf]  ;;  %1026 = vmatpush.bf16.msra.mxu1 %v3522_v19  ;;  %1035 = vmatpush.bf16.msra.mxu2 %v3524_v51  ;;  %v3569_v27 = vor.u32 %v2673_v0, %v2127_v49 }
  0x4f   :  { %5056 = vst [vmem:[#allocation57_spill] sm:$0xff] %v3536_v59  ;;  %v2749_v48 = vld [vmem:[%s4775_s1 + $0x2f4] sm:$0xf0]  ;;  %v2559_v13 = vld [vmem:[%s4775_s1 + $0x3e8] sm:$0xf]  ;;  %1048 = vmatpush.bf16.msra.mxu3 %v3536_v59  ;;  %v3572_v20 = vor.u32 %v2705_v41, %v2255_v42 }
  0x50   :  { %5057 = vst [vmem:[#allocation58_spill] sm:$0xff] %v3557_v4  ;;  %v2781_v55 = vld [vmem:[%s4775_s1 + $0x3f4] sm:$0xf0]  ;;  %v3574_v11 = vor.u32 %v2749_v48, %v2431_v10  ;;  %v2111_v63 = vld [vmem:[%s4775_s1 + $0x68] sm:$0xf]  ;;  %1014 = vmatpush.bf16.msra.mxu0 %v3557_v4 }
  0x51   :  { %5058 = vst [vmem:[#allocation59_spill] sm:$0xff] %v3567_v43  ;;  %v2669_v19 = vld [vmem:[%s4775_s1 + $0x74] sm:$0xf0]  ;;  %v2239_v40 = vld [vmem:[%s4775_s1 + $0x168] sm:$0xf]  ;;  %v3585_v15 = vor.u32 %v2781_v55, %v2559_v13 }
  0x52   :  { %5059 = vst [vmem:[#allocation60_spill] sm:$0xff] %v3569_v27  ;;  %v2701_v49 = vld [vmem:[%s4775_s1 + $0x174] sm:$0xf0]  ;;  %v2415_v0 = vld [vmem:[%s4775_s1 + $0x2c8] sm:$0xf]  ;;  %1027 = vmatpush.bf16.msra.mxu1 %v3567_v43  ;;  %1036 = vmatpush.bf16.msra.mxu2 %v3569_v27  ;;  %v3605_v13 = vor.u32 %v2669_v19, %v2111_v63 }
  0x53   :  { %5060 = vst [vmem:[#allocation61_spill] sm:$0xff] %v3572_v20  ;;  %v2745_v42 = vld [vmem:[%s4775_s1 + $0x2d4] sm:$0xf0]  ;;  %v2543_v41 = vld [vmem:[%s4775_s1 + $0x3c8] sm:$0xf]  ;;  %1049 = vmatpush.bf16.msra.mxu3 %v3572_v20  ;;  %v3609_v10 = vor.u32 %v2701_v49, %v2239_v40  ;;  %1015 = vmatmul.bf16.vlgmr.msra.gmra.mxu0 %v3175_v35 }
  0x54   :  { %5061 = vst [vmem:[#allocation62_spill] sm:$0xff] %v3574_v11  ;;  %v2777_v55 = vld [vmem:[%s4775_s1 + $0x3d4] sm:$0xf0]  ;;  %1059 = vmatpush.bf16.msrb.mxu0 %v3574_v11  ;;  %v3611_v48 = vor.u32 %v2745_v42, %v2415_v0  ;;  %v2095_v4 = vld [vmem:[%s4775_s1 + $0x48] sm:$0xf] }
  0x55   :  { %5062 = vst [vmem:[#allocation63_spill] sm:$0xff] %v3585_v15  ;;  %v2665_v43 = vld [vmem:[%s4775_s1 + $0x54] sm:$0xf0]  ;;  %v2223_v19 = vld [vmem:[%s4775_s1 + $0x148] sm:$0xf]  ;;  %v3623_v63 = vor.u32 %v2777_v55, %v2543_v41  ;;  %2630 = vmatmul.msk.bf16.vlgmr.msra.gmra.mxu1 %vm899_vm0, %v3336_v26 }
  0x56   :  { %5063 = vst [vmem:[#allocation64_spill] sm:$0xff] %v3605_v13  ;;  %1072 = vmatpush.bf16.msrb.mxu1 %v3585_v15  ;;  %v2697_v40 = vld [vmem:[%s4775_s1 + $0x154] sm:$0xf0]  ;;  %v2399_v49 = vld [vmem:[%s4775_s1 + $0x2a8] sm:$0xf]  ;;  %1037 = vmatpush.bf16.msra.mxu2 %v3605_v13  ;;  %v3642_v55 = vor.u32 %v2665_v43, %v2095_v4 }
  0x57   :  { %5064 = vst [vmem:[#allocation65_spill] sm:$0xff] %v3609_v10  ;;  %v2741_v0 = vld [vmem:[%s4775_s1 + $0x2b4] sm:$0xf0]  ;;  %v2527_v42 = vld [vmem:[%s4775_s1 + $0x3a8] sm:$0xf]  ;;  %1050 = vmatpush.bf16.msra.mxu3 %v3609_v10  ;;  %v3646_v15 = vor.u32 %v2697_v40, %v2223_v19 }
  0x58   :  { %5065 = vst [vmem:[#allocation66_spill] sm:$0xff] %v3611_v48  ;;  %v2773_v41 = vld [vmem:[%s4775_s1 + $0x3b4] sm:$0xf0]  ;;  %1060 = vmatpush.bf16.msrb.mxu0 %v3611_v48  ;;  %v3648_v11 = vor.u32 %v2741_v0, %v2399_v49  ;;  %v2079_v20 = vld [vmem:[%s4775_s1 + $0x28] sm:$0xf] }
  0x59   :  { %5066 = vst [vmem:[#allocation67_spill] sm:$0xff] %v3623_v63  ;;  %v2661_v27 = vld [vmem:[%s4775_s1 + $0x34] sm:$0xf0]  ;;  %v2207_v43 = vld [vmem:[%s4775_s1 + $0x128] sm:$0xf]  ;;  %v3660_v4 = vor.u32 %v2773_v41, %v2527_v42 }
  0x5a   :  { %5067 = vst [vmem:[#allocation68_spill] sm:$0xff] %v3642_v55  ;;  %1073 = vmatpush.bf16.msrb.mxu1 %v3623_v63  ;;  %v2693_v19 = vld [vmem:[%s4775_s1 + $0x134] sm:$0xf0]  ;;  %v2383_v40 = vld [vmem:[%s4775_s1 + $0x288] sm:$0xf]  ;;  %1038 = vmatpush.bf16.msra.mxu2 %v3642_v55  ;;  %v3680_v41 = vor.u32 %v2661_v27, %v2079_v20 }
  0x5b   :  { %5068 = vst [vmem:[#allocation69_spill] sm:$0xff] %v3646_v15  ;;  %v2737_v49 = vld [vmem:[%s4775_s1 + $0x294] sm:$0xf0]  ;;  %v2511_v0 = vld [vmem:[%s4775_s1 + $0x388] sm:$0xf]  ;;  %1051 = vmatpush.bf16.msra.mxu3 %v3646_v15  ;;  %v3687_v48 = vor.u32 %v2693_v19, %v2207_v43 }
  0x5c   :  { %5069 = vst [vmem:[#allocation70_spill] sm:$0xff] %v3648_v11  ;;  %v2769_v42 = vld [vmem:[%s4775_s1 + $0x394] sm:$0xf0]  ;;  %v2063_v63 = vld [vmem:[%s4775_s1 + $0x8] sm:$0xf]  ;;  %1061 = vmatpush.bf16.msrb.mxu0 %v3648_v11  ;;  %v3689_v10 = vor.u32 %v2737_v49, %v2383_v40 }
  0x5d   :  { %5070 = vst [vmem:[#allocation71_spill] sm:$0xff] %v3660_v4  ;;  %v2657_v13 = vld [vmem:[%s4775_s1 + $0x14] sm:$0xf0]  ;;  %v2191_v27 = vld [vmem:[%s4775_s1 + $0x108] sm:$0xf]  ;;  %v3701_v15 = vor.u32 %v2769_v42, %v2511_v0 }
  0x5e   :  { %5071 = vst [vmem:[#allocation72_spill] sm:$0xff] %v3680_v41  ;;  %v2689_v20 = vld [vmem:[%s4775_s1 + $0x114] sm:$0xf0]  ;;  %1074 = vmatpush.bf16.msrb.mxu1 %v3660_v4  ;;  %v2367_v43 = vld [vmem:[%s4775_s1 + $0x268] sm:$0xf]  ;;  %1039 = vmatpush.bf16.msra.mxu2 %v3680_v41  ;;  %v3722_v4 = vor.u32 %v2657_v13, %v2063_v63 }
  0x5f   :  { %5072 = vst [vmem:[#allocation73_spill] sm:$0xff] %v3687_v48  ;;  %v2733_v19 = vld [vmem:[%s4775_s1 + $0x274] sm:$0xf0]  ;;  %v2495_v40 = vld [vmem:[%s4775_s1 + $0x368] sm:$0xf]  ;;  %1052 = vmatpush.bf16.msra.mxu3 %v3687_v48  ;;  %v3732_v59 = vor.u32 %v2689_v20, %v2191_v27 }
  0x60   :  { %5073 = vst [vmem:[#allocation74_spill] sm:$0xff] %v3689_v10  ;;  %v2765_v49 = vld [vmem:[%s4775_s1 + $0x374] sm:$0xf0]  ;;  %v2623_v0 = vld [vmem:[%s4775_s1 + $0x468] sm:$0xf]  ;;  %1062 = vmatpush.bf16.msrb.mxu0 %v3689_v10  ;;  %v3734_v51 = vor.u32 %v2733_v19, %v2367_v43 }
  0x61   :  { %5074 = vst [vmem:[#allocation75_spill] sm:$0xff] %v3701_v15  ;;  %v2797_v42 = vld [vmem:[%s4775_s1 + $0x474] sm:$0xf0]  ;;  %v2683_v11 = vld [vmem:[%s4775_s1 + $0xec] sm:$0xf]  ;;  %v3737_v13 = vor.u32 %v2765_v49, %v2495_v40 }
  0x62   :  { %5075 = vst [vmem:[#allocation76_spill] sm:$0xff] %v3722_v4  ;;  %v2177_v55 = vld [vmem:[%s4775_s1 + $0xf8] sm:$0xf0]  ;;  %1075 = vmatpush.bf16.msrb.mxu1 %v3701_v15  ;;  %v3739_v63 = vor.u32 %v2797_v42, %v2623_v0  ;;  %v2351_v41 = vld [vmem:[%s4775_s1 + $0x248] sm:$0xf]  ;;  %1040 = vmatpush.bf16.msra.mxu2 %v3722_v4 }
  0x63   :  { %5076 = vst [vmem:[#allocation77_spill] sm:$0xff] %v3732_v59  ;;  %v2729_v48 = vld [vmem:[%s4775_s1 + $0x254] sm:$0xf0]  ;;  %v2479_v27 = vld [vmem:[%s4775_s1 + $0x348] sm:$0xf]  ;;  %v3750_v20 = vor.u32 %v2683_v11, %v2177_v55  ;;  %1053 = vmatpush.bf16.msra.mxu3 %v3732_v59 }
  0x64   :  { %5077 = vst [vmem:[#allocation78_spill] sm:$0xff] %v3734_v51  ;;  %v2761_v43 = vld [vmem:[%s4775_s1 + $0x354] sm:$0xf0]  ;;  %v2607_v19 = vld [vmem:[%s4775_s1 + $0x448] sm:$0xf]  ;;  %1063 = vmatpush.bf16.msrb.mxu0 %v3734_v51  ;;  %v3770_v55 = vor.u32 %v2729_v48, %v2351_v41 }
  0x65   :  { %5078 = vst [vmem:[#allocation79_spill] sm:$0xff] %v3737_v13  ;;  %v2793_v40 = vld [vmem:[%s4775_s1 + $0x454] sm:$0xf0]  ;;  %v2679_v49 = vld [vmem:[%s4775_s1 + $0xcc] sm:$0xf]  ;;  %v3774_v0 = vor.u32 %v2761_v43, %v2479_v27  ;;  %1041 = vmatmul.bf16.vlgmr.msra.gmra.mxu2 %v3159_v24 }
  0x66   :  { %5079 = vst [vmem:[#allocation80_spill] sm:$0xff] %v3739_v63  ;;  %v2161_v11 = vld [vmem:[%s4775_s1 + $0xd8] sm:$0xf0]  ;;  %1076 = vmatpush.bf16.msrb.mxu1 %v3737_v13  ;;  %1089 = vmatpush.bf16.msrb.mxu2 %v3739_v63  ;;  %v3776_v42 = vor.u32 %v2793_v40, %v2607_v19  ;;  %v2335_v4 = vld [vmem:[%s4775_s1 + $0x228] sm:$0xf] }
  0x67   :  { %5080 = vst [vmem:[#allocation81_spill] sm:$0xff] %v3750_v20  ;;  %v2725_v59 = vld [vmem:[%s4775_s1 + $0x234] sm:$0xf0]  ;;  %v2463_v48 = vld [vmem:[%s4775_s1 + $0x328] sm:$0xf]  ;;  %1098 = vmatpush.bf16.msrb.mxu3 %v3750_v20  ;;  %v3789_v41 = vor.u32 %v2679_v49, %v2161_v11 }
  0x68   :  { %5081 = vst [vmem:[#allocation82_spill] sm:$0xff] %v3770_v55  ;;  %v2757_v27 = vld [vmem:[%s4775_s1 + $0x334] sm:$0xf0]  ;;  %v2591_v43 = vld [vmem:[%s4775_s1 + $0x428] sm:$0xf]  ;;  %1054 = vmatmul.bf16.vlgmr.msra.gmra.mxu3 %v3177_v37  ;;  %1064 = vmatpush.bf16.msrb.mxu0 %v3770_v55  ;;  %v3808_v11 = vor.u32 %v2725_v59, %v2335_v4 }
  0x69   :  { %5082 = vst [vmem:[#allocation83_spill] sm:$0xff] %v3774_v0  ;;  %v2789_v19 = vld [vmem:[%s4775_s1 + $0x434] sm:$0xf0]  ;;  %v2675_v40 = vld [vmem:[%s4775_s1 + $0xac] sm:$0xf]  ;;  %v3818_v13 = vor.u32 %v2757_v27, %v2463_v48 }
  0x6a   :  { %5083 = vst [vmem:[#allocation84_spill] sm:$0xff] %v3776_v42  ;;  %v2145_v49 = vld [vmem:[%s4775_s1 + $0xb8] sm:$0xf0]  ;;  %v2319_v20 = vld [vmem:[%s4775_s1 + $0x208] sm:$0xf]  ;;  %1077 = vmatpush.bf16.msrb.mxu1 %v3774_v0  ;;  %1090 = vmatpush.bf16.msrb.mxu2 %v3776_v42  ;;  %v3820_v51 = vor.u32 %v2789_v19, %v2591_v43 }
  0x6b   :  { %5084 = vst [vmem:[#allocation85_spill] sm:$0xff] %v3789_v41  ;;  %v2721_v63 = vld [vmem:[%s4775_s1 + $0x214] sm:$0xf0]  ;;  %v2447_v59 = vld [vmem:[%s4775_s1 + $0x308] sm:$0xf]  ;;  %1099 = vmatpush.bf16.msrb.mxu3 %v3789_v41  ;;  %v3832_v0 = vor.u32 %v2675_v40, %v2145_v49 }
  0x6c   :  { %5085 = vst [vmem:[#allocation86_spill] sm:$0xff] %v3808_v11  ;;  %v2753_v4 = vld [vmem:[%s4775_s1 + $0x314] sm:$0xf0]  ;;  %v2575_v55 = vld [vmem:[%s4775_s1 + $0x408] sm:$0xf]  ;;  %1065 = vmatpush.bf16.msrb.mxu0 %v3808_v11  ;;  %v3853_v41 = vor.u32 %v2721_v63, %v2319_v20 }
  0x6d   :  { %5086 = vst [vmem:[#allocation87_spill] sm:$0xff] %v3818_v13  ;;  %v2785_v48 = vld [vmem:[%s4775_s1 + $0x414] sm:$0xf0]  ;;  %v2671_v27 = vld [vmem:[%s4775_s1 + $0x8c] sm:$0xf]  ;;  %v3866_v52 = vor.u32 %v2753_v4, %v2447_v59 }
  0x6e   :  { %v2129_v43 = vld [vmem:[%s4775_s1 + $0x98] sm:$0xf0]  ;;  %v2715_v19 = vld [vmem:[%s4775_s1 + $0x1ec] sm:$0xf]  ;;  %5087 = vst [vmem:[#allocation88_spill] sm:$0xff] %v3853_v41  ;;  %1078 = vmatpush.bf16.msrb.mxu1 %v3818_v13  ;;  %1091 = vmatpush.bf16.msrb.mxu2 %v3820_v51  ;;  %v3868_v63 = vor.u32 %v2785_v48, %v2575_v55 }
  0x6f   :  { %v2305_v40 = vld [vmem:[%s4775_s1 + $0x1f8] sm:$0xf0]  ;;  %v2747_v49 = vld [vmem:[%s4775_s1 + $0x2ec] sm:$0xf]  ;;  %5088 = vst [vmem:[#allocation89_spill] sm:$0xff] %v3866_v52  ;;  %1100 = vmatpush.bf16.msrb.mxu3 %v3832_v0  ;;  %v3871_v20 = vor.u32 %v2671_v27, %v2129_v43 }
  0x70   :  { %v2433_v42 = vld [vmem:[%s4775_s1 + $0x2f8] sm:$0xf0]  ;;  %v2779_v15 = vld [vmem:[%s4775_s1 + $0x3ec] sm:$0xf]  ;;  %5089 = vst [vmem:[#allocation90_spill] sm:$0xff] %v3868_v63  ;;  %v3873_v11 = vor.u32 %v2715_v19, %v2305_v40  ;;  %1066 = vmatpush.bf16.msrb.mxu0 %v3853_v41 }
  0x71   :  { %v2561_v10 = vld [vmem:[%s4775_s1 + $0x3f8] sm:$0xf0]  ;;  %5090 = vst [vmem:[#allocation91_spill] sm:$0xff] %v3871_v20  ;;  %v2667_v22 = vld [vmem:[%s4775_s1 + $0x6c] sm:$0xf]  ;;  %v3881_v39 = vor.u32 %v2747_v49, %v2433_v42 }
  0x72   :  { %5091 = vst [vmem:[#allocation92_spill] sm:$0xff] %v3873_v11  ;;  %v2113_v13 = vld [vmem:[%s4775_s1 + $0x78] sm:$0xf0]  ;;  %v3883_v59 = vor.u32 %v2779_v15, %v2561_v10  ;;  %v2711_v55 = vld [vmem:[%s4775_s1 + $0x1cc] sm:$0xf]  ;;  %1079 = vmatpush.bf16.msrb.mxu1 %v3866_v52  ;;  %1092 = vmatpush.bf16.msrb.mxu2 %v3868_v63 }
  0x73   :  { %5092 = vst [vmem:[#allocation93_spill] sm:$0xff] %v3881_v39  ;;  %v2289_v4 = vld [vmem:[%s4775_s1 + $0x1d8] sm:$0xf0]  ;;  %v2743_v48 = vld [vmem:[%s4775_s1 + $0x2cc] sm:$0xf]  ;;  %1101 = vmatpush.bf16.msrb.mxu3 %v3871_v20  ;;  %v3908_v27 = vor.u32 %v2667_v22, %v2113_v13  ;;  %1067 = vmatmul.bf16.vlgmr.msrb.gmra.mxu0 %v3169_v31 }
  0x74   :  { %5093 = vst [vmem:[#allocation94_spill] sm:$0xff] %v3883_v59  ;;  %v2417_v42 = vld [vmem:[%s4775_s1 + $0x2d8] sm:$0xf0]  ;;  %v2775_v15 = vld [vmem:[%s4775_s1 + $0x3cc] sm:$0xf]  ;;  %1111 = vmatpush.bf16.msra.mxu0 %v3873_v11  ;;  %v3910_v43 = vor.u32 %v2711_v55, %v2289_v4 }
  0x75   :  { %v2545_v10 = vld [vmem:[%s4775_s1 + $0x3d8] sm:$0xf0]  ;;  %5094 = vst [vmem:[#allocation95_spill] sm:$0xff] %v3908_v27  ;;  %v2663_v19 = vld [vmem:[%s4775_s1 + $0x4c] sm:$0xf]  ;;  %v3920_v49 = vor.u32 %v2743_v48, %v2417_v42  ;;  %1080 = vmatmul.bf16.vlgmr.msrb.gmra.mxu1 %v3175_v35  ;;  %2631 = vmatmul.msk.bf16.vlgmr.msrb.gmra.mxu2 %vm899_vm0, %v3336_v26 }
  0x76   :  { %5095 = vst [vmem:[#allocation96_spill] sm:$0xff] %v3910_v43  ;;  %v2097_v40 = vld [vmem:[%s4775_s1 + $0x58] sm:$0xf0]  ;;  %1124 = vmatpush.bf16.msra.mxu1 %v3881_v39  ;;  %1137 = vmatpush.bf16.msra.mxu2 %v3883_v59  ;;  %v3922_v20 = vor.u32 %v2775_v15, %v2545_v10  ;;  %v2707_v22 = vld [vmem:[%s4775_s1 + $0x1ac] sm:$0xf] }
  0x77   :  { %5096 = vst [vmem:[#allocation97_spill] sm:$0xff] %v3920_v49  ;;  %v2273_v13 = vld [vmem:[%s4775_s1 + $0x1b8] sm:$0xf0]  ;;  %v2739_v55 = vld [vmem:[%s4775_s1 + $0x2ac] sm:$0xf]  ;;  %1102 = vmatpush.bf16.msrb.mxu3 %v3908_v27  ;;  %v3946_v15 = vor.u32 %v2663_v19, %v2097_v40 }
  0x78   :  { %5097 = vst [vmem:[#allocation98_spill] sm:$0xff] %v3922_v20  ;;  %v2401_v4 = vld [vmem:[%s4775_s1 + $0x2b8] sm:$0xf0]  ;;  %v2771_v48 = vld [vmem:[%s4775_s1 + $0x3ac] sm:$0xf]  ;;  %1112 = vmatpush.bf16.msra.mxu0 %v3910_v43  ;;  %v3948_v10 = vor.u32 %v2707_v22, %v2273_v13 }
  0x79   :  { %v2529_v42 = vld [vmem:[%s4775_s1 + $0x3b8] sm:$0xf0]  ;;  %5098 = vst [vmem:[#allocation99_spill] sm:$0xff] %v3946_v15  ;;  %v2659_v59 = vld [vmem:[%s4775_s1 + $0x2c] sm:$0xf]  ;;  %v3958_v11 = vor.u32 %v2739_v55, %v2401_v4 }
  0x7a   :  { %5099 = vst [vmem:[#allocation100_spill] sm:$0xff] %v3948_v10  ;;  %v2081_v39 = vld [vmem:[%s4775_s1 + $0x38] sm:$0xf0]  ;;  %1125 = vmatpush.bf16.msra.mxu1 %v3920_v49  ;;  %1138 = vmatpush.bf16.msra.mxu2 %v3922_v20  ;;  %v3960_v27 = vor.u32 %v2771_v48, %v2529_v42  ;;  %v2703_v19 = vld [vmem:[%s4775_s1 + $0x18c] sm:$0xf] }
  0x7b   :  { %5100 = vst [vmem:[#allocation101_spill] sm:$0xff] %v3958_v11  ;;  %v2257_v40 = vld [vmem:[%s4775_s1 + $0x198] sm:$0xf0]  ;;  %v2735_v22 = vld [vmem:[%s4775_s1 + $0x28c] sm:$0xf]  ;;  %1103 = vmatpush.bf16.msrb.mxu3 %v3946_v15  ;;  %v3984_v48 = vor.u32 %v2659_v59, %v2081_v39 }
  0x7c   :  { %5101 = vst [vmem:[#allocation102_spill] sm:$0xff] %v3960_v27  ;;  %v2385_v13 = vld [vmem:[%s4775_s1 + $0x298] sm:$0xf0]  ;;  %v2767_v55 = vld [vmem:[%s4775_s1 + $0x38c] sm:$0xf]  ;;  %1113 = vmatpush.bf16.msra.mxu0 %v3948_v10  ;;  %v3986_v42 = vor.u32 %v2703_v19, %v2257_v40 }
  0x7d   :  { %v2513_v4 = vld [vmem:[%s4775_s1 + $0x398] sm:$0xf0]  ;;  %v2655_v20 = vld [vmem:[%s4775_s1 + $0xc] sm:$0xf]  ;;  %v3996_v43 = vor.u32 %v2735_v22, %v2385_v13 }
  0x7e   :  { %5102 = vst [vmem:[#allocation103_spill] sm:$0xff] %v3986_v42  ;;  %v2065_v49 = vld [vmem:[%s4775_s1 + $0x18] sm:$0xf0]  ;;  %1126 = vmatpush.bf16.msra.mxu1 %v3958_v11  ;;  %1139 = vmatpush.bf16.msra.mxu2 %v3960_v27  ;;  %v3998_v15 = vor.u32 %v2767_v55, %v2513_v4  ;;  %v2699_v39 = vld [vmem:[%s4775_s1 + $0x16c] sm:$0xf] }
  0x7f   :  { %5103 = vst [vmem:[#allocation104_spill] sm:$0xff] %v3996_v43  ;;  %v2241_v59 = vld [vmem:[%s4775_s1 + $0x178] sm:$0xf0]  ;;  %v2731_v19 = vld [vmem:[%s4775_s1 + $0x26c] sm:$0xf]  ;;  %1104 = vmatpush.bf16.msrb.mxu3 %v3984_v48  ;;  %v4026_v27 = vor.u32 %v2655_v20, %v2065_v49 }
  0x80   :  { %5104 = vst [vmem:[#allocation105_spill] sm:$0xff] %v3998_v15  ;;  %v2369_v40 = vld [vmem:[%s4775_s1 + $0x278] sm:$0xf0]  ;;  %v2763_v22 = vld [vmem:[%s4775_s1 + $0x36c] sm:$0xf]  ;;  %1114 = vmatpush.bf16.msra.mxu0 %v3986_v42  ;;  %v4028_v11 = vor.u32 %v2699_v39, %v2241_v59 }
  0x81   :  { %v2497_v13 = vld [vmem:[%s4775_s1 + $0x378] sm:$0xf0]  ;;  %v2795_v55 = vld [vmem:[%s4775_s1 + $0x46c] sm:$0xf]  ;;  %5105 = vst [vmem:[#allocation106_spill] sm:$0xff] %v4026_v27  ;;  %v4032_v10 = vor.u32 %v2731_v19, %v2369_v40 }
  0x82   :  { %v2625_v4 = vld [vmem:[%s4775_s1 + $0x478] sm:$0xf0]  ;;  %5106 = vst [vmem:[#allocation107_spill] sm:$0xff] %v4028_v11  ;;  %1127 = vmatpush.bf16.msra.mxu1 %v3996_v43  ;;  %1140 = vmatpush.bf16.msra.mxu2 %v3998_v15  ;;  %v4034_v63 = vor.u32 %v2763_v22, %v2497_v13  ;;  %v2695_v52 = vld [vmem:[%s4775_s1 + $0x14c] sm:$0xf] }
  0x83   :  { %5107 = vst [vmem:[#allocation108_spill] sm:$0xff] %v4032_v10  ;;  %v2225_v42 = vld [vmem:[%s4775_s1 + $0x158] sm:$0xf0]  ;;  %v2727_v20 = vld [vmem:[%s4775_s1 + $0x24c] sm:$0xf]  ;;  %v4045_v49 = vor.u32 %v2795_v55, %v2625_v4  ;;  %1105 = vmatpush.bf16.msrb.mxu3 %v4026_v27 }
  0x84   :  { %5108 = vst [vmem:[#allocation109_spill] sm:$0xff] %v4034_v63  ;;  %v2353_v39 = vld [vmem:[%s4775_s1 + $0x258] sm:$0xf0]  ;;  %v2759_v59 = vld [vmem:[%s4775_s1 + $0x34c] sm:$0xf]  ;;  %1115 = vmatpush.bf16.msra.mxu0 %v4028_v11  ;;  %v4064_v13 = vor.u32 %v2695_v52, %v2225_v42 }
  0x85   :  { %5109 = vst [vmem:[#allocation110_spill] sm:$0xff] %v4045_v49  ;;  %v2481_v19 = vld [vmem:[%s4775_s1 + $0x358] sm:$0xf0]  ;;  %v2791_v40 = vld [vmem:[%s4775_s1 + $0x44c] sm:$0xf]  ;;  %v4068_v55 = vor.u32 %v2727_v20, %v2353_v39 }
  0x86   :  { %v2609_v22 = vld [vmem:[%s4775_s1 + $0x458] sm:$0xf0]  ;;  %1128 = vmatpush.bf16.msra.mxu1 %v4032_v10  ;;  %1141 = vmatpush.bf16.msra.mxu2 %v4034_v63  ;;  %v4070_v4 = vor.u32 %v2759_v59, %v2481_v19  ;;  %v2691_v15 = vld [vmem:[%s4775_s1 + $0x12c] sm:$0xf] }
  0x87   :  { %5110 = vst [vmem:[#allocation111_spill] sm:$0xff] %v4068_v55  ;;  %v2209_v27 = vld [vmem:[%s4775_s1 + $0x138] sm:$0xf0]  ;;  %v2723_v52 = vld [vmem:[%s4775_s1 + $0x22c] sm:$0xf]  ;;  %1154 = vmatpush.bf16.msra.mxu3 %v4045_v49  ;;  %v4082_v42 = vor.u32 %v2791_v40, %v2609_v22 }
  0x88   :  { %5111 = vst [vmem:[#allocation112_spill] sm:$0xff] %v4070_v4  ;;  %v2337_v20 = vld [vmem:[%s4775_s1 + $0x238] sm:$0xf0]  ;;  %v2755_v39 = vld [vmem:[%s4775_s1 + $0x32c] sm:$0xf]  ;;  %1106 = vmatmul.bf16.vlgmr.msrb.gmra.mxu3 %v3159_v24  ;;  %1116 = vmatpush.bf16.msra.mxu0 %v4064_v13  ;;  %v4101_v22 = vor.u32 %v2691_v15, %v2209_v27 }
  0x89   :  { %5112 = vst [vmem:[#allocation113_spill] sm:$0xff] %v4082_v42  ;;  %v2465_v59 = vld [vmem:[%s4775_s1 + $0x338] sm:$0xf0]  ;;  %v2787_v19 = vld [vmem:[%s4775_s1 + $0x42c] sm:$0xf]  ;;  %v4105_v49 = vor.u32 %v2723_v52, %v2337_v20 }
  0x8a   :  { %v2593_v40 = vld [vmem:[%s4775_s1 + $0x438] sm:$0xf0]  ;;  %1129 = vmatpush.bf16.msra.mxu1 %v4068_v55  ;;  %1142 = vmatpush.bf16.msra.mxu2 %v4070_v4  ;;  %v4107_v63 = vor.u32 %v2755_v39, %v2465_v59  ;;  %v2687_v24 = vld [vmem:[%s4775_s1 + $0x10c] sm:$0xf] }
  0x8b   :  { %v2193_v10 = vld [vmem:[%s4775_s1 + $0x118] sm:$0xf0]  ;;  %v2719_v27 = vld [vmem:[%s4775_s1 + $0x20c] sm:$0xf]  ;;  %1155 = vmatpush.bf16.msra.mxu3 %v4082_v42  ;;  %v4119_v15 = vor.u32 %v2787_v19, %v2593_v40 }
  0x8c   :  { %v2321_v52 = vld [vmem:[%s4775_s1 + $0x218] sm:$0xf0]  ;;  %v2751_v20 = vld [vmem:[%s4775_s1 + $0x30c] sm:$0xf]  ;;  %1117 = vmatpush.bf16.msra.mxu0 %v4101_v22  ;;  %v4137_v40 = vor.u32 %v2687_v24, %v2193_v10 }
  0x8d   :  { %v2449_v39 = vld [vmem:[%s4775_s1 + $0x318] sm:$0xf0]  ;;  %v2783_v59 = vld [vmem:[%s4775_s1 + $0x40c] sm:$0xf]  ;;  %v4141_v42 = vor.u32 %v2719_v27, %v2321_v52 }
  0x8e   :  { %v2577_v19 = vld [vmem:[%s4775_s1 + $0x418] sm:$0xf0]  ;;  %1130 = vmatpush.bf16.msra.mxu1 %v4105_v49  ;;  %1143 = vmatpush.bf16.msra.mxu2 %v4107_v63  ;;  %v4143_v4 = vor.u32 %v2751_v20, %v2449_v39 }
  0x8f   :  { %1156 = vmatpush.bf16.msra.mxu3 %v4119_v15  ;;  %v4146_v55 = vor.u32 %v2783_v59, %v2577_v19 }
  0x90   :  { %1118 = vmatpush.bf16.msra.mxu0 %v4137_v40 }
  0x92   :  { %1131 = vmatpush.bf16.msra.mxu1 %v4141_v42  ;;  %1144 = vmatpush.bf16.msra.mxu2 %v4143_v4 }
  0x93   :  { %1157 = vmatpush.bf16.msra.mxu3 %v4146_v55  ;;  %1119 = vmatmul.bf16.vlgmr.msra.gmra.mxu0 %v3177_v37 }
  0x94   :  { %1187 = vmatpush.bf16.msrb.mxu0 %v2827_v3 }
  0x95   :  { %1145 = vmatmul.bf16.vlgmr.msra.gmra.mxu2 %v3175_v35  ;;  %1132 = vmatmul.bf16.vlgmr.msra.gmra.mxu1 %v3169_v31  ;;  %v2633_v31 = vld [vmem:[%s4776_s0 + $0x14] sm:$0xff]  ;;  %v2634_v35 = vld [vmem:[%s4776_s0 + $0x1c] sm:$0xff] }
  0x96   :  { %1200 = vmatpush.bf16.msrb.mxu1 %v2838_v7  ;;  %1213 = vmatpush.bf16.msrb.mxu2 %v2840_v8  ;;  %v1172_v10 = vunpack.c.l.b16 %v2634_v35  ;;  %v1173_v24 = vunpack.c.h.b16 %v2634_v35  ;;  %v1171_v20 = vunpack.c.h.b16 %v2633_v31 }
  0x97   :  { %1226 = vmatpush.bf16.msrb.mxu3 %v2852_v12 }
  0x98   :  { %1188 = vmatpush.bf16.msrb.mxu0 %v2865_v16  ;;  %2632 = vmatmul.msk.bf16.vlgmr.msra.gmra.mxu3 %vm899_vm0, %v3336_v26  ;;  %v1170_v26 = vunpack.c.l.b16 %v2633_v31  ;;  %v4196_v59 = vpack.c.b16 %v1172_v10, %v1172_v10  ;;  %v4198_v19 = vpack.c.b16 %v1173_v24, %v1173_v24  ;;  %v4202_v35 = vpack.c.b16 %v1171_v20, %v1171_v20  ;;  %v5113_v20 = vld [vmem:[#allocation19_spill] sm:$0xff] }
  0x9a   :  { %1201 = vmatpush.bf16.msrb.mxu1 %v2867_v17  ;;  %1214 = vmatpush.bf16.msrb.mxu2 %v2879_v21  ;;  %v4192_v39 = vpack.c.b16 %v1170_v26, %v1170_v26 }
  0x9b   :  { %1227 = vmatpush.bf16.msrb.mxu3 %v2890_v25 }
  0x9c   :  { %1189 = vmatpush.bf16.msrb.mxu0 %v2902_v29 }
  0x9e   :  { %1202 = vmatpush.bf16.msrb.mxu1 %v2915_v33  ;;  %1215 = vmatpush.bf16.msrb.mxu2 %v2917_v34 }
  0x9f   :  { %1228 = vmatpush.bf16.msrb.mxu3 %v2929_v38 }
  0xa0   :  { %1190 = vmatpush.bf16.msrb.mxu0 %v2947_v44 }
  0xa2   :  { %1203 = vmatpush.bf16.msrb.mxu1 %v2951_v45  ;;  %1216 = vmatpush.bf16.msrb.mxu2 %v2953_v46 }
  0xa3   :  { %1229 = vmatpush.bf16.msrb.mxu3 %v2965_v50 }
  0xa4   :  { %1191 = vmatpush.bf16.msrb.mxu0 %v2983_v56  ;;  %v912_v37 = vpop.f32.mrf.mxu0 }
  0xa6   :  { %1204 = vmatpush.bf16.msrb.mxu1 %v2987_v57  ;;  %1217 = vmatpush.bf16.msrb.mxu2 %v2989_v58  ;;  %v925_v27 = vpop.f32.mrf.mxu1 }
  0xa7   :  { %1230 = vmatpush.bf16.msrb.mxu3 %v3001_v62  ;;  %v926_v52 = vadd.f32 %v925_v27, %v912_v37 }
  0xa8   :  { %1192 = vmatpush.bf16.msrb.mxu0 %v3019_v5 }
  0xa9   :  { %v951_v31 = vpop.f32.mrf.mxu3 }
  0xaa   :  { %1205 = vmatpush.bf16.msrb.mxu1 %v3023_v6  ;;  %1218 = vmatpush.bf16.msrb.mxu2 %v3025_v9 }
  0xab   :  { %1231 = vmatpush.bf16.msrb.mxu3 %v3037_v14  ;;  %v938_v37 = vpop.f32.mrf.mxu2 }
  0xac   :  { %1193 = vmatpush.bf16.msrb.mxu0 %v3055_v23  ;;  %v914_v26 = vpop.f32.mrf.mxu0  ;;  %v939_v27 = vadd.f32 %v938_v37, %v926_v52  ;;  %v5116_v52 = vld [vmem:[#allocation22_spill] sm:$0xff] }
  0xad   :  { %v5115_v26 = vld [vmem:[#allocation21_spill] sm:$0xff]  ;;  %v2635_v37 = vld [vmem:[%s4776_s0 + $0x24] sm:$0xf] }
  0xae   :  { %1206 = vmatpush.bf16.msrb.mxu1 %v3068_v28  ;;  %1219 = vmatpush.bf16.msrb.mxu2 %v3070_v30  ;;  %v952_v10 = vadd.f32 %v951_v31, %v939_v27  ;;  %v927_v24 = vpop.f32.mrf.mxu1  ;;  %v5117_v31 = vld [vmem:[#allocation23_spill] sm:$0xff]  ;;  %v5118_v27 = vld [vmem:[#allocation24_spill] sm:$0xff] }
  0xaf   :  { %1232 = vmatpush.bf16.msrb.mxu3 %v3082_v36  ;;  %v5119_v24 = vld [vmem:[#allocation25_spill] sm:$0xff] }
  0xb0   :  { %1194 = vmatpush.bf16.msrb.mxu0 %v3103_v47 }
  0xb2   :  { %1207 = vmatpush.bf16.msrb.mxu1 %v3116_v53  ;;  %1220 = vmatpush.bf16.msrb.mxu2 %v3118_v54  ;;  %v5144_v54 = vld [vmem:[#allocation49_spill] sm:$0xff] }
  0xb3   :  { %1233 = vmatpush.bf16.msrb.mxu3 %v3127_v60  ;;  %1195 = vmatmul.bf16.vlgmr.msrb.gmra.mxu0 %v4192_v39  ;;  %v5124_v60 = vld [vmem:[#allocation29_spill] sm:$0xff] }
  0xb4   :  { %1243 = vmatpush.bf16.msra.mxu0 %v3129_v61  ;;  %v5121_v61 = vld [vmem:[#allocation26_spill] sm:$0xff]  ;;  %v5152_v53 = vld [vmem:[#allocation57_spill] sm:$0xff] }
  0xb5   :  { %1221 = vmatmul.bf16.vlgmr.msrb.gmra.mxu2 %v4196_v59  ;;  %1208 = vmatmul.bf16.vlgmr.msrb.gmra.mxu1 %v4202_v35 }
  0xb6   :  { %1252 = vmatpush.bf16.msra.mxu1 %v3134_v1  ;;  %1265 = vmatpush.bf16.msra.mxu2 %v3136_v2  ;;  %v5114_v1 = vld [vmem:[#allocation20_spill] sm:$0xff]  ;;  %v940_v2 = vpop.f32.mrf.mxu2 }
  0xb7   :  { %1278 = vmatpush.bf16.msra.mxu3 %v3148_v18  ;;  %v953_v18 = vpop.f32.mrf.mxu3 }
  0xb8   :  { %1234 = vmatmul.bf16.vlgmr.msrb.gmra.mxu3 %v4198_v19  ;;  %1244 = vmatpush.bf16.msra.mxu0 %v3173_v32  ;;  %v964_v32 = vpop.f32.mrf.mxu0  ;;  %v5125_v18 = vld [vmem:[#allocation30_spill] sm:$0xff] }
  0xba   :  { %1253 = vmatpush.bf16.msra.mxu1 %v5113_v20  ;;  %1266 = vmatpush.bf16.msra.mxu2 %v5114_v1  ;;  %v4222_v20 = vadd.f32 %v964_v32, %v952_v10  ;;  %v1174_v1 = vunpack.c.l.b16 %v2635_v37  ;;  %v5129_v32 = vld [vmem:[#allocation34_spill] sm:$0xff]  ;;  %v5130_v37 = vld [vmem:[#allocation35_spill] sm:$0xff] }
  0xbb   :  { %1279 = vmatpush.bf16.msra.mxu3 %v5115_v26  ;;  %v5122_v26 = vld [vmem:[#allocation27_spill] sm:$0xff] }
  0xbc   :  { %1245 = vmatpush.bf16.msra.mxu0 %v5116_v52  ;;  %5120 = vst [vmem:[#allocation114_spill] sm:$0xff] %v4222_v20  ;;  %v5123_v52 = vld [vmem:[#allocation28_spill] sm:$0xff]  ;;  %v4229_v2 = vpack.c.b16 %v1174_v1, %v1174_v1  ;;  %v5133_v1 = vld [vmem:[#allocation38_spill] sm:$0xff] }
  0xbd   :  { %v5131_v20 = vld [vmem:[#allocation36_spill] sm:$0xff] }
  0xbe   :  { %1254 = vmatpush.bf16.msra.mxu1 %v5117_v31  ;;  %1267 = vmatpush.bf16.msra.mxu2 %v5118_v27  ;;  %v5126_v31 = vld [vmem:[#allocation31_spill] sm:$0xff]  ;;  %v5127_v27 = vld [vmem:[#allocation32_spill] sm:$0xff] }
  0xbf   :  { %1280 = vmatpush.bf16.msra.mxu3 %v5119_v24  ;;  %v5128_v24 = vld [vmem:[#allocation33_spill] sm:$0xff] }
  0xc0   :  { %1246 = vmatpush.bf16.msra.mxu0 %v5121_v61  ;;  %v966_v10 = vpop.f32.mrf.mxu0  ;;  %v5143_v61 = vld [vmem:[#allocation48_spill] sm:$0xff] }
  0xc1   :  { %v5138_v10 = vld [vmem:[#allocation43_spill] sm:$0xff] }
  0xc2   :  { %1255 = vmatpush.bf16.msra.mxu1 %v5122_v26  ;;  %1268 = vmatpush.bf16.msra.mxu2 %v5123_v52  ;;  %v5139_v52 = vld [vmem:[#allocation44_spill] sm:$0xff] }
  0xc3   :  { %1281 = vmatpush.bf16.msra.mxu3 %v5124_v60  ;;  %2636 = vmatmul.msk.bf16.vlgmr.msra.gmra.mxu0 %vm899_vm0, %v4229_v2  ;;  %v5132_v60 = vld [vmem:[#allocation37_spill] sm:$0xff] }
  0xc4   :  { %1291 = vmatpush.bf16.msrb.mxu0 %v5125_v18  ;;  %v977_v18 = vpop.f32.mrf.mxu1 }
  0xc6   :  { %1256 = vmatpush.bf16.msra.mxu1 %v5126_v31  ;;  %1269 = vmatpush.bf16.msra.mxu2 %v5127_v27  ;;  %v5134_v31 = vld [vmem:[#allocation39_spill] sm:$0xff]  ;;  %v5135_v27 = vld [vmem:[#allocation40_spill] sm:$0xff] }
  0xc7   :  { %1282 = vmatpush.bf16.msra.mxu3 %v5128_v24  ;;  %v5136_v24 = vld [vmem:[#allocation41_spill] sm:$0xff] }
  0xc8   :  { %1292 = vmatpush.bf16.msrb.mxu0 %v5129_v32  ;;  %v5137_v32 = vld [vmem:[#allocation42_spill] sm:$0xff] }
  0xca   :  { %1257 = vmatpush.bf16.msra.mxu1 %v5130_v37  ;;  %1270 = vmatpush.bf16.msra.mxu2 %v5131_v20  ;;  %v5140_v37 = vld [vmem:[#allocation45_spill] sm:$0xff]  ;;  %v5141_v20 = vld [vmem:[#allocation46_spill] sm:$0xff] }
  0xcb   :  { %1283 = vmatpush.bf16.msra.mxu3 %v5132_v60  ;;  %v990_v60 = vpop.f32.mrf.mxu2  ;;  %v1003_v26 = vpop.f32.mrf.mxu3 }
  0xcc   :  { %1293 = vmatpush.bf16.msrb.mxu0 %v5133_v1  ;;  %v5142_v1 = vld [vmem:[#allocation47_spill] sm:$0xff] }
  0xce   :  { %1258 = vmatpush.bf16.msra.mxu1 %v5134_v31  ;;  %1271 = vmatpush.bf16.msra.mxu2 %v5135_v27  ;;  %v979_v31 = vpop.f32.mrf.mxu1  ;;  %v991_v27 = vadd.f32 %v990_v60, %v977_v18  ;;  %v5149_v60 = vld [vmem:[#allocation54_spill] sm:$0xff] }
  0xcf   :  { %1284 = vmatpush.bf16.msra.mxu3 %v5136_v24  ;;  %v5151_v24 = vld [vmem:[#allocation56_spill] sm:$0xff] }
  0xd0   :  { %1294 = vmatpush.bf16.msrb.mxu0 %v5137_v32  ;;  %v5150_v32 = vld [vmem:[#allocation55_spill] sm:$0xff] }
  0xd2   :  { %1259 = vmatpush.bf16.msra.mxu1 %v5138_v10  ;;  %1272 = vmatpush.bf16.msra.mxu2 %v5139_v52  ;;  %v1004_v52 = vadd.f32 %v1003_v26, %v991_v27  ;;  %v5147_v10 = vld [vmem:[#allocation52_spill] sm:$0xff]  ;;  %v5153_v27 = vld [vmem:[#allocation58_spill] sm:$0xff] }
  0xd3   :  { %1285 = vmatpush.bf16.msra.mxu3 %v5140_v37  ;;  %v5145_v37 = vld [vmem:[#allocation50_spill] sm:$0xff]  ;;  %v992_v18 = vpop.f32.mrf.mxu2 }
  0xd4   :  { %1295 = vmatpush.bf16.msrb.mxu0 %v5141_v20  ;;  %v5146_v20 = vld [vmem:[#allocation51_spill] sm:$0xff] }
  0xd5   :  { %1260 = vmatmul.bf16.vlgmr.msra.gmra.mxu1 %v4192_v39  ;;  %1273 = vmatmul.bf16.vlgmr.msra.gmra.mxu2 %v4202_v35  ;;  %v5159_v18 = vld [vmem:[#allocation63_spill] sm:$0xff] }
  0xd6   :  { %1308 = vmatpush.bf16.msrb.mxu1 %v5142_v1  ;;  %1317 = vmatpush.bf16.msrb.mxu2 %v5143_v61  ;;  %v5148_v1 = vld [vmem:[#allocation53_spill] sm:$0xff]  ;;  %v1016_v61 = vpop.f32.mrf.mxu0  ;;  %v1029_v26 = vpop.f32.mrf.mxu1 }
  0xd7   :  { %1330 = vmatpush.bf16.msrb.mxu3 %v5144_v54  ;;  %v1017_v31 = vadd.f32 %v1016_v61, %v1004_v52  ;;  %v1005_v54 = vpop.f32.mrf.mxu3  ;;  %v5157_v61 = vld [vmem:[#allocation61_spill] sm:$0xff]  ;;  %v5158_v52 = vld [vmem:[#allocation62_spill] sm:$0xff] }
  0xd8   :  { %1286 = vmatmul.bf16.vlgmr.msra.gmra.mxu3 %v4196_v59  ;;  %1296 = vmatpush.bf16.msrb.mxu0 %v5145_v37 }
  0xda   :  { %1309 = vmatpush.bf16.msrb.mxu1 %v5146_v20  ;;  %1318 = vmatpush.bf16.msrb.mxu2 %v5147_v10  ;;  %v4264_v20 = vadd.f32 %v1029_v26, %v1017_v31  ;;  %v5155_v10 = vld [vmem:[#allocation59_spill] sm:$0xff] }
  0xdb   :  { %1331 = vmatpush.bf16.msrb.mxu3 %v5148_v1  ;;  %v5156_v1 = vld [vmem:[#allocation60_spill] sm:$0xff]  ;;  %v5163_v31 = vld [vmem:[#allocation67_spill] sm:$0xff] }
  0xdc   :  { %1297 = vmatpush.bf16.msrb.mxu0 %v5149_v60  ;;  %5154 = vst [vmem:[#allocation50_spill] sm:$0xff] %v4264_v20  ;;  %v5164_v20 = vld [vmem:[#allocation68_spill] sm:$0xff] }
  0xde   :  { %1310 = vmatpush.bf16.msrb.mxu1 %v5150_v32  ;;  %1319 = vmatpush.bf16.msrb.mxu2 %v5151_v24  ;;  %v1018_v54 = vpop.f32.mrf.mxu0  ;;  %v5160_v24 = vld [vmem:[#allocation64_spill] sm:$0xff]  ;;  %v1031_v26 = vpop.f32.mrf.mxu1 }
  0xdf   :  { %1332 = vmatpush.bf16.msrb.mxu3 %v5152_v53  ;;  %v5161_v53 = vld [vmem:[#allocation65_spill] sm:$0xff]  ;;  %v5166_v54 = vld [vmem:[#allocation70_spill] sm:$0xff]  ;;  %v5172_v26 = vld [vmem:[#allocation76_spill] sm:$0xff] }
  0xe0   :  { %1298 = vmatpush.bf16.msrb.mxu0 %v5153_v27  ;;  %v5162_v27 = vld [vmem:[#allocation66_spill] sm:$0xff] }
  0xe2   :  { %1311 = vmatpush.bf16.msrb.mxu1 %v5155_v10  ;;  %1320 = vmatpush.bf16.msrb.mxu2 %v5156_v1  ;;  %v5173_v1 = vld [vmem:[#allocation77_spill] sm:$0xff]  ;;  %v5175_v10 = vld [vmem:[#allocation79_spill] sm:$0xff] }
  0xe3   :  { %1333 = vmatpush.bf16.msrb.mxu3 %v5157_v61  ;;  %1299 = vmatmul.bf16.vlgmr.msrb.gmra.mxu0 %v4198_v19  ;;  %v5168_v61 = vld [vmem:[#allocation72_spill] sm:$0xff] }
  0xe4   :  { %1343 = vmatpush.bf16.msra.mxu0 %v5158_v52  ;;  %v5165_v52 = vld [vmem:[#allocation69_spill] sm:$0xff] }
  0xe5   :  { %2637 = vmatmul.msk.bf16.vlgmr.msrb.gmra.mxu1 %vm899_vm0, %v4229_v2 }
  0xe6   :  { %1356 = vmatpush.bf16.msra.mxu1 %v5159_v18  ;;  %1321 = vmatpush.bf16.msrb.mxu2 %v5160_v24  ;;  %v5167_v18 = vld [vmem:[#allocation71_spill] sm:$0xff]  ;;  %v5169_v24 = vld [vmem:[#allocation73_spill] sm:$0xff] }
  0xe7   :  { %1334 = vmatpush.bf16.msrb.mxu3 %v5161_v53  ;;  %v5170_v53 = vld [vmem:[#allocation74_spill] sm:$0xff] }
  0xe8   :  { %1344 = vmatpush.bf16.msra.mxu0 %v5162_v27  ;;  %v5171_v27 = vld [vmem:[#allocation75_spill] sm:$0xff] }
  0xea   :  { %1357 = vmatpush.bf16.msra.mxu1 %v5163_v31  ;;  %1322 = vmatpush.bf16.msrb.mxu2 %v5164_v20  ;;  %v1042_v31 = vpop.f32.mrf.mxu2  ;;  %v5174_v20 = vld [vmem:[#allocation78_spill] sm:$0xff] }
  0xeb   :  { %1335 = vmatpush.bf16.msrb.mxu3 %v5165_v52  ;;  %v1055_v52 = vpop.f32.mrf.mxu3 }
  0xec   :  { %1345 = vmatpush.bf16.msra.mxu0 %v5166_v54  ;;  %v5176_v54 = vld [vmem:[#allocation80_spill] sm:$0xff] }
  0xee   :  { %1358 = vmatpush.bf16.msra.mxu1 %v5167_v18  ;;  %1323 = vmatpush.bf16.msrb.mxu2 %v5168_v61  ;;  %v1056_v18 = vadd.f32 %v1055_v52, %v1042_v31  ;;  %v5177_v61 = vld [vmem:[#allocation81_spill] sm:$0xff] }
  0xef   :  { %1336 = vmatpush.bf16.msrb.mxu3 %v5169_v24 }
  0xf0   :  { %1346 = vmatpush.bf16.msra.mxu0 %v5170_v53  ;;  %v5180_v53 = vld [vmem:[#allocation84_spill] sm:$0xff]  ;;  %v1068_v24 = vpop.f32.mrf.mxu0 }
  0xf2   :  { %1359 = vmatpush.bf16.msra.mxu1 %v5171_v27  ;;  %1324 = vmatpush.bf16.msrb.mxu2 %v5172_v26  ;;  %v5178_v27 = vld [vmem:[#allocation82_spill] sm:$0xff]  ;;  %v5179_v26 = vld [vmem:[#allocation83_spill] sm:$0xff]  ;;  %v1081_v52 = vpop.f32.mrf.mxu1 }
  0xf3   :  { %1337 = vmatpush.bf16.msrb.mxu3 %v5173_v1  ;;  %v5181_v1 = vld [vmem:[#allocation85_spill] sm:$0xff]  ;;  %v1057_v31 = vpop.f32.mrf.mxu3 }
  0xf4   :  { %1347 = vmatpush.bf16.msra.mxu0 %v5174_v20  ;;  %v1044_v20 = vpop.f32.mrf.mxu2 }
  0xf5   :  { %1325 = vmatmul.bf16.vlgmr.msrb.gmra.mxu2 %v4192_v39  ;;  %v5186_v20 = vld [vmem:[#allocation91_spill] sm:$0xff] }
  0xf6   :  { %1360 = vmatpush.bf16.msra.mxu1 %v5175_v10  ;;  %1373 = vmatpush.bf16.msra.mxu2 %v5176_v54  ;;  %v5182_v10 = vld [vmem:[#allocation86_spill] sm:$0xff]  ;;  %v1069_v54 = vadd.f32 %v1068_v24, %v1056_v18  ;;  %v5188_v24 = vld [vmem:[#allocation93_spill] sm:$0xff] }
  0xf7   :  { %1382 = vmatpush.bf16.msra.mxu3 %v5177_v61  ;;  %v5183_v61 = vld [vmem:[#allocation87_spill] sm:$0xff]  ;;  %v5189_v18 = vld [vmem:[#allocation94_spill] sm:$0xff] }
  0xf8   :  { %1338 = vmatmul.bf16.vlgmr.msrb.gmra.mxu3 %v4202_v35  ;;  %1348 = vmatpush.bf16.msra.mxu0 %v5178_v27  ;;  %v1082_v27 = vadd.f32 %v1081_v52, %v1069_v54  ;;  %v1070_v31 = vpop.f32.mrf.mxu0 }
  0xf9   :  { %v5195_v31 = vld [vmem:[#allocation99_spill] sm:$0xff] }
  0xfa   :  { %1361 = vmatpush.bf16.msra.mxu1 %v5179_v26  ;;  %1374 = vmatpush.bf16.msra.mxu2 %v5180_v53  ;;  %v5184_v26 = vld [vmem:[#allocation89_spill] sm:$0xff]  ;;  %v5185_v53 = vld [vmem:[#allocation90_spill] sm:$0xff]  ;;  %v1083_v54 = vpop.f32.mrf.mxu1 }
  0xfb   :  { %1383 = vmatpush.bf16.msra.mxu3 %v5181_v1  ;;  %v5187_v1 = vld [vmem:[#allocation92_spill] sm:$0xff]  ;;  %v5198_v54 = vld [vmem:[#allocation102_spill] sm:$0xff] }
  0xfc   :  { %1349 = vmatpush.bf16.msra.mxu0 %v5182_v10  ;;  %v1094_v52 = vpop.f32.mrf.mxu2 }
  0xfe   :  { %1362 = vmatpush.bf16.msra.mxu1 %v5183_v61  ;;  %1375 = vmatpush.bf16.msra.mxu2 %v3820_v51 }
  0xff   :  { %1384 = vmatpush.bf16.msra.mxu3 %v3832_v0 }
 0x100   :  { %1350 = vmatpush.bf16.msra.mxu0 %v3853_v41  ;;  %v5190_v41 = vld [vmem:[#allocation95_spill] sm:$0xff] }
 0x102   :  { %1363 = vmatpush.bf16.msra.mxu1 %v5184_v26  ;;  %1376 = vmatpush.bf16.msra.mxu2 %v5185_v53  ;;  %v5191_v26 = vld [vmem:[#allocation96_spill] sm:$0xff]  ;;  %v4313_v53 = vadd.f32 %v1094_v52, %v1082_v27  ;;  %v5199_v27 = vld [vmem:[#allocation103_spill] sm:$0xff]  ;;  %v5200_v52 = vld [vmem:[#allocation105_spill] sm:$0xff] }
 0x103   :  { %1385 = vmatpush.bf16.msra.mxu3 %v5186_v20  ;;  %1351 = vmatmul.bf16.vlgmr.msra.gmra.mxu0 %v4196_v59  ;;  %v5193_v20 = vld [vmem:[#allocation97_spill] sm:$0xff] }
 0x104   :  { %1395 = vmatpush.bf16.msrb.mxu0 %v5187_v1  ;;  %5192 = vst [vmem:[#allocation54_spill] sm:$0xff] %v4313_v53  ;;  %v5194_v1 = vld [vmem:[#allocation98_spill] sm:$0xff] }
 0x105   :  { %1364 = vmatmul.bf16.vlgmr.msra.gmra.mxu1 %v4198_v19  ;;  %2638 = vmatmul.msk.bf16.vlgmr.msra.gmra.mxu2 %vm899_vm0, %v4229_v2  ;;  %v5201_v53 = vld [vmem:[#allocation106_spill] sm:$0xff] }
 0x106   :  { %1408 = vmatpush.bf16.msrb.mxu1 %v5188_v24  ;;  %1421 = vmatpush.bf16.msrb.mxu2 %v5189_v18  ;;  %v5196_v18 = vld [vmem:[#allocation100_spill] sm:$0xff]  ;;  %v5197_v24 = vld [vmem:[#allocation101_spill] sm:$0xff] }
 0x107   :  { %1386 = vmatpush.bf16.msra.mxu3 %v5190_v41  ;;  %v1096_v41 = vpop.f32.mrf.mxu2 }
 0x108   :  { %1396 = vmatpush.bf16.msrb.mxu0 %v5191_v26  ;;  %v5205_v41 = vld [vmem:[#allocation111_spill] sm:$0xff] }
 0x10a   :  { %1409 = vmatpush.bf16.msrb.mxu1 %v5193_v20  ;;  %1422 = vmatpush.bf16.msrb.mxu2 %v5194_v1  ;;  %v5202_v1 = vld [vmem:[#allocation108_spill] sm:$0xff] }
 0x10b   :  { %1387 = vmatpush.bf16.msra.mxu3 %v5195_v31  ;;  %v1107_v31 = vpop.f32.mrf.mxu3 }
 0x10c   :  { %1397 = vmatpush.bf16.msrb.mxu0 %v5196_v18  ;;  %v5203_v18 = vld [vmem:[#allocation109_spill] sm:$0xff] }
 0x10e   :  { %1410 = vmatpush.bf16.msrb.mxu1 %v5197_v24  ;;  %1423 = vmatpush.bf16.msrb.mxu2 %v5198_v54  ;;  %v5204_v24 = vld [vmem:[#allocation110_spill] sm:$0xff] }
 0x10f   :  { %1388 = vmatpush.bf16.msra.mxu3 %v3984_v48 }
 0x110   :  { %1398 = vmatpush.bf16.msrb.mxu0 %v5199_v27 }
 0x112   :  { %1411 = vmatpush.bf16.msrb.mxu1 %v3996_v43  ;;  %1424 = vmatpush.bf16.msrb.mxu2 %v5200_v52  ;;  %v5206_v43 = vld [vmem:[#allocation112_spill] sm:$0xff]  ;;  %v5207_v52 = vld [vmem:[#allocation113_spill] sm:$0xff] }
 0x113   :  { %1389 = vmatpush.bf16.msra.mxu3 %v5201_v53  ;;  %v1120_v53 = vpop.f32.mrf.mxu0 }
 0x114   :  { %1399 = vmatpush.bf16.msrb.mxu0 %v4028_v11  ;;  %v1109_v11 = vpop.f32.mrf.mxu3 }
 0x116   :  { %1412 = vmatpush.bf16.msrb.mxu1 %v5202_v1  ;;  %1425 = vmatpush.bf16.msrb.mxu2 %v5203_v18  ;;  %v1121_v18 = vadd.f32 %v1120_v53, %v1107_v31 }
 0x117   :  { %1438 = vmatpush.bf16.msrb.mxu3 %v5204_v24  ;;  %v1133_v24 = vpop.f32.mrf.mxu1 }
 0x118   :  { %1390 = vmatmul.bf16.vlgmr.msra.gmra.mxu3 %v4192_v39  ;;  %1400 = vmatpush.bf16.msrb.mxu0 %v4064_v13  ;;  %v1134_v39 = vadd.f32 %v1133_v24, %v1121_v18 }
 0x11a   :  { %1413 = vmatpush.bf16.msrb.mxu1 %v5205_v41  ;;  %1426 = vmatpush.bf16.msrb.mxu2 %v5206_v43 }
 0x11b   :  { %1439 = vmatpush.bf16.msrb.mxu3 %v5207_v52  ;;  %v1146_v52 = vpop.f32.mrf.mxu2  ;;  %v1122_v53 = vpop.f32.mrf.mxu0 }
 0x11c   :  { %1401 = vmatpush.bf16.msrb.mxu0 %v4101_v22  ;;  %v1147_v11 = vadd.f32 %v1146_v52, %v1134_v39  ;;  %v1159_v18 = vpop.f32.mrf.mxu3 }
 0x11e   :  { %1414 = vmatpush.bf16.msrb.mxu1 %v4105_v49  ;;  %1427 = vmatpush.bf16.msrb.mxu2 %v4107_v63  ;;  %v4355_v31 = vadd.f32 %v1159_v18, %v1147_v11 }
 0x11f   :  { %1440 = vmatpush.bf16.msrb.mxu3 %v4119_v15  ;;  %v1135_v24 = vpop.f32.mrf.mxu1 }
 0x120   :  { %1402 = vmatpush.bf16.msrb.mxu0 %v4137_v40 }
 0x122   :  { %1415 = vmatpush.bf16.msrb.mxu1 %v4141_v42  ;;  %1428 = vmatpush.bf16.msrb.mxu2 %v4143_v4 }
 0x123   :  { %1441 = vmatpush.bf16.msrb.mxu3 %v4146_v55  ;;  %1403 = vmatmul.bf16.vlgmr.msrb.gmra.mxu0 %v4202_v35  ;;  %v2640_v35 = vld [vmem:[%s4776_s0 + $0x28] sm:$0xff] }
 0x124   :  { %1475 = vmatpush.bf16.msra.mxu0 %v2827_v3  ;;  %v1458_v39 = vunpack.c.l.b16 %v2640_v35 }
 0x125   :  { %1429 = vmatmul.bf16.vlgmr.msrb.gmra.mxu2 %v4198_v19  ;;  %1416 = vmatmul.bf16.vlgmr.msrb.gmra.mxu1 %v4196_v59  ;;  %v1148_v19 = vpop.f32.mrf.mxu2  ;;  %v1161_v59 = vpop.f32.mrf.mxu3 }
 0x126   :  { %1488 = vmatpush.bf16.msra.mxu1 %v2838_v7  ;;  %1501 = vmatpush.bf16.msra.mxu2 %v2840_v8  ;;  %v1459_v19 = vunpack.c.h.b16 %v2640_v35  ;;  %v4387_v59 = vpack.c.b16 %v1458_v39, %v1458_v39  ;;  %v5212_v35 = vld [vmem:[#allocation15_spill] sm:$0xff]  ;;  %v5213_v39 = vld [vmem:[#allocation16_spill] sm:$0xff] }
 0x127   :  { %1514 = vmatpush.bf16.msra.mxu3 %v2852_v12 }
 0x128   :  { %1476 = vmatpush.bf16.msra.mxu0 %v2865_v16  ;;  %2639 = vmatmul.msk.bf16.vlgmr.msrb.gmra.mxu3 %vm899_vm0, %v4229_v2  ;;  %v2641_v2 = vld [vmem:[%s4776_s0 + $0x30] sm:$0xff] }
 0x129   :  { %v1460_v53 = vunpack.c.l.b16 %v2641_v2  ;;  %v1461_v24 = vunpack.c.h.b16 %v2641_v2 }
 0x12a   :  { %1489 = vmatpush.bf16.msra.mxu1 %v2867_v17  ;;  %1502 = vmatpush.bf16.msra.mxu2 %v2879_v21 }
 0x12b   :  { %1515 = vmatpush.bf16.msra.mxu3 %v2890_v25 }
 0x12c   :  { %1477 = vmatpush.bf16.msra.mxu0 %v2902_v29 }
 0x12e   :  { %1490 = vmatpush.bf16.msra.mxu1 %v2915_v33  ;;  %1503 = vmatpush.bf16.msra.mxu2 %v2917_v34 }
 0x12f   :  { %1516 = vmatpush.bf16.msra.mxu3 %v2929_v38 }
 0x130   :  { %1478 = vmatpush.bf16.msra.mxu0 %v2947_v44  ;;  %v1196_v52 = vpop.f32.mrf.mxu0 }
 0x132   :  { %1491 = vmatpush.bf16.msra.mxu1 %v2951_v45  ;;  %1504 = vmatpush.bf16.msra.mxu2 %v2953_v46  ;;  %v1209_v11 = vpop.f32.mrf.mxu1 }
 0x133   :  { %1517 = vmatpush.bf16.msra.mxu3 %v2965_v50  ;;  %v1210_v18 = vadd.f32 %v1209_v11, %v1196_v52  ;;  %v4397_v52 = vpack.c.b16 %v1459_v19, %v1459_v19  ;;  %v5216_v19 = vld [vmem:[#allocation19_spill] sm:$0xff] }
 0x134   :  { %1479 = vmatpush.bf16.msra.mxu0 %v2983_v56 }
 0x136   :  { %1492 = vmatpush.bf16.msra.mxu1 %v2987_v57  ;;  %1505 = vmatpush.bf16.msra.mxu2 %v2989_v58 }
 0x137   :  { %1518 = vmatpush.bf16.msra.mxu3 %v3001_v62 }
 0x138   :  { %1480 = vmatpush.bf16.msra.mxu0 %v3019_v5  ;;  %v1222_v2 = vpop.f32.mrf.mxu2  ;;  %v1198_v11 = vpop.f32.mrf.mxu0  ;;  %v5248_v5 = vld [vmem:[#allocation49_spill] sm:$0xff] }
 0x139   :  { %v5218_v11 = vld [vmem:[#allocation21_spill] sm:$0xff] }
 0x13a   :  { %1493 = vmatpush.bf16.msra.mxu1 %v3023_v6  ;;  %1506 = vmatpush.bf16.msra.mxu2 %v3025_v9  ;;  %v5209_v9 = vld [vmem:[#allocation12_spill] sm:$0xff]  ;;  %v5211_v6 = vld [vmem:[#allocation14_spill] sm:$0xff] }
 0x13b   :  { %1519 = vmatpush.bf16.msra.mxu3 %v3037_v14  ;;  %v5208_v14 = vld [vmem:[#allocation11_spill] sm:$0xff] }
 0x13c   :  { %1481 = vmatpush.bf16.msra.mxu0 %v3055_v23  ;;  %v4391_v23 = vpack.c.b16 %v1460_v53, %v1460_v53 }
 0x13e   :  { %1494 = vmatpush.bf16.msra.mxu1 %v3068_v28  ;;  %1507 = vmatpush.bf16.msra.mxu2 %v3070_v30  ;;  %v4393_v28 = vpack.c.b16 %v1461_v24, %v1461_v24  ;;  %v5210_v30 = vld [vmem:[#allocation13_spill] sm:$0xff]  ;;  %v1211_v24 = vpop.f32.mrf.mxu1 }
 0x13f   :  { %1520 = vmatpush.bf16.msra.mxu3 %v3082_v36  ;;  %v1235_v36 = vpop.f32.mrf.mxu3  ;;  %v5222_v24 = vld [vmem:[#allocation25_spill] sm:$0xff] }
 0x140   :  { %1482 = vmatpush.bf16.msra.mxu0 %v3103_v47  ;;  %v5214_v47 = vld [vmem:[#allocation17_spill] sm:$0xff] }
 0x142   :  { %1495 = vmatpush.bf16.msra.mxu1 %v5208_v14  ;;  %1508 = vmatpush.bf16.msra.mxu2 %v5209_v9  ;;  %v1223_v14 = vadd.f32 %v1222_v2, %v1210_v18  ;;  %v5219_v18 = vld [vmem:[#allocation22_spill] sm:$0xff]  ;;  %v2642_v2 = vld [vmem:[%s4776_s0 + $0x38] sm:$0xf] }
 0x143   :  { %1521 = vmatpush.bf16.msra.mxu3 %v5210_v30  ;;  %1483 = vmatmul.bf16.vlgmr.msra.gmra.mxu0 %v4387_v59  ;;  %v5224_v30 = vld [vmem:[#allocation26_spill] sm:$0xff] }
 0x144   :  { %1531 = vmatpush.bf16.msrb.mxu0 %v5211_v6  ;;  %v1236_v53 = vadd.f32 %v1235_v36, %v1223_v14  ;;  %v5215_v6 = vld [vmem:[#allocation18_spill] sm:$0xff]  ;;  %v5220_v14 = vld [vmem:[#allocation23_spill] sm:$0xff]  ;;  %v5221_v36 = vld [vmem:[#allocation24_spill] sm:$0xff] }
 0x145   :  { %1509 = vmatmul.bf16.vlgmr.msra.gmra.mxu2 %v4391_v23  ;;  %1496 = vmatmul.bf16.vlgmr.msra.gmra.mxu1 %v4397_v52 }
 0x146   :  { %1540 = vmatpush.bf16.msrb.mxu1 %v5212_v35  ;;  %1553 = vmatpush.bf16.msrb.mxu2 %v5213_v39  ;;  %v5217_v35 = vld [vmem:[#allocation20_spill] sm:$0xff] }
 0x147   :  { %1566 = vmatpush.bf16.msrb.mxu3 %v5214_v47  ;;  %v1224_v47 = vpop.f32.mrf.mxu2  ;;  %v1237_v39 = vpop.f32.mrf.mxu3 }
 0x148   :  { %1522 = vmatmul.bf16.vlgmr.msra.gmra.mxu3 %v4393_v28  ;;  %1532 = vmatpush.bf16.msrb.mxu0 %v5215_v6  ;;  %v1248_v6 = vpop.f32.mrf.mxu0  ;;  %v5228_v39 = vld [vmem:[#allocation29_spill] sm:$0xff]  ;;  %v5235_v47 = vld [vmem:[#allocation36_spill] sm:$0xff] }
 0x14a   :  { %1541 = vmatpush.bf16.msrb.mxu1 %v5216_v19  ;;  %1554 = vmatpush.bf16.msrb.mxu2 %v5217_v35  ;;  %v4417_v19 = vadd.f32 %v1248_v6, %v1236_v53  ;;  %v1462_v35 = vunpack.c.l.b16 %v2642_v2  ;;  %v5231_v6 = vld [vmem:[#allocation32_spill] sm:$0xff]  ;;  %v5232_v53 = vld [vmem:[#allocation33_spill] sm:$0xff]  ;;  %v5233_v2 = vld [vmem:[#allocation34_spill] sm:$0xff] }
 0x14b   :  { %1567 = vmatpush.bf16.msrb.mxu3 %v5218_v11  ;;  %v5225_v11 = vld [vmem:[#allocation27_spill] sm:$0xff] }
 0x14c   :  { %1533 = vmatpush.bf16.msrb.mxu0 %v5219_v18  ;;  %5223 = vst [vmem:[#allocation86_spill] sm:$0xff] %v4417_v19  ;;  %v5226_v18 = vld [vmem:[#allocation28_spill] sm:$0xff] }
 0x14d   :  { %v5243_v19 = vld [vmem:[#allocation44_spill] sm:$0xff] }
 0x14e   :  { %1542 = vmatpush.bf16.msrb.mxu1 %v5220_v14  ;;  %1555 = vmatpush.bf16.msrb.mxu2 %v5221_v36  ;;  %v5229_v14 = vld [vmem:[#allocation30_spill] sm:$0xff]  ;;  %v4426_v36 = vpack.c.b16 %v1462_v35, %v1462_v35 }
 0x14f   :  { %1568 = vmatpush.bf16.msrb.mxu3 %v5222_v24  ;;  %v5230_v24 = vld [vmem:[#allocation31_spill] sm:$0xff]  ;;  %v5237_v35 = vld [vmem:[#allocation38_spill] sm:$0xff] }
 0x150   :  { %1534 = vmatpush.bf16.msrb.mxu0 %v5224_v30  ;;  %v5247_v30 = vld [vmem:[#allocation48_spill] sm:$0xff] }
 0x152   :  { %1543 = vmatpush.bf16.msrb.mxu1 %v5225_v11  ;;  %1556 = vmatpush.bf16.msrb.mxu2 %v5226_v18  ;;  %v1250_v11 = vpop.f32.mrf.mxu0  ;;  %v5234_v18 = vld [vmem:[#allocation35_spill] sm:$0xff] }
 0x153   :  { %1569 = vmatpush.bf16.msrb.mxu3 %v5228_v39  ;;  %2643 = vmatmul.msk.bf16.vlgmr.msrb.gmra.mxu0 %vm899_vm0, %v4426_v36  ;;  %v5236_v39 = vld [vmem:[#allocation37_spill] sm:$0xff]  ;;  %v5242_v11 = vld [vmem:[#allocation43_spill] sm:$0xff] }
 0x154   :  { %1579 = vmatpush.bf16.msra.mxu0 %v5229_v14  ;;  %v1261_v14 = vpop.f32.mrf.mxu1 }
 0x156   :  { %1544 = vmatpush.bf16.msrb.mxu1 %v5230_v24  ;;  %1557 = vmatpush.bf16.msrb.mxu2 %v5231_v6  ;;  %v5238_v24 = vld [vmem:[#allocation39_spill] sm:$0xff]  ;;  %v5239_v6 = vld [vmem:[#allocation40_spill] sm:$0xff] }
 0x157   :  { %1570 = vmatpush.bf16.msrb.mxu3 %v5232_v53  ;;  %v5240_v53 = vld [vmem:[#allocation41_spill] sm:$0xff] }
 0x158   :  { %1580 = vmatpush.bf16.msra.mxu0 %v5233_v2  ;;  %v5241_v2 = vld [vmem:[#allocation42_spill] sm:$0xff] }
 0x15a   :  { %1545 = vmatpush.bf16.msrb.mxu1 %v5234_v18  ;;  %1558 = vmatpush.bf16.msrb.mxu2 %v5235_v47  ;;  %v5244_v18 = vld [vmem:[#allocation45_spill] sm:$0xff]  ;;  %v5245_v47 = vld [vmem:[#allocation46_spill] sm:$0xff] }
 0x15b   :  { %1571 = vmatpush.bf16.msrb.mxu3 %v5236_v39  ;;  %v1274_v39 = vpop.f32.mrf.mxu2  ;;  %v1287_v9 = vpop.f32.mrf.mxu3 }
 0x15c   :  { %1581 = vmatpush.bf16.msra.mxu0 %v5237_v35  ;;  %v5246_v35 = vld [vmem:[#allocation47_spill] sm:$0xff] }
 0x15e   :  { %1546 = vmatpush.bf16.msrb.mxu1 %v5238_v24  ;;  %1559 = vmatpush.bf16.msrb.mxu2 %v5239_v6  ;;  %v1263_v24 = vpop.f32.mrf.mxu1  ;;  %v1275_v6 = vadd.f32 %v1274_v39, %v1261_v14 }
 0x15f   :  { %1572 = vmatpush.bf16.msrb.mxu3 %v5240_v53 }
 0x160   :  { %1582 = vmatpush.bf16.msra.mxu0 %v5241_v2 }
 0x162   :  { %1547 = vmatpush.bf16.msrb.mxu1 %v5242_v11  ;;  %1560 = vmatpush.bf16.msrb.mxu2 %v5243_v19  ;;  %v1288_v19 = vadd.f32 %v1287_v9, %v1275_v6  ;;  %v5253_v11 = vld [vmem:[#allocation57_spill] sm:$0xff]  ;;  %v5254_v6 = vld [vmem:[#allocation58_spill] sm:$0xff] }
 0x163   :  { %1573 = vmatpush.bf16.msrb.mxu3 %v5244_v18  ;;  %v5250_v18 = vld [vmem:[#allocation52_spill] sm:$0xff]  ;;  %v1276_v14 = vpop.f32.mrf.mxu2  ;;  %v1289_v39 = vpop.f32.mrf.mxu3 }
 0x164   :  { %1583 = vmatpush.bf16.msra.mxu0 %v5245_v47  ;;  %v5249_v47 = vld [vmem:[#allocation51_spill] sm:$0xff]  ;;  %v5267_v39 = vld [vmem:[#allocation69_spill] sm:$0xff] }
 0x165   :  { %1548 = vmatmul.bf16.vlgmr.msrb.gmra.mxu1 %v4387_v59  ;;  %1561 = vmatmul.bf16.vlgmr.msrb.gmra.mxu2 %v4397_v52  ;;  %v5275_v14 = vld [vmem:[#allocation77_spill] sm:$0xff] }
 0x166   :  { %1596 = vmatpush.bf16.msra.mxu1 %v5246_v35  ;;  %1605 = vmatpush.bf16.msra.mxu2 %v5247_v30  ;;  %v5251_v35 = vld [vmem:[#allocation53_spill] sm:$0xff]  ;;  %v1300_v30 = vpop.f32.mrf.mxu0  ;;  %v1313_v9 = vpop.f32.mrf.mxu1 }
 0x167   :  { %1618 = vmatpush.bf16.msra.mxu3 %v5248_v5  ;;  %v1301_v24 = vadd.f32 %v1300_v30, %v1288_v19  ;;  %v5252_v5 = vld [vmem:[#allocation56_spill] sm:$0xff]  ;;  %v5258_v30 = vld [vmem:[#allocation61_spill] sm:$0xff]  ;;  %v5259_v19 = vld [vmem:[#allocation62_spill] sm:$0xff] }
 0x168   :  { %1574 = vmatmul.bf16.vlgmr.msrb.gmra.mxu3 %v4391_v23  ;;  %1584 = vmatpush.bf16.msra.mxu0 %v5145_v37 }
 0x16a   :  { %1597 = vmatpush.bf16.msra.mxu1 %v5249_v47  ;;  %1606 = vmatpush.bf16.msra.mxu2 %v5250_v18  ;;  %v4461_v47 = vadd.f32 %v1313_v9, %v1301_v24  ;;  %v5256_v18 = vld [vmem:[#allocation59_spill] sm:$0xff]  ;;  %v5263_v24 = vld [vmem:[#allocation65_spill] sm:$0xff]  ;;  %v5264_v9 = vld [vmem:[#allocation66_spill] sm:$0xff] }
 0x16b   :  { %1619 = vmatpush.bf16.msra.mxu3 %v5251_v35  ;;  %v5257_v35 = vld [vmem:[#allocation60_spill] sm:$0xff] }
 0x16c   :  { %1585 = vmatpush.bf16.msra.mxu0 %v5149_v60  ;;  %5255 = vst [vmem:[#allocation87_spill] sm:$0xff] %v4461_v47  ;;  %v5270_v47 = vld [vmem:[#allocation72_spill] sm:$0xff] }
 0x16e   :  { %1598 = vmatpush.bf16.msra.mxu1 %v5150_v32  ;;  %1607 = vmatpush.bf16.msra.mxu2 %v5252_v5  ;;  %v1302_v32 = vpop.f32.mrf.mxu0  ;;  %v5261_v5 = vld [vmem:[#allocation63_spill] sm:$0xff] }
 0x16f   :  { %1620 = vmatpush.bf16.msra.mxu3 %v5253_v11  ;;  %v5262_v11 = vld [vmem:[#allocation64_spill] sm:$0xff]  ;;  %v5268_v32 = vld [vmem:[#allocation70_spill] sm:$0xff] }
 0x170   :  { %1586 = vmatpush.bf16.msra.mxu0 %v5254_v6 }
 0x172   :  { %1599 = vmatpush.bf16.msra.mxu1 %v5256_v18  ;;  %1608 = vmatpush.bf16.msra.mxu2 %v5257_v35  ;;  %v5265_v18 = vld [vmem:[#allocation67_spill] sm:$0xff]  ;;  %v1315_v35 = vpop.f32.mrf.mxu1 }
 0x173   :  { %1621 = vmatpush.bf16.msra.mxu3 %v5258_v30  ;;  %1587 = vmatmul.bf16.vlgmr.msra.gmra.mxu0 %v4393_v28  ;;  %v5274_v35 = vld [vmem:[#allocation76_spill] sm:$0xff]  ;;  %v5277_v30 = vld [vmem:[#allocation79_spill] sm:$0xff] }
 0x174   :  { %1631 = vmatpush.bf16.msrb.mxu0 %v5259_v19  ;;  %v5266_v19 = vld [vmem:[#allocation68_spill] sm:$0xff] }
 0x175   :  { %2644 = vmatmul.msk.bf16.vlgmr.msra.gmra.mxu1 %vm899_vm0, %v4426_v36 }
 0x176   :  { %1644 = vmatpush.bf16.msrb.mxu1 %v5261_v5  ;;  %1609 = vmatpush.bf16.msra.mxu2 %v5262_v11  ;;  %v5269_v5 = vld [vmem:[#allocation71_spill] sm:$0xff]  ;;  %v5271_v11 = vld [vmem:[#allocation73_spill] sm:$0xff] }
 0x177   :  { %1622 = vmatpush.bf16.msra.mxu3 %v5263_v24  ;;  %v5272_v24 = vld [vmem:[#allocation74_spill] sm:$0xff] }
 0x178   :  { %1632 = vmatpush.bf16.msrb.mxu0 %v5264_v9  ;;  %v5273_v9 = vld [vmem:[#allocation75_spill] sm:$0xff] }
 0x17a   :  { %1645 = vmatpush.bf16.msrb.mxu1 %v5265_v18  ;;  %1610 = vmatpush.bf16.msra.mxu2 %v5266_v19  ;;  %v1326_v18 = vpop.f32.mrf.mxu2  ;;  %v5276_v19 = vld [vmem:[#allocation78_spill] sm:$0xff] }
 0x17b   :  { %1623 = vmatpush.bf16.msra.mxu3 %v5267_v39  ;;  %v1339_v39 = vpop.f32.mrf.mxu3 }
 0x17c   :  { %1633 = vmatpush.bf16.msrb.mxu0 %v5268_v32  ;;  %v5278_v32 = vld [vmem:[#allocation80_spill] sm:$0xff] }
 0x17e   :  { %1646 = vmatpush.bf16.msrb.mxu1 %v5269_v5  ;;  %1611 = vmatpush.bf16.msra.mxu2 %v5270_v47  ;;  %v1340_v5 = vadd.f32 %v1339_v39, %v1326_v18  ;;  %v5279_v47 = vld [vmem:[#allocation81_spill] sm:$0xff] }
 0x17f   :  { %1624 = vmatpush.bf16.msra.mxu3 %v5271_v11 }
 0x180   :  { %1634 = vmatpush.bf16.msrb.mxu0 %v5272_v24  ;;  %v5282_v24 = vld [vmem:[#allocation84_spill] sm:$0xff]  ;;  %v1352_v11 = vpop.f32.mrf.mxu0 }
 0x182   :  { %1647 = vmatpush.bf16.msrb.mxu1 %v5273_v9  ;;  %1612 = vmatpush.bf16.msra.mxu2 %v5274_v35  ;;  %v5280_v9 = vld [vmem:[#allocation82_spill] sm:$0xff]  ;;  %v5281_v35 = vld [vmem:[#allocation83_spill] sm:$0xff]  ;;  %v1365_v18 = vpop.f32.mrf.mxu1 }
 0x183   :  { %1625 = vmatpush.bf16.msra.mxu3 %v5275_v14  ;;  %v5283_v14 = vld [vmem:[#allocation85_spill] sm:$0xff]  ;;  %v1341_v39 = vpop.f32.mrf.mxu3 }
 0x184   :  { %1635 = vmatpush.bf16.msrb.mxu0 %v5276_v19  ;;  %v1328_v19 = vpop.f32.mrf.mxu2 }
 0x185   :  { %1613 = vmatmul.bf16.vlgmr.msra.gmra.mxu2 %v4387_v59  ;;  %v5287_v19 = vld [vmem:[#allocation91_spill] sm:$0xff] }
 0x186   :  { %1648 = vmatpush.bf16.msrb.mxu1 %v5277_v30  ;;  %1661 = vmatpush.bf16.msrb.mxu2 %v5278_v32  ;;  %v1353_v32 = vadd.f32 %v1352_v11, %v1340_v5  ;;  %v5289_v5 = vld [vmem:[#allocation93_spill] sm:$0xff]  ;;  %v5290_v11 = vld [vmem:[#allocation94_spill] sm:$0xff] }
 0x187   :  { %1670 = vmatpush.bf16.msrb.mxu3 %v5279_v47  ;;  %v5284_v47 = vld [vmem:[#allocation88_spill] sm:$0xff] }
 0x188   :  { %1626 = vmatmul.bf16.vlgmr.msra.gmra.mxu3 %v4397_v52  ;;  %1636 = vmatpush.bf16.msrb.mxu0 %v5280_v9  ;;  %v1366_v9 = vadd.f32 %v1365_v18, %v1353_v32  ;;  %v1354_v39 = vpop.f32.mrf.mxu0 }
 0x189   :  { %v5293_v39 = vld [vmem:[#allocation54_spill] sm:$0xff] }
 0x18a   :  { %1649 = vmatpush.bf16.msrb.mxu1 %v5281_v35  ;;  %1662 = vmatpush.bf16.msrb.mxu2 %v5282_v24  ;;  %v5285_v35 = vld [vmem:[#allocation89_spill] sm:$0xff]  ;;  %v5286_v24 = vld [vmem:[#allocation90_spill] sm:$0xff]  ;;  %v1367_v32 = vpop.f32.mrf.mxu1 }
 0x18b   :  { %1671 = vmatpush.bf16.msrb.mxu3 %v5283_v14  ;;  %v5288_v14 = vld [vmem:[#allocation92_spill] sm:$0xff] }
 0x18c   :  { %1637 = vmatpush.bf16.msrb.mxu0 %v5182_v10  ;;  %v1378_v18 = vpop.f32.mrf.mxu2  ;;  %v5295_v32 = vld [vmem:[#allocation100_spill] sm:$0xff] }
 0x18e   :  { %1650 = vmatpush.bf16.msrb.mxu1 %v5183_v61  ;;  %1663 = vmatpush.bf16.msrb.mxu2 %v3820_v51 }
 0x18f   :  { %1672 = vmatpush.bf16.msrb.mxu3 %v3832_v0 }
 0x190   :  { %1638 = vmatpush.bf16.msrb.mxu0 %v5284_v47  ;;  %v5291_v47 = vld [vmem:[#allocation95_spill] sm:$0xff] }
 0x192   :  { %1651 = vmatpush.bf16.msrb.mxu1 %v5285_v35  ;;  %1664 = vmatpush.bf16.msrb.mxu2 %v5286_v24  ;;  %v4512_v24 = vadd.f32 %v1378_v18, %v1366_v9  ;;  %v5297_v18 = vld [vmem:[#allocation104_spill] sm:$0xff] }
 0x193   :  { %1673 = vmatpush.bf16.msrb.mxu3 %v5287_v19  ;;  %1639 = vmatmul.bf16.vlgmr.msrb.gmra.mxu0 %v4391_v23  ;;  %v5296_v19 = vld [vmem:[#allocation101_spill] sm:$0xff] }
 0x194   :  { %1683 = vmatpush.bf16.msra.mxu0 %v5288_v14  ;;  %v5292_v14 = vld [vmem:[#allocation98_spill] sm:$0xff]  ;;  %v1380_v9 = vpop.f32.mrf.mxu2 }
 0x195   :  { %1652 = vmatmul.bf16.vlgmr.msrb.gmra.mxu1 %v4393_v28  ;;  %2645 = vmatmul.msk.bf16.vlgmr.msrb.gmra.mxu2 %vm899_vm0, %v4426_v36  ;;  %v5303_v9 = vld [vmem:[#allocation113_spill] sm:$0xff] }
 0x196   :  { %1696 = vmatpush.bf16.msra.mxu1 %v5289_v5  ;;  %1709 = vmatpush.bf16.msra.mxu2 %v5290_v11  ;;  %v5294_v5 = vld [vmem:[#allocation99_spill] sm:$0xff] }
 0x197   :  { %1674 = vmatpush.bf16.msrb.mxu3 %v5291_v47  ;;  %v5300_v11 = vld [vmem:[#allocation107_spill] sm:$0xff] }
 0x198   :  { %1684 = vmatpush.bf16.msra.mxu0 %v5191_v26 }
 0x19a   :  { %1697 = vmatpush.bf16.msra.mxu1 %v5193_v20  ;;  %1710 = vmatpush.bf16.msra.mxu2 %v5292_v14  ;;  %v5298_v14 = vld [vmem:[#allocation105_spill] sm:$0xff]  ;;  %v5299_v20 = vld [vmem:[#allocation106_spill] sm:$0xff] }
 0x19b   :  { %1675 = vmatpush.bf16.msrb.mxu3 %v5294_v5  ;;  %v1391_v5 = vpop.f32.mrf.mxu3 }
 0x19c   :  { %1685 = vmatpush.bf16.msra.mxu0 %v5295_v32  ;;  %v5301_v32 = vld [vmem:[#allocation109_spill] sm:$0xff] }
 0x19e   :  { %1698 = vmatpush.bf16.msra.mxu1 %v5296_v19  ;;  %1711 = vmatpush.bf16.msra.mxu2 %v5198_v54  ;;  %v5302_v19 = vld [vmem:[#allocation110_spill] sm:$0xff] }
 0x19f   :  { %1676 = vmatpush.bf16.msrb.mxu3 %v3984_v48 }
 0x1a0   :  { %1686 = vmatpush.bf16.msra.mxu0 %v5199_v27 }
 0x1a2   :  { %1699 = vmatpush.bf16.msra.mxu1 %v5297_v18  ;;  %1712 = vmatpush.bf16.msra.mxu2 %v5298_v14 }
 0x1a3   :  { %1677 = vmatpush.bf16.msrb.mxu3 %v5299_v20  ;;  %v1404_v20 = vpop.f32.mrf.mxu0 }
 0x1a4   :  { %1687 = vmatpush.bf16.msra.mxu0 %v5300_v11  ;;  %v1393_v11 = vpop.f32.mrf.mxu3 }
 0x1a6   :  { %1700 = vmatpush.bf16.msra.mxu1 %v5202_v1  ;;  %1713 = vmatpush.bf16.msra.mxu2 %v5301_v32  ;;  %v1405_v32 = vadd.f32 %v1404_v20, %v1391_v5 }
 0x1a7   :  { %1726 = vmatpush.bf16.msra.mxu3 %v5302_v19  ;;  %v1417_v19 = vpop.f32.mrf.mxu1 }
 0x1a8   :  { %1678 = vmatmul.bf16.vlgmr.msrb.gmra.mxu3 %v4387_v59  ;;  %1688 = vmatpush.bf16.msra.mxu0 %v4064_v13  ;;  %v1418_v59 = vadd.f32 %v1417_v19, %v1405_v32  ;;  %v5314_v32 = vld [vmem:[#allocation12_spill] sm:$0xff] }
 0x1aa   :  { %1701 = vmatpush.bf16.msra.mxu1 %v5205_v41  ;;  %1714 = vmatpush.bf16.msra.mxu2 %v5206_v43 }
 0x1ab   :  { %1727 = vmatpush.bf16.msra.mxu3 %v5303_v9  ;;  %v1430_v9 = vpop.f32.mrf.mxu2  ;;  %v1406_v20 = vpop.f32.mrf.mxu0 }
 0x1ac   :  { %1689 = vmatpush.bf16.msra.mxu0 %v4101_v22  ;;  %v1431_v11 = vadd.f32 %v1430_v9, %v1418_v59  ;;  %v1443_v5 = vpop.f32.mrf.mxu3  ;;  %v5316_v20 = vld [vmem:[#allocation14_spill] sm:$0xff] }
 0x1ae   :  { %1702 = vmatpush.bf16.msra.mxu1 %v4105_v49  ;;  %1715 = vmatpush.bf16.msra.mxu2 %v4107_v63 }
 0x1af   :  { %1728 = vmatpush.bf16.msra.mxu3 %v4119_v15  ;;  %v1419_v19 = vpop.f32.mrf.mxu1 }
 0x1b0   :  { %1690 = vmatpush.bf16.msra.mxu0 %v4137_v40 }
 0x1b2   :  { %1703 = vmatpush.bf16.msra.mxu1 %v4141_v42  ;;  %1716 = vmatpush.bf16.msra.mxu2 %v4143_v4 }
 0x1b3   :  { %1729 = vmatpush.bf16.msra.mxu3 %v4146_v55  ;;  %1691 = vmatmul.bf16.vlgmr.msra.gmra.mxu0 %v4397_v52 }
 0x1b4   :  { %1763 = vmatpush.bf16.msrb.mxu0 %v2827_v3  ;;  %v4556_v3 = vadd.f32 %v1443_v5, %v1431_v11  ;;  %v5315_v11 = vld [vmem:[#allocation13_spill] sm:$0xff] }
 0x1b5   :  { %1717 = vmatmul.bf16.vlgmr.msra.gmra.mxu2 %v4393_v28  ;;  %1704 = vmatmul.bf16.vlgmr.msra.gmra.mxu1 %v4391_v23  ;;  %v5312_v28 = vld [vmem:[#allocation10_spill] sm:$0xff] }
 0x1b6   :  { %1776 = vmatpush.bf16.msrb.mxu1 %v2838_v7  ;;  %1789 = vmatpush.bf16.msrb.mxu2 %v2840_v8  ;;  %v1450_v7 = vmax.f32 %v4355_v31, %v4556_v3  ;;  %v1432_v8 = vpop.f32.mrf.mxu2 }
 0x1b7   :  { %1802 = vmatpush.bf16.msrb.mxu3 %v2852_v12  ;;  %v1445_v12 = vpop.f32.mrf.mxu3 }
 0x1b8   :  { %1764 = vmatpush.bf16.msrb.mxu0 %v2865_v16  ;;  %2646 = vmatmul.msk.bf16.vlgmr.msra.gmra.mxu3 %vm899_vm0, %v4426_v36  ;;  %v5304_v16 = vld [vmem:[#allocation2_spill] sm:$0xff]  ;;  %v5313_v36 = vld [vmem:[#allocation11_spill] sm:$0xff] }
 0x1b9   :  { %v5317_v12 = vld [vmem:[#allocation15_spill] sm:$0xff] }
 0x1ba   :  { %1777 = vmatpush.bf16.msrb.mxu1 %v2867_v17  ;;  %1790 = vmatpush.bf16.msrb.mxu2 %v2879_v21  ;;  %v5305_v17 = vld [vmem:[#allocation3_spill] sm:$0xff]  ;;  %v5306_v21 = vld [vmem:[#allocation4_spill] sm:$0xff] }
 0x1bb   :  { %1803 = vmatpush.bf16.msrb.mxu3 %v2890_v25  ;;  %v2647_v25 = vld [vmem:[%s4776_s0 + $0x3c] sm:$0xff] }
 0x1bc   :  { %1765 = vmatpush.bf16.msrb.mxu0 %v2902_v29  ;;  %v5307_v29 = vld [vmem:[#allocation5_spill] sm:$0xff]  ;;  %v1747_v23 = vunpack.c.h.b16 %v2647_v25 }
 0x1be   :  { %1778 = vmatpush.bf16.msrb.mxu1 %v2915_v33  ;;  %1791 = vmatpush.bf16.msrb.mxu2 %v2917_v34  ;;  %v2648_v33 = vld [vmem:[%s4776_s0 + $0x44] sm:$0xff]  ;;  %v4600_v8 = vpack.c.b16 %v1747_v23, %v1747_v23  ;;  %v5327_v23 = vld [vmem:[#allocation25_spill] sm:$0xff] }
 0x1bf   :  { %1804 = vmatpush.bf16.msrb.mxu3 %v2929_v38  ;;  %v5308_v38 = vld [vmem:[#allocation6_spill] sm:$0xff] }
 0x1c0   :  { %1766 = vmatpush.bf16.msrb.mxu0 %v2947_v44  ;;  %v1484_v34 = vpop.f32.mrf.mxu0  ;;  %v1746_v44 = vunpack.c.l.b16 %v2647_v25  ;;  %v5319_v25 = vld [vmem:[#allocation17_spill] sm:$0xff] }
 0x1c2   :  { %1779 = vmatpush.bf16.msrb.mxu1 %v2951_v45  ;;  %1792 = vmatpush.bf16.msrb.mxu2 %v2953_v46  ;;  %v5309_v45 = vld [vmem:[#allocation7_spill] sm:$0xff]  ;;  %v5310_v46 = vld [vmem:[#allocation8_spill] sm:$0xff]  ;;  %v4590_v52 = vpack.c.b16 %v1746_v44, %v1746_v44 }
 0x1c3   :  { %1805 = vmatpush.bf16.msrb.mxu3 %v2965_v50  ;;  %v1497_v50 = vpop.f32.mrf.mxu1  ;;  %v5322_v44 = vld [vmem:[#allocation20_spill] sm:$0xff] }
 0x1c4   :  { %1767 = vmatpush.bf16.msrb.mxu0 %v2983_v56  ;;  %v1748_v56 = vunpack.c.l.b16 %v2648_v33 }
 0x1c6   :  { %1780 = vmatpush.bf16.msrb.mxu1 %v2987_v57  ;;  %1793 = vmatpush.bf16.msrb.mxu2 %v2989_v58  ;;  %v1749_v57 = vunpack.c.h.b16 %v2648_v33  ;;  %v5311_v58 = vld [vmem:[#allocation9_spill] sm:$0xff]  ;;  %v4594_v9 = vpack.c.b16 %v1748_v56, %v1748_v56 }
 0x1c7   :  { %1806 = vmatpush.bf16.msrb.mxu3 %v3001_v62  ;;  %v1498_v62 = vadd.f32 %v1497_v50, %v1484_v34  ;;  %v5320_v34 = vld [vmem:[#allocation18_spill] sm:$0xff]  ;;  %v2649_v50 = vld [vmem:[%s4776_s0 + $0x4c] sm:$0xf] }
 0x1c8   :  { %1768 = vmatpush.bf16.msrb.mxu0 %v5304_v16  ;;  %v4596_v59 = vpack.c.b16 %v1749_v57, %v1749_v57  ;;  %v1510_v19 = vpop.f32.mrf.mxu2  ;;  %v5318_v16 = vld [vmem:[#allocation16_spill] sm:$0xff] }
 0x1ca   :  { %1781 = vmatpush.bf16.msrb.mxu1 %v5305_v17  ;;  %1794 = vmatpush.bf16.msrb.mxu2 %v5306_v21  ;;  %v1486_v17 = vpop.f32.mrf.mxu0  ;;  %v1511_v21 = vadd.f32 %v1510_v19, %v1498_v62  ;;  %v5326_v62 = vld [vmem:[#allocation24_spill] sm:$0xff] }
 0x1cb   :  { %1807 = vmatpush.bf16.msrb.mxu3 %v5307_v29  ;;  %v1523_v5 = vpop.f32.mrf.mxu3  ;;  %v1499_v33 = vpop.f32.mrf.mxu1  ;;  %v5330_v19 = vld [vmem:[#allocation28_spill] sm:$0xff] }
 0x1cc   :  { %1769 = vmatpush.bf16.msrb.mxu0 %v5308_v38  ;;  %v1524_v29 = vadd.f32 %v1523_v5, %v1511_v21  ;;  %v5321_v38 = vld [vmem:[#allocation19_spill] sm:$0xff]  ;;  %v5331_v5 = vld [vmem:[#allocation114_spill] sm:$0xff]  ;;  %v5334_v21 = vld [vmem:[#allocation29_spill] sm:$0xff] }
 0x1ce   :  { %1782 = vmatpush.bf16.msrb.mxu1 %v5309_v45  ;;  %1795 = vmatpush.bf16.msrb.mxu2 %v5310_v46  ;;  %v5323_v45 = vld [vmem:[#allocation21_spill] sm:$0xff]  ;;  %v5324_v46 = vld [vmem:[#allocation22_spill] sm:$0xff] }
 0x1cf   :  { %1808 = vmatpush.bf16.msrb.mxu3 %v5311_v58  ;;  %v5325_v58 = vld [vmem:[#allocation23_spill] sm:$0xff] }
 0x1d0   :  { %1770 = vmatpush.bf16.msrb.mxu0 %v5312_v28  ;;  %v1512_v56 = vpop.f32.mrf.mxu2 }
 0x1d1   :  { %v5342_v56 = vld [vmem:[#allocation37_spill] sm:$0xff] }
 0x1d2   :  { %1783 = vmatpush.bf16.msrb.mxu1 %v5313_v36  ;;  %1796 = vmatpush.bf16.msrb.mxu2 %v5314_v32  ;;  %v1536_v28 = vpop.f32.mrf.mxu0  ;;  %v1750_v32 = vunpack.c.l.b16 %v2649_v50  ;;  %v5341_v50 = vld [vmem:[#allocation36_spill] sm:$0xff] }
 0x1d3   :  { %1809 = vmatpush.bf16.msrb.mxu3 %v5315_v11  ;;  %1771 = vmatmul.bf16.vlgmr.msrb.gmra.mxu0 %v4590_v52  ;;  %v1525_v57 = vpop.f32.mrf.mxu3  ;;  %v1537_v36 = vadd.f32 %v1536_v28, %v1524_v29  ;;  %v5328_v11 = vld [vmem:[#allocation26_spill] sm:$0xff]  ;;  %v5337_v29 = vld [vmem:[#allocation32_spill] sm:$0xff]  ;;  %v5346_v28 = vld [vmem:[#allocation43_spill] sm:$0xff] }
 0x1d4   :  { %1819 = vmatpush.bf16.msra.mxu0 %v5316_v20  ;;  %v5329_v20 = vld [vmem:[#allocation27_spill] sm:$0xff]  ;;  %v4630_v33 = vpack.c.b16 %v1750_v32, %v1750_v32  ;;  %v5343_v57 = vld [vmem:[#allocation38_spill] sm:$0xff]  ;;  %v5348_v32 = vld [vmem:[#allocation45_spill] sm:$0xff] }
 0x1d5   :  { %1797 = vmatmul.bf16.vlgmr.msrb.gmra.mxu2 %v4594_v9  ;;  %1784 = vmatmul.bf16.vlgmr.msrb.gmra.mxu1 %v4600_v8 }
 0x1d6   :  { %1828 = vmatpush.bf16.msra.mxu1 %v5317_v12  ;;  %1841 = vmatpush.bf16.msra.mxu2 %v5318_v16  ;;  %v5332_v12 = vld [vmem:[#allocation86_spill] sm:$0xff] }
 0x1d7   :  { %1854 = vmatpush.bf16.msra.mxu3 %v5319_v25  ;;  %v5333_v16 = vmax.f32 %v5331_v5, %v5332_v12  ;;  %v5335_v25 = vld [vmem:[#allocation30_spill] sm:$0xff]  ;;  %v5350_v5 = vld [vmem:[#allocation47_spill] sm:$0xff]  ;;  %v5351_v12 = vld [vmem:[#allocation48_spill] sm:$0xff] }
 0x1d8   :  { %1810 = vmatmul.bf16.vlgmr.msrb.gmra.mxu3 %v4596_v59  ;;  %1820 = vmatpush.bf16.msra.mxu0 %v5320_v34  ;;  %v5336_v34 = vld [vmem:[#allocation31_spill] sm:$0xff] }
 0x1d9   :  { %v4626_v17 = vmax.f32 %v5333_v16, %v1537_v36  ;;  %v5347_v36 = vld [vmem:[#allocation44_spill] sm:$0xff] }
 0x1da   :  { %1829 = vmatpush.bf16.msra.mxu1 %v5321_v38  ;;  %1842 = vmatpush.bf16.msra.mxu2 %v5322_v44  ;;  %v5338_v38 = vld [vmem:[#allocation33_spill] sm:$0xff]  ;;  %v5339_v44 = vld [vmem:[#allocation34_spill] sm:$0xff] }
 0x1db   :  { %1855 = vmatpush.bf16.msra.mxu3 %v5323_v45  ;;  %v1538_v45 = vpop.f32.mrf.mxu0 }
 0x1dc   :  { %1821 = vmatpush.bf16.msra.mxu0 %v5324_v46  ;;  %v5340_v46 = vld [vmem:[#allocation35_spill] sm:$0xff] }
 0x1de   :  { %1830 = vmatpush.bf16.msra.mxu1 %v5325_v58  ;;  %1843 = vmatpush.bf16.msra.mxu2 %v5326_v62  ;;  %v5344_v62 = vld [vmem:[#allocation39_spill] sm:$0xff] }
 0x1df   :  { %1856 = vmatpush.bf16.msra.mxu3 %v5327_v23  ;;  %v5345_v23 = vld [vmem:[#allocation40_spill] sm:$0xff] }
 0x1e0   :  { %1822 = vmatpush.bf16.msra.mxu0 %v5328_v11  ;;  %v5349_v11 = vld [vmem:[#allocation46_spill] sm:$0xff] }
 0x1e2   :  { %1831 = vmatpush.bf16.msra.mxu1 %v5329_v20  ;;  %1844 = vmatpush.bf16.msra.mxu2 %v5330_v19  ;;  %v1549_v58 = vpop.f32.mrf.mxu1 }
 0x1e3   :  { %1857 = vmatpush.bf16.msra.mxu3 %v5334_v21  ;;  %2650 = vmatmul.msk.bf16.vlgmr.msra.gmra.mxu0 %vm899_vm0, %v4630_v33 }
 0x1e4   :  { %1867 = vmatpush.bf16.msrb.mxu0 %v5335_v25  ;;  %v5352_v25 = vld [vmem:[#allocation49_spill] sm:$0xff] }
 0x1e6   :  { %1832 = vmatpush.bf16.msra.mxu1 %v5336_v34  ;;  %1845 = vmatpush.bf16.msra.mxu2 %v5337_v29  ;;  %v5354_v34 = vld [vmem:[#allocation52_spill] sm:$0xff]  ;;  %v5355_v29 = vld [vmem:[#allocation53_spill] sm:$0xff] }
 0x1e7   :  { %1858 = vmatpush.bf16.msra.mxu3 %v5338_v38 }
 0x1e8   :  { %1868 = vmatpush.bf16.msrb.mxu0 %v5339_v44  ;;  %v1562_v20 = vpop.f32.mrf.mxu2 }
 0x1e9   :  { %v1563_v21 = vadd.f32 %v1562_v20, %v1549_v58 }
 0x1ea   :  { %1833 = vmatpush.bf16.msra.mxu1 %v5340_v46  ;;  %1846 = vmatpush.bf16.msra.mxu2 %v5341_v50  ;;  %v1551_v16 = vpop.f32.mrf.mxu1  ;;  %v5356_v50 = vld [vmem:[#allocation55_spill] sm:$0xff] }
 0x1eb   :  { %1859 = vmatpush.bf16.msra.mxu3 %v5342_v56  ;;  %v1575_v19 = vpop.f32.mrf.mxu3  ;;  %v5357_v56 = vld [vmem:[#allocation56_spill] sm:$0xff]  ;;  %v5369_v16 = vld [vmem:[#allocation66_spill] sm:$0xff] }
 0x1ec   :  { %1869 = vmatpush.bf16.msrb.mxu0 %v5343_v57  ;;  %v5358_v57 = vld [vmem:[#allocation57_spill] sm:$0xff] }
 0x1ee   :  { %1834 = vmatpush.bf16.msra.mxu1 %v5344_v62  ;;  %1847 = vmatpush.bf16.msra.mxu2 %v5345_v23  ;;  %v5359_v62 = vld [vmem:[#allocation59_spill] sm:$0xff]  ;;  %v5360_v23 = vld [vmem:[#allocation60_spill] sm:$0xff] }
 0x1ef   :  { %1860 = vmatpush.bf16.msra.mxu3 %v5240_v53  ;;  %v1576_v53 = vadd.f32 %v1575_v19, %v1563_v21  ;;  %v5370_v21 = vld [vmem:[#allocation67_spill] sm:$0xff] }
 0x1f0   :  { %1870 = vmatpush.bf16.msrb.mxu0 %v5241_v2  ;;  %v5353_v2 = vld [vmem:[#allocation51_spill] sm:$0xff]  ;;  %v1588_v38 = vpop.f32.mrf.mxu0  ;;  %v1564_v45 = vpop.f32.mrf.mxu2 }
 0x1f1   :  { %v1589_v44 = vadd.f32 %v1588_v38, %v1576_v53  ;;  %v5371_v53 = vld [vmem:[#allocation68_spill] sm:$0xff]  ;;  %v5377_v45 = vld [vmem:[#allocation74_spill] sm:$0xff] }
 0x1f2   :  { %1835 = vmatpush.bf16.msra.mxu1 %v5346_v28  ;;  %1848 = vmatpush.bf16.msra.mxu2 %v5347_v36  ;;  %v1601_v58 = vpop.f32.mrf.mxu1  ;;  %v5361_v28 = vld [vmem:[#allocation61_spill] sm:$0xff]  ;;  %v5362_v36 = vld [vmem:[#allocation62_spill] sm:$0xff]  ;;  %v5375_v38 = vld [vmem:[#allocation72_spill] sm:$0xff] }
 0x1f3   :  { %1861 = vmatpush.bf16.msra.mxu3 %v5348_v32  ;;  %v1577_v46 = vpop.f32.mrf.mxu3  ;;  %v5364_v32 = vld [vmem:[#allocation87_spill] sm:$0xff] }
 0x1f4   :  { %1871 = vmatpush.bf16.msrb.mxu0 %v5349_v11  ;;  %v5378_v46 = vld [vmem:[#allocation75_spill] sm:$0xff] }
 0x1f5   :  { %1836 = vmatmul.bf16.vlgmr.msra.gmra.mxu1 %v4590_v52  ;;  %1849 = vmatmul.bf16.vlgmr.msra.gmra.mxu2 %v4600_v8 }
 0x1f6   :  { %1884 = vmatpush.bf16.msrb.mxu1 %v5350_v5  ;;  %1893 = vmatpush.bf16.msrb.mxu2 %v5351_v12  ;;  %v5366_v5 = vld [vmem:[#allocation63_spill] sm:$0xff]  ;;  %v5368_v12 = vld [vmem:[#allocation65_spill] sm:$0xff] }
 0x1f7   :  { %1906 = vmatpush.bf16.msrb.mxu3 %v5352_v25 }
 0x1f8   :  { %1862 = vmatmul.bf16.vlgmr.msra.gmra.mxu3 %v4594_v9  ;;  %1872 = vmatpush.bf16.msrb.mxu0 %v5145_v37  ;;  %v1602_v37 = vadd.f32 %v1601_v58, %v1589_v44  ;;  %v1590_v19 = vpop.f32.mrf.mxu0  ;;  %v5376_v44 = vld [vmem:[#allocation73_spill] sm:$0xff]  ;;  %v5381_v58 = vld [vmem:[#allocation78_spill] sm:$0xff] }
 0x1fa   :  { %1885 = vmatpush.bf16.msrb.mxu1 %v5353_v2  ;;  %1894 = vmatpush.bf16.msrb.mxu2 %v5354_v34  ;;  %v1603_v25 = vpop.f32.mrf.mxu1  ;;  %v5372_v2 = vld [vmem:[#allocation69_spill] sm:$0xff]  ;;  %v5373_v34 = vld [vmem:[#allocation70_spill] sm:$0xff] }
 0x1fb   :  { %1907 = vmatpush.bf16.msrb.mxu3 %v5355_v29  ;;  %v5374_v29 = vld [vmem:[#allocation71_spill] sm:$0xff]  ;;  %v5389_v25 = vld [vmem:[#allocation90_spill] sm:$0xff] }
 0x1fc   :  { %1873 = vmatpush.bf16.msrb.mxu0 %v5149_v60  ;;  %v5363_v60 = vld [vmem:[#allocation50_spill] sm:$0xff] }
 0x1fd   :  { %v5365_v11 = vmax.f32 %v5363_v60, %v5364_v32  ;;  %v5385_v60 = vld [vmem:[#allocation83_spill] sm:$0xff]  ;;  %v5386_v32 = vld [vmem:[#allocation84_spill] sm:$0xff] }
 0x1fe   :  { %1886 = vmatpush.bf16.msrb.mxu1 %v5356_v50  ;;  %1895 = vmatpush.bf16.msrb.mxu2 %v5357_v56  ;;  %v5379_v50 = vld [vmem:[#allocation76_spill] sm:$0xff] }
 0x1ff   :  { %1908 = vmatpush.bf16.msrb.mxu3 %v5358_v57  ;;  %v4672_v20 = vmax.f32 %v5365_v11, %v1602_v37  ;;  %v5380_v57 = vld [vmem:[#allocation77_spill] sm:$0xff] }
 0x200   :  { %1874 = vmatpush.bf16.msrb.mxu0 %v5254_v6  ;;  %v5367_v6 = vld [vmem:[#allocation64_spill] sm:$0xff]  ;;  %v5387_v11 = vld [vmem:[#allocation85_spill] sm:$0xff] }
 0x202   :  { %1887 = vmatpush.bf16.msrb.mxu1 %v5359_v62  ;;  %1896 = vmatpush.bf16.msrb.mxu2 %v5360_v23  ;;  %v5382_v62 = vld [vmem:[#allocation80_spill] sm:$0xff] }
 0x203   :  { %1909 = vmatpush.bf16.msrb.mxu3 %v5361_v28  ;;  %1875 = vmatmul.bf16.vlgmr.msrb.gmra.mxu0 %v4596_v59  ;;  %v5383_v28 = vld [vmem:[#allocation81_spill] sm:$0xff] }
 0x204   :  { %1919 = vmatpush.bf16.msra.mxu0 %v5362_v36  ;;  %v5384_v36 = vld [vmem:[#allocation82_spill] sm:$0xff] }
 0x205   :  { %2651 = vmatmul.msk.bf16.vlgmr.msrb.gmra.mxu1 %vm899_vm0, %v4630_v33 }
 0x206   :  { %1932 = vmatpush.bf16.msra.mxu1 %v5366_v5  ;;  %1897 = vmatpush.bf16.msrb.mxu2 %v5367_v6 }
 0x207   :  { %1910 = vmatpush.bf16.msrb.mxu3 %v5368_v12 }
 0x208   :  { %1920 = vmatpush.bf16.msra.mxu0 %v5369_v16  ;;  %v1614_v56 = vpop.f32.mrf.mxu2 }
 0x20a   :  { %1933 = vmatpush.bf16.msra.mxu1 %v5370_v21  ;;  %1898 = vmatpush.bf16.msrb.mxu2 %v5371_v53  ;;  %v5388_v21 = vld [vmem:[#allocation88_spill] sm:$0xff]  ;;  %v5390_v53 = vld [vmem:[#allocation91_spill] sm:$0xff] }
 0x20b   :  { %1911 = vmatpush.bf16.msrb.mxu3 %v5372_v2  ;;  %v1627_v37 = vpop.f32.mrf.mxu3  ;;  %v5391_v2 = vld [vmem:[#allocation92_spill] sm:$0xff] }
 0x20c   :  { %1921 = vmatpush.bf16.msra.mxu0 %v5373_v34  ;;  %v1628_v23 = vadd.f32 %v1627_v37, %v1614_v56  ;;  %v5393_v34 = vld [vmem:[#allocation94_spill] sm:$0xff] }
 0x20e   :  { %1934 = vmatpush.bf16.msra.mxu1 %v5374_v29  ;;  %1899 = vmatpush.bf16.msrb.mxu2 %v5375_v38  ;;  %v5394_v29 = vld [vmem:[#allocation97_spill] sm:$0xff]  ;;  %v5395_v38 = vld [vmem:[#allocation98_spill] sm:$0xff] }
 0x20f   :  { %1912 = vmatpush.bf16.msrb.mxu3 %v5376_v44  ;;  %v5396_v44 = vmax.f32 %v5293_v39, %v4512_v24  ;;  %v5400_v24 = vld [vmem:[#allocation106_spill] sm:$0xff]  ;;  %v5401_v39 = vld [vmem:[#allocation107_spill] sm:$0xff] }
 0x210   :  { %1922 = vmatpush.bf16.msra.mxu0 %v5377_v45  ;;  %v1616_v19 = vpop.f32.mrf.mxu2  ;;  %v1640_v5 = vpop.f32.mrf.mxu0 }
 0x212   :  { %1935 = vmatpush.bf16.msra.mxu1 %v5378_v46  ;;  %1900 = vmatpush.bf16.msrb.mxu2 %v5379_v50  ;;  %v1653_v6 = vpop.f32.mrf.mxu1  ;;  %v5397_v46 = vld [vmem:[#allocation99_spill] sm:$0xff]  ;;  %v5398_v50 = vld [vmem:[#allocation100_spill] sm:$0xff] }
 0x213   :  { %1913 = vmatpush.bf16.msrb.mxu3 %v5380_v57  ;;  %v1629_v12 = vpop.f32.mrf.mxu3  ;;  %v5402_v57 = vld [vmem:[#allocation109_spill] sm:$0xff] }
 0x214   :  { %1923 = vmatpush.bf16.msra.mxu0 %v5381_v58  ;;  %v5403_v58 = vld [vmem:[#allocation110_spill] sm:$0xff] }
 0x215   :  { %1901 = vmatmul.bf16.vlgmr.msrb.gmra.mxu2 %v4590_v52 }
 0x216   :  { %1936 = vmatpush.bf16.msra.mxu1 %v5277_v30  ;;  %1949 = vmatpush.bf16.msra.mxu2 %v5382_v62  ;;  %v1641_v30 = vadd.f32 %v1640_v5, %v1628_v23 }
 0x217   :  { %1958 = vmatpush.bf16.msra.mxu3 %v5383_v28 }
 0x218   :  { %1914 = vmatmul.bf16.vlgmr.msrb.gmra.mxu3 %v4600_v8  ;;  %1924 = vmatpush.bf16.msra.mxu0 %v5384_v36  ;;  %v1654_v16 = vadd.f32 %v1653_v6, %v1641_v30  ;;  %v2027_v6 = vld [vmem:[%s4777_s2] sm:$0xf] }
 0x21a   :  { %1937 = vmatpush.bf16.msra.mxu1 %v5385_v60  ;;  %1950 = vmatpush.bf16.msra.mxu2 %v5386_v32 }
 0x21b   :  { %1959 = vmatpush.bf16.msra.mxu3 %v5387_v11 }
 0x21c   :  { %1925 = vmatpush.bf16.msra.mxu0 %v5182_v10  ;;  %v5392_v10 = vld [vmem:[#allocation93_spill] sm:$0xff] }
 0x21e   :  { %1938 = vmatpush.bf16.msra.mxu1 %v5183_v61  ;;  %1951 = vmatpush.bf16.msra.mxu2 %v3820_v51  ;;  %v1642_v61 = vpop.f32.mrf.mxu0  ;;  %v1655_v51 = vpop.f32.mrf.mxu1 }
 0x21f   :  { %1960 = vmatpush.bf16.msra.mxu3 %v3832_v0  ;;  %v1666_v0 = vpop.f32.mrf.mxu2 }
 0x220   :  { %1926 = vmatpush.bf16.msra.mxu0 %v5388_v21 }
 0x222   :  { %1939 = vmatpush.bf16.msra.mxu1 %v5285_v35  ;;  %1952 = vmatpush.bf16.msra.mxu2 %v5389_v25  ;;  %v1667_v35 = vadd.f32 %v1666_v0, %v1654_v16 }
 0x223   :  { %1961 = vmatpush.bf16.msra.mxu3 %v5390_v53  ;;  %1927 = vmatmul.bf16.vlgmr.msra.gmra.mxu0 %v4594_v9  ;;  %v2029_v53 = vperm.slane %v2027_v6, 0 }
 0x224   :  { %1971 = vmatpush.bf16.msrb.mxu0 %v5391_v2  ;;  %v4724_v45 = vmax.f32 %v5396_v44, %v1667_v35 }
 0x225   :  { %1940 = vmatmul.bf16.vlgmr.msra.gmra.mxu1 %v4596_v59  ;;  %2652 = vmatmul.msk.bf16.vlgmr.msra.gmra.mxu2 %vm899_vm0, %v4630_v33 }
 0x226   :  { %1984 = vmatpush.bf16.msrb.mxu1 %v5392_v10  ;;  %1997 = vmatpush.bf16.msrb.mxu2 %v5393_v34  ;;  %v2030_v34 = vperm.slane %v2027_v6, 1 }
 0x227   :  { %1962 = vmatpush.bf16.msra.mxu3 %v5291_v47  ;;  %v5399_v47 = vld [vmem:[#allocation101_spill] sm:$0xff] }
 0x228   :  { %1972 = vmatpush.bf16.msrb.mxu0 %v5191_v26  ;;  %v1668_v26 = vpop.f32.mrf.mxu2 }
 0x22a   :  { %1985 = vmatpush.bf16.msrb.mxu1 %v5394_v29  ;;  %1998 = vmatpush.bf16.msrb.mxu2 %v5395_v38 }
 0x22b   :  { %1963 = vmatpush.bf16.msra.mxu3 %v5397_v46  ;;  %v1679_v56 = vpop.f32.mrf.mxu3 }
 0x22c   :  { %1973 = vmatpush.bf16.msrb.mxu0 %v5398_v50 }
 0x22e   :  { %1986 = vmatpush.bf16.msrb.mxu1 %v5399_v47  ;;  %1999 = vmatpush.bf16.msrb.mxu2 %v5198_v54 }
 0x22f   :  { %1964 = vmatpush.bf16.msra.mxu3 %v3984_v48  ;;  %v5404_v48 = vld [vmem:[#allocation113_spill] sm:$0xff] }
 0x230   :  { %1974 = vmatpush.bf16.msrb.mxu0 %v5199_v27  ;;  %v1692_v27 = vpop.f32.mrf.mxu0 }
 0x232   :  { %1987 = vmatpush.bf16.msrb.mxu1 %v5297_v18  ;;  %2000 = vmatpush.bf16.msrb.mxu2 %v5298_v14  ;;  %v1705_v14 = vpop.f32.mrf.mxu1 }
 0x233   :  { %1965 = vmatpush.bf16.msra.mxu3 %v5400_v24  ;;  %v1681_v54 = vpop.f32.mrf.mxu3 }
 0x234   :  { %1975 = vmatpush.bf16.msrb.mxu0 %v5401_v39 }
 0x236   :  { %1988 = vmatpush.bf16.msrb.mxu1 %v5202_v1  ;;  %2001 = vmatpush.bf16.msrb.mxu2 %v5402_v57  ;;  %v1693_v1 = vadd.f32 %v1692_v27, %v1679_v56 }
 0x237   :  { %2014 = vmatpush.bf16.msrb.mxu3 %v5403_v58 }
 0x238   :  { %1966 = vmatmul.bf16.vlgmr.msra.gmra.mxu3 %v4590_v52  ;;  %1976 = vmatpush.bf16.msrb.mxu0 %v4064_v13  ;;  %v1706_v18 = vadd.f32 %v1705_v14, %v1693_v1 }
 0x23a   :  { %1989 = vmatpush.bf16.msrb.mxu1 %v5205_v41  ;;  %2002 = vmatpush.bf16.msrb.mxu2 %v5206_v43  ;;  %v1718_v43 = vpop.f32.mrf.mxu2 }
 0x23b   :  { %2015 = vmatpush.bf16.msrb.mxu3 %v5404_v48  ;;  %v1719_v13 = vadd.f32 %v1718_v43, %v1706_v18 }
 0x23c   :  { %1977 = vmatpush.bf16.msrb.mxu0 %v4101_v22  ;;  %v1731_v22 = vpop.f32.mrf.mxu3 }
 0x23e   :  { %1990 = vmatpush.bf16.msrb.mxu1 %v4105_v49  ;;  %2003 = vmatpush.bf16.msrb.mxu2 %v4107_v63  ;;  %v1694_v63 = vpop.f32.mrf.mxu0  ;;  %v1707_v49 = vpop.f32.mrf.mxu1 }
 0x23f   :  { %2016 = vmatpush.bf16.msrb.mxu3 %v4119_v15  ;;  %v1732_v15 = vadd.f32 %v1731_v22, %v1719_v13 }
 0x240   :  { %1978 = vmatpush.bf16.msrb.mxu0 %v4137_v40 }
 0x242   :  { %1991 = vmatpush.bf16.msrb.mxu1 %v4141_v42  ;;  %2004 = vmatpush.bf16.msrb.mxu2 %v4143_v4  ;;  %v4760_v4 = vmax.f32 %v1450_v7, %v1732_v15 }
 0x243   :  { %2017 = vmatpush.bf16.msrb.mxu3 %v4146_v55  ;;  %1979 = vmatmul.bf16.vlgmr.msrb.gmra.mxu0 %v4600_v8  ;;  %v1720_v55 = vpop.f32.mrf.mxu2 }
 0x244   :  { %v1733_v42 = vpop.f32.mrf.mxu3 }
 0x245   :  { %1992 = vmatmul.bf16.vlgmr.msrb.gmra.mxu1 %v4594_v9  ;;  %2005 = vmatmul.bf16.vlgmr.msrb.gmra.mxu2 %v4596_v59 }
 0x248   :  { %2653 = vmatmul.msk.bf16.vlgmr.msrb.gmra.mxu3 %vm899_vm0, %v4630_v33 }
 0x250   :  { %v1772_v40 = vpop.f32.mrf.mxu0 }
 0x252   :  { %v1785_v41 = vpop.f32.mrf.mxu1 }
 0x253   :  { %v1786_v33 = vadd.f32 %v1785_v41, %v1772_v40  ;;  %v2031_v40 = vperm.slane %v2027_v6, 2 }
 0x258   :  { %v1798_v52 = vpop.f32.mrf.mxu2  ;;  %v1774_v8 = vpop.f32.mrf.mxu0 }
 0x259   :  { %v1799_v60 = vadd.f32 %v1798_v52, %v1786_v33  ;;  %v2032_v8 = vperm.slane %v2027_v6, 3 }
 0x25a   :  { %v1787_v59 = vpop.f32.mrf.mxu1 }
 0x25b   :  { %v1811_v9 = vpop.f32.mrf.mxu3 }
 0x25c   :  { %v1812_v7 = vadd.f32 %v1811_v9, %v1799_v60 }
 0x260   :  { %v1800_v37 = vpop.f32.mrf.mxu2  ;;  %v1824_v23 = vpop.f32.mrf.mxu0 }
 0x261   :  { %v1825_v5 = vadd.f32 %v1824_v23, %v1812_v7 }
 0x263   :  { %v1813_v62 = vpop.f32.mrf.mxu3  ;;  %v2023_v25 = vmax.f32 %v4626_v17, %v1825_v5 }
 0x265   :  { %v2037_v61 = vadd.f32 %v2029_v53, %v2023_v25 }
 0x267   :  { %v2041_v29 = vmax.f32 %v2037_v61, 0.0 }
 0x268   :  { %v1826_v28 = vpop.f32.mrf.mxu0 }
 0x272   :  { %v1837_v36 = vpop.f32.mrf.mxu1 }
 0x278   :  { %v1850_v32 = vpop.f32.mrf.mxu2 }
 0x279   :  { %v1851_v3 = vadd.f32 %v1850_v32, %v1837_v36 }
 0x27a   :  { %v1839_v31 = vpop.f32.mrf.mxu1 }
 0x27b   :  { %v1863_v11 = vpop.f32.mrf.mxu3 }
 0x27c   :  { %v1864_v19 = vadd.f32 %v1863_v11, %v1851_v3 }
 0x280   :  { %v1876_v30 = vpop.f32.mrf.mxu0  ;;  %v1852_v16 = vpop.f32.mrf.mxu2 }
 0x281   :  { %v1877_v12 = vadd.f32 %v1876_v30, %v1864_v19 }
 0x282   :  { %v1889_v2 = vpop.f32.mrf.mxu1 }
 0x283   :  { %v1865_v21 = vpop.f32.mrf.mxu3  ;;  %v1890_v10 = vadd.f32 %v1889_v2, %v1877_v12 }
 0x285   :  { %v2024_v51 = vmax.f32 %v4672_v20, %v1890_v10 }
 0x287   :  { %v2038_v35 = vadd.f32 %v2030_v34, %v2024_v51 }
 0x288   :  { %v1878_v0 = vpop.f32.mrf.mxu0 }
 0x289   :  { %v2042_v38 = vmax.f32 %v2038_v35, 0.0 }
 0x28a   :  { %v1891_v44 = vpop.f32.mrf.mxu1 }
 0x28b   :  { %v2045_v46 = vpack.c.bf16 %v2042_v38, %v2041_v29 }
 0x28d   :  { %2047 = vst [vmem:[%s4778_s3] sm:$0xff] %v2045_v46 }
 0x298   :  { %v1902_v50 = vpop.f32.mrf.mxu2 }
 0x29b   :  { %v1915_v47 = vpop.f32.mrf.mxu3 }
 0x29c   :  { %v1916_v48 = vadd.f32 %v1915_v47, %v1902_v50 }
 0x2a0   :  { %v1904_v17 = vpop.f32.mrf.mxu2  ;;  %v1928_v26 = vpop.f32.mrf.mxu0 }
 0x2a1   :  { %v1929_v27 = vadd.f32 %v1928_v26, %v1916_v48 }
 0x2a2   :  { %v1941_v39 = vpop.f32.mrf.mxu1 }
 0x2a3   :  { %v1917_v24 = vpop.f32.mrf.mxu3  ;;  %v1942_v14 = vadd.f32 %v1941_v39, %v1929_v27 }
 0x2a8   :  { %v1930_v56 = vpop.f32.mrf.mxu0  ;;  %v1954_v58 = vpop.f32.mrf.mxu2 }
 0x2a9   :  { %v1955_v63 = vadd.f32 %v1954_v58, %v1942_v14 }
 0x2aa   :  { %v1943_v57 = vpop.f32.mrf.mxu1 }
 0x2ab   :  { %v2025_v42 = vmax.f32 %v4724_v45, %v1955_v63 }
 0x2ad   :  { %v2039_v59 = vadd.f32 %v2031_v40, %v2025_v42 }
 0x2af   :  { %v2043_v28 = vmax.f32 %v2039_v59, 0.0 }
 0x2b0   :  { %v1956_v20 = vpop.f32.mrf.mxu2 }
 0x2bb   :  { %v1967_v54 = vpop.f32.mrf.mxu3 }
 0x2c0   :  { %v1980_v1 = vpop.f32.mrf.mxu0 }
 0x2c1   :  { %v1981_v43 = vadd.f32 %v1980_v1, %v1967_v54 }
 0x2c2   :  { %v1993_v18 = vpop.f32.mrf.mxu1 }
 0x2c3   :  { %v1969_v13 = vpop.f32.mrf.mxu3  ;;  %v1994_v49 = vadd.f32 %v1993_v18, %v1981_v43 }
 0x2c8   :  { %v2006_v22 = vpop.f32.mrf.mxu2  ;;  %v1982_v55 = vpop.f32.mrf.mxu0 }
 0x2c9   :  { %v2007_v15 = vadd.f32 %v2006_v22, %v1994_v49 }
 0x2ca   :  { %v1995_v41 = vpop.f32.mrf.mxu1 }
 0x2cb   :  { %v2019_v52 = vpop.f32.mrf.mxu3 }
 0x2cc   :  { %v2020_v9 = vadd.f32 %v2019_v52, %v2007_v15 }
 0x2ce   :  { %v2026_v37 = vmax.f32 %v4760_v4, %v2020_v9 }
 0x2d0   :  { %v2040_v62 = vadd.f32 %v2032_v8, %v2026_v37  ;;  %v2008_v23 = vpop.f32.mrf.mxu2 }
 0x2d2   :  { %v2044_v36 = vmax.f32 %v2040_v62, 0.0 }
 0x2d3   :  { %v2021_v33 = vpop.f32.mrf.mxu3 }
 0x2d4   :  { %v2046_v60 = vpack.c.bf16 %v2044_v36, %v2043_v28 }
 0x2d6   :  { %2048 = vst [vmem:[%s4778_s3 + $0x8] sm:$0xff] %v2046_v60 }

// kernel: vgg_forward.9
= control target key start
LH: loop header
LB: loop body
LE: loop exit
PB: predicated region body
PF: predicated region fallthrough
CT: control target
= control target key end

     0   :  { %s5559_s1 = inlined_call_operand.vmem [shape: bf16[512,512], index: 1, kind: input, shape index: {}]   ;;  %s5560_s0 = inlined_call_operand.vmem [shape: bf16[8,512], index: 0, kind: input, shape index: {}]   ;;  %s5561_s3 = inlined_call_operand.vmem [shape: bf16[512,512], index: 3, kind: input, shape index: {}]   ;;  %s5562_s2 = inlined_call_operand.vmem [shape: f32[1,512], index: 2, kind: input, shape index: {}]   ;;  %s5563_s5 = inlined_call_operand.vmem [shape: bf16[512,128], index: 5, kind: input, shape index: {}]   ;;  %s5564_s6 = inlined_call_operand.vmem [shape: f32[1,128], index: 6, kind: input, shape index: {}]   ;;  %s5565_s4 = inlined_call_operand.vmem [shape: f32[1,512], index: 4, kind: input, shape index: {}]   ;;  %s5566_s7 = inlined_call_operand.vmem [shape: f32[8,128], index: 7, kind: output, shape index: {}]  }
   0x1   :  { %v2461_v0 = vld [vmem:[%s5559_s1 + $0xe0] sm:$0xf]  ;;  %v3529_v1 = vld [vmem:[%s5559_s1 + $0xec] sm:$0xf0] }
   0x2   :  { %v2589_v2 = vld [vmem:[%s5559_s1 + $0x1e0] sm:$0xf]  ;;  %v2462_v3 = vor.u32 %v3529_v1, %v2461_v0  ;;  %v3561_v4 = vld [vmem:[%s5559_s1 + $0x1ec] sm:$0xf0] }
   0x3   :  { %v2717_v5 = vld [vmem:[%s5559_s1 + $0x2e0] sm:$0xf]  ;;  %v3593_v6 = vld [vmem:[%s5559_s1 + $0x2ec] sm:$0xf0]  ;;  %v2590_v7 = vor.u32 %v3561_v4, %v2589_v2 }
   0x4   :  { %v2718_v8 = vor.u32 %v3593_v6, %v2717_v5  ;;  %v2845_v9 = vld [vmem:[%s5559_s1 + $0x3e0] sm:$0xf]  ;;  %v3625_v10 = vld [vmem:[%s5559_s1 + $0x3ec] sm:$0xf0]  ;;  %820 = vmatpush.bf16.msra.mxu0 %v2462_v3 }
   0x5   :  { %v2445_v11 = vld [vmem:[%s5559_s1 + $0xc0] sm:$0xf]  ;;  %v2846_v12 = vor.u32 %v3625_v10, %v2845_v9  ;;  %v3525_v13 = vld [vmem:[%s5559_s1 + $0xcc] sm:$0xf0]  ;;  %833 = vmatpush.bf16.msra.mxu1 %v2590_v7 }
   0x6   :  { %v2573_v14 = vld [vmem:[%s5559_s1 + $0x1c0] sm:$0xf]  ;;  %v3557_v15 = vld [vmem:[%s5559_s1 + $0x1cc] sm:$0xf0]  ;;  %846 = vmatpush.bf16.msra.mxu2 %v2718_v8  ;;  %v2446_v16 = vor.u32 %v3525_v13, %v2445_v11 }
   0x7   :  { %v2574_v17 = vor.u32 %v3557_v15, %v2573_v14  ;;  %v2701_v18 = vld [vmem:[%s5559_s1 + $0x2c0] sm:$0xf]  ;;  %v3589_v19 = vld [vmem:[%s5559_s1 + $0x2cc] sm:$0xf0]  ;;  %859 = vmatpush.bf16.msra.mxu3 %v2846_v12 }
   0x8   :  { %v2829_v20 = vld [vmem:[%s5559_s1 + $0x3c0] sm:$0xf]  ;;  %v2702_v21 = vor.u32 %v3589_v19, %v2701_v18  ;;  %v3621_v22 = vld [vmem:[%s5559_s1 + $0x3cc] sm:$0xf0]  ;;  %821 = vmatpush.bf16.msra.mxu0 %v2446_v16 }
   0x9   :  { %v2429_v23 = vld [vmem:[%s5559_s1 + $0xa0] sm:$0xf]  ;;  %v3521_v24 = vld [vmem:[%s5559_s1 + $0xac] sm:$0xf0]  ;;  %v2830_v25 = vor.u32 %v3621_v22, %v2829_v20  ;;  %834 = vmatpush.bf16.msra.mxu1 %v2574_v17 }
   0xa   :  { %v2557_v26 = vld [vmem:[%s5559_s1 + $0x1a0] sm:$0xf]  ;;  %v3553_v27 = vld [vmem:[%s5559_s1 + $0x1ac] sm:$0xf0]  ;;  %v2430_v29 = vor.u32 %v3521_v24, %v2429_v23  ;;  %847 = vmatpush.bf16.msra.mxu2 %v2702_v21 }
   0xb   :  { %v2685_v28 = vld [vmem:[%s5559_s1 + $0x2a0] sm:$0xf]  ;;  %v3585_v30 = vld [vmem:[%s5559_s1 + $0x2ac] sm:$0xf0]  ;;  %v2558_v33 = vor.u32 %v3553_v27, %v2557_v26  ;;  %860 = vmatpush.bf16.msra.mxu3 %v2830_v25  ;;  %v27_v25 = vld [vmem:[%s5560_s0 + $0x8] sm:$0xff] }
   0xc   :  { %v2813_v31 = vld [vmem:[%s5559_s1 + $0x3a0] sm:$0xf]  ;;  %v3617_v32 = vld [vmem:[%s5559_s1 + $0x3ac] sm:$0xf0]  ;;  %v2686_v34 = vor.u32 %v3585_v30, %v2685_v28  ;;  %822 = vmatpush.bf16.msra.mxu0 %v2430_v29  ;;  %v3527_v29 = vld [vmem:[%s5559_s1 + $0xe4] sm:$0xf] }
   0xd   :  { %v2413_v35 = vld [vmem:[%s5559_s1 + $0x80] sm:$0xf]  ;;  %v3517_v36 = vld [vmem:[%s5559_s1 + $0x8c] sm:$0xf0]  ;;  %v2814_v38 = vor.u32 %v3617_v32, %v2813_v31  ;;  %835 = vmatpush.bf16.msra.mxu1 %v2558_v33  ;;  %v2463_v30 = vld [vmem:[%s5559_s1 + $0xf0] sm:$0xf0] }
   0xe   :  { %v2541_v37 = vld [vmem:[%s5559_s1 + $0x180] sm:$0xf]  ;;  %v3549_v39 = vld [vmem:[%s5559_s1 + $0x18c] sm:$0xf0]  ;;  %v2414_v44 = vor.u32 %v3517_v36, %v2413_v35  ;;  %848 = vmatpush.bf16.msra.mxu2 %v2686_v34  ;;  %v3559_v31 = vld [vmem:[%s5559_s1 + $0x1e4] sm:$0xf]  ;;  %v170_v36 = vunpack.c.l.b16 %v27_v25 }
   0xf   :  { %v2669_v40 = vld [vmem:[%s5559_s1 + $0x280] sm:$0xf]  ;;  %v3581_v41 = vld [vmem:[%s5559_s1 + $0x28c] sm:$0xf0]  ;;  %v2542_v45 = vor.u32 %v3549_v39, %v2541_v37  ;;  %861 = vmatpush.bf16.msra.mxu3 %v2814_v38  ;;  %v2591_v32 = vld [vmem:[%s5559_s1 + $0x1f0] sm:$0xf0] }
  0x10   :  { %v2797_v42 = vld [vmem:[%s5559_s1 + $0x380] sm:$0xf]  ;;  %v3613_v43 = vld [vmem:[%s5559_s1 + $0x38c] sm:$0xf0]  ;;  %v2670_v46 = vor.u32 %v3581_v41, %v2669_v40  ;;  %823 = vmatpush.bf16.msra.mxu0 %v2414_v44  ;;  %v3591_v34 = vld [vmem:[%s5559_s1 + $0x2e4] sm:$0xf] }
  0x11   :  { %v2397_v47 = vld [vmem:[%s5559_s1 + $0x60] sm:$0xf]  ;;  %v3513_v48 = vld [vmem:[%s5559_s1 + $0x6c] sm:$0xf0]  ;;  %v2798_v50 = vor.u32 %v3613_v43, %v2797_v42  ;;  %836 = vmatpush.bf16.msra.mxu1 %v2542_v45  ;;  %v2719_v35 = vld [vmem:[%s5559_s1 + $0x2f0] sm:$0xf0]  ;;  %v171_v43 = vunpack.c.h.b16 %v27_v25  ;;  %v2466_v45 = vor.u32 %v3527_v29, %v2463_v30 }
  0x12   :  { %v2525_v49 = vld [vmem:[%s5559_s1 + $0x160] sm:$0xf]  ;;  %v3545_v51 = vld [vmem:[%s5559_s1 + $0x16c] sm:$0xf0]  ;;  %v2398_v56 = vor.u32 %v3513_v48, %v2397_v47  ;;  %849 = vmatpush.bf16.msra.mxu2 %v2670_v46  ;;  %v3623_v40 = vld [vmem:[%s5559_s1 + $0x3e4] sm:$0xf]  ;;  %v2594_v47 = vor.u32 %v3559_v31, %v2591_v32  ;;  %v2722_v48 = vor.u32 %v3591_v34, %v2719_v35 }
  0x13   :  { %v2653_v52 = vld [vmem:[%s5559_s1 + $0x260] sm:$0xf]  ;;  %v3577_v53 = vld [vmem:[%s5559_s1 + $0x26c] sm:$0xf0]  ;;  %v2526_v57 = vor.u32 %v3545_v51, %v2525_v49  ;;  %862 = vmatpush.bf16.msra.mxu3 %v2798_v50  ;;  %v2847_v41 = vld [vmem:[%s5559_s1 + $0x3f0] sm:$0xf0] }
  0x14   :  { %v2781_v54 = vld [vmem:[%s5559_s1 + $0x360] sm:$0xf]  ;;  %v3609_v55 = vld [vmem:[%s5559_s1 + $0x36c] sm:$0xf0]  ;;  %v2654_v58 = vor.u32 %v3577_v53, %v2653_v52  ;;  %824 = vmatpush.bf16.msra.mxu0 %v2398_v56  ;;  %v3523_v49 = vld [vmem:[%s5559_s1 + $0xc4] sm:$0xf]  ;;  %v2850_v52 = vor.u32 %v3623_v40, %v2847_v41  ;;  %v4059_v53 = vpack.c.b16 %v170_v36, %v170_v36 }
  0x15   :  { %v2381_v59 = vld [vmem:[%s5559_s1 + $0x40] sm:$0xf]  ;;  %v3509_v60 = vld [vmem:[%s5559_s1 + $0x4c] sm:$0xf0]  ;;  %v2782_v62 = vor.u32 %v3609_v55, %v2781_v54  ;;  %837 = vmatpush.bf16.msra.mxu1 %v2526_v57  ;;  %v2447_v50 = vld [vmem:[%s5559_s1 + $0xd0] sm:$0xf0] }
  0x16   :  { %v2509_v61 = vld [vmem:[%s5559_s1 + $0x140] sm:$0xf]  ;;  %v3541_v63 = vld [vmem:[%s5559_s1 + $0x14c] sm:$0xf0]  ;;  %v2382_v4 = vor.u32 %v3509_v60, %v2381_v59  ;;  %850 = vmatpush.bf16.msra.mxu2 %v2654_v58  ;;  %v3555_v51 = vld [vmem:[%s5559_s1 + $0x1c4] sm:$0xf]  ;;  %v4078_v60 = vpack.c.b16 %v171_v43, %v171_v43 }
  0x17   :  { %v2637_v0 = vld [vmem:[%s5559_s1 + $0x240] sm:$0xf]  ;;  %v3573_v1 = vld [vmem:[%s5559_s1 + $0x24c] sm:$0xf0]  ;;  %v2510_v5 = vor.u32 %v3541_v63, %v2509_v61  ;;  %863 = vmatpush.bf16.msra.mxu3 %v2782_v62  ;;  %v2575_v54 = vld [vmem:[%s5559_s1 + $0x1d0] sm:$0xf0]  ;;  %v2450_v61 = vor.u32 %v3523_v49, %v2447_v50 }
  0x18   :  { %v2765_v2 = vld [vmem:[%s5559_s1 + $0x340] sm:$0xf]  ;;  %v3605_v3 = vld [vmem:[%s5559_s1 + $0x34c] sm:$0xf0]  ;;  %v2638_v6 = vor.u32 %v3573_v1, %v2637_v0  ;;  %825 = vmatpush.bf16.msra.mxu0 %v2382_v4  ;;  %v3587_v55 = vld [vmem:[%s5559_s1 + $0x2c4] sm:$0xf]  ;;  %v2578_v63 = vor.u32 %v3555_v51, %v2575_v54 }
  0x19   :  { %v2365_v7 = vld [vmem:[%s5559_s1 + $0x20] sm:$0xf]  ;;  %v3505_v8 = vld [vmem:[%s5559_s1 + $0x2c] sm:$0xf0]  ;;  %v2766_v10 = vor.u32 %v3605_v3, %v2765_v2  ;;  %838 = vmatpush.bf16.msra.mxu1 %v2510_v5  ;;  %v2703_v56 = vld [vmem:[%s5559_s1 + $0x2d0] sm:$0xf0] }
  0x1a   :  { %v2493_v9 = vld [vmem:[%s5559_s1 + $0x120] sm:$0xf]  ;;  %v3537_v11 = vld [vmem:[%s5559_s1 + $0x12c] sm:$0xf0]  ;;  %v2366_v17 = vor.u32 %v3505_v8, %v2365_v7  ;;  %851 = vmatpush.bf16.msra.mxu2 %v2638_v6  ;;  %v3619_v57 = vld [vmem:[%s5559_s1 + $0x3c4] sm:$0xf]  ;;  %v2706_v0 = vor.u32 %v3587_v55, %v2703_v56 }
  0x1b   :  { %v2621_v12 = vld [vmem:[%s5559_s1 + $0x220] sm:$0xf]  ;;  %v3569_v13 = vld [vmem:[%s5559_s1 + $0x22c] sm:$0xf0]  ;;  %v2494_v21 = vor.u32 %v3537_v11, %v2493_v9  ;;  %864 = vmatpush.bf16.msra.mxu3 %v2766_v10  ;;  %v2831_v58 = vld [vmem:[%s5559_s1 + $0x3d0] sm:$0xf0] }
  0x1c   :  { %v2749_v14 = vld [vmem:[%s5559_s1 + $0x320] sm:$0xf]  ;;  %v3601_v15 = vld [vmem:[%s5559_s1 + $0x32c] sm:$0xf0]  ;;  %v2622_v22 = vor.u32 %v3569_v13, %v2621_v12  ;;  %826 = vmatpush.bf16.msra.mxu0 %v2366_v17  ;;  %v3519_v1 = vld [vmem:[%s5559_s1 + $0xa4] sm:$0xf]  ;;  %v2834_v4 = vor.u32 %v3619_v57, %v2831_v58 }
  0x1d   :  { %v2349_v16 = vld [vmem:[%s5559_s1] sm:$0xf]  ;;  %v3501_v18 = vld [vmem:[%s5559_s1 + $0xc] sm:$0xf0]  ;;  %v2750_v26 = vor.u32 %v3601_v15, %v2749_v14  ;;  %839 = vmatpush.bf16.msra.mxu1 %v2494_v21  ;;  %v2431_v2 = vld [vmem:[%s5559_s1 + $0xb0] sm:$0xf0] }
  0x1e   :  { %v2477_v19 = vld [vmem:[%s5559_s1 + $0x100] sm:$0xf]  ;;  %v3533_v20 = vld [vmem:[%s5559_s1 + $0x10c] sm:$0xf0]  ;;  %v2350_v33 = vor.u32 %v3501_v18, %v2349_v16  ;;  %852 = vmatpush.bf16.msra.mxu2 %v2622_v22  ;;  %v3551_v3 = vld [vmem:[%s5559_s1 + $0x1a4] sm:$0xf]  ;;  %v2434_v10 = vor.u32 %v3519_v1, %v2431_v2 }
  0x1f   :  { %v2605_v23 = vld [vmem:[%s5559_s1 + $0x200] sm:$0xf]  ;;  %v3565_v24 = vld [vmem:[%s5559_s1 + $0x20c] sm:$0xf0]  ;;  %v2478_v38 = vor.u32 %v3533_v20, %v2477_v19  ;;  %865 = vmatpush.bf16.msra.mxu3 %v2750_v26  ;;  %v2559_v5 = vld [vmem:[%s5559_s1 + $0x1b0] sm:$0xf0] }
  0x20   :  { %v2733_v27 = vld [vmem:[%s5559_s1 + $0x300] sm:$0xf]  ;;  %v3597_v28 = vld [vmem:[%s5559_s1 + $0x30c] sm:$0xf0]  ;;  %v2606_v39 = vor.u32 %v3565_v24, %v2605_v23  ;;  %827 = vmatpush.bf16.msra.mxu0 %v2350_v33  ;;  %v3583_v6 = vld [vmem:[%s5559_s1 + $0x2a4] sm:$0xf]  ;;  %v2562_v11 = vor.u32 %v3551_v3, %v2559_v5 }
  0x21   :  { %v26_v37 = vld [vmem:[%s5560_s0] sm:$0xff]  ;;  %v2734_v44 = vor.u32 %v3597_v28, %v2733_v27  ;;  %840 = vmatpush.bf16.msra.mxu1 %v2478_v38  ;;  %v2687_v7 = vld [vmem:[%s5559_s1 + $0x2b0] sm:$0xf0] }
  0x22   :  { %v168_v42 = vunpack.c.l.b16 %v26_v37  ;;  %v169_v46 = vunpack.c.h.b16 %v26_v37  ;;  %853 = vmatpush.bf16.msra.mxu2 %v2606_v39  ;;  %v3615_v8 = vld [vmem:[%s5559_s1 + $0x3a4] sm:$0xf]  ;;  %v2815_v9 = vld [vmem:[%s5559_s1 + $0x3b0] sm:$0xf0]  ;;  %v2690_v12 = vor.u32 %v3583_v6, %v2687_v7 }
  0x23   :  { %866 = vmatpush.bf16.msra.mxu3 %v2734_v44  ;;  %v3515_v13 = vld [vmem:[%s5559_s1 + $0x84] sm:$0xf]  ;;  %v2415_v14 = vld [vmem:[%s5559_s1 + $0x90] sm:$0xf0]  ;;  %v2818_v16 = vor.u32 %v3615_v8, %v2815_v9 }
  0x24   :  { %v4076_v59 = vpack.c.b16 %v168_v42, %v168_v42  ;;  %872 = vmatpush.bf16.msrb.mxu0 %v2466_v45  ;;  %v4080_v62 = vpack.c.b16 %v169_v46, %v169_v46  ;;  %v3547_v15 = vld [vmem:[%s5559_s1 + $0x184] sm:$0xf]  ;;  %v2543_v17 = vld [vmem:[%s5559_s1 + $0x190] sm:$0xf0]  ;;  %v2418_v22 = vor.u32 %v3515_v13, %v2415_v14  ;;  %v3562_v14 = vld [vmem:[%s5559_s1 + $0x1f4] sm:$0xf0] }
  0x25   :  { %885 = vmatpush.bf16.msrb.mxu1 %v2594_v47  ;;  %854 = vmatmul.bf16.vlgmr.msra.gmra.mxu2 %v4059_v53  ;;  %v3579_v18 = vld [vmem:[%s5559_s1 + $0x284] sm:$0xf]  ;;  %v2671_v19 = vld [vmem:[%s5559_s1 + $0x290] sm:$0xf0]  ;;  %v2546_v23 = vor.u32 %v3547_v15, %v2543_v17  ;;  %v2725_v15 = vld [vmem:[%s5559_s1 + $0x2e8] sm:$0xf] }
  0x26   :  { %898 = vmatpush.bf16.msrb.mxu2 %v2722_v48  ;;  %828 = vmatmul.bf16.vlgmr.msra.gmra.mxu0 %v4076_v59  ;;  %v3611_v20 = vld [vmem:[%s5559_s1 + $0x384] sm:$0xf]  ;;  %v2799_v21 = vld [vmem:[%s5559_s1 + $0x390] sm:$0xf0]  ;;  %v2674_v24 = vor.u32 %v3579_v18, %v2671_v19  ;;  %v2853_v19 = vld [vmem:[%s5559_s1 + $0x3e8] sm:$0xf] }
  0x27   :  { %911 = vmatpush.bf16.msrb.mxu3 %v2850_v52  ;;  %841 = vmatmul.bf16.vlgmr.msra.gmra.mxu1 %v4080_v62  ;;  %v3511_v25 = vld [vmem:[%s5559_s1 + $0x64] sm:$0xf]  ;;  %v2399_v26 = vld [vmem:[%s5559_s1 + $0x70] sm:$0xf0]  ;;  %v2802_v28 = vor.u32 %v3611_v20, %v2799_v21  ;;  %v3626_v20 = vld [vmem:[%s5559_s1 + $0x3f4] sm:$0xf0] }
  0x28   :  { %867 = vmatmul.bf16.vlgmr.msra.gmra.mxu3 %v4078_v60  ;;  %873 = vmatpush.bf16.msrb.mxu0 %v2450_v61  ;;  %v3543_v27 = vld [vmem:[%s5559_s1 + $0x164] sm:$0xf]  ;;  %v2527_v29 = vld [vmem:[%s5559_s1 + $0x170] sm:$0xf0]  ;;  %v2402_v34 = vor.u32 %v3511_v25, %v2399_v26  ;;  %v2453_v25 = vld [vmem:[%s5559_s1 + $0xc8] sm:$0xf] }
  0x29   :  { %886 = vmatpush.bf16.msrb.mxu1 %v2578_v63  ;;  %v3575_v30 = vld [vmem:[%s5559_s1 + $0x264] sm:$0xf]  ;;  %v2655_v31 = vld [vmem:[%s5559_s1 + $0x270] sm:$0xf0]  ;;  %v2530_v35 = vor.u32 %v3543_v27, %v2527_v29  ;;  %v3526_v26 = vld [vmem:[%s5559_s1 + $0xd4] sm:$0xf0] }
  0x2a   :  { %899 = vmatpush.bf16.msrb.mxu2 %v2706_v0  ;;  %v3607_v32 = vld [vmem:[%s5559_s1 + $0x364] sm:$0xf]  ;;  %v2783_v33 = vld [vmem:[%s5559_s1 + $0x370] sm:$0xf0]  ;;  %v2658_v36 = vor.u32 %v3575_v30, %v2655_v31  ;;  %v2581_v27 = vld [vmem:[%s5559_s1 + $0x1c8] sm:$0xf] }
  0x2b   :  { %912 = vmatpush.bf16.msrb.mxu3 %v2834_v4  ;;  %v3507_v37 = vld [vmem:[%s5559_s1 + $0x44] sm:$0xf]  ;;  %v2383_v38 = vld [vmem:[%s5559_s1 + $0x50] sm:$0xf0]  ;;  %v2786_v40 = vor.u32 %v3607_v32, %v2783_v33  ;;  %v3558_v29 = vld [vmem:[%s5559_s1 + $0x1d4] sm:$0xf0] }
  0x2c   :  { %874 = vmatpush.bf16.msrb.mxu0 %v2434_v10  ;;  %v3539_v39 = vld [vmem:[%s5559_s1 + $0x144] sm:$0xf]  ;;  %v2511_v41 = vld [vmem:[%s5559_s1 + $0x150] sm:$0xf0]  ;;  %v2386_v46 = vor.u32 %v3507_v37, %v2383_v38  ;;  %v2469_v10 = vld [vmem:[%s5559_s1 + $0xe8] sm:$0xf] }
  0x2d   :  { %887 = vmatpush.bf16.msrb.mxu1 %v2562_v11  ;;  %v3571_v42 = vld [vmem:[%s5559_s1 + $0x244] sm:$0xf]  ;;  %v2639_v43 = vld [vmem:[%s5559_s1 + $0x250] sm:$0xf0]  ;;  %v2514_v47 = vor.u32 %v3539_v39, %v2511_v41  ;;  %v3530_v11 = vld [vmem:[%s5559_s1 + $0xf4] sm:$0xf0] }
  0x2e   :  { %900 = vmatpush.bf16.msrb.mxu2 %v2690_v12  ;;  %v3603_v44 = vld [vmem:[%s5559_s1 + $0x344] sm:$0xf]  ;;  %v2767_v45 = vld [vmem:[%s5559_s1 + $0x350] sm:$0xf0]  ;;  %v2642_v48 = vor.u32 %v3571_v42, %v2639_v43  ;;  %v2597_v12 = vld [vmem:[%s5559_s1 + $0x1e8] sm:$0xf] }
  0x2f   :  { %913 = vmatpush.bf16.msrb.mxu3 %v2818_v16  ;;  %v3503_v49 = vld [vmem:[%s5559_s1 + $0x24] sm:$0xf]  ;;  %v2367_v50 = vld [vmem:[%s5559_s1 + $0x30] sm:$0xf0]  ;;  %v2770_v52 = vor.u32 %v3603_v44, %v2767_v45  ;;  %v3594_v16 = vld [vmem:[%s5559_s1 + $0x2f4] sm:$0xf0] }
  0x30   :  { %875 = vmatpush.bf16.msrb.mxu0 %v2418_v22  ;;  %v3535_v51 = vld [vmem:[%s5559_s1 + $0x124] sm:$0xf]  ;;  %v2495_v54 = vld [vmem:[%s5559_s1 + $0x130] sm:$0xf0]  ;;  %v2370_v61 = vor.u32 %v3503_v49, %v2367_v50  ;;  %v2470_v22 = vor.u32 %v3530_v11, %v2469_v10  ;;  %v2709_v30 = vld [vmem:[%s5559_s1 + $0x2c8] sm:$0xf] }
  0x31   :  { %888 = vmatpush.bf16.msrb.mxu1 %v2546_v23  ;;  %v3567_v55 = vld [vmem:[%s5559_s1 + $0x224] sm:$0xf]  ;;  %v2623_v56 = vld [vmem:[%s5559_s1 + $0x230] sm:$0xf0]  ;;  %v2498_v1 = vor.u32 %v3535_v51, %v2495_v54  ;;  %v2598_v23 = vor.u32 %v3562_v14, %v2597_v12  ;;  %v3590_v31 = vld [vmem:[%s5559_s1 + $0x2d4] sm:$0xf0] }
  0x32   :  { %901 = vmatpush.bf16.msrb.mxu2 %v2674_v24  ;;  %v3599_v57 = vld [vmem:[%s5559_s1 + $0x324] sm:$0xf]  ;;  %v2751_v58 = vld [vmem:[%s5559_s1 + $0x330] sm:$0xf0]  ;;  %v2626_v2 = vor.u32 %v3567_v55, %v2623_v56  ;;  %v2726_v24 = vor.u32 %v3594_v16, %v2725_v15  ;;  %v2837_v32 = vld [vmem:[%s5559_s1 + $0x3c8] sm:$0xf] }
  0x33   :  { %914 = vmatpush.bf16.msrb.mxu3 %v2802_v28  ;;  %v3499_v63 = vld [vmem:[%s5559_s1 + $0x4] sm:$0xf]  ;;  %v2351_v0 = vld [vmem:[%s5559_s1 + $0x10] sm:$0xf0]  ;;  %v2754_v6 = vor.u32 %v3599_v57, %v2751_v58  ;;  %v2854_v28 = vor.u32 %v3626_v20, %v2853_v19  ;;  %v3622_v33 = vld [vmem:[%s5559_s1 + $0x3d4] sm:$0xf0] }
  0x34   :  { %876 = vmatpush.bf16.msrb.mxu0 %v2402_v34  ;;  %v3531_v3 = vld [vmem:[%s5559_s1 + $0x104] sm:$0xf]  ;;  %v2479_v4 = vld [vmem:[%s5559_s1 + $0x110] sm:$0xf0]  ;;  %v2354_v13 = vor.u32 %v3499_v63, %v2351_v0  ;;  %v2454_v34 = vor.u32 %v3526_v26, %v2453_v25  ;;  %v2437_v37 = vld [vmem:[%s5559_s1 + $0xa8] sm:$0xf] }
  0x35   :  { %889 = vmatpush.bf16.msrb.mxu1 %v2530_v35  ;;  %v3563_v5 = vld [vmem:[%s5559_s1 + $0x204] sm:$0xf]  ;;  %v2607_v7 = vld [vmem:[%s5559_s1 + $0x210] sm:$0xf0]  ;;  %v2482_v17 = vor.u32 %v3531_v3, %v2479_v4  ;;  %v2582_v35 = vor.u32 %v3558_v29, %v2581_v27  ;;  %v3522_v38 = vld [vmem:[%s5559_s1 + $0xb4] sm:$0xf0] }
  0x36   :  { %902 = vmatpush.bf16.msrb.mxu2 %v2658_v36  ;;  %v3595_v8 = vld [vmem:[%s5559_s1 + $0x304] sm:$0xf]  ;;  %v2735_v9 = vld [vmem:[%s5559_s1 + $0x310] sm:$0xf0]  ;;  %v2610_v18 = vor.u32 %v3563_v5, %v2607_v7  ;;  %v2710_v36 = vor.u32 %v3590_v31, %v2709_v30  ;;  %v2565_v39 = vld [vmem:[%s5559_s1 + $0x1a8] sm:$0xf] }
  0x37   :  { %915 = vmatpush.bf16.msrb.mxu3 %v2786_v40  ;;  %v2738_v21 = vor.u32 %v3595_v8, %v2735_v9  ;;  %v2838_v40 = vor.u32 %v3622_v33, %v2837_v32  ;;  %v3554_v41 = vld [vmem:[%s5559_s1 + $0x1b4] sm:$0xf0]  ;;  %v2693_v42 = vld [vmem:[%s5559_s1 + $0x2a8] sm:$0xf] }
  0x38   :  { %877 = vmatpush.bf16.msrb.mxu0 %v2386_v46  ;;  %v3586_v43 = vld [vmem:[%s5559_s1 + $0x2b4] sm:$0xf0]  ;;  %v2821_v44 = vld [vmem:[%s5559_s1 + $0x3a8] sm:$0xf]  ;;  %v2438_v46 = vor.u32 %v3522_v38, %v2437_v37 }
  0x39   :  { %890 = vmatpush.bf16.msrb.mxu1 %v2514_v47  ;;  %v3618_v45 = vld [vmem:[%s5559_s1 + $0x3b4] sm:$0xf0]  ;;  %v2566_v47 = vor.u32 %v3554_v41, %v2565_v39  ;;  %v2421_v49 = vld [vmem:[%s5559_s1 + $0x88] sm:$0xf] }
  0x3a   :  { %903 = vmatpush.bf16.msrb.mxu2 %v2642_v48  ;;  %v2694_v48 = vor.u32 %v3586_v43, %v2693_v42  ;;  %v3518_v50 = vld [vmem:[%s5559_s1 + $0x94] sm:$0xf0]  ;;  %v2549_v51 = vld [vmem:[%s5559_s1 + $0x188] sm:$0xf] }
  0x3b   :  { %916 = vmatpush.bf16.msrb.mxu3 %v2770_v52  ;;  %v2822_v52 = vor.u32 %v3618_v45, %v2821_v44  ;;  %v3550_v54 = vld [vmem:[%s5559_s1 + $0x194] sm:$0xf0]  ;;  %v2677_v55 = vld [vmem:[%s5559_s1 + $0x288] sm:$0xf] }
  0x3c   :  { %878 = vmatpush.bf16.msrb.mxu0 %v2370_v61  ;;  %v3582_v56 = vld [vmem:[%s5559_s1 + $0x294] sm:$0xf0]  ;;  %v2805_v57 = vld [vmem:[%s5559_s1 + $0x388] sm:$0xf]  ;;  %v2422_v61 = vor.u32 %v3518_v50, %v2421_v49  ;;  %v2550_v63 = vor.u32 %v3550_v54, %v2549_v51  ;;  %v2599_v50 = vld [vmem:[%s5559_s1 + $0x1f8] sm:$0xf0] }
  0x3d   :  { %891 = vmatpush.bf16.msrb.mxu1 %v2498_v1  ;;  %v3614_v58 = vld [vmem:[%s5559_s1 + $0x394] sm:$0xf0]  ;;  %v2678_v0 = vor.u32 %v3582_v56, %v2677_v55  ;;  %v2405_v1 = vld [vmem:[%s5559_s1 + $0x68] sm:$0xf]  ;;  %v3592_v51 = vld [vmem:[%s5559_s1 + $0x2ec] sm:$0xf] }
  0x3e   :  { %904 = vmatpush.bf16.msrb.mxu2 %v2626_v2  ;;  %v3514_v2 = vld [vmem:[%s5559_s1 + $0x74] sm:$0xf0]  ;;  %v2533_v3 = vld [vmem:[%s5559_s1 + $0x168] sm:$0xf]  ;;  %v2806_v4 = vor.u32 %v3614_v58, %v2805_v57  ;;  %v3624_v56 = vld [vmem:[%s5559_s1 + $0x3ec] sm:$0xf] }
  0x3f   :  { %917 = vmatpush.bf16.msrb.mxu3 %v2754_v6  ;;  %v3546_v5 = vld [vmem:[%s5559_s1 + $0x174] sm:$0xf0]  ;;  %v2661_v6 = vld [vmem:[%s5559_s1 + $0x268] sm:$0xf]  ;;  %v2406_v10 = vor.u32 %v3514_v2, %v2405_v1  ;;  %v2855_v57 = vld [vmem:[%s5559_s1 + $0x3f8] sm:$0xf0] }
  0x40   :  { %879 = vmatpush.bf16.msrb.mxu0 %v2354_v13  ;;  %v3578_v7 = vld [vmem:[%s5559_s1 + $0x274] sm:$0xf0]  ;;  %v2789_v8 = vld [vmem:[%s5559_s1 + $0x368] sm:$0xf]  ;;  %v2534_v11 = vor.u32 %v3546_v5, %v2533_v3  ;;  %v3524_v1 = vld [vmem:[%s5559_s1 + $0xcc] sm:$0xf] }
  0x41   :  { %892 = vmatpush.bf16.msrb.mxu1 %v2482_v17  ;;  %v3610_v9 = vld [vmem:[%s5559_s1 + $0x374] sm:$0xf0]  ;;  %v2662_v12 = vor.u32 %v3578_v7, %v2661_v6  ;;  %v2389_v13 = vld [vmem:[%s5559_s1 + $0x48] sm:$0xf]  ;;  %v2455_v2 = vld [vmem:[%s5559_s1 + $0xd8] sm:$0xf0] }
  0x42   :  { %905 = vmatpush.bf16.msrb.mxu2 %v2610_v18  ;;  %v3510_v14 = vld [vmem:[%s5559_s1 + $0x54] sm:$0xf0]  ;;  %v2517_v15 = vld [vmem:[%s5559_s1 + $0x148] sm:$0xf]  ;;  %v2790_v16 = vor.u32 %v3610_v9, %v2789_v8  ;;  %v3556_v3 = vld [vmem:[%s5559_s1 + $0x1cc] sm:$0xf] }
  0x43   :  { %918 = vmatpush.bf16.msrb.mxu3 %v2738_v21  ;;  %880 = vmatmul.bf16.vlgmr.msrb.gmra.mxu0 %v4076_v59  ;;  %v3542_v17 = vld [vmem:[%s5559_s1 + $0x154] sm:$0xf0]  ;;  %v2645_v18 = vld [vmem:[%s5559_s1 + $0x248] sm:$0xf]  ;;  %v2583_v5 = vld [vmem:[%s5559_s1 + $0x1d8] sm:$0xf0] }
  0x44   :  { %924 = vmatpush.bf16.msra.mxu0 %v2470_v22  ;;  %893 = vmatmul.bf16.vlgmr.msrb.gmra.mxu1 %v4080_v62  ;;  %v3574_v19 = vld [vmem:[%s5559_s1 + $0x254] sm:$0xf0]  ;;  %v2773_v20 = vld [vmem:[%s5559_s1 + $0x348] sm:$0xf]  ;;  %v2390_v22 = vor.u32 %v3510_v14, %v2389_v13  ;;  %v3588_v6 = vld [vmem:[%s5559_s1 + $0x2cc] sm:$0xf] }
  0x45   :  { %937 = vmatpush.bf16.msra.mxu1 %v2598_v23  ;;  %906 = vmatmul.bf16.vlgmr.msrb.gmra.mxu2 %v4059_v53  ;;  %v3606_v21 = vld [vmem:[%s5559_s1 + $0x354] sm:$0xf0]  ;;  %v2518_v23 = vor.u32 %v3542_v17, %v2517_v15  ;;  %v2373_v25 = vld [vmem:[%s5559_s1 + $0x28] sm:$0xf]  ;;  %v2711_v7 = vld [vmem:[%s5559_s1 + $0x2d8] sm:$0xf0] }
  0x46   :  { %950 = vmatpush.bf16.msra.mxu2 %v2726_v24  ;;  %919 = vmatmul.bf16.vlgmr.msrb.gmra.mxu3 %v4078_v60  ;;  %v2646_v24 = vor.u32 %v3574_v19, %v2645_v18  ;;  %v3506_v26 = vld [vmem:[%s5559_s1 + $0x34] sm:$0xf0]  ;;  %v2501_v27 = vld [vmem:[%s5559_s1 + $0x128] sm:$0xf]  ;;  %v3620_v8 = vld [vmem:[%s5559_s1 + $0x3cc] sm:$0xf] }
  0x47   :  { %963 = vmatpush.bf16.msra.mxu3 %v2854_v28  ;;  %v2774_v28 = vor.u32 %v3606_v21, %v2773_v20  ;;  %v3538_v29 = vld [vmem:[%s5559_s1 + $0x134] sm:$0xf0]  ;;  %v2629_v30 = vld [vmem:[%s5559_s1 + $0x228] sm:$0xf]  ;;  %v2839_v9 = vld [vmem:[%s5559_s1 + $0x3d8] sm:$0xf0] }
  0x48   :  { %925 = vmatpush.bf16.msra.mxu0 %v2454_v34  ;;  %v3570_v31 = vld [vmem:[%s5559_s1 + $0x234] sm:$0xf0]  ;;  %v2757_v32 = vld [vmem:[%s5559_s1 + $0x328] sm:$0xf]  ;;  %v2374_v34 = vor.u32 %v3506_v26, %v2373_v25  ;;  %v2502_v37 = vor.u32 %v3538_v29, %v2501_v27  ;;  %v3520_v13 = vld [vmem:[%s5559_s1 + $0xac] sm:$0xf] }
  0x49   :  { %938 = vmatpush.bf16.msra.mxu1 %v2582_v35  ;;  %v3602_v33 = vld [vmem:[%s5559_s1 + $0x334] sm:$0xf0]  ;;  %v2357_v35 = vld [vmem:[%s5559_s1 + $0x8] sm:$0xf]  ;;  %v2630_v38 = vor.u32 %v3570_v31, %v2629_v30  ;;  %v2439_v14 = vld [vmem:[%s5559_s1 + $0xb8] sm:$0xf0] }
  0x4a   :  { %951 = vmatpush.bf16.msra.mxu2 %v2710_v36  ;;  %v3502_v36 = vld [vmem:[%s5559_s1 + $0x14] sm:$0xf0]  ;;  %v2485_v39 = vld [vmem:[%s5559_s1 + $0x108] sm:$0xf]  ;;  %v2758_v42 = vor.u32 %v3602_v33, %v2757_v32  ;;  %v3552_v15 = vld [vmem:[%s5559_s1 + $0x1ac] sm:$0xf] }
  0x4b   :  { %964 = vmatpush.bf16.msra.mxu3 %v2838_v40  ;;  %v3534_v40 = vld [vmem:[%s5559_s1 + $0x114] sm:$0xf0]  ;;  %v2613_v41 = vld [vmem:[%s5559_s1 + $0x208] sm:$0xf]  ;;  %v2358_v49 = vor.u32 %v3502_v36, %v2357_v35  ;;  %v2567_v17 = vld [vmem:[%s5559_s1 + $0x1b8] sm:$0xf0] }
  0x4c   :  { %926 = vmatpush.bf16.msra.mxu0 %v2438_v46  ;;  %v3566_v43 = vld [vmem:[%s5559_s1 + $0x214] sm:$0xf0]  ;;  %v2741_v44 = vld [vmem:[%s5559_s1 + $0x308] sm:$0xf]  ;;  %v3528_v46 = vld [vmem:[%s5559_s1 + $0xec] sm:$0xf]  ;;  %v2486_v54 = vor.u32 %v3534_v40, %v2485_v39 }
  0x4d   :  { %939 = vmatpush.bf16.msra.mxu1 %v2566_v47  ;;  %v3598_v45 = vld [vmem:[%s5559_s1 + $0x314] sm:$0xf0]  ;;  %v2471_v47 = vld [vmem:[%s5559_s1 + $0xf8] sm:$0xf0]  ;;  %v2614_v55 = vor.u32 %v3566_v43, %v2613_v41  ;;  %v3584_v18 = vld [vmem:[%s5559_s1 + $0x2ac] sm:$0xf] }
  0x4e   :  { %952 = vmatpush.bf16.msra.mxu2 %v2694_v48  ;;  %v3560_v48 = vld [vmem:[%s5559_s1 + $0x1ec] sm:$0xf]  ;;  %v2742_v58 = vor.u32 %v3598_v45, %v2741_v44  ;;  %v2695_v19 = vld [vmem:[%s5559_s1 + $0x2b8] sm:$0xf0] }
  0x4f   :  { %965 = vmatpush.bf16.msra.mxu3 %v2822_v52  ;;  %v2727_v52 = vld [vmem:[%s5559_s1 + $0x2f8] sm:$0xf0]  ;;  %v3616_v20 = vld [vmem:[%s5559_s1 + $0x3ac] sm:$0xf] }
  0x50   :  { %927 = vmatpush.bf16.msra.mxu0 %v2422_v61  ;;  %v2474_v61 = vor.u32 %v3528_v46, %v2471_v47  ;;  %v2823_v21 = vld [vmem:[%s5559_s1 + $0x3b8] sm:$0xf0]  ;;  %v3516_v25 = vld [vmem:[%s5559_s1 + $0x8c] sm:$0xf] }
  0x51   :  { %940 = vmatpush.bf16.msra.mxu1 %v2550_v63  ;;  %v2602_v63 = vor.u32 %v3560_v48, %v2599_v50  ;;  %v2423_v26 = vld [vmem:[%s5559_s1 + $0x98] sm:$0xf0]  ;;  %v3548_v27 = vld [vmem:[%s5559_s1 + $0x18c] sm:$0xf] }
  0x52   :  { %953 = vmatpush.bf16.msra.mxu2 %v2678_v0  ;;  %v2730_v0 = vor.u32 %v3592_v51, %v2727_v52  ;;  %v2551_v29 = vld [vmem:[%s5559_s1 + $0x198] sm:$0xf0]  ;;  %v3580_v30 = vld [vmem:[%s5559_s1 + $0x28c] sm:$0xf] }
  0x53   :  { %966 = vmatpush.bf16.msra.mxu3 %v2806_v4  ;;  %v2858_v4 = vor.u32 %v3624_v56, %v2855_v57  ;;  %v2679_v31 = vld [vmem:[%s5559_s1 + $0x298] sm:$0xf0]  ;;  %v3612_v32 = vld [vmem:[%s5559_s1 + $0x38c] sm:$0xf]  ;;  %v2554_v35 = vor.u32 %v3548_v27, %v2551_v29 }
  0x54   :  { %928 = vmatpush.bf16.msra.mxu0 %v2406_v10  ;;  %v2458_v10 = vor.u32 %v3524_v1, %v2455_v2  ;;  %v2807_v33 = vld [vmem:[%s5559_s1 + $0x398] sm:$0xf0]  ;;  %v2682_v36 = vor.u32 %v3580_v30, %v2679_v31  ;;  %v3544_v39 = vld [vmem:[%s5559_s1 + $0x16c] sm:$0xf]  ;;  %v2957_v31 = vld [vmem:[%s5561_s3 + $0xc0] sm:$0xf] }
  0x55   :  { %941 = vmatpush.bf16.msra.mxu1 %v2534_v11  ;;  %v2586_v11 = vor.u32 %v3556_v3, %v2583_v5  ;;  %v2810_v40 = vor.u32 %v3612_v32, %v2807_v33  ;;  %v2535_v41 = vld [vmem:[%s5559_s1 + $0x178] sm:$0xf0]  ;;  %v3608_v44 = vld [vmem:[%s5559_s1 + $0x36c] sm:$0xf]  ;;  %v3653_v32 = vld [vmem:[%s5561_s3 + $0xcc] sm:$0xf0] }
  0x56   :  { %954 = vmatpush.bf16.msra.mxu2 %v2662_v12  ;;  %v2714_v12 = vor.u32 %v3588_v6, %v2711_v7  ;;  %v2663_v43 = vld [vmem:[%s5559_s1 + $0x278] sm:$0xf0]  ;;  %v2538_v47 = vor.u32 %v3544_v39, %v2535_v41  ;;  %v3540_v51 = vld [vmem:[%s5559_s1 + $0x14c] sm:$0xf] }
  0x57   :  { %967 = vmatpush.bf16.msra.mxu3 %v2790_v16  ;;  %v2842_v16 = vor.u32 %v3620_v8, %v2839_v9  ;;  %v2791_v45 = vld [vmem:[%s5559_s1 + $0x378] sm:$0xf0]  ;;  %v3604_v57 = vld [vmem:[%s5559_s1 + $0x34c] sm:$0xf] }
  0x58   :  { %929 = vmatpush.bf16.msra.mxu0 %v2390_v22  ;;  %v2442_v22 = vor.u32 %v3520_v13, %v2439_v14  ;;  %v2391_v50 = vld [vmem:[%s5559_s1 + $0x58] sm:$0xf0]  ;;  %v2794_v52 = vor.u32 %v3608_v44, %v2791_v45  ;;  %v3504_v1 = vld [vmem:[%s5559_s1 + $0x2c] sm:$0xf]  ;;  %v2909_v45 = vld [vmem:[%s5561_s3 + $0x60] sm:$0xf] }
  0x59   :  { %942 = vmatpush.bf16.msra.mxu1 %v2518_v23  ;;  %v2570_v23 = vor.u32 %v3552_v15, %v2567_v17  ;;  %v2647_v56 = vld [vmem:[%s5559_s1 + $0x258] sm:$0xf0]  ;;  %v3536_v3 = vld [vmem:[%s5559_s1 + $0x12c] sm:$0xf] }
  0x5a   :  { %955 = vmatpush.bf16.msra.mxu2 %v2646_v24  ;;  %v2698_v24 = vor.u32 %v3584_v18, %v2695_v19  ;;  %v2375_v2 = vld [vmem:[%s5559_s1 + $0x38] sm:$0xf0]  ;;  %v3568_v6 = vld [vmem:[%s5559_s1 + $0x22c] sm:$0xf] }
  0x5b   :  { %968 = vmatpush.bf16.msra.mxu3 %v2774_v28  ;;  %v2826_v28 = vor.u32 %v3616_v20, %v2823_v21  ;;  %v2503_v5 = vld [vmem:[%s5559_s1 + $0x138] sm:$0xf0]  ;;  %v3600_v8 = vld [vmem:[%s5559_s1 + $0x32c] sm:$0xf] }
  0x5c   :  { %930 = vmatpush.bf16.msra.mxu0 %v2374_v34  ;;  %v2426_v34 = vor.u32 %v3516_v25, %v2423_v26  ;;  %v2631_v7 = vld [vmem:[%s5559_s1 + $0x238] sm:$0xf0]  ;;  %v3532_v15 = vld [vmem:[%s5559_s1 + $0x10c] sm:$0xf]  ;;  %v3101_v25 = vld [vmem:[%s5561_s3 + $0x1e0] sm:$0xf] }
  0x5d   :  { %943 = vmatpush.bf16.msra.mxu1 %v2502_v37  ;;  %v3512_v37 = vld [vmem:[%s5559_s1 + $0x6c] sm:$0xf]  ;;  %v2759_v9 = vld [vmem:[%s5559_s1 + $0x338] sm:$0xf0]  ;;  %v2634_v13 = vor.u32 %v3568_v6, %v2631_v7  ;;  %v3689_v26 = vld [vmem:[%s5561_s3 + $0x1ec] sm:$0xf0] }
  0x5e   :  { %956 = vmatpush.bf16.msra.mxu2 %v2630_v38  ;;  %v2407_v38 = vld [vmem:[%s5559_s1 + $0x78] sm:$0xf0]  ;;  %v2762_v17 = vor.u32 %v3600_v8, %v2759_v9  ;;  %v3564_v18 = vld [vmem:[%s5559_s1 + $0x20c] sm:$0xf]  ;;  %v3102_v33 = vor.u32 %v3689_v26, %v3101_v25  ;;  %v3229_v7 = vld [vmem:[%s5561_s3 + $0x2e0] sm:$0xf] }
  0x5f   :  { %969 = vmatpush.bf16.msra.mxu3 %v2758_v42  ;;  %v3576_v42 = vld [vmem:[%s5559_s1 + $0x26c] sm:$0xf]  ;;  %v2410_v46 = vor.u32 %v3512_v37, %v2407_v38  ;;  %v2359_v14 = vld [vmem:[%s5559_s1 + $0x18] sm:$0xf0]  ;;  %v2941_v37 = vld [vmem:[%s5561_s3 + $0xa0] sm:$0xf] }
  0x60   :  { %931 = vmatpush.bf16.msra.mxu0 %v2358_v49  ;;  %v2666_v48 = vor.u32 %v3576_v42, %v2663_v43  ;;  %v3508_v49 = vld [vmem:[%s5559_s1 + $0x4c] sm:$0xf]  ;;  %v2615_v19 = vld [vmem:[%s5559_s1 + $0x218] sm:$0xf0]  ;;  %v3649_v38 = vld [vmem:[%s5561_s3 + $0xac] sm:$0xf0] }
  0x61   :  { %944 = vmatpush.bf16.msra.mxu1 %v2486_v54  ;;  %v2519_v54 = vld [vmem:[%s5559_s1 + $0x158] sm:$0xf0]  ;;  %v3596_v20 = vld [vmem:[%s5559_s1 + $0x30c] sm:$0xf]  ;;  %v2942_v41 = vor.u32 %v3649_v38, %v2941_v37  ;;  %v2925_v42 = vld [vmem:[%s5561_s3 + $0x80] sm:$0xf] }
  0x62   :  { %957 = vmatpush.bf16.msra.mxu2 %v2614_v55  ;;  %v3572_v55 = vld [vmem:[%s5559_s1 + $0x24c] sm:$0xf]  ;;  %v2743_v21 = vld [vmem:[%s5559_s1 + $0x318] sm:$0xf0]  ;;  %v3053_v43 = vld [vmem:[%s5561_s3 + $0x180] sm:$0xf] }
  0x63   :  { %970 = vmatpush.bf16.msra.mxu3 %v2742_v58  ;;  %932 = vmatmul.bf16.vlgmr.msra.gmra.mxu0 %v4076_v59  ;;  %v2775_v58 = vld [vmem:[%s5559_s1 + $0x358] sm:$0xf0]  ;;  %v2746_v29 = vor.u32 %v3596_v20, %v2743_v21  ;;  %v3721_v8 = vld [vmem:[%s5561_s3 + $0x2ec] sm:$0xf0]  ;;  %v2975_v9 = vld [vmem:[%s5561_s3 + $0xf0] sm:$0xf0] }
  0x64   :  { %976 = vmatpush.bf16.msrb.mxu0 %v2474_v61  ;;  %945 = vmatmul.bf16.vlgmr.msra.gmra.mxu1 %v4080_v62  ;;  %v2394_v61 = vor.u32 %v3508_v49, %v2391_v50  ;;  %v3673_v49 = vld [vmem:[%s5561_s3 + $0x16c] sm:$0xf0]  ;;  %v3651_v20 = vld [vmem:[%s5561_s3 + $0xc4] sm:$0xf]  ;;  %v2959_v21 = vld [vmem:[%s5561_s3 + $0xd0] sm:$0xf0] }
  0x65   :  { %989 = vmatpush.bf16.msrb.mxu1 %v2602_v63  ;;  %958 = vmatmul.bf16.vlgmr.msra.gmra.mxu2 %v4059_v53  ;;  %v2522_v63 = vor.u32 %v3540_v51, %v2519_v54  ;;  %v2893_v51 = vld [vmem:[%s5561_s3 + $0x40] sm:$0xf]  ;;  %v3087_v25 = vld [vmem:[%s5561_s3 + $0x1d0] sm:$0xf0]  ;;  %v2962_v26 = vor.u32 %v3651_v20, %v2959_v21  ;;  %v3709_v38 = vld [vmem:[%s5561_s3 + $0x28c] sm:$0xf0] }
  0x66   :  { %1002 = vmatpush.bf16.msrb.mxu2 %v2730_v0  ;;  %971 = vmatmul.bf16.vlgmr.msra.gmra.mxu3 %v4078_v60  ;;  %v2650_v0 = vor.u32 %v3572_v55, %v2647_v56  ;;  %v3021_v55 = vld [vmem:[%s5561_s3 + $0x140] sm:$0xf]  ;;  %v3669_v56 = vld [vmem:[%s5561_s3 + $0x14c] sm:$0xf0]  ;;  %v3627_v20 = vld [vmem:[%s5561_s3 + $0x4] sm:$0xf] }
  0x67   :  { %1015 = vmatpush.bf16.msrb.mxu3 %v2858_v4  ;;  %v2778_v4 = vor.u32 %v3604_v57, %v2775_v58  ;;  %v2877_v58 = vld [vmem:[%s5561_s3 + $0x20] sm:$0xf]  ;;  %v2863_v21 = vld [vmem:[%s5561_s3 + $0x10] sm:$0xf0] }
  0x68   :  { %977 = vmatpush.bf16.msrb.mxu0 %v2458_v10  ;;  %v2378_v10 = vor.u32 %v3504_v1, %v2375_v2  ;;  %v3665_v1 = vld [vmem:[%s5561_s3 + $0x12c] sm:$0xf0]  ;;  %v3181_v37 = vld [vmem:[%s5561_s3 + $0x280] sm:$0xf] }
  0x69   :  { %990 = vmatpush.bf16.msrb.mxu1 %v2586_v11  ;;  %v3500_v11 = vld [vmem:[%s5559_s1 + $0xc] sm:$0xf] }
  0x6a   :  { %1003 = vmatpush.bf16.msrb.mxu2 %v2714_v12  ;;  %v2506_v12 = vor.u32 %v3536_v3, %v2503_v5  ;;  %v2861_v3 = vld [vmem:[%s5561_s3] sm:$0xf]  ;;  %v3655_v5 = vld [vmem:[%s5561_s3 + $0xe4] sm:$0xf] }
  0x6b   :  { %1016 = vmatpush.bf16.msrb.mxu3 %v2842_v16  ;;  %v2487_v16 = vld [vmem:[%s5559_s1 + $0x118] sm:$0xf0] }
  0x6c   :  { %978 = vmatpush.bf16.msrb.mxu0 %v2442_v22  ;;  %v2973_v22 = vld [vmem:[%s5561_s3 + $0xe0] sm:$0xf]  ;;  %v2490_v27 = vor.u32 %v3532_v15, %v2487_v16  ;;  %v2978_v16 = vor.u32 %v3655_v5, %v2975_v9  ;;  %v3697_v9 = vld [vmem:[%s5561_s3 + $0x22c] sm:$0xf0] }
  0x6d   :  { %991 = vmatpush.bf16.msrb.mxu1 %v2570_v23  ;;  %v3657_v23 = vld [vmem:[%s5561_s3 + $0xec] sm:$0xf0] }
  0x6e   :  { %1004 = vmatpush.bf16.msrb.mxu2 %v2698_v24  ;;  %v2362_v24 = vor.u32 %v3500_v11, %v2359_v14  ;;  %v2974_v30 = vor.u32 %v3657_v23, %v2973_v22  ;;  %v3661_v11 = vld [vmem:[%s5561_s3 + $0x10c] sm:$0xf0]  ;;  %v3103_v14 = vld [vmem:[%s5561_s3 + $0x1f0] sm:$0xf0] }
  0x6f   :  { %1017 = vmatpush.bf16.msrb.mxu3 %v2826_v28  ;;  %v2618_v28 = vor.u32 %v3564_v18, %v2615_v19  ;;  %v3213_v18 = vld [vmem:[%s5561_s3 + $0x2c0] sm:$0xf]  ;;  %v3717_v19 = vld [vmem:[%s5561_s3 + $0x2cc] sm:$0xf0] }
  0x70   :  { %979 = vmatpush.bf16.msrb.mxu0 %v2426_v34  ;;  %v3085_v34 = vld [vmem:[%s5561_s3 + $0x1c0] sm:$0xf]  ;;  %v3214_v23 = vor.u32 %v3717_v19, %v3213_v18  ;;  %v3007_v18 = vld [vmem:[%s5561_s3 + $0x130] sm:$0xf0] }
  0x71   :  { %992 = vmatpush.bf16.msrb.mxu1 %v2554_v35  ;;  %v3685_v35 = vld [vmem:[%s5561_s3 + $0x1cc] sm:$0xf0] }
  0x72   :  { %1005 = vmatpush.bf16.msrb.mxu2 %v2682_v36  ;;  %v2958_v36 = vor.u32 %v3653_v32, %v2957_v31  ;;  %v3086_v39 = vor.u32 %v3685_v35, %v3085_v34  ;;  %v3071_v34 = vld [vmem:[%s5561_s3 + $0x1b0] sm:$0xf0]  ;;  %v4779_v35 = vld [vmem:[%s5562_s2] sm:$0xf] }
  0x73   :  { %1018 = vmatpush.bf16.msrb.mxu3 %v2810_v40  ;;  %v3069_v40 = vld [vmem:[%s5561_s3 + $0x1a0] sm:$0xf] }
  0x74   :  { %980 = vmatpush.bf16.msrb.mxu0 %v2410_v46  ;;  %v3641_v46 = vld [vmem:[%s5561_s3 + $0x6c] sm:$0xf0] }
  0x75   :  { %993 = vmatpush.bf16.msrb.mxu1 %v2538_v47  ;;  %v2910_v50 = vor.u32 %v3641_v46, %v2909_v45  ;;  %v3639_v46 = vld [vmem:[%s5561_s3 + $0x64] sm:$0xf] }
  0x76   :  { %1006 = vmatpush.bf16.msrb.mxu2 %v2666_v48  ;;  %v3037_v48 = vld [vmem:[%s5561_s3 + $0x160] sm:$0xf] }
  0x77   :  { %1019 = vmatpush.bf16.msrb.mxu3 %v2794_v52  ;;  %v3637_v52 = vld [vmem:[%s5561_s3 + $0x4c] sm:$0xf0]  ;;  %v3038_v54 = vor.u32 %v3673_v49, %v3037_v48 }
  0x78   :  { %981 = vmatpush.bf16.msrb.mxu0 %v2394_v61  ;;  %v2894_v57 = vor.u32 %v3637_v52, %v2893_v51  ;;  %v3633_v61 = vld [vmem:[%s5561_s3 + $0x2c] sm:$0xf0]  ;;  %v3671_v52 = vld [vmem:[%s5561_s3 + $0x164] sm:$0xf] }
  0x79   :  { %994 = vmatpush.bf16.msrb.mxu1 %v2522_v63  ;;  %v3022_v63 = vor.u32 %v3669_v56, %v3021_v55  ;;  %v2878_v2 = vor.u32 %v3633_v61, %v2877_v58  ;;  %v3701_v58 = vld [vmem:[%s5561_s3 + $0x24c] sm:$0xf0]  ;;  %v3635_v61 = vld [vmem:[%s5561_s3 + $0x44] sm:$0xf] }
  0x7a   :  { %1007 = vmatpush.bf16.msrb.mxu2 %v2650_v0  ;;  %v3005_v0 = vld [vmem:[%s5561_s3 + $0x120] sm:$0xf] }
  0x7b   :  { %1020 = vmatpush.bf16.msrb.mxu3 %v2778_v4  ;;  %v3629_v4 = vld [vmem:[%s5561_s3 + $0xc] sm:$0xf0]  ;;  %v3006_v6 = vor.u32 %v3665_v1, %v3005_v0 }
  0x7c   :  { %982 = vmatpush.bf16.msrb.mxu0 %v2378_v10  ;;  %v2989_v10 = vld [vmem:[%s5561_s3 + $0x100] sm:$0xf]  ;;  %v2862_v15 = vor.u32 %v3629_v4, %v2861_v3  ;;  %v3667_v3 = vld [vmem:[%s5561_s3 + $0x144] sm:$0xf]  ;;  %v3023_v4 = vld [vmem:[%s5561_s3 + $0x150] sm:$0xf0] }
  0x7d   :  { %995 = vmatpush.bf16.msrb.mxu1 %v2506_v12  ;;  %v3230_v12 = vor.u32 %v3721_v8, %v3229_v7  ;;  %v3133_v8 = vld [vmem:[%s5561_s3 + $0x220] sm:$0xf] }
  0x7e   :  { %1008 = vmatpush.bf16.msrb.mxu2 %v2634_v13  ;;  %v3687_v13 = vld [vmem:[%s5561_s3 + $0x1e4] sm:$0xf] }
  0x7f   :  { %1021 = vmatpush.bf16.msrb.mxu3 %v2762_v17  ;;  %v2990_v17 = vor.u32 %v3661_v11, %v2989_v10  ;;  %v3106_v22 = vor.u32 %v3687_v13, %v3103_v14  ;;  %v3631_v11 = vld [vmem:[%s5561_s3 + $0x24] sm:$0xf]  ;;  %v3026_v14 = vor.u32 %v3667_v3, %v3023_v4  ;;  %v3183_v4 = vld [vmem:[%s5561_s3 + $0x290] sm:$0xf0] }
  0x80   :  { %983 = vmatpush.bf16.msrb.mxu0 %v2362_v24  ;;  %v3683_v24 = vld [vmem:[%s5561_s3 + $0x1c4] sm:$0xf] }
  0x81   :  { %996 = vmatpush.bf16.msrb.mxu1 %v2490_v27  ;;  %v3197_v27 = vld [vmem:[%s5561_s3 + $0x2a0] sm:$0xf]  ;;  %v3090_v31 = vor.u32 %v3683_v24, %v3087_v25  ;;  %v3658_v24 = vld [vmem:[%s5561_s3 + $0xf4] sm:$0xf0] }
  0x82   :  { %1009 = vmatpush.bf16.msrb.mxu2 %v2618_v28  ;;  %v3713_v28 = vld [vmem:[%s5561_s3 + $0x2ac] sm:$0xf0]  ;;  %v3117_v25 = vld [vmem:[%s5561_s3 + $0x200] sm:$0xf] }
  0x83   :  { %1022 = vmatpush.bf16.msrb.mxu3 %v2746_v29  ;;  %984 = vmatmul.bf16.vlgmr.msrb.gmra.mxu0 %v4076_v59  ;;  %v3681_v59 = vld [vmem:[%s5561_s3 + $0x1ac] sm:$0xf0]  ;;  %v3647_v29 = vld [vmem:[%s5561_s3 + $0xa4] sm:$0xf]  ;;  %v3198_v32 = vor.u32 %v3713_v28, %v3197_v27 }
  0x84   :  { %1814 = vmatpush.bf16.msra.mxu0 %v2974_v30  ;;  %997 = vmatmul.bf16.vlgmr.msrb.gmra.mxu1 %v4080_v62  ;;  %v3070_v62 = vor.u32 %v3681_v59, %v3069_v40  ;;  %v2943_v30 = vld [vmem:[%s5561_s3 + $0xb0] sm:$0xf0] }
  0x85   :  { %1827 = vmatpush.bf16.msra.mxu1 %v3102_v33  ;;  %1010 = vmatmul.bf16.vlgmr.msrb.gmra.mxu2 %v4059_v53  ;;  %v3645_v53 = vld [vmem:[%s5561_s3 + $0x8c] sm:$0xf0]  ;;  %v3679_v33 = vld [vmem:[%s5561_s3 + $0x1a4] sm:$0xf]  ;;  %v2927_v40 = vld [vmem:[%s5561_s3 + $0x90] sm:$0xf0] }
  0x86   :  { %1023 = vmatmul.bf16.vlgmr.msrb.gmra.mxu3 %v4078_v60  ;;  %v3677_v60 = vld [vmem:[%s5561_s3 + $0x18c] sm:$0xf0]  ;;  %v2926_v44 = vor.u32 %v3645_v53, %v2925_v42  ;;  %1840 = vmatpush.bf16.msra.mxu2 %v3230_v12  ;;  %v3074_v59 = vor.u32 %v3679_v33, %v3071_v34  ;;  %v158_v42 = vperm.slane %v4779_v35, 0  ;;  %v3675_v53 = vld [vmem:[%s5561_s3 + $0x184] sm:$0xf] }
  0x87   :  { %v3054_v47 = vor.u32 %v3677_v60, %v3053_v43  ;;  %v3165_v60 = vld [vmem:[%s5561_s3 + $0x260] sm:$0xf]  ;;  %v2879_v12 = vld [vmem:[%s5561_s3 + $0x30] sm:$0xf0] }
  0x88   :  { %1815 = vmatpush.bf16.msra.mxu0 %v2958_v36  ;;  %v2946_v36 = vor.u32 %v3647_v29, %v2943_v30  ;;  %v3659_v30 = vld [vmem:[%s5561_s3 + $0x104] sm:$0xf]  ;;  %v2991_v34 = vld [vmem:[%s5561_s3 + $0x110] sm:$0xf0] }
  0x89   :  { %1828 = vmatpush.bf16.msra.mxu1 %v3086_v39  ;;  %v3643_v39 = vld [vmem:[%s5561_s3 + $0x84] sm:$0xf] }
  0x8a   :  { %1841 = vmatpush.bf16.msra.mxu2 %v3214_v23  ;;  %v2930_v43 = vor.u32 %v3643_v39, %v2927_v40  ;;  %v2981_v23 = vld [vmem:[%s5561_s3 + $0xe8] sm:$0xf] }
  0x8c   :  { %1816 = vmatpush.bf16.msra.mxu0 %v2942_v41  ;;  %v3182_v41 = vor.u32 %v3709_v38, %v3181_v37  ;;  %v3719_v37 = vld [vmem:[%s5561_s3 + $0x2e4] sm:$0xf]  ;;  %v3231_v38 = vld [vmem:[%s5561_s3 + $0x2f0] sm:$0xf0] }
  0x8d   :  { %1829 = vmatpush.bf16.msra.mxu1 %v3070_v62  ;;  %v3055_v62 = vld [vmem:[%s5561_s3 + $0x190] sm:$0xf0]  ;;  %v3234_v40 = vor.u32 %v3719_v37, %v3231_v38  ;;  %v3695_v37 = vld [vmem:[%s5561_s3 + $0x224] sm:$0xf]  ;;  %v2885_v38 = vld [vmem:[%s5561_s3 + $0x28] sm:$0xf] }
  0x8e   :  { %1842 = vmatpush.bf16.msra.mxu2 %v3198_v32  ;;  %v3058_v48 = vor.u32 %v3675_v53, %v3055_v62  ;;  %v3753_v32 = vld [vmem:[%s5561_s3 + $0x3ec] sm:$0xf0]  ;;  %v3341_v53 = vld [vmem:[%s5561_s3 + $0x3c0] sm:$0xf] }
  0x8f   :  { %v3749_v62 = vld [vmem:[%s5561_s3 + $0x3cc] sm:$0xf0] }
  0x90   :  { %1817 = vmatpush.bf16.msra.mxu0 %v2926_v44  ;;  %v3705_v44 = vld [vmem:[%s5561_s3 + $0x26c] sm:$0xf0] }
  0x91   :  { %1830 = vmatpush.bf16.msra.mxu1 %v3054_v47  ;;  %v2911_v47 = vld [vmem:[%s5561_s3 + $0x70] sm:$0xf0]  ;;  %v3166_v49 = vor.u32 %v3705_v44, %v3165_v60  ;;  %v2965_v60 = vld [vmem:[%s5561_s3 + $0xc8] sm:$0xf]  ;;  %v3654_v44 = vld [vmem:[%s5561_s3 + $0xd4] sm:$0xf0] }
  0x92   :  { %1843 = vmatpush.bf16.msra.mxu2 %v3182_v41  ;;  %v2914_v55 = vor.u32 %v3639_v46, %v2911_v47  ;;  %v2982_v41 = vor.u32 %v3658_v24, %v2981_v23  ;;  %v3215_v46 = vld [vmem:[%s5561_s3 + $0x2d0] sm:$0xf0]  ;;  %v2901_v24 = vld [vmem:[%s5561_s3 + $0x48] sm:$0xf] }
  0x94   :  { %1818 = vmatpush.bf16.msra.mxu0 %v2910_v50 }
  0x95   :  { %1831 = vmatpush.bf16.msra.mxu1 %v3038_v54  ;;  %v3039_v54 = vld [vmem:[%s5561_s3 + $0x170] sm:$0xf0] }
  0x96   :  { %1844 = vmatpush.bf16.msra.mxu2 %v3166_v49  ;;  %v3042_v0 = vor.u32 %v3671_v52, %v3039_v54  ;;  %v3325_v49 = vld [vmem:[%s5561_s3 + $0x3a0] sm:$0xf]  ;;  %v2949_v52 = vld [vmem:[%s5561_s3 + $0xa8] sm:$0xf]  ;;  %v3650_v54 = vld [vmem:[%s5561_s3 + $0xb4] sm:$0xf0] }
  0x98   :  { %1819 = vmatpush.bf16.msra.mxu0 %v2894_v57  ;;  %v3149_v57 = vld [vmem:[%s5561_s3 + $0x240] sm:$0xf] }
  0x99   :  { %1832 = vmatpush.bf16.msra.mxu1 %v3022_v63  ;;  %v2895_v63 = vld [vmem:[%s5561_s3 + $0x50] sm:$0xf0]  ;;  %v3150_v1 = vor.u32 %v3701_v58, %v3149_v57  ;;  %v2950_v58 = vor.u32 %v3650_v54, %v2949_v52  ;;  %v3093_v54 = vld [vmem:[%s5561_s3 + $0x1c8] sm:$0xf] }
  0x9a   :  { %v2898_v7 = vor.u32 %v3635_v61, %v2895_v63  ;;  %v3309_v61 = vld [vmem:[%s5561_s3 + $0x380] sm:$0xf]  ;;  %v3741_v63 = vld [vmem:[%s5561_s3 + $0x38c] sm:$0xf0] }
  0x9b   :  { %1845 = vmatpush.bf16.msra.mxu2 %v3150_v1  ;;  %v2933_v1 = vld [vmem:[%s5561_s3 + $0x88] sm:$0xf]  ;;  %v3310_v3 = vor.u32 %v3741_v63, %v3309_v61  ;;  %v3686_v61 = vld [vmem:[%s5561_s3 + $0x1d4] sm:$0xf0] }
  0x9c   :  { %1820 = vmatpush.bf16.msra.mxu0 %v2878_v2 }
  0x9d   :  { %1833 = vmatpush.bf16.msra.mxu1 %v3006_v6 }
  0xa0   :  { %1821 = vmatpush.bf16.msra.mxu0 %v2862_v15  ;;  %v3134_v15 = vor.u32 %v3697_v9, %v3133_v8  ;;  %v3293_v8 = vld [vmem:[%s5561_s3 + $0x360] sm:$0xf]  ;;  %v3737_v9 = vld [vmem:[%s5561_s3 + $0x36c] sm:$0xf0] }
  0xa1   :  { %1834 = vmatpush.bf16.msra.mxu1 %v2990_v17  ;;  %v3663_v17 = vld [vmem:[%s5561_s3 + $0x124] sm:$0xf] }
  0xa2   :  { %1846 = vmatpush.bf16.msra.mxu2 %v3134_v15  ;;  %v3010_v28 = vor.u32 %v3663_v17, %v3007_v18 }
  0xa3   :  { %v829_v45 = vpop.f32.mrf.mxu0 }
  0xa4   :  { %1866 = vmatpush.bf16.msrb.mxu0 %v2978_v16  ;;  %v830_v50 = vadd.f32 %v829_v45, %v158_v42  ;;  %v842_v51 = vpop.f32.mrf.mxu1  ;;  %v2994_v42 = vor.u32 %v3659_v30, %v2991_v34  ;;  %v3342_v45 = vor.u32 %v3749_v62, %v3341_v53  ;;  %v3261_v34 = vld [vmem:[%s5561_s3 + $0x320] sm:$0xf]  ;;  %v3690_v53 = vld [vmem:[%s5561_s3 + $0x1f4] sm:$0xf0] }
  0xa5   :  { %1879 = vmatpush.bf16.msrb.mxu1 %v3106_v22  ;;  %v2882_v22 = vor.u32 %v3631_v11, %v2879_v12  ;;  %v2917_v11 = vld [vmem:[%s5561_s3 + $0x68] sm:$0xf]  ;;  %v3642_v12 = vld [vmem:[%s5561_s3 + $0x74] sm:$0xf0] }
  0xa6   :  { %v843_v56 = vadd.f32 %v842_v51, %v830_v50  ;;  %v3745_v50 = vld [vmem:[%s5561_s3 + $0x3ac] sm:$0xf0]  ;;  %v3711_v51 = vld [vmem:[%s5561_s3 + $0x2a4] sm:$0xf] }
  0xa8   :  { %1867 = vmatpush.bf16.msrb.mxu0 %v2962_v26  ;;  %v855_v2 = vpop.f32.mrf.mxu2  ;;  %v3693_v26 = vld [vmem:[%s5561_s3 + $0x20c] sm:$0xf0] }
  0xa9   :  { %1880 = vmatpush.bf16.msrb.mxu1 %v3090_v31  ;;  %v856_v5 = vadd.f32 %v855_v2, %v843_v56  ;;  %v3118_v29 = vor.u32 %v3693_v26, %v3117_v25  ;;  %v3357_v31 = vld [vmem:[%s5561_s3 + $0x3e0] sm:$0xf]  ;;  %v3199_v56 = vld [vmem:[%s5561_s3 + $0x2b0] sm:$0xf0]  ;;  %v3646_v2 = vld [vmem:[%s5561_s3 + $0x94] sm:$0xf0] }
  0xaa   :  { %v3202_v57 = vor.u32 %v3711_v51, %v3199_v56  ;;  %v3638_v25 = vld [vmem:[%s5561_s3 + $0x54] sm:$0xf0]  ;;  %v3725_v51 = vld [vmem:[%s5561_s3 + $0x30c] sm:$0xf0]  ;;  %v3691_v56 = vld [vmem:[%s5561_s3 + $0x204] sm:$0xf] }
  0xab   :  { %v868_v6 = vpop.f32.mrf.mxu3  ;;  %v831_v13 = vpop.f32.mrf.mxu0  ;;  %1847 = vmatpush.bf16.msra.mxu2 %v3118_v29 }
  0xac   :  { %1868 = vmatpush.bf16.msrb.mxu0 %v2946_v36  ;;  %v869_v10 = vadd.f32 %v868_v6, %v856_v5  ;;  %v844_v16 = vpop.f32.mrf.mxu1  ;;  %v3358_v36 = vor.u32 %v3753_v32, %v3357_v31  ;;  %v159_v6 = vperm.slane %v4779_v35, 1  ;;  %v3294_v13 = vor.u32 %v3737_v9, %v3293_v8  ;;  %v3652_v8 = vld [vmem:[%s5561_s3 + $0xcc] sm:$0xf]  ;;  %v3747_v9 = vld [vmem:[%s5561_s3 + $0x3c4] sm:$0xf] }
  0xad   :  { %1881 = vmatpush.bf16.msrb.mxu1 %v3074_v59  ;;  %v2866_v59 = vor.u32 %v3627_v20, %v2863_v21  ;;  %v3277_v20 = vld [vmem:[%s5561_s3 + $0x340] sm:$0xf]  ;;  %v3733_v21 = vld [vmem:[%s5561_s3 + $0x34c] sm:$0xf0] }
  0xae   :  { %v1028_v19 = vmax.f32 %v869_v10, 0.0  ;;  %1853 = vmatpush.bf16.msra.mxu3 %v3358_v36  ;;  %v3703_v10 = vld [vmem:[%s5561_s3 + $0x264] sm:$0xf]  ;;  %v3278_v26 = vor.u32 %v3733_v21, %v3277_v20  ;;  %v3729_v36 = vld [vmem:[%s5561_s3 + $0x32c] sm:$0xf0] }
  0xaf   :  { %1892 = vmatpush.bf16.msrb.mxu2 %v3234_v40  ;;  %v3262_v40 = vor.u32 %v3729_v36, %v3261_v34  ;;  %v2951_v20 = vld [vmem:[%s5561_s3 + $0xb8] sm:$0xf0]  ;;  %v3061_v21 = vld [vmem:[%s5561_s3 + $0x188] sm:$0xf]  ;;  %v160_v34 = vperm.slane %v4779_v35, 2 }
  0xb0   :  { %1869 = vmatpush.bf16.msrb.mxu0 %v2930_v43  ;;  %v4872_v27 = vpack.c.bf16 %v1028_v19, %v1028_v19  ;;  %v857_v33 = vpop.f32.mrf.mxu2  ;;  %v3715_v43 = vld [vmem:[%s5561_s3 + $0x2c4] sm:$0xf]  ;;  %v2918_v19 = vor.u32 %v3642_v12, %v2917_v11  ;;  %v2967_v11 = vld [vmem:[%s5561_s3 + $0xd8] sm:$0xf0]  ;;  %v3077_v12 = vld [vmem:[%s5561_s3 + $0x1a8] sm:$0xf] }
  0xb1   :  { %1882 = vmatpush.bf16.msrb.mxu1 %v3058_v48  ;;  %v3218_v47 = vor.u32 %v3715_v43, %v3215_v46  ;;  %v2966_v48 = vor.u32 %v3654_v44, %v2965_v60  ;;  %v2902_v33 = vor.u32 %v3638_v25, %v2901_v24  ;;  %v2869_v60 = vld [vmem:[%s5561_s3 + $0x8] sm:$0xf]  ;;  %v3630_v44 = vld [vmem:[%s5561_s3 + $0x14] sm:$0xf0]  ;;  %v3739_v24 = vld [vmem:[%s5561_s3 + $0x384] sm:$0xf] }
  0xb2   :  { %1822 = vmatmul.bf16.vlgmr.msra.gmra.mxu0 %v4872_v27  ;;  %1854 = vmatpush.bf16.msra.mxu3 %v3342_v45  ;;  %v3311_v25 = vld [vmem:[%s5561_s3 + $0x390] sm:$0xf0] }
  0xb3   :  { %v870_v39 = vpop.f32.mrf.mxu3  ;;  %1893 = vmatpush.bf16.msrb.mxu2 %v3218_v47 }
  0xb4   :  { %1870 = vmatpush.bf16.msrb.mxu0 %v2914_v55  ;;  %v3326_v55 = vor.u32 %v3745_v50, %v3325_v49  ;;  %v3634_v39 = vld [vmem:[%s5561_s3 + $0x34] sm:$0xf0]  ;;  %v2983_v49 = vld [vmem:[%s5561_s3 + $0xf8] sm:$0xf0]  ;;  %v3245_v50 = vld [vmem:[%s5561_s3 + $0x300] sm:$0xf] }
  0xb5   :  { %1883 = vmatpush.bf16.msrb.mxu1 %v3042_v0  ;;  %v3707_v0 = vld [vmem:[%s5561_s3 + $0x284] sm:$0xf]  ;;  %v2886_v47 = vor.u32 %v3634_v39, %v2885_v38  ;;  %v3640_v38 = vld [vmem:[%s5561_s3 + $0x6c] sm:$0xf] }
  0xb6   :  { %1855 = vmatpush.bf16.msra.mxu3 %v3326_v55  ;;  %v3186_v5 = vor.u32 %v3707_v0, %v3183_v4  ;;  %v3246_v55 = vor.u32 %v3725_v51, %v3245_v50  ;;  %v3751_v0 = vld [vmem:[%s5561_s3 + $0x3e4] sm:$0xf]  ;;  %v2870_v4 = vor.u32 %v3630_v44, %v2869_v60  ;;  %v3013_v50 = vld [vmem:[%s5561_s3 + $0x128] sm:$0xf]  ;;  %v3666_v51 = vld [vmem:[%s5561_s3 + $0x134] sm:$0xf0] }
  0xb7   :  { %1894 = vmatpush.bf16.msrb.mxu2 %v3202_v57  ;;  %v3119_v57 = vld [vmem:[%s5561_s3 + $0x210] sm:$0xf0]  ;;  %v3735_v39 = vld [vmem:[%s5561_s3 + $0x364] sm:$0xf] }
  0xb8   :  { %1871 = vmatpush.bf16.msrb.mxu0 %v2898_v7  ;;  %v2934_v7 = vor.u32 %v3646_v2, %v2933_v1  ;;  %v3122_v63 = vor.u32 %v3691_v56, %v3119_v57  ;;  %v3359_v1 = vld [vmem:[%s5561_s3 + $0x3f0] sm:$0xf0]  ;;  %v3014_v57 = vor.u32 %v3666_v51, %v3013_v50  ;;  %v3668_v50 = vld [vmem:[%s5561_s3 + $0x14c] sm:$0xf]  ;;  %v3031_v51 = vld [vmem:[%s5561_s3 + $0x158] sm:$0xf0] }
  0xb9   :  { %1884 = vmatpush.bf16.msrb.mxu1 %v3026_v14  ;;  %v3167_v14 = vld [vmem:[%s5561_s3 + $0x270] sm:$0xf0] }
  0xba   :  { %1856 = vmatpush.bf16.msra.mxu3 %v3310_v3  ;;  %v3170_v16 = vor.u32 %v3703_v10, %v3167_v14  ;;  %v3362_v3 = vor.u32 %v3751_v0, %v3359_v1  ;;  %v3343_v10 = vld [vmem:[%s5561_s3 + $0x3d0] sm:$0xf0] }
  0xbb   :  { %1895 = vmatpush.bf16.msrb.mxu2 %v3186_v5  ;;  %v3346_v14 = vor.u32 %v3747_v9, %v3343_v10  ;;  %v3263_v0 = vld [vmem:[%s5561_s3 + $0x330] sm:$0xf0] }
  0xbc   :  { %1872 = vmatpush.bf16.msrb.mxu0 %v2882_v22  ;;  %v3699_v22 = vld [vmem:[%s5561_s3 + $0x244] sm:$0xf] }
  0xbd   :  { %1885 = vmatpush.bf16.msrb.mxu1 %v3010_v28  ;;  %v3151_v28 = vld [vmem:[%s5561_s3 + $0x250] sm:$0xf0] }
  0xbe   :  { %1857 = vmatpush.bf16.msra.mxu3 %v3294_v13  ;;  %v3154_v29 = vor.u32 %v3699_v22, %v3151_v28  ;;  %v3682_v13 = vld [vmem:[%s5561_s3 + $0x1b4] sm:$0xf0] }
  0xbf   :  { %1896 = vmatpush.bf16.msrb.mxu2 %v3170_v16  ;;  %v3327_v16 = vld [vmem:[%s5561_s3 + $0x3b0] sm:$0xf0]  ;;  %v3678_v22 = vld [vmem:[%s5561_s3 + $0x194] sm:$0xf0] }
  0xc0   :  { %1873 = vmatpush.bf16.msrb.mxu0 %v2866_v59  ;;  %v881_v15 = vpop.f32.mrf.mxu0  ;;  %v3135_v59 = vld [vmem:[%s5561_s3 + $0x230] sm:$0xf0]  ;;  %v3062_v28 = vor.u32 %v3678_v22, %v3061_v21  ;;  %v2871_v21 = vld [vmem:[%s5561_s3 + $0x18] sm:$0xf0] }
  0xc1   :  { %1886 = vmatpush.bf16.msrb.mxu1 %v2994_v42  ;;  %v882_v17 = vadd.f32 %v881_v15, %v159_v6  ;;  %v894_v18 = vpop.f32.mrf.mxu1  ;;  %v3109_v42 = vld [vmem:[%s5561_s3 + $0x1e8] sm:$0xf]  ;;  %v3138_v43 = vor.u32 %v3695_v37, %v3135_v59  ;;  %v3743_v15 = vld [vmem:[%s5561_s3 + $0x3a4] sm:$0xf]  ;;  %v2919_v59 = vld [vmem:[%s5561_s3 + $0x78] sm:$0xf0] }
  0xc2   :  { %1858 = vmatpush.bf16.msra.mxu3 %v3278_v26  ;;  %v3110_v52 = vor.u32 %v3690_v53, %v3109_v42  ;;  %v3670_v42 = vld [vmem:[%s5561_s3 + $0x154] sm:$0xf0]  ;;  %v2922_v44 = vor.u32 %v3640_v38, %v2919_v59  ;;  %v3205_v38 = vld [vmem:[%s5561_s3 + $0x2a8] sm:$0xf] }
  0xc3   :  { %1874 = vmatmul.bf16.vlgmr.msrb.gmra.mxu0 %v4872_v27  ;;  %v895_v23 = vadd.f32 %v894_v18, %v882_v17  ;;  %1897 = vmatpush.bf16.msrb.mxu2 %v3154_v29  ;;  %v2970_v17 = vor.u32 %v3652_v8, %v2967_v11  ;;  %v3078_v18 = vor.u32 %v3682_v13, %v3077_v12  ;;  %v3644_v29 = vld [vmem:[%s5561_s3 + $0x8c] sm:$0xf]  ;;  %v3111_v8 = vld [vmem:[%s5561_s3 + $0x1f8] sm:$0xf0]  ;;  %v3237_v11 = vld [vmem:[%s5561_s3 + $0x2e8] sm:$0xf] }
  0xc4   :  { %1918 = vmatpush.bf16.msra.mxu0 %v2982_v41  ;;  %v3722_v12 = vld [vmem:[%s5561_s3 + $0x2f4] sm:$0xf0] }
  0xc5   :  { %v3238_v22 = vor.u32 %v3722_v12, %v3237_v11  ;;  %v3125_v12 = vld [vmem:[%s5561_s3 + $0x208] sm:$0xf] }
  0xc6   :  { %1859 = vmatpush.bf16.msra.mxu3 %v3262_v40  ;;  %v3295_v40 = vld [vmem:[%s5561_s3 + $0x370] sm:$0xf0] }
  0xc7   :  { %1898 = vmatpush.bf16.msrb.mxu2 %v3138_v43  ;;  %v3298_v53 = vor.u32 %v3735_v39, %v3295_v40  ;;  %v3714_v39 = vld [vmem:[%s5561_s3 + $0x2b4] sm:$0xf0] }
  0xc8   :  { %1919 = vmatpush.bf16.msra.mxu0 %v2966_v48  ;;  %v907_v30 = vpop.f32.mrf.mxu2  ;;  %v883_v62 = vpop.f32.mrf.mxu0  ;;  %v3656_v48 = vld [vmem:[%s5561_s3 + $0xec] sm:$0xf]  ;;  %v3206_v59 = vor.u32 %v3714_v39, %v3205_v38  ;;  %v3207_v38 = vld [vmem:[%s5561_s3 + $0x2b8] sm:$0xf0]  ;;  %v3333_v39 = vld [vmem:[%s5561_s3 + $0x3a8] sm:$0xf] }
  0xc9   :  { %v908_v31 = vadd.f32 %v907_v30, %v895_v23  ;;  %v920_v32 = vpop.f32.mrf.mxu3  ;;  %v896_v45 = vpop.f32.mrf.mxu1  ;;  %v2986_v6 = vor.u32 %v3656_v48, %v2983_v49  ;;  %v3330_v23 = vor.u32 %v3743_v15, %v3327_v16  ;;  %v2935_v30 = vld [vmem:[%s5561_s3 + $0x98] sm:$0xf0]  ;;  %v3279_v48 = vld [vmem:[%s5561_s3 + $0x350] sm:$0xf0]  ;;  %v3723_v16 = vld [vmem:[%s5561_s3 + $0x304] sm:$0xf] }
  0xca   :  { %1860 = vmatpush.bf16.msra.mxu3 %v3246_v55  ;;  %v2938_v36 = vor.u32 %v3644_v29, %v2935_v30  ;;  %v2903_v49 = vld [vmem:[%s5561_s3 + $0x58] sm:$0xf0]  ;;  %v3718_v29 = vld [vmem:[%s5561_s3 + $0x2d4] sm:$0xf0] }
  0xcb   :  { %v921_v41 = vadd.f32 %v920_v32, %v908_v31  ;;  %1899 = vmatpush.bf16.msrb.mxu2 %v3122_v63  ;;  %v3045_v31 = vld [vmem:[%s5561_s3 + $0x168] sm:$0xf]  ;;  %v3674_v32 = vld [vmem:[%s5561_s3 + $0x174] sm:$0xf0]  ;;  %v3727_v63 = vld [vmem:[%s5561_s3 + $0x324] sm:$0xf] }
  0xcc   :  { %1920 = vmatpush.bf16.msra.mxu0 %v2950_v58  ;;  %v3046_v37 = vor.u32 %v3674_v32, %v3045_v31 }
  0xcd   :  { %v1029_v46 = vmax.f32 %v921_v41, 0.0  ;;  %v3029_v41 = vld [vmem:[%s5561_s3 + $0x148] sm:$0xf] }
  0xce   :  { %1905 = vmatpush.bf16.msrb.mxu3 %v3362_v3  ;;  %v3030_v45 = vor.u32 %v3670_v42, %v3029_v41  ;;  %v2887_v3 = vld [vmem:[%s5561_s3 + $0x38] sm:$0xf0]  ;;  %v3676_v41 = vld [vmem:[%s5561_s3 + $0x18c] sm:$0xf] }
  0xcf   :  { %v5036_v58 = vpack.c.bf16 %v1029_v46, %v1029_v46  ;;  %v3636_v46 = vld [vmem:[%s5561_s3 + $0x4c] sm:$0xf]  ;;  %v3063_v42 = vld [vmem:[%s5561_s3 + $0x198] sm:$0xf0] }
  0xd0   :  { %1921 = vmatpush.bf16.msra.mxu0 %v2934_v7  ;;  %v909_v2 = vpop.f32.mrf.mxu2  ;;  %v3094_v7 = vor.u32 %v3686_v61, %v3093_v54  ;;  %v2906_v56 = vor.u32 %v3636_v46, %v2903_v49  ;;  %v3632_v61 = vld [vmem:[%s5561_s3 + $0x2c] sm:$0xf]  ;;  %v3706_v46 = vld [vmem:[%s5561_s3 + $0x274] sm:$0xf0] }
  0xd1   :  { %1835 = vmatmul.bf16.vlgmr.msra.gmra.mxu1 %v5036_v58  ;;  %v922_v5 = vpop.f32.mrf.mxu3  ;;  %v2890_v13 = vor.u32 %v3632_v61, %v2887_v3  ;;  %v3698_v3 = vld [vmem:[%s5561_s3 + $0x234] sm:$0xf0] }
  0xd2   :  { %1931 = vmatpush.bf16.msra.mxu1 %v3110_v52  ;;  %1906 = vmatpush.bf16.msrb.mxu3 %v3346_v14  ;;  %v3662_v5 = vld [vmem:[%s5561_s3 + $0x114] sm:$0xf0] }
  0xd4   :  { %1922 = vmatpush.bf16.msra.mxu0 %v2918_v19  ;;  %v3648_v19 = vld [vmem:[%s5561_s3 + $0xac] sm:$0xf] }
  0xd5   :  { %v2954_v26 = vor.u32 %v3648_v19, %v2951_v20  ;;  %v3628_v20 = vld [vmem:[%s5561_s3 + $0xc] sm:$0xf] }
  0xd6   :  { %1932 = vmatpush.bf16.msra.mxu1 %v3094_v7  ;;  %1907 = vmatpush.bf16.msrb.mxu3 %v3330_v23  ;;  %v3688_v7 = vld [vmem:[%s5561_s3 + $0x1ec] sm:$0xf]  ;;  %v2874_v30 = vor.u32 %v3628_v20, %v2871_v21  ;;  %v3754_v20 = vld [vmem:[%s5561_s3 + $0x3f4] sm:$0xf0] }
  0xd7   :  { %v3114_v19 = vor.u32 %v3688_v7, %v3111_v8  ;;  %v3684_v23 = vld [vmem:[%s5561_s3 + $0x1cc] sm:$0xf]  ;;  %v2999_v8 = vld [vmem:[%s5561_s3 + $0x118] sm:$0xf0] }
  0xd8   :  { %1923 = vmatpush.bf16.msra.mxu0 %v2902_v33  ;;  %v3314_v33 = vor.u32 %v3739_v24, %v3311_v25  ;;  %v3095_v24 = vld [vmem:[%s5561_s3 + $0x1d8] sm:$0xf0]  ;;  %v3660_v7 = vld [vmem:[%s5561_s3 + $0x10c] sm:$0xf] }
  0xd9   :  { %v3098_v32 = vor.u32 %v3684_v23, %v3095_v24 }
  0xda   :  { %1933 = vmatpush.bf16.msra.mxu1 %v3078_v18  ;;  %1908 = vmatpush.bf16.msrb.mxu3 %v3314_v33 }
  0xdc   :  { %1924 = vmatpush.bf16.msra.mxu0 %v2886_v47  ;;  %v3731_v47 = vld [vmem:[%s5561_s3 + $0x344] sm:$0xf] }
  0xdd   :  { %v3282_v52 = vor.u32 %v3731_v47, %v3279_v48  ;;  %v161_v47 = vperm.slane %v4779_v35, 3  ;;  %v3702_v35 = vld [vmem:[%s5561_s3 + $0x254] sm:$0xf0] }
  0xde   :  { %1934 = vmatpush.bf16.msra.mxu1 %v3062_v28  ;;  %1909 = vmatpush.bf16.msrb.mxu3 %v3298_v53  ;;  %v3221_v28 = vld [vmem:[%s5561_s3 + $0x2c8] sm:$0xf] }
  0xdf   :  { %v3189_v53 = vld [vmem:[%s5561_s3 + $0x288] sm:$0xf] }
  0xe0   :  { %1925 = vmatpush.bf16.msra.mxu0 %v2870_v4  ;;  %v933_v62 = vpop.f32.mrf.mxu0  ;;  %v2997_v4 = vld [vmem:[%s5561_s3 + $0x108] sm:$0xf] }
  0xe1   :  { %1887 = vmatmul.bf16.vlgmr.msrb.gmra.mxu1 %v5036_v58  ;;  %v934_v43 = vadd.f32 %v933_v62, %v160_v34  ;;  %v946_v60 = vpop.f32.mrf.mxu1  ;;  %v2998_v14 = vor.u32 %v3662_v5, %v2997_v4  ;;  %v3222_v34 = vor.u32 %v3718_v29, %v3221_v28  ;;  %v3710_v62 = vld [vmem:[%s5561_s3 + $0x294] sm:$0xf0]  ;;  %v3223_v28 = vld [vmem:[%s5561_s3 + $0x2d8] sm:$0xf0] }
  0xe2   :  { %1935 = vmatpush.bf16.msra.mxu1 %v3046_v37  ;;  %1910 = vmatpush.bf16.msrb.mxu3 %v3282_v52  ;;  %v3079_v37 = vld [vmem:[%s5561_s3 + $0x1b8] sm:$0xf0] }
  0xe3   :  { %1926 = vmatmul.bf16.vlgmr.msra.gmra.mxu0 %v4872_v27  ;;  %v947_v54 = vadd.f32 %v946_v60, %v934_v43  ;;  %v3066_v43 = vor.u32 %v3676_v41, %v3063_v42  ;;  %v3190_v60 = vor.u32 %v3710_v62, %v3189_v53  ;;  %v3708_v41 = vld [vmem:[%s5561_s3 + $0x28c] sm:$0xf]  ;;  %v3191_v42 = vld [vmem:[%s5561_s3 + $0x298] sm:$0xf0]  ;;  %v3317_v53 = vld [vmem:[%s5561_s3 + $0x388] sm:$0xf] }
  0xe4   :  { %1970 = vmatpush.bf16.msrb.mxu0 %v2986_v6  ;;  %v3266_v6 = vor.u32 %v3727_v63, %v3263_v0  ;;  %v3664_v63 = vld [vmem:[%s5561_s3 + $0x12c] sm:$0xf]  ;;  %v3015_v0 = vld [vmem:[%s5561_s3 + $0x138] sm:$0xf0]  ;;  %v3742_v62 = vld [vmem:[%s5561_s3 + $0x394] sm:$0xf0] }
  0xe5   :  { %v3018_v4 = vor.u32 %v3664_v63, %v3015_v0 }
  0xe6   :  { %1936 = vmatpush.bf16.msra.mxu1 %v3030_v45  ;;  %1911 = vmatpush.bf16.msrb.mxu3 %v3266_v6  ;;  %v3173_v45 = vld [vmem:[%s5561_s3 + $0x268] sm:$0xf] }
  0xe7   :  { %v3174_v49 = vor.u32 %v3706_v46, %v3173_v45  ;;  %v3301_v45 = vld [vmem:[%s5561_s3 + $0x368] sm:$0xf]  ;;  %v3738_v46 = vld [vmem:[%s5561_s3 + $0x374] sm:$0xf0] }
  0xe8   :  { %1971 = vmatpush.bf16.msrb.mxu0 %v2970_v17  ;;  %v959_v55 = vpop.f32.mrf.mxu2  ;;  %v935_v10 = vpop.f32.mrf.mxu0  ;;  %v3247_v17 = vld [vmem:[%s5561_s3 + $0x310] sm:$0xf0] }
  0xe9   :  { %v960_v1 = vadd.f32 %v959_v55, %v947_v54  ;;  %v972_v2 = vpop.f32.mrf.mxu3  ;;  %v948_v15 = vpop.f32.mrf.mxu1  ;;  %v3250_v25 = vor.u32 %v3723_v16, %v3247_v17  ;;  %v3157_v54 = vld [vmem:[%s5561_s3 + $0x248] sm:$0xf]  ;;  %v3239_v16 = vld [vmem:[%s5561_s3 + $0x2f8] sm:$0xf0] }
  0xea   :  { %1937 = vmatpush.bf16.msra.mxu1 %v3014_v57  ;;  %v3034_v57 = vor.u32 %v3668_v50, %v3031_v51  ;;  %v3158_v61 = vor.u32 %v3702_v35, %v3157_v54  ;;  %v3720_v15 = vld [vmem:[%s5561_s3 + $0x2ec] sm:$0xf]  ;;  %v3159_v50 = vld [vmem:[%s5561_s3 + $0x258] sm:$0xf0]  ;;  %v3285_v51 = vld [vmem:[%s5561_s3 + $0x348] sm:$0xf] }
  0xeb   :  { %v973_v9 = vadd.f32 %v972_v2, %v960_v1  ;;  %1912 = vmatpush.bf16.msrb.mxu3 %v3250_v25  ;;  %v3141_v2 = vld [vmem:[%s5561_s3 + $0x228] sm:$0xf]  ;;  %v3242_v23 = vor.u32 %v3720_v15, %v3239_v16  ;;  %v3716_v25 = vld [vmem:[%s5561_s3 + $0x2cc] sm:$0xf] }
  0xec   :  { %1972 = vmatpush.bf16.msrb.mxu0 %v2954_v26  ;;  %v3142_v6 = vor.u32 %v3698_v3, %v3141_v2  ;;  %v3127_v2 = vld [vmem:[%s5561_s3 + $0x218] sm:$0xf0]  ;;  %v3253_v3 = vld [vmem:[%s5561_s3 + $0x308] sm:$0xf] }
  0xed   :  { %v1030_v18 = vmax.f32 %v973_v9, 0.0 }
  0xee   :  { %1938 = vmatpush.bf16.msra.mxu1 %v2998_v14 }
  0xef   :  { %v5189_v26 = vpack.c.bf16 %v1030_v18, %v1030_v18  ;;  %v3002_v18 = vor.u32 %v3660_v7, %v2999_v8 }
  0xf0   :  { %1973 = vmatpush.bf16.msrb.mxu0 %v2938_v36  ;;  %v961_v31 = vpop.f32.mrf.mxu2  ;;  %v3680_v36 = vld [vmem:[%s5561_s3 + $0x1ac] sm:$0xf] }
  0xf1   :  { %1848 = vmatmul.bf16.vlgmr.msra.gmra.mxu2 %v5189_v26  ;;  %v974_v33 = vpop.f32.mrf.mxu3  ;;  %1939 = vmatmul.bf16.vlgmr.msra.gmra.mxu1 %v5036_v58  ;;  %v3082_v40 = vor.u32 %v3680_v36, %v3079_v37  ;;  %v3750_v31 = vld [vmem:[%s5561_s3 + $0x3d4] sm:$0xf0]  ;;  %v3712_v37 = vld [vmem:[%s5561_s3 + $0x2ac] sm:$0xf] }
  0xf2   :  { %1983 = vmatpush.bf16.msrb.mxu1 %v3114_v19  ;;  %1944 = vmatpush.bf16.msra.mxu2 %v3238_v22  ;;  %v3365_v19 = vld [vmem:[%s5561_s3 + $0x3e8] sm:$0xf] }
  0xf3   :  { %v3366_v24 = vor.u32 %v3754_v20, %v3365_v19  ;;  %v3736_v19 = vld [vmem:[%s5561_s3 + $0x36c] sm:$0xf]  ;;  %v3303_v20 = vld [vmem:[%s5561_s3 + $0x378] sm:$0xf0] }
  0xf4   :  { %1974 = vmatpush.bf16.msrb.mxu0 %v2922_v44  ;;  %v3672_v44 = vld [vmem:[%s5561_s3 + $0x16c] sm:$0xf] }
  0xf6   :  { %1984 = vmatpush.bf16.msrb.mxu1 %v3098_v32  ;;  %1945 = vmatpush.bf16.msra.mxu2 %v3222_v34  ;;  %v3226_v34 = vor.u32 %v3716_v25, %v3223_v28  ;;  %v3728_v28 = vld [vmem:[%s5561_s3 + $0x32c] sm:$0xf] }
  0xf8   :  { %1975 = vmatpush.bf16.msrb.mxu0 %v2906_v56 }
  0xfa   :  { %1985 = vmatpush.bf16.msrb.mxu1 %v3082_v40  ;;  %1946 = vmatpush.bf16.msra.mxu2 %v3206_v59  ;;  %v3746_v40 = vld [vmem:[%s5561_s3 + $0x3b4] sm:$0xf0] }
  0xfb   :  { %v3334_v59 = vor.u32 %v3746_v40, %v3333_v39 }
  0xfc   :  { %1976 = vmatpush.bf16.msrb.mxu0 %v2890_v13  ;;  %v3694_v13 = vld [vmem:[%s5561_s3 + $0x214] sm:$0xf0] }
  0xfd   :  { %v3126_v21 = vor.u32 %v3694_v13, %v3125_v12  ;;  %v3744_v13 = vld [vmem:[%s5561_s3 + $0x3ac] sm:$0xf] }
  0xfe   :  { %1986 = vmatpush.bf16.msrb.mxu1 %v3066_v43  ;;  %1947 = vmatpush.bf16.msra.mxu2 %v3190_v60  ;;  %v3194_v43 = vor.u32 %v3708_v41, %v3191_v42  ;;  %v3318_v60 = vor.u32 %v3742_v62, %v3317_v53  ;;  %v3760_v41 = vld [vmem:[%s5563_s5 + $0x28] sm:$0xff]  ;;  %v3759_v53 = vld [vmem:[%s5563_s5 + $0x20] sm:$0xff]  ;;  %v3770_v62 = vld [vmem:[%s5563_s5 + $0x78] sm:$0xff] }
 0x100   :  { %1977 = vmatpush.bf16.msrb.mxu0 %v2874_v30  ;;  %v985_v52 = vpop.f32.mrf.mxu0  ;;  %v3349_v30 = vld [vmem:[%s5561_s3 + $0x3c8] sm:$0xf] }
 0x101   :  { %v986_v55 = vadd.f32 %v985_v52, %v161_v47  ;;  %v998_v56 = vpop.f32.mrf.mxu1  ;;  %1900 = vmatmul.bf16.vlgmr.msrb.gmra.mxu2 %v5189_v26  ;;  %v3350_v36 = vor.u32 %v3750_v31, %v3349_v30  ;;  %v3734_v52 = vld [vmem:[%s5561_s3 + $0x354] sm:$0xf0]  ;;  %v3271_v30 = vld [vmem:[%s5561_s3 + $0x338] sm:$0xf0] }
 0x102   :  { %1948 = vmatpush.bf16.msra.mxu2 %v3174_v49  ;;  %v3700_v49 = vld [vmem:[%s5561_s3 + $0x24c] sm:$0xf]  ;;  %v3286_v35 = vor.u32 %v3734_v52, %v3285_v51  ;;  %v3274_v31 = vor.u32 %v3728_v28, %v3271_v30  ;;  %v3767_v51 = vld [vmem:[%s5563_s5 + $0x60] sm:$0xff] }
 0x103   :  { %1978 = vmatmul.bf16.vlgmr.msrb.gmra.mxu0 %v4872_v27  ;;  %v3047_v27 = vld [vmem:[%s5561_s3 + $0x178] sm:$0xf0]  ;;  %v999_v1 = vadd.f32 %v998_v56, %v986_v55  ;;  %v3162_v54 = vor.u32 %v3700_v49, %v3159_v50  ;;  %v3696_v55 = vld [vmem:[%s5561_s3 + $0x22c] sm:$0xf]  ;;  %v3755_v50 = vld [vmem:[%s5563_s5] sm:$0xff] }
 0x104   :  { %v3050_v48 = vor.u32 %v3672_v44, %v3047_v27  ;;  %v3704_v44 = vld [vmem:[%s5561_s3 + $0x26c] sm:$0xf]  ;;  %v3175_v27 = vld [vmem:[%s5561_s3 + $0x278] sm:$0xf0] }
 0x105   :  { %v3178_v47 = vor.u32 %v3704_v44, %v3175_v27  ;;  %v3143_v56 = vld [vmem:[%s5561_s3 + $0x238] sm:$0xf0]  ;;  %v3757_v44 = vld [vmem:[%s5563_s5 + $0x10] sm:$0xff] }
 0x106   :  { %1987 = vmatpush.bf16.msrb.mxu1 %v3050_v48  ;;  %1949 = vmatpush.bf16.msra.mxu2 %v3158_v61  ;;  %v3302_v48 = vor.u32 %v3738_v46, %v3301_v45  ;;  %v3730_v61 = vld [vmem:[%s5561_s3 + $0x334] sm:$0xf0]  ;;  %v3146_v63 = vor.u32 %v3696_v55, %v3143_v56  ;;  %v3769_v27 = vld [vmem:[%s5563_s5 + $0x70] sm:$0xff]  ;;  %v3756_v46 = vld [vmem:[%s5563_s5 + $0x8] sm:$0xff] }
 0x108   :  { %v1011_v5 = vpop.f32.mrf.mxu2  ;;  %v987_v11 = vpop.f32.mrf.mxu0 }
 0x109   :  { %v1012_v9 = vadd.f32 %v1011_v5, %v999_v1  ;;  %v1024_v10 = vpop.f32.mrf.mxu3  ;;  %v1000_v14 = vpop.f32.mrf.mxu1  ;;  %v3692_v1 = vld [vmem:[%s5561_s3 + $0x20c] sm:$0xf]  ;;  %v3351_v11 = vld [vmem:[%s5561_s3 + $0x3d8] sm:$0xf0] }
 0x10a   :  { %1988 = vmatpush.bf16.msrb.mxu1 %v3034_v57  ;;  %1950 = vmatpush.bf16.msra.mxu2 %v3142_v6  ;;  %v3269_v57 = vld [vmem:[%s5561_s3 + $0x328] sm:$0xf]  ;;  %v3752_v5 = vld [vmem:[%s5561_s3 + $0x3ec] sm:$0xf]  ;;  %v3367_v6 = vld [vmem:[%s5561_s3 + $0x3f8] sm:$0xf0]  ;;  %v3130_v7 = vor.u32 %v3692_v1, %v3127_v2 }
 0x10b   :  { %v1025_v17 = vadd.f32 %v1024_v10, %v1012_v9  ;;  %v3270_v0 = vor.u32 %v3730_v61, %v3269_v57  ;;  %v3370_v9 = vor.u32 %v3752_v5, %v3367_v6  ;;  %v3748_v10 = vld [vmem:[%s5561_s3 + $0x3cc] sm:$0xf]  ;;  %v3335_v14 = vld [vmem:[%s5561_s3 + $0x3b8] sm:$0xf0]  ;;  %v3765_v57 = vld [vmem:[%s5563_s5 + $0x50] sm:$0xff] }
 0x10c   :  { %v3354_v12 = vor.u32 %v3748_v10, %v3351_v11  ;;  %v3338_v15 = vor.u32 %v3744_v13, %v3335_v14  ;;  %v3777_v61 = vld [vmem:[%s5563_s5 + $0xb0] sm:$0xff]  ;;  %v5498_v1 = vld [vmem:[%s5565_s4] sm:$0xf]  ;;  %v3774_v6 = vld [vmem:[%s5563_s5 + $0x98] sm:$0xff] }
 0x10d   :  { %v1031_v22 = vmax.f32 %v1025_v17, 0.0  ;;  %v3740_v17 = vld [vmem:[%s5561_s3 + $0x38c] sm:$0xf]  ;;  %v1166_v5 = vperm.slane %v5498_v1, 0 }
 0x10e   :  { %1989 = vmatpush.bf16.msrb.mxu1 %v3018_v4  ;;  %1951 = vmatpush.bf16.msra.mxu2 %v3126_v21  ;;  %v3726_v4 = vld [vmem:[%s5561_s3 + $0x314] sm:$0xf0]  ;;  %v3306_v21 = vor.u32 %v3736_v19, %v3303_v20  ;;  %v3772_v13 = vld [vmem:[%s5563_s5 + $0x88] sm:$0xff] }
 0x10f   :  { %v5292_v29 = vpack.c.bf16 %v1031_v22, %v1031_v22  ;;  %v3254_v8 = vor.u32 %v3726_v4, %v3253_v3  ;;  %v3763_v3 = vld [vmem:[%s5563_s5 + $0x40] sm:$0xff]  ;;  %v3786_v19 = vld [vmem:[%s5563_s5 + $0xf8] sm:$0xff] }
 0x110   :  { %v1013_v32 = vpop.f32.mrf.mxu2  ;;  %v3775_v4 = vld [vmem:[%s5563_s5 + $0xa0] sm:$0xff] }
 0x111   :  { %v1026_v33 = vpop.f32.mrf.mxu3  ;;  %1861 = vmatmul.bf16.vlgmr.msra.gmra.mxu3 %v5292_v29  ;;  %1952 = vmatmul.bf16.vlgmr.msra.gmra.mxu2 %v5189_v26 }
 0x112   :  { %1990 = vmatpush.bf16.msrb.mxu1 %v3002_v18  ;;  %1996 = vmatpush.bf16.msrb.mxu2 %v3242_v23  ;;  %v3732_v23 = vld [vmem:[%s5561_s3 + $0x34c] sm:$0xf] }
 0x113   :  { %1957 = vmatpush.bf16.msra.mxu3 %v3366_v24  ;;  %v3287_v24 = vld [vmem:[%s5561_s3 + $0x358] sm:$0xf0]  ;;  %v3724_v33 = vld [vmem:[%s5561_s3 + $0x30c] sm:$0xf] }
 0x114   :  { %v3290_v25 = vor.u32 %v3732_v23, %v3287_v24  ;;  %v3784_v24 = vld [vmem:[%s5563_s5 + $0xe8] sm:$0xff] }
 0x115   :  { %1991 = vmatmul.bf16.vlgmr.msrb.gmra.mxu1 %v5036_v58  ;;  %v3210_v58 = vor.u32 %v3712_v37, %v3207_v38 }
 0x116   :  { %1997 = vmatpush.bf16.msrb.mxu2 %v3226_v34  ;;  %v3255_v34 = vld [vmem:[%s5561_s3 + $0x318] sm:$0xf0]  ;;  %2303 = vmatpush.bf16.msra.mxu1 %v3770_v62 }
 0x117   :  { %1958 = vmatpush.bf16.msra.mxu3 %v3350_v36  ;;  %v3258_v36 = vor.u32 %v3724_v33, %v3255_v34 }
 0x11a   :  { %1998 = vmatpush.bf16.msrb.mxu2 %v3210_v58  ;;  %v3762_v58 = vld [vmem:[%s5563_s5 + $0x38] sm:$0xff]  ;;  %2304 = vmatpush.bf16.msra.mxu1 %v3769_v27 }
 0x11b   :  { %1959 = vmatpush.bf16.msra.mxu3 %v3334_v59  ;;  %2290 = vmatpush.bf16.msra.mxu0 %v3762_v58  ;;  %v3761_v59 = vld [vmem:[%s5563_s5 + $0x30] sm:$0xff]  ;;  %v1168_v58 = vperm.slane %v5498_v1, 2 }
 0x11e   :  { %1999 = vmatpush.bf16.msrb.mxu2 %v3194_v43  ;;  %v3758_v43 = vld [vmem:[%s5563_s5 + $0x18] sm:$0xff] }
 0x11f   :  { %1960 = vmatpush.bf16.msra.mxu3 %v3318_v60  ;;  %2291 = vmatpush.bf16.msra.mxu0 %v3761_v59 }
 0x121   :  { %1913 = vmatmul.bf16.vlgmr.msrb.gmra.mxu3 %v5292_v29 }
 0x122   :  { %2000 = vmatpush.bf16.msrb.mxu2 %v3178_v47  ;;  %v3768_v47 = vld [vmem:[%s5563_s5 + $0x68] sm:$0xff] }
 0x123   :  { %1961 = vmatpush.bf16.msra.mxu3 %v3302_v48  ;;  %2292 = vmatpush.bf16.msra.mxu0 %v3760_v41 }
 0x124   :  { %2305 = vmatpush.bf16.msra.mxu1 %v3768_v47 }
 0x126   :  { %2001 = vmatpush.bf16.msrb.mxu2 %v3162_v54  ;;  %v3766_v54 = vld [vmem:[%s5563_s5 + $0x58] sm:$0xff] }
 0x127   :  { %1962 = vmatpush.bf16.msra.mxu3 %v3286_v35  ;;  %2293 = vmatpush.bf16.msra.mxu0 %v3759_v53  ;;  %v3778_v35 = vld [vmem:[%s5563_s5 + $0xb8] sm:$0xff] }
 0x128   :  { %2306 = vmatpush.bf16.msra.mxu1 %v3767_v51 }
 0x12a   :  { %2002 = vmatpush.bf16.msrb.mxu2 %v3146_v63  ;;  %v3764_v63 = vld [vmem:[%s5563_s5 + $0x48] sm:$0xff] }
 0x12b   :  { %1963 = vmatpush.bf16.msra.mxu3 %v3270_v0  ;;  %2294 = vmatpush.bf16.msra.mxu0 %v3758_v43  ;;  %v3776_v0 = vld [vmem:[%s5563_s5 + $0xa8] sm:$0xff]  ;;  %v3779_v43 = vld [vmem:[%s5563_s5 + $0xc0] sm:$0xff] }
 0x12c   :  { %2307 = vmatpush.bf16.msra.mxu1 %v3766_v54 }
 0x12e   :  { %2003 = vmatpush.bf16.msrb.mxu2 %v3130_v7 }
 0x12f   :  { %1964 = vmatpush.bf16.msra.mxu3 %v3254_v8  ;;  %v5396_v16 = vpop.f32.mrf.mxu0  ;;  %2295 = vmatpush.bf16.msra.mxu0 %v3757_v44  ;;  %v3773_v8 = vld [vmem:[%s5563_s5 + $0x90] sm:$0xff] }
 0x130   :  { %2308 = vmatpush.bf16.msra.mxu1 %v3765_v57  ;;  %v1824_v7 = vadd.f32 %v5396_v16, %v1166_v5 }
 0x131   :  { %2004 = vmatmul.bf16.vlgmr.msrb.gmra.mxu2 %v5189_v26  ;;  %v3319_v26 = vld [vmem:[%s5561_s3 + $0x398] sm:$0xf0] }
 0x132   :  { %1965 = vmatmul.bf16.vlgmr.msra.gmra.mxu3 %v5292_v29  ;;  %v3322_v18 = vor.u32 %v3740_v17, %v3319_v26  ;;  %2316 = vmatpush.bf16.msra.mxu2 %v3778_v35 }
 0x133   :  { %2009 = vmatpush.bf16.msrb.mxu3 %v3370_v9  ;;  %2296 = vmatpush.bf16.msra.mxu0 %v3756_v46 }
 0x134   :  { %2309 = vmatpush.bf16.msra.mxu1 %v3764_v63 }
 0x136   :  { %2317 = vmatpush.bf16.msra.mxu2 %v3777_v61 }
 0x137   :  { %2010 = vmatpush.bf16.msrb.mxu3 %v3354_v12  ;;  %v1825_v22 = vpop.f32.mrf.mxu0  ;;  %2297 = vmatpush.bf16.msra.mxu0 %v3755_v50 }
 0x138   :  { %2310 = vmatpush.bf16.msra.mxu1 %v3763_v3  ;;  %v3785_v22 = vld [vmem:[%s5563_s5 + $0xf0] sm:$0xff] }
 0x13a   :  { %2318 = vmatpush.bf16.msra.mxu2 %v3776_v0 }
 0x13b   :  { %2011 = vmatpush.bf16.msrb.mxu3 %v3338_v15 }
 0x13e   :  { %2319 = vmatpush.bf16.msra.mxu2 %v3775_v4 }
 0x13f   :  { %2012 = vmatpush.bf16.msrb.mxu3 %v3322_v18  ;;  %v3771_v18 = vld [vmem:[%s5563_s5 + $0x80] sm:$0xff] }
 0x140   :  { %v5422_v32 = vpop.f32.mrf.mxu0 }
 0x142   :  { %2320 = vmatpush.bf16.msra.mxu2 %v3774_v6 }
 0x143   :  { %2013 = vmatpush.bf16.msrb.mxu3 %v3306_v21  ;;  %v1167_v21 = vperm.slane %v5498_v1, 1 }
 0x145   :  { %v1876_v28 = vadd.f32 %v5422_v32, %v1167_v21  ;;  %v3781_v32 = vld [vmem:[%s5563_s5 + $0xd0] sm:$0xff] }
 0x146   :  { %2321 = vmatpush.bf16.msra.mxu2 %v3773_v8 }
 0x147   :  { %2014 = vmatpush.bf16.msrb.mxu3 %v3290_v25 }
 0x148   :  { %v1877_v37 = vpop.f32.mrf.mxu0 }
 0x149   :  { %v3782_v37 = vld [vmem:[%s5563_s5 + $0xd8] sm:$0xff] }
 0x14a   :  { %2322 = vmatpush.bf16.msra.mxu2 %v3772_v13 }
 0x14b   :  { %2015 = vmatpush.bf16.msrb.mxu3 %v3274_v31  ;;  %v3783_v31 = vld [vmem:[%s5563_s5 + $0xe0] sm:$0xff] }
 0x14e   :  { %v5431_v38 = vpop.f32.mrf.mxu1  ;;  %2323 = vmatpush.bf16.msra.mxu2 %v3771_v18 }
 0x14f   :  { %2016 = vmatpush.bf16.msrb.mxu3 %v3258_v36  ;;  %v1837_v11 = vadd.f32 %v5431_v38, %v1824_v7 }
 0x152   :  { %2017 = vmatmul.bf16.vlgmr.msrb.gmra.mxu3 %v5292_v29 }
 0x153   :  { %2329 = vmatpush.bf16.msra.mxu3 %v3786_v19 }
 0x156   :  { %v1838_v40 = vpop.f32.mrf.mxu1 }
 0x157   :  { %2330 = vmatpush.bf16.msra.mxu3 %v3785_v22 }
 0x15b   :  { %2331 = vmatpush.bf16.msra.mxu3 %v3784_v24 }
 0x15e   :  { %v5444_v42 = vpop.f32.mrf.mxu1 }
 0x15f   :  { %v1889_v30 = vadd.f32 %v5444_v42, %v1876_v28  ;;  %2332 = vmatpush.bf16.msra.mxu3 %v3783_v31 }
 0x160   :  { %v5433_v39 = vpop.f32.mrf.mxu0 }
 0x161   :  { %v1928_v41 = vadd.f32 %v5433_v39, %v1168_v58 }
 0x163   :  { %2333 = vmatpush.bf16.msra.mxu3 %v3782_v37 }
 0x166   :  { %v1890_v60 = vpop.f32.mrf.mxu1 }
 0x167   :  { %2334 = vmatpush.bf16.msra.mxu3 %v3781_v32 }
 0x168   :  { %v1929_v29 = vpop.f32.mrf.mxu0 }
 0x169   :  { %v3780_v29 = vld [vmem:[%s5563_s5 + $0xc8] sm:$0xff] }
 0x16b   :  { %2335 = vmatpush.bf16.msra.mxu3 %v3780_v29 }
 0x16e   :  { %v5461_v45 = vpop.f32.mrf.mxu1 }
 0x16f   :  { %v1941_v42 = vadd.f32 %v5461_v45, %v1928_v41  ;;  %2336 = vmatpush.bf16.msra.mxu3 %v3779_v43 }
 0x174   :  { %v1849_v49 = vpop.f32.mrf.mxu2 }
 0x175   :  { %v1850_v12 = vadd.f32 %v1849_v49, %v1837_v11  ;;  %v1169_v49 = vperm.slane %v5498_v1, 3  ;;  %v3787_v1 = vld [vmem:[%s5564_s6] ss:$0 sm:$0xff] }
 0x176   :  { %v1942_v52 = vpop.f32.mrf.mxu1 }
 0x17c   :  { %v1851_v56 = vpop.f32.mrf.mxu2 }
 0x180   :  { %v5469_v48 = vpop.f32.mrf.mxu0 }
 0x181   :  { %v1980_v50 = vadd.f32 %v5469_v48, %v1169_v49 }
 0x184   :  { %v1901_v2 = vpop.f32.mrf.mxu2 }
 0x185   :  { %v1902_v33 = vadd.f32 %v1901_v2, %v1889_v30 }
 0x188   :  { %v1981_v55 = vpop.f32.mrf.mxu0 }
 0x18c   :  { %v1903_v9 = vpop.f32.mrf.mxu2 }
 0x192   :  { %v1992_v10 = vpop.f32.mrf.mxu1 }
 0x193   :  { %v1993_v45 = vadd.f32 %v1992_v10, %v1980_v50 }
 0x194   :  { %v1862_v14 = vpop.f32.mrf.mxu3  ;;  %v1953_v17 = vpop.f32.mrf.mxu2 }
 0x195   :  { %v1863_v15 = vadd.f32 %v1862_v14, %v1850_v12  ;;  %v1954_v53 = vadd.f32 %v1953_v17, %v1941_v42 }
 0x197   :  { %v2022_v16 = vmax.f32 %v1863_v15, 0.0 }
 0x199   :  { %v2026_v20 = vpack.c.bf16 %v2022_v16, %v2022_v16 }
 0x19a   :  { %v1994_v26 = vpop.f32.mrf.mxu1 }
 0x19b   :  { %2298 = vmatmul.bf16.vlgmr.msra.gmra.mxu0 %v2026_v20 }
 0x19c   :  { %v1864_v23 = vpop.f32.mrf.mxu3  ;;  %v1955_v25 = vpop.f32.mrf.mxu2 }
 0x1a4   :  { %v1914_v34 = vpop.f32.mrf.mxu3 }
 0x1a5   :  { %v1915_v36 = vadd.f32 %v1914_v34, %v1902_v33 }
 0x1a7   :  { %v2023_v38 = vmax.f32 %v1915_v36, 0.0 }
 0x1a9   :  { %v2027_v40 = vpack.c.bf16 %v2023_v38, %v2023_v38 }
 0x1ab   :  { %2311 = vmatmul.bf16.vlgmr.msra.gmra.mxu1 %v2027_v40 }
 0x1ac   :  { %v1916_v59 = vpop.f32.mrf.mxu3 }
 0x1b4   :  { %v2005_v62 = vpop.f32.mrf.mxu2 }
 0x1b5   :  { %v1966_v60 = vpop.f32.mrf.mxu3  ;;  %v2006_v51 = vadd.f32 %v2005_v62, %v1993_v45 }
 0x1b6   :  { %v1967_v44 = vadd.f32 %v1966_v60, %v1954_v53 }
 0x1b8   :  { %v2024_v27 = vmax.f32 %v1967_v44, 0.0 }
 0x1ba   :  { %v2028_v46 = vpack.c.bf16 %v2024_v27, %v2024_v27 }
 0x1bc   :  { %v2007_v47 = vpop.f32.mrf.mxu2  ;;  %2324 = vmatmul.bf16.vlgmr.msra.gmra.mxu2 %v2028_v46 }
 0x1bd   :  { %v1968_v39 = vpop.f32.mrf.mxu3 }
 0x1d5   :  { %v2018_v52 = vpop.f32.mrf.mxu3 }
 0x1d6   :  { %v2019_v54 = vadd.f32 %v2018_v52, %v2006_v51 }
 0x1d8   :  { %v2025_v35 = vmax.f32 %v2019_v54, 0.0 }
 0x1da   :  { %v2029_v55 = vpack.c.bf16 %v2025_v35, %v2025_v35 }
 0x1dc   :  { %2337 = vmatmul.bf16.vlgmr.msra.gmra.mxu3 %v2029_v55 }
 0x1dd   :  { %v2020_v56 = vpop.f32.mrf.mxu3 }
 0x218   :  { %v2299_v57 = vpop.f32.mrf.mxu0 }
 0x219   :  { %v2300_v4 = vadd.f32 %v3787_v1, %v2299_v57 }
 0x220   :  { %v2301_v61 = vpop.f32.mrf.mxu0 }
 0x228   :  { %v2312_v63 = vpop.f32.mrf.mxu1 }
 0x229   :  { %v2313_v48 = vadd.f32 %v2312_v63, %v2300_v4 }
 0x230   :  { %v2314_v0 = vpop.f32.mrf.mxu1 }
 0x23f   :  { %v2325_v2 = vpop.f32.mrf.mxu2 }
 0x240   :  { %v2326_v5 = vadd.f32 %v2325_v2, %v2313_v48 }
 0x247   :  { %v2327_v3 = vpop.f32.mrf.mxu2 }
 0x25f   :  { %v2338_v6 = vpop.f32.mrf.mxu3 }
 0x260   :  { %v2339_v7 = vadd.f32 %v2338_v6, %v2326_v5 }
 0x262   :  { %2342 = vst [vmem:[%s5566_s7] sm:$0xff] %v2339_v7 }
 0x267   :  { %v2340_v8 = vpop.f32.mrf.mxu3 }

</bundles_post_ra>
